<compile_context>
chip_gen: v6e
topology: v6e:2x2x1
jax: 0.10.0
libtpu: 0.0.40
codegen_flags: <defaults>
</compile_context>

<pallas_src>
import functools

import jax
import jax.numpy as jnp
from jax.experimental import pallas as pl
from jax.experimental.pallas import tpu as pltpu

EPS = 1e-5        # nn.BatchNorm2d default eps
LANES = 128


# ---------------------------------------------------------------------------
# Compiler params (generation-aware VMEM limit)
# ---------------------------------------------------------------------------
@functools.lru_cache(maxsize=None)
def _vmem_limit_bytes():
    cap = 64 * 1024 * 1024
    try:
        info = pltpu.get_tpu_info()
        cap = int(getattr(info, "vmem_capacity_bytes", cap))
    except Exception:
        pass
    # ~3/4 of physical VMEM, capped at 96 MiB (v5e/v6e -> 96 MiB, v7x -> 48 MiB).
    return max(32 * 1024 * 1024, min(3 * cap // 4, 96 * 1024 * 1024))


def _mosaic():
    return pltpu.CompilerParams(
        dimension_semantics=("parallel",),
        vmem_limit_bytes=_vmem_limit_bytes())


# ---------------------------------------------------------------------------
# Kernels
# ---------------------------------------------------------------------------
def _round_and_stats(z_f32):
    """bf16-round z for storage + per-tile (mean, M2) stats in f32 (Chan partials)."""
    zb = z_f32.astype(jnp.bfloat16)
    zf = zb.astype(jnp.float32)
    mean = jnp.mean(zf, axis=0, keepdims=True)
    m2 = jnp.sum((zf - mean) ** 2, axis=0, keepdims=True)
    return zb, jnp.concatenate([mean, m2], axis=0)


def _conv1x1_kernel(x_ref, w_ref, z_ref, st_ref):
    """(tm, K) @ (K, C) -> bf16 pre-BN z tile + per-tile (mean, M2) channel stats."""
    z = jnp.dot(x_ref[...].astype(jnp.bfloat16), w_ref[...],
                preferred_element_type=jnp.float32)
    zb, st = _round_and_stats(z)
    z_ref[...] = zb
    st_ref[0] = st


def _bnrelu_conv1x1_kernel(x_ref, a_ref, b_ref, w_ref, z_ref, st_ref):
    """Apply previous layer's BN(training stats)+ReLU to the tile, then 1x1 conv."""
    act = jnp.maximum(x_ref[...].astype(jnp.float32) * a_ref[...] + b_ref[...], 0.0)
    z = jnp.dot(act.astype(jnp.bfloat16), w_ref[...],
                preferred_element_type=jnp.float32)
    zb, st = _round_and_stats(z)
    z_ref[...] = zb
    st_ref[0] = st


def _bnrelu_conv3x3_kernel(x_ref, a_ref, b_ref, w_ref, z_ref, st_ref,
                           act_ref, slab_ref):
    """Per-sample fused: BN1+ReLU -> bf16 halo-padded VMEM scratch -> on-chip im2col
    slab -> single (HW, 9*Cin) @ (9*Cin, Cout) MXU matmul."""
    _, H, W, Cin = x_ref.shape
    HW = H * W
    a = jnp.reshape(a_ref[...], (1, 1, Cin))
    b = jnp.reshape(b_ref[...], (1, 1, Cin))

    # BN + ReLU of the previous layer, bf16, with a 1-pixel zero halo rebuilt in the
    # same stores (matches nn.Conv2d padding=1; no full-scratch zero pass, and correct
    # regardless of how the "parallel" grid axis is sharded across cores).
    act = jnp.maximum(x_ref[0].astype(jnp.float32) * a + b, 0.0).astype(jnp.bfloat16)
    zero_col = jnp.zeros((H, 1, Cin), jnp.bfloat16)
    act_ref[pl.ds(1, H), :, :] = jnp.concatenate([zero_col, act, zero_col], axis=1)
    zero_row = jnp.zeros((1, W + 2, Cin), jnp.bfloat16)
    act_ref[pl.ds(0, 1), :, :] = zero_row
    act_ref[pl.ds(H + 1, 1), :, :] = zero_row

    # Pack the 9 shifted views into one bf16 im2col slab in VMEM (never touches HBM),
    # reading each dy row-band only once.
    for dy in range(3):
        band = act_ref[pl.ds(dy, H), :, :]                     # (H, W+2, Cin)
        for dx in range(3):
            patch = band[:, dx:dx + W, :].reshape(HW, Cin)
            slab_ref[:, pl.ds((dy * 3 + dx) * Cin, Cin)] = patch

    # conv3x3(stride=1, pad=1) as a single big-K MXU matmul with f32 accumulation.
    z = jnp.dot(slab_ref[...], w_ref[...], preferred_element_type=jnp.float32)
    zb, st = _round_and_stats(z)
    z_ref[0] = zb
    st_ref[0] = st


def _bnrelu_se_residual_kernel(z_ref, a_ref, b_ref, wd_ref, wu_ref, id_ref, o_ref):
    """Per-sample fused: BN3+ReLU -> SE (pool, down, ReLU, up, sigmoid, scale)
    -> residual add -> final ReLU."""
    y = jnp.maximum(z_ref[0].astype(jnp.float32) * a_ref[...] + b_ref[...], 0.0)
    pooled = jnp.mean(y, axis=0, keepdims=True)                 # AdaptiveAvgPool2d(1)
    s = jnp.dot(pooled.astype(jnp.bfloat16), wd_ref[...],
                preferred_element_type=jnp.float32)
    s = jnp.maximum(s, 0.0)                                     # ReLU
    s = jnp.dot(s.astype(jnp.bfloat16), wu_ref[...],
                preferred_element_type=jnp.float32)
    s = 1.0 / (1.0 + jnp.exp(-s))                               # f32 sigmoid (tiny array)
    o_ref[0] = jnp.maximum(y * s + id_ref[0].astype(jnp.float32), 0.0)


def _bnrelu_residual_kernel(z_ref, a_ref, b_ref, id_ref, o_ref):
    y = jnp.maximum(z_ref[0].astype(jnp.float32) * a_ref[...] + b_ref[...], 0.0)
    o_ref[0] = jnp.maximum(y + id_ref[0].astype(jnp.float32), 0.0)


# ---------------------------------------------------------------------------
# pallas_call wrappers
# ---------------------------------------------------------------------------
def _conv1x1(x2d, w_bf16, prev_affine=None, *, row_tile):
    M, K = x2d.shape
    Cout = w_bf16.shape[1]
    nt = M // row_tile
    x_spec = pl.BlockSpec((row_tile, K), lambda i: (i, 0))
    w_spec = pl.BlockSpec((K, Cout), lambda i: (0, 0))
    ab_spec = pl.BlockSpec((1, K), lambda i: (0, 0))
    out_shape = (jax.ShapeDtypeStruct((M, Cout), jnp.bfloat16),
                 jax.ShapeDtypeStruct((nt, 2, Cout), jnp.float32))
    out_specs = [pl.BlockSpec((row_tile, Cout), lambda i: (i, 0)),
                 pl.BlockSpec((1, 2, Cout), lambda i: (i, 0, 0))]
    if prev_affine is None:
        grid_spec = pltpu.PrefetchScalarGridSpec(
            num_scalar_prefetch=0, grid=(nt,),
            in_specs=[x_spec, w_spec], out_specs=out_specs)
        return pl.pallas_call(_conv1x1_kernel, out_shape=out_shape,
                              grid_spec=grid_spec,
                              compiler_params=_mosaic())(x2d, w_bf16)
    a, b = prev_affine
    grid_spec = pltpu.PrefetchScalarGridSpec(
        num_scalar_prefetch=0, grid=(nt,),
        in_specs=[x_spec, ab_spec, ab_spec, w_spec], out_specs=out_specs)
    return pl.pallas_call(_bnrelu_conv1x1_kernel, out_shape=out_shape,
                          grid_spec=grid_spec,
                          compiler_params=_mosaic())(x2d, a, b, w_bf16)


def _conv3x3(z1_nhwc, a1, b1, w2_flat_bf16):
    N, H, W, Cin = z1_nhwc.shape
    HW = H * W
    Cout = w2_flat_bf16.shape[-1]
    out_shape = (jax.ShapeDtypeStruct((N, HW, Cout), jnp.bfloat16),
                 jax.ShapeDtypeStruct((N, 2, Cout), jnp.float32))
    grid_spec = pltpu.PrefetchScalarGridSpec(
        num_scalar_prefetch=0, grid=(N,),
        in_specs=[pl.BlockSpec((1, H, W, Cin), lambda n: (n, 0, 0, 0)),
                  pl.BlockSpec((1, Cin), lambda n: (0, 0)),
                  pl.BlockSpec((1, Cin), lambda n: (0, 0)),
                  pl.BlockSpec((9 * Cin, Cout), lambda n: (0, 0))],
        out_specs=[pl.BlockSpec((1, HW, Cout), lambda n: (n, 0, 0)),
                   pl.BlockSpec((1, 2, Cout), lambda n: (n, 0, 0))],
        scratch_shapes=[pltpu.VMEM((H + 2, W + 2, Cin), jnp.bfloat16),   # halo act
                        pltpu.VMEM((HW, 9 * Cin), jnp.bfloat16)])        # im2col slab
    return pl.pallas_call(_bnrelu_conv3x3_kernel, out_shape=out_shape,
                          grid_spec=grid_spec,
                          compiler_params=_mosaic())(z1_nhwc, a1, b1, w2_flat_bf16)


def _se_residual(z3, a3, b3, wd_bf16, wu_bf16, identity, add_se_module):
    N, HW, C = z3.shape
    Cr = wd_bf16.shape[1]
    out_shape = jax.ShapeDtypeStruct((N, HW, C), jnp.float32)
    z_spec = pl.BlockSpec((1, HW, C), lambda n: (n, 0, 0))
    id_spec = pl.BlockSpec((1, HW, C), lambda n: (n, 0, 0))
    vec_spec = pl.BlockSpec((1, C), lambda n: (0, 0))
    if add_se_module:
        grid_spec = pltpu.PrefetchScalarGridSpec(
            num_scalar_prefetch=0, grid=(N,),
            in_specs=[z_spec, vec_spec, vec_spec,
                      pl.BlockSpec((C, Cr), lambda n: (0, 0)),
                      pl.BlockSpec((Cr, C), lambda n: (0, 0)),
                      id_spec],
            out_specs=z_spec)
        return pl.pallas_call(_bnrelu_se_residual_kernel, out_shape=out_shape,
                              grid_spec=grid_spec, compiler_params=_mosaic())(
            z3, a3, b3, wd_bf16, wu_bf16, identity)
    grid_spec = pltpu.PrefetchScalarGridSpec(
        num_scalar_prefetch=0, grid=(N,),
        in_specs=[z_spec, vec_spec, vec_spec, id_spec],
        out_specs=z_spec)
    return pl.pallas_call(_bnrelu_residual_kernel, out_shape=out_shape,
                          grid_spec=grid_spec, compiler_params=_mosaic())(
        z3, a3, b3, identity)


# ---------------------------------------------------------------------------
# Glue helpers
# ---------------------------------------------------------------------------
def _round_up(n, m=LANES):
    return ((n + m - 1) // m) * m


def _pick_row_tile(m, target=2048):
    # Largest multiple-of-8 divisor of m that is <= target rows AND leaves >= ~8 grid
    # steps (pipelining + v7x megacore).  Fall back to m (full-extent block is legal).
    cap = min(target, max(8, m // 8))
    best = None
    for t in range(8, cap + 1, 8):
        if m % t == 0:
            best = t
    return best if best is not None else m


def _pad2(a, rows, cols):
    return jnp.pad(a, ((0, rows - a.shape[0]), (0, cols - a.shape[1])))


def _pad_vec(v, n):
    # NOTE: gamma/beta MUST be zero-padded; a padded-lane gamma of 1 would inject
    # rsqrt(0 + eps) into the padded channels and corrupt downstream matmuls.
    return jnp.pad(v, (0, n - v.shape[0]))


def _bn_scale_shift(stats, gamma, beta, tile_rows, count):
    """stats: (tiles, 2, C) per-tile (mean, M2) partials -> training-mode BN folded
    into the per-channel affine  y = a * z + b, via Chan's parallel combination."""
    means = stats[:, 0, :]                                   # (nt, C)
    m2s = stats[:, 1, :]                                     # (nt, C)
    mean = jnp.mean(means, axis=0)                           # equal-sized tiles
    var = (jnp.sum(m2s, axis=0)
           + tile_rows * jnp.sum((means - mean) ** 2, axis=0)) / count
    var = jnp.maximum(var, 0.0)                              # biased variance (PyTorch BN)
    a = gamma * jax.lax.rsqrt(var + EPS)
    b = beta - mean * a
    return a.reshape(1, -1), b.reshape(1, -1)


# ---------------------------------------------------------------------------
# Block forward
# ---------------------------------------------------------------------------
@functools.partial(jax.jit, static_argnames=("add_se_module",))
def block_forward(x_nchw, p, add_se_module=True):
    # NOTE: in a full network these NCHW<->NHWC transposes and the final channel slice
    # would be hoisted out of the per-block path (keep activations NHWC end-to-end).
    x = jnp.transpose(x_nchw, (0, 2, 3, 1)).astype(jnp.float32)    # NCHW -> NHWC
    N, H, W, cin = x.shape
    M, HW = N * H * W, H * W
    c1 = p["w1"].shape[1]
    c4 = p["w3"].shape[1]
    assert cin == c4, "identity_downsample=None path requires in_channels == out_channels*4"

    c1_p, c4_p = _round_up(c1), _round_up(c4)
    tm = _pick_row_tile(M)

    # Lane-dense (multiple-of-128) zero-padded output-channel geometry + bf16 MXU weights.
    # Contraction (K) dims stay full-extent where the source array already provides them.
    w1 = jnp.pad(p["w1"], ((0, 0), (0, c1_p - c1))).astype(jnp.bfloat16)       # (cin, c1_p)
    w2 = jnp.pad(p["w2"], ((0, 0), (0, 0), (0, c1_p - c1), (0, c1_p - c1)))
    w2 = w2.reshape(9 * c1_p, c1_p).astype(jnp.bfloat16)                       # (9*c1_p, c1_p)
    w3 = _pad2(p["w3"], c1_p, c4_p).astype(jnp.bfloat16)                       # (c1_p, c4_p)
    wd = jnp.pad(p["w_down"], ((0, c4_p - c4), (0, 0))).astype(jnp.bfloat16)   # (c4_p, cr)
    wu = jnp.pad(p["w_up"], ((0, 0), (0, c4_p - c4))).astype(jnp.bfloat16)     # (cr, c4_p)
    g1, beta1 = _pad_vec(p["g1"], c1_p), _pad_vec(p["beta1"], c1_p)
    g2, beta2 = _pad_vec(p["g2"], c1_p), _pad_vec(p["beta2"], c1_p)
    g3, beta3 = _pad_vec(p["g3"], c4_p), _pad_vec(p["beta3"], c4_p)

    # conv1 (1x1): row-tiled matmul on the RAW (unpadded) activation + BN1 stat partials
    z1, st1 = _conv1x1(x.reshape(M, cin), w1, row_tile=tm)
    a1, b1 = _bn_scale_shift(st1, g1, beta1, tm, M)

    # conv2 (3x3, stride=1, pad=1): fused BN1+ReLU + in-VMEM im2col + single big-K matmul
    z2, st2 = _conv3x3(z1.reshape(N, H, W, c1_p), a1, b1, w2)
    a2, b2 = _bn_scale_shift(st2, g2, beta2, HW, M)

    # conv3 (1x1): fused BN2+ReLU + row-tiled matmul + BN3 stat partials
    z3, st3 = _conv1x1(z2.reshape(M, c1_p), w3, prev_affine=(a2, b2), row_tile=tm)
    a3, b3 = _bn_scale_shift(st3, g3, beta3, tm, M)

    # Residual identity: reuse x directly when out channels are already lane-aligned
    # (the realistic case); otherwise pad once.
    if c4_p == c4:
        identity = x.reshape(N, HW, c4_p)
    else:
        identity = jnp.pad(x, ((0, 0), (0, 0), (0, 0), (0, c4_p - c4))).reshape(N, HW, c4_p)

    # BN3+ReLU + SE (pool/down/ReLU/up/sigmoid/scale) + residual add + final ReLU
    out = _se_residual(z3.reshape(N, HW, c4_p), a3, b3, wd, wu, identity,
                       add_se_module)

    out = out.reshape(N, H, W, c4_p)[..., :c4]
    return jnp.transpose(out, (0, 3, 1, 2))                        # NHWC -> NCHW


# ---------------------------------------------------------------------------
# Deterministic parameter construction (shapes per Block.__init__ / SENet.__init__)
# ---------------------------------------------------------------------------
def init_params(key, in_channels, out_channels, expansion=4, scale_factor=16):
    c4 = out_channels * expansion
    cr = c4 // scale_factor
    ks = jax.random.split(key, 11)

    def rand(k, shape, scale=0.05):
        return (scale * jax.random.normal(k, shape)).astype(jnp.float32)

    # NOTE: conv biases are omitted -- with training-mode BatchNorm right after each
    # conv, a per-channel bias is cancelled exactly by the batch-mean subtraction.
    return {
        "w1": rand(ks[0], (in_channels, out_channels)),
        "g1": 1.0 + rand(ks[1], (out_channels,), 0.1),
        "beta1": rand(ks[2], (out_channels,), 0.1),
        "w2": rand(ks[3], (3, 3, out_channels, out_channels)),    # (dy, dx, cin, cout)
        "g2": 1.0 + rand(ks[4], (out_channels,), 0.1),
        "beta2": rand(ks[5], (out_channels,), 0.1),
        "w3": rand(ks[6], (out_channels, c4)),
        "g3": 1.0 + rand(ks[7], (c4,), 0.1),
        "beta3": rand(ks[8], (c4,), 0.1),
        "w_down": rand(ks[9], (c4, cr)),      # SENet.conv_down (bias=False)
        "w_up": rand(ks[10], (cr, c4)),       # SENet.conv_up   (bias=False)
    }


# ---------------------------------------------------------------------------
# Pure-JAX reference (mirrors bf16 MXU inputs + bf16 inter-stage storage)
# ---------------------------------------------------------------------------
def reference_forward(x_nchw, p, add_se_module=True):
    x = jnp.transpose(x_nchw, (0, 2, 3, 1)).astype(jnp.float32)
    N, H, W, cin = x.shape
    M = N * H * W

    def bdot(a, b):   # mirror the kernels' bf16 MXU inputs / f32 accumulation
        return jnp.dot(a.astype(jnp.bfloat16), b.astype(jnp.bfloat16),
                       preferred_element_type=jnp.float32)

    def bn_relu(z, g, beta):   # training-mode BatchNorm + ReLU on bf16-stored pre-acts
        zb = z.astype(jnp.bfloat16).astype(jnp.float32)
        m = zb.mean(axis=0, keepdims=True)
        v = ((zb - m) ** 2).mean(axis=0, keepdims=True)
        return jnp.maximum((zb - m) * jax.lax.rsqrt(v + EPS) * g + beta, 0.0)

    y1 = bn_relu(bdot(x.reshape(M, cin), p["w1"]), p["g1"], p["beta1"])
    c1 = y1.shape[-1]
    yp = jnp.pad(y1.reshape(N, H, W, c1), ((0, 0), (1, 1), (1, 1), (0, 0)))
    z2 = sum(bdot(yp[:, dy:dy + H, dx:dx + W, :].reshape(M, c1), p["w2"][dy, dx])
             for dy in range(3) for dx in range(3))
    y2 = bn_relu(z2, p["g2"], p["beta2"])
    y3 = bn_relu(bdot(y2, p["w3"]), p["g3"], p["beta3"])
    c4 = y3.shape[-1]
    y3 = y3.reshape(N, H * W, c4)
    identity = x.reshape(N, H * W, cin)
    if add_se_module:
        pooled = y3.mean(axis=1)
        s = jnp.maximum(bdot(pooled, p["w_down"]), 0.0)
        s = 1.0 / (1.0 + jnp.exp(-bdot(s, p["w_up"])))
        y3 = y3 * s[:, None, :]
    out = jnp.maximum(y3 + identity, 0.0).reshape(N, H, W, c4)
    return jnp.transpose(out, (0, 3, 1, 2))


if __name__ == "__main__":
    key = jax.random.PRNGKey(0)
    kx, kp = jax.random.split(key)

    # in_channels == out_channels * expansion so the residual add works without an
    # identity_downsample (identity_downsample=None in the PyTorch module).
    in_channels, out_channels = 64, 16
    N, H, W = 2, 16, 16

    x = jax.random.normal(kx, (N, in_channels, H, W), dtype=jnp.float32)
    params = init_params(kp, in_channels, out_channels)

    for use_se in (True, False):
        out = jax.block_until_ready(block_forward(x, params, add_se_module=use_se))
        ref = reference_forward(x, params, add_se_module=use_se)
        assert out.shape == (N, out_channels * 4, H, W), out.shape
        err = float(jnp.max(jnp.abs(out - ref)))
        # bf16 HBM intermediates + differing f32 accumulation order between the fused
        # big-K kernel matmul and the 9-tap reference dominate the residual error.
        assert jnp.allclose(out, ref, atol=2e-2, rtol=2e-2), (use_se, err)
    print("KERNEL_OK")
</pallas_src>

<mosaic_0001>
module attributes {stable_mosaic.version = 11 : i64} {
  func.func @_bnrelu_conv3x3_kernel(%arg0: i32, %arg1: memref<1x16x16x128xbf16, #tpu.memory_space<vmem>>, %arg2: memref<1x128xf32, #tpu.memory_space<vmem>>, %arg3: memref<1x128xf32, #tpu.memory_space<vmem>>, %arg4: memref<1152x128xbf16, #tpu.memory_space<vmem>>, %arg5: memref<1x256x128xbf16, #tpu.memory_space<vmem>>, %arg6: memref<1x2x128xf32, #tpu.memory_space<vmem>>, %arg7: memref<18x18x128xbf16, #tpu.memory_space<vmem>>, %arg8: memref<256x1152xbf16, #tpu.memory_space<vmem>>) attributes {dimension_semantics = [#tpu.dimension_semantics<parallel>], iteration_bounds = array<i64: 2>, scalar_prefetch = 0 : i64, scratch_operands = 2 : i64, tpu.core_type = #tpu.core_type<tc>, window_params = [{transform_indices = @transform_0, window_bounds = array<i64: 1, 16, 16, 128>}, {pipeline_mode = #tpu.pipeline_mode<synchronous>, transform_indices = @transform_1, window_bounds = array<i64: 1, 128>}, {pipeline_mode = #tpu.pipeline_mode<synchronous>, transform_indices = @transform_2, window_bounds = array<i64: 1, 128>}, {pipeline_mode = #tpu.pipeline_mode<synchronous>, transform_indices = @transform_3, window_bounds = array<i64: 1152, 128>}, {transform_indices = @transform_4, window_bounds = array<i64: 1, 256, 128>}, {transform_indices = @transform_5, window_bounds = array<i64: 1, 2, 128>}]} {
    %c0 = arith.constant 0 : index
    %c0_0 = arith.constant 0 : index
    %0 = vector.load %arg2[%c0, %c0_0] : memref<1x128xf32, #tpu.memory_space<vmem>>, vector<1x128xf32>
    %1 = vector.shape_cast %0 : vector<1x128xf32> to vector<1x1x128xf32>
    %c0_1 = arith.constant 0 : index
    %c0_2 = arith.constant 0 : index
    %2 = vector.load %arg3[%c0_1, %c0_2] : memref<1x128xf32, #tpu.memory_space<vmem>>, vector<1x128xf32>
    %3 = vector.shape_cast %2 : vector<1x128xf32> to vector<1x1x128xf32>
    %c0_3 = arith.constant 0 : index
    %c0_4 = arith.constant 0 : index
    %c0_5 = arith.constant 0 : index
    %c0_6 = arith.constant 0 : index
    %4 = vector.load %arg1[%c0_3, %c0_4, %c0_5, %c0_6] : memref<1x16x16x128xbf16, #tpu.memory_space<vmem>>, vector<1x16x16x128xbf16>
    %5 = vector.shape_cast %4 : vector<1x16x16x128xbf16> to vector<16x16x128xbf16>
    %6 = arith.extf %5 : vector<16x16x128xbf16> to vector<16x16x128xf32>
    %7 = vector.broadcast %1 : vector<1x1x128xf32> to vector<16x16x128xf32>
    %8 = arith.mulf %6, %7 : vector<16x16x128xf32>
    %9 = vector.broadcast %3 : vector<1x1x128xf32> to vector<16x16x128xf32>
    %10 = arith.addf %8, %9 : vector<16x16x128xf32>
    %cst = arith.constant 0.000000e+00 : f32
    %11 = vector.broadcast %cst : f32 to vector<16x16x128xf32>
    %12 = arith.maximumf %10, %11 : vector<16x16x128xf32>
    %13 = arith.truncf %12 : vector<16x16x128xf32> to vector<16x16x128xbf16>
    %cst_7 = arith.constant 0.000000e+00 : bf16
    %14 = vector.broadcast %cst_7 : bf16 to vector<16x1x128xbf16>
    %15 = tpu.concatenate %14, %13, %14 in 1 : vector<16x1x128xbf16>, vector<16x16x128xbf16>, vector<16x1x128xbf16> -> vector<16x18x128xbf16>
    %c1 = arith.constant 1 : index
    %c0_8 = arith.constant 0 : index
    %c0_9 = arith.constant 0 : index
    %16 = vector.load %arg7[%c1, %c0_8, %c0_9] : memref<18x18x128xbf16, #tpu.memory_space<vmem>>, vector<16x18x128xbf16>
    tpu.vector_store %arg7[%c1, %c0_8, %c0_9], %15 {strides = array<i32>} : memref<18x18x128xbf16, #tpu.memory_space<vmem>>, vector<16x18x128xbf16>,
    %cst_10 = arith.constant 0.000000e+00 : bf16
    %17 = vector.broadcast %cst_10 : bf16 to vector<1x18x128xbf16>
    %c0_11 = arith.constant 0 : index
    %c0_12 = arith.constant 0 : index
    %c0_13 = arith.constant 0 : index
    %18 = vector.load %arg7[%c0_11, %c0_12, %c0_13] : memref<18x18x128xbf16, #tpu.memory_space<vmem>>, vector<1x18x128xbf16>
    tpu.vector_store %arg7[%c0_11, %c0_12, %c0_13], %17 {strides = array<i32>} : memref<18x18x128xbf16, #tpu.memory_space<vmem>>, vector<1x18x128xbf16>,
    %c17 = arith.constant 17 : index
    %c0_14 = arith.constant 0 : index
    %c0_15 = arith.constant 0 : index
    %19 = vector.load %arg7[%c17, %c0_14, %c0_15] : memref<18x18x128xbf16, #tpu.memory_space<vmem>>, vector<1x18x128xbf16>
    tpu.vector_store %arg7[%c17, %c0_14, %c0_15], %17 {strides = array<i32>} : memref<18x18x128xbf16, #tpu.memory_space<vmem>>, vector<1x18x128xbf16>,
    %c0_16 = arith.constant 0 : index
    %c0_17 = arith.constant 0 : index
    %c0_18 = arith.constant 0 : index
    %20 = vector.load %arg7[%c0_16, %c0_17, %c0_18] : memref<18x18x128xbf16, #tpu.memory_space<vmem>>, vector<16x18x128xbf16>
    %21 = vector.extract_strided_slice %20 {offsets = [0, 0, 0], sizes = [16, 16, 128], strides = [1, 1, 1]} : vector<16x18x128xbf16> to vector<16x16x128xbf16>
    %22 = vector.shape_cast %21 : vector<16x16x128xbf16> to vector<256x128xbf16>
    %c0_19 = arith.constant 0 : index
    %c0_20 = arith.constant 0 : index
    %23 = vector.load %arg8[%c0_19, %c0_20] : memref<256x1152xbf16, #tpu.memory_space<vmem>>, vector<256x128xbf16>
    tpu.vector_store %arg8[%c0_19, %c0_20], %22 {strides = array<i32>} : memref<256x1152xbf16, #tpu.memory_space<vmem>>, vector<256x128xbf16>,
    %24 = vector.extract_strided_slice %20 {offsets = [0, 1, 0], sizes = [16, 16, 128], strides = [1, 1, 1]} : vector<16x18x128xbf16> to vector<16x16x128xbf16>
    %25 = vector.shape_cast %24 : vector<16x16x128xbf16> to vector<256x128xbf16>
    %c0_21 = arith.constant 0 : index
    %c128 = arith.constant 128 : index
    %26 = vector.load %arg8[%c0_21, %c128] : memref<256x1152xbf16, #tpu.memory_space<vmem>>, vector<256x128xbf16>
    tpu.vector_store %arg8[%c0_21, %c128], %25 {strides = array<i32>} : memref<256x1152xbf16, #tpu.memory_space<vmem>>, vector<256x128xbf16>,
    %27 = vector.extract_strided_slice %20 {offsets = [0, 2, 0], sizes = [16, 16, 128], strides = [1, 1, 1]} : vector<16x18x128xbf16> to vector<16x16x128xbf16>
    %28 = vector.shape_cast %27 : vector<16x16x128xbf16> to vector<256x128xbf16>
    %c0_22 = arith.constant 0 : index
    %c256 = arith.constant 256 : index
    %29 = vector.load %arg8[%c0_22, %c256] : memref<256x1152xbf16, #tpu.memory_space<vmem>>, vector<256x128xbf16>
    tpu.vector_store %arg8[%c0_22, %c256], %28 {strides = array<i32>} : memref<256x1152xbf16, #tpu.memory_space<vmem>>, vector<256x128xbf16>,
    %c1_23 = arith.constant 1 : index
    %c0_24 = arith.constant 0 : index
    %c0_25 = arith.constant 0 : index
    %30 = vector.load %arg7[%c1_23, %c0_24, %c0_25] : memref<18x18x128xbf16, #tpu.memory_space<vmem>>, vector<16x18x128xbf16>
    %31 = vector.extract_strided_slice %30 {offsets = [0, 0, 0], sizes = [16, 16, 128], strides = [1, 1, 1]} : vector<16x18x128xbf16> to vector<16x16x128xbf16>
    %32 = vector.shape_cast %31 : vector<16x16x128xbf16> to vector<256x128xbf16>
    %c0_26 = arith.constant 0 : index
    %c384 = arith.constant 384 : index
    %33 = vector.load %arg8[%c0_26, %c384] : memref<256x1152xbf16, #tpu.memory_space<vmem>>, vector<256x128xbf16>
    tpu.vector_store %arg8[%c0_26, %c384], %32 {strides = array<i32>} : memref<256x1152xbf16, #tpu.memory_space<vmem>>, vector<256x128xbf16>,
    %34 = vector.extract_strided_slice %30 {offsets = [0, 1, 0], sizes = [16, 16, 128], strides = [1, 1, 1]} : vector<16x18x128xbf16> to vector<16x16x128xbf16>
    %35 = vector.shape_cast %34 : vector<16x16x128xbf16> to vector<256x128xbf16>
    %c0_27 = arith.constant 0 : index
    %c512 = arith.constant 512 : index
    %36 = vector.load %arg8[%c0_27, %c512] : memref<256x1152xbf16, #tpu.memory_space<vmem>>, vector<256x128xbf16>
    tpu.vector_store %arg8[%c0_27, %c512], %35 {strides = array<i32>} : memref<256x1152xbf16, #tpu.memory_space<vmem>>, vector<256x128xbf16>,
    %37 = vector.extract_strided_slice %30 {offsets = [0, 2, 0], sizes = [16, 16, 128], strides = [1, 1, 1]} : vector<16x18x128xbf16> to vector<16x16x128xbf16>
    %38 = vector.shape_cast %37 : vector<16x16x128xbf16> to vector<256x128xbf16>
    %c0_28 = arith.constant 0 : index
    %c640 = arith.constant 640 : index
    %39 = vector.load %arg8[%c0_28, %c640] : memref<256x1152xbf16, #tpu.memory_space<vmem>>, vector<256x128xbf16>
    tpu.vector_store %arg8[%c0_28, %c640], %38 {strides = array<i32>} : memref<256x1152xbf16, #tpu.memory_space<vmem>>, vector<256x128xbf16>,
    %c2 = arith.constant 2 : index
    %c0_29 = arith.constant 0 : index
    %c0_30 = arith.constant 0 : index
    %40 = vector.load %arg7[%c2, %c0_29, %c0_30] : memref<18x18x128xbf16, #tpu.memory_space<vmem>>, vector<16x18x128xbf16>
    %41 = vector.extract_strided_slice %40 {offsets = [0, 0, 0], sizes = [16, 16, 128], strides = [1, 1, 1]} : vector<16x18x128xbf16> to vector<16x16x128xbf16>
    %42 = vector.shape_cast %41 : vector<16x16x128xbf16> to vector<256x128xbf16>
    %c0_31 = arith.constant 0 : index
    %c768 = arith.constant 768 : index
    %43 = vector.load %arg8[%c0_31, %c768] : memref<256x1152xbf16, #tpu.memory_space<vmem>>, vector<256x128xbf16>
    tpu.vector_store %arg8[%c0_31, %c768], %42 {strides = array<i32>} : memref<256x1152xbf16, #tpu.memory_space<vmem>>, vector<256x128xbf16>,
    %44 = vector.extract_strided_slice %40 {offsets = [0, 1, 0], sizes = [16, 16, 128], strides = [1, 1, 1]} : vector<16x18x128xbf16> to vector<16x16x128xbf16>
    %45 = vector.shape_cast %44 : vector<16x16x128xbf16> to vector<256x128xbf16>
    %c0_32 = arith.constant 0 : index
    %c896 = arith.constant 896 : index
    %46 = vector.load %arg8[%c0_32, %c896] : memref<256x1152xbf16, #tpu.memory_space<vmem>>, vector<256x128xbf16>
    tpu.vector_store %arg8[%c0_32, %c896], %45 {strides = array<i32>} : memref<256x1152xbf16, #tpu.memory_space<vmem>>, vector<256x128xbf16>,
    %47 = vector.extract_strided_slice %40 {offsets = [0, 2, 0], sizes = [16, 16, 128], strides = [1, 1, 1]} : vector<16x18x128xbf16> to vector<16x16x128xbf16>
    %48 = vector.shape_cast %47 : vector<16x16x128xbf16> to vector<256x128xbf16>
    %c0_33 = arith.constant 0 : index
    %c1024 = arith.constant 1024 : index
    %49 = vector.load %arg8[%c0_33, %c1024] : memref<256x1152xbf16, #tpu.memory_space<vmem>>, vector<256x128xbf16>
    tpu.vector_store %arg8[%c0_33, %c1024], %48 {strides = array<i32>} : memref<256x1152xbf16, #tpu.memory_space<vmem>>, vector<256x128xbf16>,
    %c0_34 = arith.constant 0 : index
    %c0_35 = arith.constant 0 : index
    %50 = vector.load %arg8[%c0_34, %c0_35] : memref<256x1152xbf16, #tpu.memory_space<vmem>>, vector<256x1152xbf16>
    %c0_36 = arith.constant 0 : index
    %c0_37 = arith.constant 0 : index
    %51 = vector.load %arg4[%c0_36, %c0_37] : memref<1152x128xbf16, #tpu.memory_space<vmem>>, vector<1152x128xbf16>
    %cst_38 = arith.constant dense<0.000000e+00> : vector<256x128xf32>
    %52 = tpu.matmul %50, %51, %cst_38 {dimension_numbers = #tpu.dot_dimension_numbers<[1], [0], [0], [1], [0, 0, 1, 1], [], []>} : vector<256x1152xbf16>, vector<1152x128xbf16>, vector<256x128xf32> -> vector<256x128xf32>
    %53 = arith.truncf %52 : vector<256x128xf32> to vector<256x128xbf16>
    %54 = arith.extf %53 : vector<256x128xbf16> to vector<256x128xf32>
    %cst_39 = arith.constant dense<0.000000e+00> : vector<128xf32>
    %55 = vector.multi_reduction <add>, %54, %cst_39 [0] : vector<256x128xf32> to vector<128xf32>
    %56 = vector.shape_cast %55 : vector<128xf32> to vector<1x128xf32>
    %cst_40 = arith.constant 2.560000e+02 : f32
    %57 = vector.broadcast %cst_40 : f32 to vector<1x128xf32>
    %58 = arith.divf %56, %57 : vector<1x128xf32>
    %59 = vector.broadcast %58 : vector<1x128xf32> to vector<256x128xf32>
    %60 = arith.subf %54, %59 : vector<256x128xf32>
    %61 = arith.mulf %60, %60 : vector<256x128xf32>
    %cst_41 = arith.constant dense<0.000000e+00> : vector<128xf32>
    %62 = vector.multi_reduction <add>, %61, %cst_41 [0] : vector<256x128xf32> to vector<128xf32>
    %63 = vector.shape_cast %62 : vector<128xf32> to vector<1x128xf32>
    %64 = tpu.concatenate %58, %63 in 0 : vector<1x128xf32>, vector<1x128xf32> -> vector<2x128xf32>
    %c0_42 = arith.constant 0 : index
    %c0_43 = arith.constant 0 : index
    %c0_44 = arith.constant 0 : index
    %65 = vector.load %arg5[%c0_42, %c0_43, %c0_44] : memref<1x256x128xbf16, #tpu.memory_space<vmem>>, vector<1x256x128xbf16>
    %66 = vector.shape_cast %65 : vector<1x256x128xbf16> to vector<256x128xbf16>
    %67 = vector.shape_cast %53 : vector<256x128xbf16> to vector<1x256x128xbf16>
    tpu.vector_store %arg5[%c0_42, %c0_43, %c0_44], %67 {strides = array<i32>} : memref<1x256x128xbf16, #tpu.memory_space<vmem>>, vector<1x256x128xbf16>,
    %c0_45 = arith.constant 0 : index
    %c0_46 = arith.constant 0 : index
    %c0_47 = arith.constant 0 : index
    %68 = vector.load %arg6[%c0_45, %c0_46, %c0_47] : memref<1x2x128xf32, #tpu.memory_space<vmem>>, vector<1x2x128xf32>
    %69 = vector.shape_cast %68 : vector<1x2x128xf32> to vector<2x128xf32>
    %70 = vector.shape_cast %64 : vector<2x128xf32> to vector<1x2x128xf32>
    tpu.vector_store %arg6[%c0_45, %c0_46, %c0_47], %70 {strides = array<i32>} : memref<1x2x128xf32, #tpu.memory_space<vmem>>, vector<1x2x128xf32>,
    return
  }
  func.func @transform_0(%arg0: i32) -> (i32, i32, i32, i32) {
    %c0_i32 = arith.constant 0 : i32
    %c0_i32_0 = arith.constant 0 : i32
    %c0_i32_1 = arith.constant 0 : i32
    %c0_i32_2 = arith.constant 0 : i32
    return %arg0, %c0_i32, %c0_i32_0, %c0_i32_1 : i32, i32, i32, i32
  }
  func.func @transform_1(%arg0: i32) -> (i32, i32) {
    %c0_i32 = arith.constant 0 : i32
    %c0_i32_0 = arith.constant 0 : i32
    %c0_i32_1 = arith.constant 0 : i32
    return %c0_i32, %c0_i32_0 : i32, i32
  }
  func.func @transform_2(%arg0: i32) -> (i32, i32) {
    %c0_i32 = arith.constant 0 : i32
    %c0_i32_0 = arith.constant 0 : i32
    %c0_i32_1 = arith.constant 0 : i32
    return %c0_i32, %c0_i32_0 : i32, i32
  }
  func.func @transform_3(%arg0: i32) -> (i32, i32) {
    %c0_i32 = arith.constant 0 : i32
    %c0_i32_0 = arith.constant 0 : i32
    %c0_i32_1 = arith.constant 0 : i32
    return %c0_i32, %c0_i32_0 : i32, i32
  }
  func.func @transform_4(%arg0: i32) -> (i32, i32, i32) {
    %c0_i32 = arith.constant 0 : i32
    %c0_i32_0 = arith.constant 0 : i32
    %c0_i32_1 = arith.constant 0 : i32
    return %arg0, %c0_i32, %c0_i32_0 : i32, i32, i32
  }
  func.func @transform_5(%arg0: i32) -> (i32, i32, i32) {
    %c0_i32 = arith.constant 0 : i32
    %c0_i32_0 = arith.constant 0 : i32
    %c0_i32_1 = arith.constant 0 : i32
    return %arg0, %c0_i32, %c0_i32_0 : i32, i32, i32
  }
}

module attributes {stable_mosaic.version = 11 : i64} {
  func.func @_conv1x1_kernel(%arg0: i32, %arg1: memref<64x64xf32, #tpu.memory_space<vmem>>, %arg2: memref<64x128xbf16, #tpu.memory_space<vmem>>, %arg3: memref<64x128xbf16, #tpu.memory_space<vmem>>, %arg4: memref<1x2x128xf32, #tpu.memory_space<vmem>>) attributes {dimension_semantics = [#tpu.dimension_semantics<parallel>], iteration_bounds = array<i64: 8>, scalar_prefetch = 0 : i64, scratch_operands = 0 : i64, tpu.core_type = #tpu.core_type<tc>, window_params = [{transform_indices = @transform_0, window_bounds = array<i64: 64, 64>}, {pipeline_mode = #tpu.pipeline_mode<synchronous>, transform_indices = @transform_1, window_bounds = array<i64: 64, 128>}, {transform_indices = @transform_2, window_bounds = array<i64: 64, 128>}, {transform_indices = @transform_3, window_bounds = array<i64: 1, 2, 128>}]} {
    %c0 = arith.constant 0 : index
    %c0_0 = arith.constant 0 : index
    %0 = vector.load %arg1[%c0, %c0_0] : memref<64x64xf32, #tpu.memory_space<vmem>>, vector<64x64xf32>
    %1 = arith.truncf %0 : vector<64x64xf32> to vector<64x64xbf16>
    %c0_1 = arith.constant 0 : index
    %c0_2 = arith.constant 0 : index
    %2 = vector.load %arg2[%c0_1, %c0_2] : memref<64x128xbf16, #tpu.memory_space<vmem>>, vector<64x128xbf16>
    %cst = arith.constant dense<0.000000e+00> : vector<64x128xf32>
    %3 = tpu.matmul %1, %2, %cst {dimension_numbers = #tpu.dot_dimension_numbers<[1], [0], [0], [1], [0, 0, 1, 1], [], []>} : vector<64x64xbf16>, vector<64x128xbf16>, vector<64x128xf32> -> vector<64x128xf32>
    %4 = arith.truncf %3 : vector<64x128xf32> to vector<64x128xbf16>
    %5 = arith.extf %4 : vector<64x128xbf16> to vector<64x128xf32>
    %cst_3 = arith.constant dense<0.000000e+00> : vector<128xf32>
    %6 = vector.multi_reduction <add>, %5, %cst_3 [0] : vector<64x128xf32> to vector<128xf32>
    %7 = vector.shape_cast %6 : vector<128xf32> to vector<1x128xf32>
    %cst_4 = arith.constant 6.400000e+01 : f32
    %8 = vector.broadcast %cst_4 : f32 to vector<1x128xf32>
    %9 = arith.divf %7, %8 : vector<1x128xf32>
    %10 = vector.broadcast %9 : vector<1x128xf32> to vector<64x128xf32>
    %11 = arith.subf %5, %10 : vector<64x128xf32>
    %12 = arith.mulf %11, %11 : vector<64x128xf32>
    %cst_5 = arith.constant dense<0.000000e+00> : vector<128xf32>
    %13 = vector.multi_reduction <add>, %12, %cst_5 [0] : vector<64x128xf32> to vector<128xf32>
    %14 = vector.shape_cast %13 : vector<128xf32> to vector<1x128xf32>
    %15 = tpu.concatenate %9, %14 in 0 : vector<1x128xf32>, vector<1x128xf32> -> vector<2x128xf32>
    %c0_6 = arith.constant 0 : index
    %c0_7 = arith.constant 0 : index
    %16 = vector.load %arg3[%c0_6, %c0_7] : memref<64x128xbf16, #tpu.memory_space<vmem>>, vector<64x128xbf16>
    tpu.vector_store %arg3[%c0_6, %c0_7], %4 {strides = array<i32>} : memref<64x128xbf16, #tpu.memory_space<vmem>>, vector<64x128xbf16>,
    %c0_8 = arith.constant 0 : index
    %c0_9 = arith.constant 0 : index
    %c0_10 = arith.constant 0 : index
    %17 = vector.load %arg4[%c0_8, %c0_9, %c0_10] : memref<1x2x128xf32, #tpu.memory_space<vmem>>, vector<1x2x128xf32>
    %18 = vector.shape_cast %17 : vector<1x2x128xf32> to vector<2x128xf32>
    %19 = vector.shape_cast %15 : vector<2x128xf32> to vector<1x2x128xf32>
    tpu.vector_store %arg4[%c0_8, %c0_9, %c0_10], %19 {strides = array<i32>} : memref<1x2x128xf32, #tpu.memory_space<vmem>>, vector<1x2x128xf32>,
    return
  }
  func.func @transform_0(%arg0: i32) -> (i32, i32) {
    %c0_i32 = arith.constant 0 : i32
    %c0_i32_0 = arith.constant 0 : i32
    return %arg0, %c0_i32 : i32, i32
  }
  func.func @transform_1(%arg0: i32) -> (i32, i32) {
    %c0_i32 = arith.constant 0 : i32
    %c0_i32_0 = arith.constant 0 : i32
    %c0_i32_1 = arith.constant 0 : i32
    return %c0_i32, %c0_i32_0 : i32, i32
  }
  func.func @transform_2(%arg0: i32) -> (i32, i32) {
    %c0_i32 = arith.constant 0 : i32
    %c0_i32_0 = arith.constant 0 : i32
    return %arg0, %c0_i32 : i32, i32
  }
  func.func @transform_3(%arg0: i32) -> (i32, i32, i32) {
    %c0_i32 = arith.constant 0 : i32
    %c0_i32_0 = arith.constant 0 : i32
    %c0_i32_1 = arith.constant 0 : i32
    return %arg0, %c0_i32, %c0_i32_0 : i32, i32, i32
  }
}

module attributes {stable_mosaic.version = 11 : i64} {
  func.func @_bnrelu_conv1x1_kernel(%arg0: i32, %arg1: memref<64x128xbf16, #tpu.memory_space<vmem>>, %arg2: memref<1x128xf32, #tpu.memory_space<vmem>>, %arg3: memref<1x128xf32, #tpu.memory_space<vmem>>, %arg4: memref<128x128xbf16, #tpu.memory_space<vmem>>, %arg5: memref<64x128xbf16, #tpu.memory_space<vmem>>, %arg6: memref<1x2x128xf32, #tpu.memory_space<vmem>>) attributes {dimension_semantics = [#tpu.dimension_semantics<parallel>], iteration_bounds = array<i64: 8>, scalar_prefetch = 0 : i64, scratch_operands = 0 : i64, tpu.core_type = #tpu.core_type<tc>, window_params = [{transform_indices = @transform_0, window_bounds = array<i64: 64, 128>}, {pipeline_mode = #tpu.pipeline_mode<synchronous>, transform_indices = @transform_1, window_bounds = array<i64: 1, 128>}, {pipeline_mode = #tpu.pipeline_mode<synchronous>, transform_indices = @transform_2, window_bounds = array<i64: 1, 128>}, {pipeline_mode = #tpu.pipeline_mode<synchronous>, transform_indices = @transform_3, window_bounds = array<i64: 128, 128>}, {transform_indices = @transform_4, window_bounds = array<i64: 64, 128>}, {transform_indices = @transform_5, window_bounds = array<i64: 1, 2, 128>}]} {
    %c0 = arith.constant 0 : index
    %c0_0 = arith.constant 0 : index
    %0 = vector.load %arg1[%c0, %c0_0] : memref<64x128xbf16, #tpu.memory_space<vmem>>, vector<64x128xbf16>
    %1 = arith.extf %0 : vector<64x128xbf16> to vector<64x128xf32>
    %c0_1 = arith.constant 0 : index
    %c0_2 = arith.constant 0 : index
    %2 = vector.load %arg2[%c0_1, %c0_2] : memref<1x128xf32, #tpu.memory_space<vmem>>, vector<1x128xf32>
    %3 = vector.broadcast %2 : vector<1x128xf32> to vector<64x128xf32>
    %4 = arith.mulf %1, %3 : vector<64x128xf32>
    %c0_3 = arith.constant 0 : index
    %c0_4 = arith.constant 0 : index
    %5 = vector.load %arg3[%c0_3, %c0_4] : memref<1x128xf32, #tpu.memory_space<vmem>>, vector<1x128xf32>
    %6 = vector.broadcast %5 : vector<1x128xf32> to vector<64x128xf32>
    %7 = arith.addf %4, %6 : vector<64x128xf32>
    %cst = arith.constant 0.000000e+00 : f32
    %8 = vector.broadcast %cst : f32 to vector<64x128xf32>
    %9 = arith.maximumf %7, %8 : vector<64x128xf32>
    %10 = arith.truncf %9 : vector<64x128xf32> to vector<64x128xbf16>
    %c0_5 = arith.constant 0 : index
    %c0_6 = arith.constant 0 : index
    %11 = vector.load %arg4[%c0_5, %c0_6] : memref<128x128xbf16, #tpu.memory_space<vmem>>, vector<128x128xbf16>
    %cst_7 = arith.constant dense<0.000000e+00> : vector<64x128xf32>
    %12 = tpu.matmul %10, %11, %cst_7 {dimension_numbers = #tpu.dot_dimension_numbers<[1], [0], [0], [1], [0, 0, 1, 1], [], []>} : vector<64x128xbf16>, vector<128x128xbf16>, vector<64x128xf32> -> vector<64x128xf32>
    %13 = arith.truncf %12 : vector<64x128xf32> to vector<64x128xbf16>
    %14 = arith.extf %13 : vector<64x128xbf16> to vector<64x128xf32>
    %cst_8 = arith.constant dense<0.000000e+00> : vector<128xf32>
    %15 = vector.multi_reduction <add>, %14, %cst_8 [0] : vector<64x128xf32> to vector<128xf32>
    %16 = vector.shape_cast %15 : vector<128xf32> to vector<1x128xf32>
    %cst_9 = arith.constant 6.400000e+01 : f32
    %17 = vector.broadcast %cst_9 : f32 to vector<1x128xf32>
    %18 = arith.divf %16, %17 : vector<1x128xf32>
    %19 = vector.broadcast %18 : vector<1x128xf32> to vector<64x128xf32>
    %20 = arith.subf %14, %19 : vector<64x128xf32>
    %21 = arith.mulf %20, %20 : vector<64x128xf32>
    %cst_10 = arith.constant dense<0.000000e+00> : vector<128xf32>
    %22 = vector.multi_reduction <add>, %21, %cst_10 [0] : vector<64x128xf32> to vector<128xf32>
    %23 = vector.shape_cast %22 : vector<128xf32> to vector<1x128xf32>
    %24 = tpu.concatenate %18, %23 in 0 : vector<1x128xf32>, vector<1x128xf32> -> vector<2x128xf32>
    %c0_11 = arith.constant 0 : index
    %c0_12 = arith.constant 0 : index
    %25 = vector.load %arg5[%c0_11, %c0_12] : memref<64x128xbf16, #tpu.memory_space<vmem>>, vector<64x128xbf16>
    tpu.vector_store %arg5[%c0_11, %c0_12], %13 {strides = array<i32>} : memref<64x128xbf16, #tpu.memory_space<vmem>>, vector<64x128xbf16>,
    %c0_13 = arith.constant 0 : index
    %c0_14 = arith.constant 0 : index
    %c0_15 = arith.constant 0 : index
    %26 = vector.load %arg6[%c0_13, %c0_14, %c0_15] : memref<1x2x128xf32, #tpu.memory_space<vmem>>, vector<1x2x128xf32>
    %27 = vector.shape_cast %26 : vector<1x2x128xf32> to vector<2x128xf32>
    %28 = vector.shape_cast %24 : vector<2x128xf32> to vector<1x2x128xf32>
    tpu.vector_store %arg6[%c0_13, %c0_14, %c0_15], %28 {strides = array<i32>} : memref<1x2x128xf32, #tpu.memory_space<vmem>>, vector<1x2x128xf32>,
    return
  }
  func.func @transform_0(%arg0: i32) -> (i32, i32) {
    %c0_i32 = arith.constant 0 : i32
    %c0_i32_0 = arith.constant 0 : i32
    return %arg0, %c0_i32 : i32, i32
  }
  func.func @transform_1(%arg0: i32) -> (i32, i32) {
    %c0_i32 = arith.constant 0 : i32
    %c0_i32_0 = arith.constant 0 : i32
    %c0_i32_1 = arith.constant 0 : i32
    return %c0_i32, %c0_i32_0 : i32, i32
  }
  func.func @transform_2(%arg0: i32) -> (i32, i32) {
    %c0_i32 = arith.constant 0 : i32
    %c0_i32_0 = arith.constant 0 : i32
    %c0_i32_1 = arith.constant 0 : i32
    return %c0_i32, %c0_i32_0 : i32, i32
  }
  func.func @transform_3(%arg0: i32) -> (i32, i32) {
    %c0_i32 = arith.constant 0 : i32
    %c0_i32_0 = arith.constant 0 : i32
    %c0_i32_1 = arith.constant 0 : i32
    return %c0_i32, %c0_i32_0 : i32, i32
  }
  func.func @transform_4(%arg0: i32) -> (i32, i32) {
    %c0_i32 = arith.constant 0 : i32
    %c0_i32_0 = arith.constant 0 : i32
    return %arg0, %c0_i32 : i32, i32
  }
  func.func @transform_5(%arg0: i32) -> (i32, i32, i32) {
    %c0_i32 = arith.constant 0 : i32
    %c0_i32_0 = arith.constant 0 : i32
    %c0_i32_1 = arith.constant 0 : i32
    return %arg0, %c0_i32, %c0_i32_0 : i32, i32, i32
  }
}

module attributes {stable_mosaic.version = 11 : i64} {
  func.func @_bnrelu_se_residual_kernel(%arg0: i32, %arg1: memref<1x256x128xbf16, #tpu.memory_space<vmem>>, %arg2: memref<1x128xf32, #tpu.memory_space<vmem>>, %arg3: memref<1x128xf32, #tpu.memory_space<vmem>>, %arg4: memref<128x4xbf16, #tpu.memory_space<vmem>>, %arg5: memref<4x128xbf16, #tpu.memory_space<vmem>>, %arg6: memref<1x256x128xf32, #tpu.memory_space<vmem>>, %arg7: memref<1x256x128xf32, #tpu.memory_space<vmem>>) attributes {dimension_semantics = [#tpu.dimension_semantics<parallel>], iteration_bounds = array<i64: 2>, scalar_prefetch = 0 : i64, scratch_operands = 0 : i64, tpu.core_type = #tpu.core_type<tc>, window_params = [{transform_indices = @transform_0, window_bounds = array<i64: 1, 256, 128>}, {pipeline_mode = #tpu.pipeline_mode<synchronous>, transform_indices = @transform_1, window_bounds = array<i64: 1, 128>}, {pipeline_mode = #tpu.pipeline_mode<synchronous>, transform_indices = @transform_2, window_bounds = array<i64: 1, 128>}, {pipeline_mode = #tpu.pipeline_mode<synchronous>, transform_indices = @transform_3, window_bounds = array<i64: 128, 4>}, {pipeline_mode = #tpu.pipeline_mode<synchronous>, transform_indices = @transform_4, window_bounds = array<i64: 4, 128>}, {transform_indices = @transform_5, window_bounds = array<i64: 1, 256, 128>}, {transform_indices = @transform_6, window_bounds = array<i64: 1, 256, 128>}]} {
    %c0 = arith.constant 0 : index
    %c0_0 = arith.constant 0 : index
    %c0_1 = arith.constant 0 : index
    %0 = vector.load %arg1[%c0, %c0_0, %c0_1] : memref<1x256x128xbf16, #tpu.memory_space<vmem>>, vector<1x256x128xbf16>
    %1 = vector.shape_cast %0 : vector<1x256x128xbf16> to vector<256x128xbf16>
    %2 = arith.extf %1 : vector<256x128xbf16> to vector<256x128xf32>
    %c0_2 = arith.constant 0 : index
    %c0_3 = arith.constant 0 : index
    %3 = vector.load %arg2[%c0_2, %c0_3] : memref<1x128xf32, #tpu.memory_space<vmem>>, vector<1x128xf32>
    %4 = vector.broadcast %3 : vector<1x128xf32> to vector<256x128xf32>
    %5 = arith.mulf %2, %4 : vector<256x128xf32>
    %c0_4 = arith.constant 0 : index
    %c0_5 = arith.constant 0 : index
    %6 = vector.load %arg3[%c0_4, %c0_5] : memref<1x128xf32, #tpu.memory_space<vmem>>, vector<1x128xf32>
    %7 = vector.broadcast %6 : vector<1x128xf32> to vector<256x128xf32>
    %8 = arith.addf %5, %7 : vector<256x128xf32>
    %cst = arith.constant 0.000000e+00 : f32
    %9 = vector.broadcast %cst : f32 to vector<256x128xf32>
    %10 = arith.maximumf %8, %9 : vector<256x128xf32>
    %cst_6 = arith.constant dense<0.000000e+00> : vector<128xf32>
    %11 = vector.multi_reduction <add>, %10, %cst_6 [0] : vector<256x128xf32> to vector<128xf32>
    %12 = vector.shape_cast %11 : vector<128xf32> to vector<1x128xf32>
    %cst_7 = arith.constant 2.560000e+02 : f32
    %13 = vector.broadcast %cst_7 : f32 to vector<1x128xf32>
    %14 = arith.divf %12, %13 : vector<1x128xf32>
    %15 = arith.truncf %14 : vector<1x128xf32> to vector<1x128xbf16>
    %c0_8 = arith.constant 0 : index
    %c0_9 = arith.constant 0 : index
    %16 = vector.load %arg4[%c0_8, %c0_9] : memref<128x4xbf16, #tpu.memory_space<vmem>>, vector<128x4xbf16>
    %cst_10 = arith.constant dense<0.000000e+00> : vector<1x4xf32>
    %17 = tpu.matmul %15, %16, %cst_10 {dimension_numbers = #tpu.dot_dimension_numbers<[1], [0], [0], [1], [0, 0, 1, 1], [], []>} : vector<1x128xbf16>, vector<128x4xbf16>, vector<1x4xf32> -> vector<1x4xf32>
    %cst_11 = arith.constant 0.000000e+00 : f32
    %18 = vector.broadcast %cst_11 : f32 to vector<1x4xf32>
    %19 = arith.maximumf %17, %18 : vector<1x4xf32>
    %20 = arith.truncf %19 : vector<1x4xf32> to vector<1x4xbf16>
    %c0_12 = arith.constant 0 : index
    %c0_13 = arith.constant 0 : index
    %21 = vector.load %arg5[%c0_12, %c0_13] : memref<4x128xbf16, #tpu.memory_space<vmem>>, vector<4x128xbf16>
    %cst_14 = arith.constant dense<0.000000e+00> : vector<1x128xf32>
    %22 = tpu.matmul %20, %21, %cst_14 {dimension_numbers = #tpu.dot_dimension_numbers<[1], [0], [0], [1], [0, 0, 1, 1], [], []>} : vector<1x4xbf16>, vector<4x128xbf16>, vector<1x128xf32> -> vector<1x128xf32>
    %cst_15 = arith.constant 0.000000e+00 : f32
    %23 = vector.broadcast %cst_15 : f32 to vector<1x128xf32>
    %24 = arith.subf %23, %22 : vector<1x128xf32>
    %25 = math.exp %24 : vector<1x128xf32>
    %cst_16 = arith.constant 1.000000e+00 : f32
    %26 = vector.broadcast %cst_16 : f32 to vector<1x128xf32>
    %27 = arith.addf %26, %25 : vector<1x128xf32>
    %cst_17 = arith.constant 1.000000e+00 : f32
    %28 = vector.broadcast %cst_17 : f32 to vector<1x128xf32>
    %29 = arith.divf %28, %27 : vector<1x128xf32>
    %30 = vector.broadcast %29 : vector<1x128xf32> to vector<256x128xf32>
    %31 = arith.mulf %10, %30 : vector<256x128xf32>
    %c0_18 = arith.constant 0 : index
    %c0_19 = arith.constant 0 : index
    %c0_20 = arith.constant 0 : index
    %32 = vector.load %arg6[%c0_18, %c0_19, %c0_20] : memref<1x256x128xf32, #tpu.memory_space<vmem>>, vector<1x256x128xf32>
    %33 = vector.shape_cast %32 : vector<1x256x128xf32> to vector<256x128xf32>
    %34 = arith.addf %31, %33 : vector<256x128xf32>
    %cst_21 = arith.constant 0.000000e+00 : f32
    %35 = vector.broadcast %cst_21 : f32 to vector<256x128xf32>
    %36 = arith.maximumf %34, %35 : vector<256x128xf32>
    %c0_22 = arith.constant 0 : index
    %c0_23 = arith.constant 0 : index
    %c0_24 = arith.constant 0 : index
    %37 = vector.load %arg7[%c0_22, %c0_23, %c0_24] : memref<1x256x128xf32, #tpu.memory_space<vmem>>, vector<1x256x128xf32>
    %38 = vector.shape_cast %37 : vector<1x256x128xf32> to vector<256x128xf32>
    %39 = vector.shape_cast %36 : vector<256x128xf32> to vector<1x256x128xf32>
    tpu.vector_store %arg7[%c0_22, %c0_23, %c0_24], %39 {strides = array<i32>} : memref<1x256x128xf32, #tpu.memory_space<vmem>>, vector<1x256x128xf32>,
    return
  }
  func.func @transform_0(%arg0: i32) -> (i32, i32, i32) {
    %c0_i32 = arith.constant 0 : i32
    %c0_i32_0 = arith.constant 0 : i32
    %c0_i32_1 = arith.constant 0 : i32
    return %arg0, %c0_i32, %c0_i32_0 : i32, i32, i32
  }
  func.func @transform_1(%arg0: i32) -> (i32, i32) {
    %c0_i32 = arith.constant 0 : i32
    %c0_i32_0 = arith.constant 0 : i32
    %c0_i32_1 = arith.constant 0 : i32
    return %c0_i32, %c0_i32_0 : i32, i32
  }
  func.func @transform_2(%arg0: i32) -> (i32, i32) {
    %c0_i32 = arith.constant 0 : i32
    %c0_i32_0 = arith.constant 0 : i32
    %c0_i32_1 = arith.constant 0 : i32
    return %c0_i32, %c0_i32_0 : i32, i32
  }
  func.func @transform_3(%arg0: i32) -> (i32, i32) {
    %c0_i32 = arith.constant 0 : i32
    %c0_i32_0 = arith.constant 0 : i32
    %c0_i32_1 = arith.constant 0 : i32
    return %c0_i32, %c0_i32_0 : i32, i32
  }
  func.func @transform_4(%arg0: i32) -> (i32, i32) {
    %c0_i32 = arith.constant 0 : i32
    %c0_i32_0 = arith.constant 0 : i32
    %c0_i32_1 = arith.constant 0 : i32
    return %c0_i32, %c0_i32_0 : i32, i32
  }
  func.func @transform_5(%arg0: i32) -> (i32, i32, i32) {
    %c0_i32 = arith.constant 0 : i32
    %c0_i32_0 = arith.constant 0 : i32
    %c0_i32_1 = arith.constant 0 : i32
    return %arg0, %c0_i32, %c0_i32_0 : i32, i32, i32
  }
  func.func @transform_6(%arg0: i32) -> (i32, i32, i32) {
    %c0_i32 = arith.constant 0 : i32
    %c0_i32_0 = arith.constant 0 : i32
    %c0_i32_1 = arith.constant 0 : i32
    return %arg0, %c0_i32, %c0_i32_0 : i32, i32, i32
  }
}

</mosaic_0001>

<bundles_post_ra>
// kernel: block_forward.6
= control target key start
LH: loop header
LB: loop body
LE: loop exit
PB: predicated region body
PF: predicated region fallthrough
CT: control target
= control target key end

     0   :  { %s795_s18 = smov 0   ;;  %s857_s0 = inlined_call_operand.vmem [shape: bf16[512,128], index: 0, kind: input, shape index: {}]   ;;  %s858_s1 = inlined_call_operand.vmem [shape: f32[1,128], index: 1, kind: input, shape index: {}]   ;;  %s859_s2 = inlined_call_operand.vmem [shape: f32[1,128], index: 2, kind: input, shape index: {}]   ;;  %s860_s3 = inlined_call_operand.vmem [shape: bf16[128,128], index: 3, kind: input, shape index: {}]   ;;  %s861_s4 = inlined_call_operand.vmem [shape: bf16[512,128], index: 4, kind: output, shape index: {0}]   ;;  %s862_s5 = inlined_call_operand.vmem [shape: f32[8,2,128], index: 5, kind: output, shape index: {1}]  }
   0x1 LB: > { %s801_s19 = sadd.s32 4294967295, %s763_s18   ;;  %p613_p0 = scmp.ge.s32.totalorder %s763_s18, 1  ;;  %s763_s18 = sphi %s795_s18, %s16_s18  }
   0x2   : > { %p191_p1 = scmp.lt.s32.totalorder %s763_s18, 9 }
   0x4   : > { %p192_p2 = pnand %p613_p0, %p191_p1 }
   0x5   : > { %s614_s22 = sshll.u32 (!%p192_p2), %s801_s19, 3  ;;  %p235_p4 = scmp.lt.s32.totalorder (!%p192_p2), %s801_s19, 7 }
   0x6   : > { %195 = sbr.rel (%p192_p2) target bundleno = 307 (0x133), region = 36  ;;  %p224_p3 = scmp.lt.s32.totalorder (!%p192_p2), %s614_s22, 63 }
   0xb   : > { %v749_v0 = vld [vmem:[%s860_s3 + $0x38] sm:$0xff]   ;;  %v750_v1 = vld [vmem:[%s860_s3 + $0x30] sm:$0xff]   ;;  %s864_s22 = smov (!%p224_p3, %s614_s22), 63  ;;  %v751_v2 = vld [vmem:[%s860_s3 + $0x28] sm:$0xff]   ;;  %s866_s19 = smov (!%p235_p4, %s801_s19), 7  ;;  %vm483_vm0 = vcmask 1040384  }
   0xc   : > { %701 = vmatprep.subr.bf16.mxu0 %v749_v0  ;;  %725 = vmatprep.subr.bf16.mxu1 %v749_v0  ;;  %s615_s27 = sshll.u32 %s864_s22, 2  ;;  %v752_v3 = vld [vmem:[%s860_s3 + $0x20] sm:$0xff]   ;;  %v753_v16 = vld [vmem:[%s860_s3 + $0x18] sm:$0xff]   ;;  %v754_v29 = vld [vmem:[%s860_s3 + $0x10] sm:$0xff]   ;;  %s618_s22 = sshll.u32 %s866_s19, 1 }
   0xd   : > { %702 = vmatpush3.bf16.msra.mxu0 %v749_v0  ;;  %733 = vmatpush3.bf16.msra.mxu1 %v749_v0  ;;  %s227_s30 = scalar_lea.vmem %s857_s0, %s615_s27  ;;  %v619_v5 = vld [vmem:[%s858_s1] ss:$0 sm:$0xff]  ;;  %v755_v38 = vld [vmem:[%s860_s3 + $0x8] sm:$0xff]   ;;  %s233_s25 = scalar_lea.vmem %s861_s4, %s615_s27 }
   0xe   : > { %703 = vmatprep.subr.bf16.mxu0 %v750_v1  ;;  %726 = vmatprep.subr.bf16.mxu1 %v750_v1  ;;  %v648_v4 = vld [vmem:[%s227_s30] sm:$0xff]   ;;  %v684_v8 = vld [vmem:[%s227_s30 + $0x10] sm:$0xff]   ;;  %v683_v12 = vld [vmem:[%s227_s30 + $0x8] sm:$0xff]   ;;  %s238_s28 = scalar_lea.vmem %s862_s5, %s618_s22 }
   0xf   : > { %v649_v6 = vunpack.c.l.bf16 %v648_v4  ;;  %v650_v7 = vunpack.c.h.bf16 %v648_v4  ;;  %v620_v9 = vld [vmem:[%s859_s2] ss:$0 sm:$0xff]  ;;  %v657_v10 = vunpack.c.l.bf16 %v684_v8  ;;  %v658_v11 = vunpack.c.h.bf16 %v684_v8  ;;  %v685_v15 = vld [vmem:[%s227_s30 + $0x18] sm:$0xff]  }
  0x10   : > { %v653_v21 = vunpack.c.l.bf16 %v683_v12  ;;  %v654_v22 = vunpack.c.h.bf16 %v683_v12  ;;  %v661_v25 = vunpack.c.l.bf16 %v685_v15  ;;  %v662_v26 = vunpack.c.h.bf16 %v685_v15  ;;  %v756_v43 = vld [vmem:[%s860_s3] sm:$0xff]  }
  0x11   : > { %704 = vmatpush3.bf16.msra.mxu0 %v750_v1  ;;  %734 = vmatpush3.bf16.msra.mxu1 %v750_v1  ;;  %v263_v13 = vmul.f32 %v649_v6, %v619_v5  ;;  %v264_v14 = vmul.f32 %v650_v7, %v619_v5  ;;  %v267_v17 = vmul.f32 %v657_v10, %v619_v5 }
  0x12   : > { %705 = vmatprep.subr.bf16.mxu0 %v751_v2  ;;  %727 = vmatprep.subr.bf16.mxu1 %v751_v2  ;;  %v268_v18 = vmul.f32 %v658_v11, %v619_v5  ;;  %v265_v33 = vmul.f32 %v653_v21, %v619_v5  ;;  %v266_v35 = vmul.f32 %v654_v22, %v619_v5 }
  0x13   : > { %v278_v19 = vadd.f32 %v620_v9, %v263_v13  ;;  %v279_v20 = vadd.f32 %v620_v9, %v264_v14  ;;  %v282_v23 = vadd.f32 %v620_v9, %v267_v17  ;;  %v269_v36 = vmul.f32 %v661_v25, %v619_v5 }
  0x14   : > { %v283_v24 = vadd.f32 %v620_v9, %v268_v18  ;;  %v270_v37 = vmul.f32 %v662_v26, %v619_v5  ;;  %v280_v39 = vadd.f32 %v620_v9, %v265_v33  ;;  %v281_v40 = vadd.f32 %v620_v9, %v266_v35 }
  0x15   : > { %706 = vmatpush3.bf16.msra.mxu0 %v751_v2  ;;  %735 = vmatpush3.bf16.msra.mxu1 %v751_v2  ;;  %v286_v27 = vmax.f32 %v278_v19, 0.0  ;;  %v287_v28 = vmax.f32 %v279_v20, 0.0  ;;  %v290_v30 = vmax.f32 %v282_v23, 0.0  ;;  %v284_v41 = vadd.f32 %v620_v9, %v269_v36 }
  0x16   : > { %707 = vmatprep.subr.bf16.mxu0 %v752_v3  ;;  %728 = vmatprep.subr.bf16.mxu1 %v752_v3  ;;  %v291_v31 = vmax.f32 %v283_v24, 0.0  ;;  %v285_v42 = vadd.f32 %v620_v9, %v270_v37  ;;  %v288_v44 = vmax.f32 %v280_v39, 0.0  ;;  %v289_v45 = vmax.f32 %v281_v40, 0.0 }
  0x17   : > { %v294_v32 = vpack.c.bf16 %v287_v28, %v286_v27  ;;  %v292_v46 = vmax.f32 %v284_v41, 0.0 }
  0x18   : > { %v296_v34 = vpack.c.bf16 %v291_v31, %v290_v30  ;;  %v293_v47 = vmax.f32 %v285_v42, 0.0  ;;  %v295_v48 = vpack.c.bf16 %v289_v45, %v288_v44 }
  0x19   : > { %708 = vmatpush3.bf16.msra.mxu0 %v752_v3  ;;  %736 = vmatpush3.bf16.msra.mxu1 %v752_v3 }
  0x1a   : > { %709 = vmatprep.subr.bf16.mxu0 %v753_v16  ;;  %729 = vmatprep.subr.bf16.mxu1 %v753_v16  ;;  %v297_v49 = vpack.c.bf16 %v293_v47, %v292_v46 }
  0x1b   : > { %717 = vmatprep.mubr.bf16.mxu0 %v294_v32  ;;  %721 = vmatprep.mubr.bf16.mxu1 %v296_v34 }
  0x1d   : > { %710 = vmatpush3.bf16.msra.mxu0 %v753_v16  ;;  %737 = vmatpush3.bf16.msra.mxu1 %v753_v16 }
  0x1e   : > { %711 = vmatprep.subr.bf16.mxu0 %v754_v29  ;;  %730 = vmatprep.subr.bf16.mxu1 %v754_v29 }
  0x21   : > { %712 = vmatpush3.bf16.msra.mxu0 %v754_v29  ;;  %738 = vmatpush3.bf16.msra.mxu1 %v754_v29 }
  0x22   : > { %713 = vmatprep.subr.bf16.mxu0 %v755_v38  ;;  %731 = vmatprep.subr.bf16.mxu1 %v755_v38 }
  0x25   : > { %714 = vmatpush3.bf16.msra.mxu0 %v755_v38  ;;  %739 = vmatpush3.bf16.msra.mxu1 %v755_v38 }
  0x26   : > { %715 = vmatprep.subr.bf16.mxu0 %v756_v43  ;;  %732 = vmatprep.subr.bf16.mxu1 %v756_v43 }
  0x29   : > { %716 = vmatpush3.bf16.msra.mxu0 %v756_v43  ;;  %740 = vmatpush3.bf16.msra.mxu1 %v756_v43 }
  0x2c   : > { %718 = vmatmul.mubr.bf16.vlgmr.msra.gmra.mxu0 %v295_v48  ;;  %722 = vmatmul.mubr.bf16.vlgmr.msra.gmra.mxu1 %v297_v49 }
  0xec   : > { %v719_v50 = vpop.f32.mrf.mxu0  ;;  %v723_v51 = vpop.f32.mrf.mxu1 }
  0xee   : > { %v396_v52 = vpop.f32.mrf.mxu0  ;;  %v412_v53 = vpop.f32.mrf.mxu1 }
  0xf0   : > { %v720_v54 = vpop.f32.mrf.mxu0  ;;  %v724_v55 = vpop.f32.mrf.mxu1 }
  0xf1   : > { %v428_v56 = vpack.c.bf16 %v720_v54, %v719_v50  ;;  %v430_v57 = vpack.c.bf16 %v724_v55, %v723_v51 }
  0xf2   : > { %v399_v58 = vpop.f32.mrf.mxu0  ;;  %v415_v59 = vpop.f32.mrf.mxu1 }
  0xf3   : > { %686 = vst [vmem:[%s233_s25 + $0x8] sm:$0xff] %v428_v56   ;;  %688 = vst [vmem:[%s233_s25 + $0x18] sm:$0xff] %v430_v57   ;;  %v427_v60 = vpack.c.bf16 %v399_v58, %v396_v52  ;;  %v429_v61 = vpack.c.bf16 %v415_v59, %v412_v53  ;;  %v433_v0 = vunpack.c.l.bf16 %v428_v56  ;;  %v434_v2 = vunpack.c.h.bf16 %v428_v56 }
  0xf4   : > { %v437_v8 = vunpack.c.l.bf16 %v430_v57  ;;  %v438_v10 = vunpack.c.h.bf16 %v430_v57 }
  0xf5   : > { %v431_v62 = vunpack.c.l.bf16 %v427_v60  ;;  %v432_v63 = vunpack.c.h.bf16 %v427_v60  ;;  %667 = vst [vmem:[%s233_s25] sm:$0xff] %v427_v60   ;;  %687 = vst [vmem:[%s233_s25 + $0x10] sm:$0xff] %v429_v61   ;;  %v435_v4 = vunpack.c.l.bf16 %v429_v61  ;;  %v436_v6 = vunpack.c.h.bf16 %v429_v61 }
  0xf7   : > { %v439_v1 = vadd.f32 %v432_v63, %v431_v62 }
  0xf9   : > { %v440_v3 = vadd.f32 %v439_v1, %v433_v0 }
  0xfb   : > { %v441_v5 = vadd.f32 %v440_v3, %v434_v2 }
  0xfd   : > { %v442_v7 = vadd.f32 %v441_v5, %v435_v4 }
  0xff   : > { %v443_v9 = vadd.f32 %v442_v7, %v436_v6 }
 0x101   : > { %v444_v11 = vadd.f32 %v443_v9, %v437_v8 }
 0x103   : > { %v445_v12 = vadd.f32 %v444_v11, %v438_v10 }
 0x105   : > { %v446_v13 = vrot.slane %v445_v12, 4 }
 0x107   : > { %v447_v14 = vadd.f32 %v446_v13, %v445_v12 }
 0x109   : > { %v448_v15 = vrot.slane %v447_v14, 2 }
 0x10b   : > { %v449_v16 = vadd.f32 %v448_v15, %v447_v14 }
 0x10d   : > { %v450_v17 = vrot.slane %v449_v16, 1 }
 0x10f   : > { %v451_v18 = vadd.f32 %v450_v17, %v449_v16 }
 0x111   : > { %v453_v19 = vmul.f32 0.015625, %v451_v18 }
 0x113   : > { %v454_v20 = vsub.f32 %v431_v62, %v453_v19  ;;  %v455_v21 = vsub.f32 %v432_v63, %v453_v19  ;;  %v456_v22 = vsub.f32 %v433_v0, %v453_v19  ;;  %v457_v23 = vsub.f32 %v434_v2, %v453_v19 }
 0x114   : > { %v458_v26 = vsub.f32 %v435_v4, %v453_v19  ;;  %v459_v29 = vsub.f32 %v436_v6, %v453_v19  ;;  %v460_v32 = vsub.f32 %v437_v8, %v453_v19  ;;  %v461_v35 = vsub.f32 %v438_v10, %v453_v19 }
 0x115   : > { %v462_v24 = vmul.f32 %v454_v20, %v454_v20  ;;  %v463_v25 = vmul.f32 %v455_v21, %v455_v21  ;;  %v464_v27 = vmul.f32 %v456_v22, %v456_v22  ;;  %v465_v30 = vmul.f32 %v457_v23, %v457_v23 }
 0x116   : > { %v466_v33 = vmul.f32 %v458_v26, %v458_v26  ;;  %v467_v36 = vmul.f32 %v459_v29, %v459_v29  ;;  %v468_v38 = vmul.f32 %v460_v32, %v460_v32  ;;  %v469_v40 = vmul.f32 %v461_v35, %v461_v35 }
 0x117   : > { %v470_v28 = vadd.f32 %v463_v25, %v462_v24 }
 0x119   : > { %v471_v31 = vadd.f32 %v470_v28, %v464_v27 }
 0x11b   : > { %v472_v34 = vadd.f32 %v471_v31, %v465_v30 }
 0x11d   : > { %v473_v37 = vadd.f32 %v472_v34, %v466_v33 }
 0x11f   : > { %v474_v39 = vadd.f32 %v473_v37, %v467_v36 }
 0x121   : > { %v475_v41 = vadd.f32 %v474_v39, %v468_v38 }
 0x123   : > { %v476_v42 = vadd.f32 %v475_v41, %v469_v40 }
 0x125   : > { %v477_v43 = vrot.slane %v476_v42, 4 }
 0x127   : > { %v478_v44 = vadd.f32 %v477_v43, %v476_v42 }
 0x129   : > { %v479_v45 = vrot.slane %v478_v44, 2 }
 0x12b   : > { %v480_v46 = vadd.f32 %v479_v45, %v478_v44 }
 0x12d   : > { %v481_v47 = vrot.slane %v480_v46, 1 }
 0x12f   : > { %v482_v48 = vadd.f32 %v481_v47, %v480_v46 }
 0x131   : > { %v484_v49 = vsel %vm483_vm0, %v453_v19, %v482_v48 }
 0x132   : > { %521 = vst [vmem:[%s238_s28] sm:$0x3] %v484_v49 }
 0x133 PF: > { %s16_s18 = sadd.s32 1, %s763_s18  }
 0x134   : > { %p13_p5 = scmp.ge.s32.totalorder %s16_s18, 10  }
 0x136   :  { %15 = sbr.rel (!%p13_p5) target bundleno = 1 (0x1), region = 78 }

// kernel: block_forward.4
= control target key start
LH: loop header
LB: loop body
LE: loop exit
PB: predicated region body
PF: predicated region fallthrough
CT: control target
= control target key end

     0   :  { %s621_s12 = smov 0   ;;  %s666_s0 = inlined_call_operand.vmem [shape: f32[512,64], index: 0, kind: input, shape index: {}]   ;;  %s667_s1 = inlined_call_operand.vmem [shape: bf16[64,128], index: 1, kind: input, shape index: {}]   ;;  %s668_s2 = inlined_call_operand.vmem [shape: bf16[512,128], index: 2, kind: output, shape index: {0}]   ;;  %s669_s3 = inlined_call_operand.vmem [shape: f32[8,2,128], index: 3, kind: output, shape index: {1}]  }
   0x1 LB: > { %s627_s13 = sadd.s32 4294967295, %s599_s12   ;;  %p494_p0 = scmp.ge.s32.totalorder %s599_s12, 1  ;;  %s599_s12 = sphi %s621_s12, %s14_s12  }
   0x2   : > { %p141_p1 = scmp.lt.s32.totalorder %s599_s12, 9 }
   0x4   : > { %p142_p2 = pnand %p494_p0, %p141_p1 }
   0x5   : > { %s495_s16 = sshll.u32 (!%p142_p2), %s627_s13, 3  ;;  %p181_p4 = scmp.lt.s32.totalorder (!%p142_p2), %s627_s13, 7 }
   0x6   : > { %145 = sbr.rel (%p142_p2) target bundleno = 291 (0x123), region = 28  ;;  %p170_p3 = scmp.lt.s32.totalorder (!%p142_p2), %s495_s16, 63 }
   0xb   : > { %v589_v0 = vld [vmem:[%s667_s1 + $0x18] sm:$0xff]   ;;  %v590_v1 = vld [vmem:[%s667_s1 + $0x10] sm:$0xff]   ;;  %s671_s16 = smov (!%p170_p3, %s495_s16), 63  ;;  %v591_v2 = vld [vmem:[%s667_s1 + $0x8] sm:$0xff]   ;;  %vm230_vm0 = vcmask 523264   ;;  %s673_s13 = smov (!%p181_p4, %s627_s13), 7 }
   0xc   : > { %557 = vmatprep.subr.bf16.mxu0 %v589_v0  ;;  %573 = vmatprep.subr.bf16.mxu1 %v589_v0  ;;  %s496_s21 = sshll.u32 %s671_s16, 3  ;;  %v592_v6 = vld [vmem:[%s667_s1] sm:$0xff]   ;;  %s498_s27 = sshll.u32 %s671_s16, 2  ;;  %vm364_vm1 = vcmask 1040384  }
   0xd   : > { %558 = vmatpush3.bf16.msra.mxu0 %v589_v0  ;;  %577 = vmatpush3.bf16.msra.mxu1 %v589_v0  ;;  %s173_s24 = scalar_lea.vmem %s666_s0, %s496_s21  ;;  %s179_s30 = scalar_lea.vmem %s668_s2, %s498_s27 }
   0xe   : > { %559 = vmatprep.subr.bf16.mxu0 %v590_v1  ;;  %574 = vmatprep.subr.bf16.mxu1 %v590_v1  ;;  %v186_v3 = vld [vmem:[%s173_s24] sm:$0xff]  ;;  %v187_v4 = vld [vmem:[%s173_s24 + $0x8] sm:$0xff]  ;;  %v188_v10 = vld [vmem:[%s173_s24 + $0x10] sm:$0xff]  ;;  %s499_s4 = sshll.u32 %s673_s13, 1 }
   0xf   : > { %v190_v5 = vld [vmem:[%s173_s24 + $0x20] sm:$0xff]  ;;  %v194_v7 = vpack.c.bf16 %v187_v4, %v186_v3  ;;  %v191_v8 = vld [vmem:[%s173_s24 + $0x28] sm:$0xff]  ;;  %v189_v11 = vld [vmem:[%s173_s24 + $0x18] sm:$0xff]  ;;  %s184_s7 = scalar_lea.vmem %s669_s3, %s499_s4 }
  0x10   : > { %v196_v9 = vpack.c.bf16 %v191_v8, %v190_v5  ;;  %v192_v12 = vld [vmem:[%s173_s24 + $0x30] sm:$0xff]  ;;  %v193_v13 = vld [vmem:[%s173_s24 + $0x38] sm:$0xff]  ;;  %v195_v14 = vpack.c.bf16 %v189_v11, %v188_v10 }
  0x11   : > { %560 = vmatpush3.bf16.msra.mxu0 %v590_v1  ;;  %578 = vmatpush3.bf16.msra.mxu1 %v590_v1  ;;  %v197_v15 = vpack.c.bf16 %v193_v13, %v192_v12 }
  0x12   : > { %561 = vmatprep.subr.bf16.mxu0 %v591_v2  ;;  %575 = vmatprep.subr.bf16.mxu1 %v591_v2 }
  0x13   : > { %565 = vmatprep.mubr.msk.bf16.mxu0 %vm230_vm0, %v194_v7  ;;  %569 = vmatprep.mubr.msk.bf16.mxu1 %vm230_vm0, %v196_v9 }
  0x15   : > { %562 = vmatpush3.bf16.msra.mxu0 %v591_v2  ;;  %579 = vmatpush3.bf16.msra.mxu1 %v591_v2 }
  0x16   : > { %563 = vmatprep.subr.bf16.mxu0 %v592_v6  ;;  %576 = vmatprep.subr.bf16.mxu1 %v592_v6 }
  0x19   : > { %564 = vmatpush3.bf16.msra.mxu0 %v592_v6  ;;  %580 = vmatpush3.bf16.msra.mxu1 %v592_v6 }
  0x1c   : > { %566 = vmatmul.mubr.msk.bf16.vlgmr.msra.gmra.mxu0 %vm230_vm0, %v195_v14  ;;  %570 = vmatmul.mubr.msk.bf16.vlgmr.msra.gmra.mxu1 %vm230_vm0, %v197_v15 }
  0xdc   : > { %v567_v16 = vpop.f32.mrf.mxu0  ;;  %v571_v17 = vpop.f32.mrf.mxu1 }
  0xde   : > { %v277_v18 = vpop.f32.mrf.mxu0  ;;  %v293_v19 = vpop.f32.mrf.mxu1 }
  0xe0   : > { %v568_v20 = vpop.f32.mrf.mxu0  ;;  %v572_v21 = vpop.f32.mrf.mxu1 }
  0xe1   : > { %v309_v22 = vpack.c.bf16 %v568_v20, %v567_v16  ;;  %v311_v23 = vpack.c.bf16 %v572_v21, %v571_v17 }
  0xe2   : > { %v280_v24 = vpop.f32.mrf.mxu0  ;;  %v296_v25 = vpop.f32.mrf.mxu1 }
  0xe3   : > { %546 = vst [vmem:[%s179_s30 + $0x8] sm:$0xff] %v309_v22   ;;  %548 = vst [vmem:[%s179_s30 + $0x18] sm:$0xff] %v311_v23   ;;  %v308_v26 = vpack.c.bf16 %v280_v24, %v277_v18  ;;  %v310_v27 = vpack.c.bf16 %v296_v25, %v293_v19  ;;  %v314_v30 = vunpack.c.l.bf16 %v309_v22  ;;  %v315_v32 = vunpack.c.h.bf16 %v309_v22 }
  0xe4   : > { %v318_v38 = vunpack.c.l.bf16 %v311_v23  ;;  %v319_v40 = vunpack.c.h.bf16 %v311_v23 }
  0xe5   : > { %v312_v28 = vunpack.c.l.bf16 %v308_v26  ;;  %v313_v29 = vunpack.c.h.bf16 %v308_v26  ;;  %530 = vst [vmem:[%s179_s30] sm:$0xff] %v308_v26   ;;  %547 = vst [vmem:[%s179_s30 + $0x10] sm:$0xff] %v310_v27   ;;  %v316_v34 = vunpack.c.l.bf16 %v310_v27  ;;  %v317_v36 = vunpack.c.h.bf16 %v310_v27 }
  0xe7   : > { %v320_v31 = vadd.f32 %v313_v29, %v312_v28 }
  0xe9   : > { %v321_v33 = vadd.f32 %v320_v31, %v314_v30 }
  0xeb   : > { %v322_v35 = vadd.f32 %v321_v33, %v315_v32 }
  0xed   : > { %v323_v37 = vadd.f32 %v322_v35, %v316_v34 }
  0xef   : > { %v324_v39 = vadd.f32 %v323_v37, %v317_v36 }
  0xf1   : > { %v325_v41 = vadd.f32 %v324_v39, %v318_v38 }
  0xf3   : > { %v326_v42 = vadd.f32 %v325_v41, %v319_v40 }
  0xf5   : > { %v327_v43 = vrot.slane %v326_v42, 4 }
  0xf7   : > { %v328_v44 = vadd.f32 %v327_v43, %v326_v42 }
  0xf9   : > { %v329_v45 = vrot.slane %v328_v44, 2 }
  0xfb   : > { %v330_v46 = vadd.f32 %v329_v45, %v328_v44 }
  0xfd   : > { %v331_v47 = vrot.slane %v330_v46, 1 }
  0xff   : > { %v332_v48 = vadd.f32 %v331_v47, %v330_v46 }
 0x101   : > { %v334_v49 = vmul.f32 0.015625, %v332_v48 }
 0x103   : > { %v335_v50 = vsub.f32 %v312_v28, %v334_v49  ;;  %v336_v51 = vsub.f32 %v313_v29, %v334_v49  ;;  %v337_v52 = vsub.f32 %v314_v30, %v334_v49  ;;  %v338_v53 = vsub.f32 %v315_v32, %v334_v49 }
 0x104   : > { %v339_v56 = vsub.f32 %v316_v34, %v334_v49  ;;  %v340_v59 = vsub.f32 %v317_v36, %v334_v49  ;;  %v341_v62 = vsub.f32 %v318_v38, %v334_v49  ;;  %v342_v1 = vsub.f32 %v319_v40, %v334_v49 }
 0x105   : > { %v343_v54 = vmul.f32 %v335_v50, %v335_v50  ;;  %v344_v55 = vmul.f32 %v336_v51, %v336_v51  ;;  %v345_v57 = vmul.f32 %v337_v52, %v337_v52  ;;  %v346_v60 = vmul.f32 %v338_v53, %v338_v53 }
 0x106   : > { %v347_v63 = vmul.f32 %v339_v56, %v339_v56  ;;  %v348_v2 = vmul.f32 %v340_v59, %v340_v59  ;;  %v349_v4 = vmul.f32 %v341_v62, %v341_v62  ;;  %v350_v6 = vmul.f32 %v342_v1, %v342_v1 }
 0x107   : > { %v351_v58 = vadd.f32 %v344_v55, %v343_v54 }
 0x109   : > { %v352_v61 = vadd.f32 %v351_v58, %v345_v57 }
 0x10b   : > { %v353_v0 = vadd.f32 %v352_v61, %v346_v60 }
 0x10d   : > { %v354_v3 = vadd.f32 %v353_v0, %v347_v63 }
 0x10f   : > { %v355_v5 = vadd.f32 %v354_v3, %v348_v2 }
 0x111   : > { %v356_v7 = vadd.f32 %v355_v5, %v349_v4 }
 0x113   : > { %v357_v8 = vadd.f32 %v356_v7, %v350_v6 }
 0x115   : > { %v358_v9 = vrot.slane %v357_v8, 4 }
 0x117   : > { %v359_v10 = vadd.f32 %v358_v9, %v357_v8 }
 0x119   : > { %v360_v11 = vrot.slane %v359_v10, 2 }
 0x11b   : > { %v361_v12 = vadd.f32 %v360_v11, %v359_v10 }
 0x11d   : > { %v362_v13 = vrot.slane %v361_v12, 1 }
 0x11f   : > { %v363_v14 = vadd.f32 %v362_v13, %v361_v12 }
 0x121   : > { %v365_v15 = vsel %vm364_vm1, %v334_v49, %v363_v14 }
 0x122   : > { %402 = vst [vmem:[%s184_s7] sm:$0x3] %v365_v15 }
 0x123 PF: > { %s14_s12 = sadd.s32 1, %s599_s12  }
 0x124   : > { %p11_p5 = scmp.ge.s32.totalorder %s14_s12, 10  }
 0x126   :  { %13 = sbr.rel (!%p11_p5) target bundleno = 1 (0x1), region = 70 }

// kernel: block_forward.7
= control target key start
LH: loop header
LB: loop body
LE: loop exit
PB: predicated region body
PF: predicated region fallthrough
CT: control target
= control target key end

     0   :  { %s1089_s21 = smov 0   ;;  %s1564_s0 = inlined_call_operand.vmem [shape: bf16[2,256,128], index: 0, kind: input, shape index: {}]   ;;  %s1565_s1 = inlined_call_operand.vmem [shape: f32[1,128], index: 1, kind: input, shape index: {}]   ;;  %s1566_s2 = inlined_call_operand.vmem [shape: f32[1,128], index: 2, kind: input, shape index: {}]   ;;  %s1567_s3 = inlined_call_operand.vmem [shape: bf16[128,4], index: 3, kind: input, shape index: {}]   ;;  %s1568_s4 = inlined_call_operand.vmem [shape: bf16[4,128], index: 4, kind: input, shape index: {}]   ;;  %s1569_s5 = inlined_call_operand.vmem [shape: f32[2,256,128], index: 5, kind: input, shape index: {}]   ;;  %s1570_s6 = inlined_call_operand.vmem [shape: f32[2,256,128], index: 6, kind: output, shape index: {}]  }
   0x1 LB: > { %s879_s22 = sadd.s32 4294967295, %s1050_s21   ;;  %p883_p0 = scmp.ge.s32.totalorder %s1050_s21, 1  ;;  %s1050_s21 = sphi %s1089_s21, %s16_s21  }
   0x2   : > { %p222_p1 = scmp.lt.s32.totalorder %s1050_s21, 3 }
   0x4   : > { %p223_p2 = pnand %p883_p0, %p222_p1 }
   0x5   : > { %p257_p3 = scmp.lt.s32.totalorder (!%p223_p2), %s879_s22, 1 }
   0x6   : > { %226 = sbr.rel (%p223_p2) target bundleno = 564 (0x234), region = 44 }
   0xb   : > { %v1032_v0 = vld [vmem:[%s1567_s3 + $0x38] sm:$0xff]   ;;  %v1052_v1 = vmov 0.0   ;;  %v1033_v2 = vld [vmem:[%s1567_s3 + $0x30] sm:$0xff]   ;;  %vm1053_vm0 = vmmov 0   ;;  %v1034_v3 = vld [vmem:[%s1567_s3 + $0x28] sm:$0xff]   ;;  %s1604_s22 = smov (!%p257_p3, %s879_s22), 1 }
   0xc   : > { %996 = vmatprep.subr.bf16.mxu0 %v1052_v1  ;;  %1016 = vmatprep.subr.bf16.mxu1 %v1052_v1  ;;  %v1035_v4 = vld [vmem:[%s1567_s3 + $0x20] sm:$0xff]   ;;  %v1036_v5 = vld [vmem:[%s1567_s3 + $0x18] sm:$0xff]   ;;  %s903_s9 = sshll.u32 %s1604_s22, 7  ;;  %v1037_v6 = vld [vmem:[%s1567_s3 + $0x10] sm:$0xff]   ;;  %vm598_vm1 = vcmask 1041408   ;;  %vm594_vm2 = vcmask 31744  }
   0xd   : > { %997 = vmatpush3.bf16.msra.mxu0 %v1032_v0  ;;  %1012 = vmatprep.mubr.msk.bf16.mxu0 %vm1053_vm0, %v1052_v1  ;;  %s1121_s14 = scalar_lea.vmem %s1564_s0, %s903_s9  ;;  %v1038_v7 = vld [vmem:[%s1567_s3 + $0x8] sm:$0xff]   ;;  %v1039_v12 = vld [vmem:[%s1567_s3] sm:$0xff]   ;;  %s904_s27 = sshll.u32 %s1604_s22, 8 }
   0xe   : > { %998 = vmatprep.subr.bf16.mxu0 %v1052_v1  ;;  %1018 = vmatprep.mubr.msk.bf16.mxu1 %vm1053_vm0, %v1052_v1  ;;  %v907_v8 = vld [vmem:[%s1121_s14] sm:$0xff]   ;;  %v970_v9 = vld [vmem:[%s1121_s14 + $0x8] sm:$0xff]   ;;  %v971_v15 = vld [vmem:[%s1121_s14 + $0x10] sm:$0xff]   ;;  %s1388_s30 = scalar_lea.vmem %s1569_s5, %s904_s27  ;;  %s1507_s9 = scalar_lea.vmem %s1570_s6, %s904_s27 }
   0xf   : > { %v908_v10 = vunpack.c.l.bf16 %v907_v8  ;;  %v909_v11 = vunpack.c.h.bf16 %v907_v8  ;;  %v1134_v13 = vld [vmem:[%s1565_s1] ss:$0 sm:$0xff]  ;;  %v912_v14 = vunpack.c.l.bf16 %v970_v9  ;;  %v913_v16 = vunpack.c.h.bf16 %v970_v9  ;;  %v972_v22 = vld [vmem:[%s1121_s14 + $0x18] sm:$0xff]   ;;  %v974_v37 = vld [vmem:[%s1121_s14 + $0x28] sm:$0xff]  }
  0x10   : > { %v1142_v19 = vld [vmem:[%s1566_s2] ss:$0 sm:$0xff]  ;;  %v916_v20 = vunpack.c.l.bf16 %v971_v15  ;;  %v917_v23 = vunpack.c.h.bf16 %v971_v15  ;;  %v920_v27 = vunpack.c.l.bf16 %v972_v22  ;;  %v921_v30 = vunpack.c.h.bf16 %v972_v22  ;;  %v975_v47 = vld [vmem:[%s1121_s14 + $0x30] sm:$0xff]   ;;  %v976_v58 = vld [vmem:[%s1121_s14 + $0x38] sm:$0xff]  }
  0x11   : > { %999 = vmatpush3.bf16.msra.mxu0 %v1033_v2  ;;  %v344_v17 = vmul.f32 %v908_v10, %v1134_v13  ;;  %v345_v18 = vmul.f32 %v909_v11, %v1134_v13  ;;  %v346_v21 = vmul.f32 %v912_v14, %v1134_v13  ;;  %v347_v24 = vmul.f32 %v913_v16, %v1134_v13  ;;  %v973_v31 = vld [vmem:[%s1121_s14 + $0x20] sm:$0xff]  }
  0x12   : > { %1000 = vmatprep.subr.bf16.mxu0 %v1052_v1  ;;  %v348_v28 = vmul.f32 %v916_v20, %v1134_v13  ;;  %v349_v32 = vmul.f32 %v917_v23, %v1134_v13  ;;  %v924_v36 = vunpack.c.l.bf16 %v973_v31  ;;  %v350_v38 = vmul.f32 %v920_v27, %v1134_v13 }
  0x13   : > { %v1148_v25 = vadd.f32 %v1142_v19, %v344_v17  ;;  %v1151_v26 = vadd.f32 %v1142_v19, %v345_v18  ;;  %v1155_v29 = vadd.f32 %v1142_v19, %v346_v21  ;;  %v1160_v33 = vadd.f32 %v1142_v19, %v347_v24  ;;  %v978_v17 = vld [vmem:[%s1121_s14 + $0x48] sm:$0xff]  }
  0x14   : > { %v1167_v39 = vadd.f32 %v1142_v19, %v348_v28  ;;  %v925_v41 = vunpack.c.h.bf16 %v973_v31  ;;  %v351_v42 = vmul.f32 %v921_v30, %v1134_v13  ;;  %v1172_v43 = vadd.f32 %v1142_v19, %v349_v32  ;;  %v979_v32 = vld [vmem:[%s1121_s14 + $0x50] sm:$0xff]  }
  0x15   : > { %1001 = vmatpush3.bf16.msra.mxu0 %v1034_v3  ;;  %v415_v34 = vmax.f32 %v1148_v25, 0.0  ;;  %v416_v35 = vmax.f32 %v1151_v26, 0.0  ;;  %v417_v40 = vmax.f32 %v1155_v29, 0.0  ;;  %v418_v44 = vmax.f32 %v1160_v33, 0.0 }
  0x16   : > { %1002 = vmatprep.subr.bf16.mxu0 %v1052_v1  ;;  %v928_v46 = vunpack.c.l.bf16 %v974_v37  ;;  %v352_v48 = vmul.f32 %v924_v36, %v1134_v13  ;;  %v1182_v49 = vadd.f32 %v1142_v19, %v350_v38  ;;  %v419_v50 = vmax.f32 %v1167_v39, 0.0 }
  0x17   : > { %v447_v45 = vadd.f32 %v416_v35, %v415_v34  ;;  %v929_v52 = vunpack.c.h.bf16 %v974_v37  ;;  %v353_v53 = vmul.f32 %v925_v41, %v1134_v13  ;;  %v1189_v54 = vadd.f32 %v1142_v19, %v351_v42 }
  0x18   : > { %v420_v55 = vmax.f32 %v1172_v43, 0.0  ;;  %v932_v57 = vunpack.c.l.bf16 %v975_v47  ;;  %v354_v59 = vmul.f32 %v928_v46, %v1134_v13  ;;  %v1197_v60 = vadd.f32 %v1142_v19, %v352_v48  ;;  %v685_v43 = vld [vmem:[%s1388_s30 + $0x8] sm:$0xff] }
  0x19   : > { %1003 = vmatpush3.bf16.msra.mxu0 %v1035_v4  ;;  %v448_v51 = vadd.f32 %v447_v45, %v417_v40  ;;  %v421_v61 = vmax.f32 %v1182_v49, 0.0  ;;  %v933_v63 = vunpack.c.h.bf16 %v975_v47  ;;  %v355_v0 = vmul.f32 %v929_v52, %v1134_v13  ;;  %v980_v52 = vld [vmem:[%s1121_s14 + $0x58] sm:$0xff]  }
  0x1a   : > { %1004 = vmatprep.subr.bf16.mxu0 %v1052_v1  ;;  %v422_v2 = vmax.f32 %v1189_v54, 0.0  ;;  %v936_v4 = vunpack.c.l.bf16 %v976_v58  ;;  %v423_v8 = vmax.f32 %v1197_v60, 0.0  ;;  %v937_v10 = vunpack.c.h.bf16 %v976_v58  ;;  %v687_v49 = vld [vmem:[%s1388_s30 + $0x18] sm:$0xff] }
  0x1b   : > { %v449_v56 = vadd.f32 %v448_v51, %v418_v44  ;;  %v357_v11 = vmul.f32 %v933_v63, %v1134_v13  ;;  %v944_v31 = vunpack.c.l.bf16 %v978_v17  ;;  %v945_v42 = vunpack.c.h.bf16 %v978_v17 }
  0x1c   : > { %v358_v18 = vmul.f32 %v936_v4, %v1134_v13  ;;  %v359_v24 = vmul.f32 %v937_v10, %v1134_v13  ;;  %v948_v51 = vunpack.c.l.bf16 %v979_v32  ;;  %v952_v4 = vunpack.c.l.bf16 %v980_v52 }
  0x1d   : > { %1005 = vmatpush3.bf16.msra.mxu0 %v1036_v5  ;;  %v450_v62 = vadd.f32 %v449_v56, %v419_v50  ;;  %v977_v5 = vld [vmem:[%s1121_s14 + $0x40] sm:$0xff]   ;;  %v1234_v27 = vadd.f32 %v1142_v19, %v357_v11 }
  0x1e   : > { %1006 = vmatprep.subr.bf16.mxu0 %v1052_v1  ;;  %v940_v16 = vunpack.c.l.bf16 %v977_v5  ;;  %v941_v23 = vunpack.c.h.bf16 %v977_v5  ;;  %v1242_v37 = vadd.f32 %v1142_v19, %v358_v18  ;;  %v1249_v46 = vadd.f32 %v1142_v19, %v359_v24  ;;  %v981_v5 = vld [vmem:[%s1121_s14 + $0x60] sm:$0xff]   ;;  %v982_v24 = vld [vmem:[%s1121_s14 + $0x68] sm:$0xff]  }
  0x1f   : > { %v451_v3 = vadd.f32 %v450_v62, %v420_v55  ;;  %v428_v47 = vmax.f32 %v1234_v27, 0.0  ;;  %v363_v62 = vmul.f32 %v945_v42, %v1134_v13 }
  0x20   : > { %v360_v36 = vmul.f32 %v940_v16, %v1134_v13  ;;  %v361_v45 = vmul.f32 %v941_v23, %v1134_v13  ;;  %v956_v23 = vunpack.c.l.bf16 %v981_v5  ;;  %v1587_v60 = vmax.f32 %v1249_v46, 0.0 }
  0x21   : > { %1007 = vmatpush3.bf16.msra.mxu0 %v1037_v6  ;;  %v356_v6 = vmul.f32 %v932_v57, %v1134_v13  ;;  %v452_v9 = vadd.f32 %v451_v3, %v421_v61  ;;  %v429_v57 = vmax.f32 %v1242_v37, 0.0  ;;  %v1279_v17 = vadd.f32 %v1142_v19, %v363_v62 }
  0x22   : > { %1008 = vmatprep.subr.bf16.mxu0 %v1052_v1  ;;  %v1257_v56 = vadd.f32 %v1142_v19, %v360_v36  ;;  %v1264_v63 = vadd.f32 %v1142_v19, %v361_v45 }
  0x23   : > { %v453_v15 = vadd.f32 %v452_v9, %v422_v2  ;;  %v1227_v20 = vadd.f32 %v1142_v19, %v356_v6  ;;  %v364_v6 = vmul.f32 %v948_v51, %v1134_v13  ;;  %v1591_v37 = vmax.f32 %v1279_v17, 0.0 }
  0x24   : > { %v1582_v10 = vmax.f32 %v1257_v56, 0.0  ;;  %v1573_v18 = vmax.f32 %v1264_v63, 0.0 }
  0x25   : > { %1009 = vmatpush3.bf16.msra.mxu0 %v1038_v7  ;;  %v1212_v7 = vadd.f32 %v1142_v19, %v354_v59  ;;  %v454_v22 = vadd.f32 %v453_v15, %v423_v8  ;;  %v427_v38 = vmax.f32 %v1227_v20, 0.0  ;;  %v949_v59 = vunpack.c.h.bf16 %v979_v32 }
  0x26   : > { %1010 = vmatprep.subr.bf16.mxu0 %v1052_v1  ;;  %v1204_v1 = vadd.f32 %v1142_v19, %v353_v53  ;;  %v362_v53 = vmul.f32 %v944_v31, %v1134_v13  ;;  %v953_v15 = vunpack.c.h.bf16 %v980_v52  ;;  %v1287_v31 = vadd.f32 %v1142_v19, %v364_v6 }
  0x27   : > { %v425_v21 = vmax.f32 %v1212_v7, 0.0  ;;  %v365_v16 = vmul.f32 %v949_v59, %v1134_v13  ;;  %v960_v52 = vunpack.c.l.bf16 %v982_v24  ;;  %v690_v7 = vld [vmem:[%s1388_s30 + $0x30] sm:$0xff]  ;;  %v1589_v20 = vmax.f32 %v1264_v63, 0.0 }
  0x28   : > { %v424_v14 = vmax.f32 %v1204_v1, 0.0  ;;  %v1272_v9 = vadd.f32 %v1142_v19, %v362_v53  ;;  %v367_v42 = vmul.f32 %v953_v15, %v1134_v13  ;;  %v983_v53 = vld [vmem:[%s1121_s14 + $0x70] sm:$0xff]   ;;  %v1574_v62 = vmax.f32 %v1287_v31, 0.0  ;;  %v688_v1 = vld [vmem:[%s1388_s30 + $0x20] sm:$0xff] }
  0x29   : > { %1011 = vmatpush3.bf16.msra.mxu0 %v1039_v12  ;;  %v1219_v12 = vadd.f32 %v1142_v19, %v355_v0  ;;  %v1583_v0 = vmax.f32 %v1249_v46, 0.0  ;;  %v1294_v45 = vadd.f32 %v1142_v19, %v365_v16  ;;  %v964_v16 = vunpack.c.l.bf16 %v983_v53  ;;  %v692_v46 = vld [vmem:[%s1388_s30 + $0x40] sm:$0xff] }
  0x2a   : > { %v455_v30 = vadd.f32 %v454_v22, %v424_v14  ;;  %v1572_v32 = vmax.f32 %v1272_v9, 0.0  ;;  %v1309_v6 = vadd.f32 %v1142_v19, %v367_v42  ;;  %v1590_v27 = vmax.f32 %v1272_v9, 0.0 }
  0x2b   : > { %v426_v28 = vmax.f32 %v1219_v12, 0.0  ;;  %v1588_v12 = vmax.f32 %v1257_v56, 0.0  ;;  %v1593_v56 = vmax.f32 %v1294_v45, 0.0 }
  0x2c   : > { %v456_v41 = vadd.f32 %v455_v30, %v425_v21  ;;  %v366_v30 = vmul.f32 %v952_v4, %v1134_v13  ;;  %v961_v4 = vunpack.c.h.bf16 %v982_v24  ;;  %v1595_v9 = vmax.f32 %v1309_v6, 0.0 }
  0x2e   : > { %v457_v48 = vadd.f32 %v456_v41, %v426_v28  ;;  %v957_v41 = vunpack.c.h.bf16 %v981_v5  ;;  %v1302_v59 = vadd.f32 %v1142_v19, %v366_v30  ;;  %v371_v42 = vmul.f32 %v961_v4, %v1134_v13 }
  0x30   : > { %v458_v58 = vadd.f32 %v457_v48, %v427_v38  ;;  %v1571_v48 = vmax.f32 %v1279_v17, 0.0  ;;  %v369_v5 = vmul.f32 %v957_v41, %v1134_v13  ;;  %v965_v41 = vunpack.c.h.bf16 %v983_v53 }
  0x31   : > { %v1594_v63 = vmax.f32 %v1302_v59, 0.0 }
  0x32   : > { %v459_v3 = vadd.f32 %v458_v58, %v428_v47  ;;  %v368_v58 = vmul.f32 %v956_v23, %v1134_v13  ;;  %v370_v23 = vmul.f32 %v960_v52, %v1134_v13 }
  0x34   : > { %v460_v11 = vadd.f32 %v459_v3, %v429_v57  ;;  %v1317_v30 = vadd.f32 %v1142_v19, %v368_v58  ;;  %v372_v58 = vmul.f32 %v964_v16, %v1134_v13 }
  0x36   : > { %v461_v22 = vadd.f32 %v460_v11, %v1583_v0  ;;  %v1575_v11 = vmax.f32 %v1294_v45, 0.0 }
  0x38   : > { %v462_v36 = vadd.f32 %v461_v22, %v1582_v10  ;;  %v984_v22 = vld [vmem:[%s1121_s14 + $0x78] sm:$0xff]  }
  0x39   : > { %v968_v52 = vunpack.c.l.bf16 %v984_v22  ;;  %v969_v4 = vunpack.c.h.bf16 %v984_v22 }
  0x3a   : > { %v463_v51 = vadd.f32 %v462_v36, %v1573_v18  ;;  %v1581_v36 = vmax.f32 %v1302_v59, 0.0  ;;  %v1579_v18 = vmax.f32 %v1317_v30, 0.0 }
  0x3b   : > { %v374_v16 = vmul.f32 %v968_v52, %v1134_v13  ;;  %v375_v22 = vmul.f32 %v969_v4, %v1134_v13 }
  0x3c   : > { %v464_v3 = vadd.f32 %v463_v51, %v1572_v32  ;;  %v1324_v51 = vadd.f32 %v1142_v19, %v369_v5  ;;  %v1331_v32 = vadd.f32 %v1142_v19, %v370_v23  ;;  %v373_v5 = vmul.f32 %v965_v41, %v1134_v13 }
  0x3d   : > { %v1345_v23 = vadd.f32 %v1142_v19, %v372_v58  ;;  %v1358_v52 = vadd.f32 %v1142_v19, %v374_v16 }
  0x3e   : > { %v465_v15 = vadd.f32 %v464_v3, %v1571_v48  ;;  %v1576_v3 = vmax.f32 %v1309_v6, 0.0  ;;  %v1352_v41 = vadd.f32 %v1142_v19, %v373_v5  ;;  %v1598_v45 = vmax.f32 %v1331_v32, 0.0 }
  0x3f   : > { %v443_v58 = vmax.f32 %v1345_v23, 0.0  ;;  %v1584_v5 = vmax.f32 %v1358_v52, 0.0 }
  0x40   : > { %v466_v24 = vadd.f32 %v465_v15, %v1574_v62  ;;  %v1338_v15 = vadd.f32 %v1142_v19, %v371_v42  ;;  %v1577_v62 = vmax.f32 %v1324_v51, 0.0  ;;  %v1585_v13 = vmax.f32 %v1352_v41, 0.0 }
  0x42   : > { %v467_v48 = vadd.f32 %v466_v24, %v1575_v11  ;;  %v1578_v11 = vmax.f32 %v1331_v32, 0.0  ;;  %v1580_v42 = vmax.f32 %v1338_v15, 0.0  ;;  %v1599_v59 = vmax.f32 %v1338_v15, 0.0 }
  0x44   : > { %v468_v53 = vadd.f32 %v467_v48, %v1581_v36 }
  0x46   : > { %v469_v24 = vadd.f32 %v468_v53, %v1576_v3 }
  0x48   : > { %v470_v48 = vadd.f32 %v469_v24, %v1579_v18  ;;  %v1364_v24 = vadd.f32 %v1142_v19, %v375_v22 }
  0x4a   : > { %v471_v53 = vadd.f32 %v470_v48, %v1577_v62  ;;  %v1586_v16 = vmax.f32 %v1364_v24, 0.0  ;;  %v1602_v32 = vmax.f32 %v1364_v24, 0.0 }
  0x4c   : > { %v472_v3 = vadd.f32 %v471_v53, %v1578_v11 }
  0x4e   : > { %v473_v4 = vadd.f32 %v472_v3, %v1580_v42 }
  0x50   : > { %v474_v48 = vadd.f32 %v473_v4, %v443_v58  ;;  %v593_v4 = vld [vmem:[%s1568_s4] sm:$0x3] }
  0x52   : > { %v475_v62 = vadd.f32 %v474_v48, %v1585_v13  ;;  %v600_v48 = vsel %vm598_vm1, %v593_v4, 0 }
  0x53   : > { %1017 = vmatpush3.bf16.msra.mxu1 %v600_v48  ;;  %v648_v48 = vlaneseq }
  0x54   : > { %v476_v53 = vadd.f32 %v475_v62, %v1584_v5 }
  0x56   : > { %v477_v19 = vadd.f32 %v476_v53, %v1586_v16 }
  0x58   : > { %v478_v22 = vrot.slane %v477_v19, 4 }
  0x5a   : > { %v479_v11 = vadd.f32 %v478_v22, %v477_v19 }
  0x5c   : > { %v480_v18 = vrot.slane %v479_v11, 2 }
  0x5e   : > { %v481_v3 = vadd.f32 %v480_v18, %v479_v11 }
  0x60   : > { %v482_v42 = vrot.slane %v481_v3, 1 }
  0x62   : > { %v483_v36 = vadd.f32 %v482_v42, %v481_v3 }
  0x64   : > { %v485_v10 = vmul.f32 0.00390625, %v483_v36 }
  0x66   : > { %v486_v0 = vpack.c.bf16 %v485_v10, %v485_v10 }
  0x68   : > { %1013 = vmatmul.mubr.bf16.vlgmr.msra.gmra.mxu0 %v486_v0 }
 0x128   : > { %v585_v62 = vpop.f32.mrf.mxu0 }
 0x129   : > { %v591_v5 = vmax.f32 %v585_v62, 0.0  ;;  %v649_v62 = vshrl.u32 %v648_v48, 7  ;;  %v1596_v48 = vmax.f32 %v1317_v30, 0.0  ;;  %v1600_v30 = vmax.f32 %v1352_v41, 0.0  ;;  %v704_v41 = vld [vmem:[%s1388_s30 + $0xa0] sm:$0xff] }
 0x12a   : > { %v1014_v13 = vpop.f32.mrf.mxu0 }
 0x12b   : > { %v592_v53 = vpack.c.bf16 %v591_v5, %v591_v5  ;;  %v650_v13 = vsub.s32 0, %v649_v62 }
 0x12c   : > { %v588_v19 = vpop.f32.mrf.mxu0 }
 0x12d   : > { %1019 = vmatmul.mubr.msk.bf16.vlgmr.msra.gmra.mxu1 %vm594_vm2, %v592_v53 }
 0x12e   : > { %v1015_v18 = vpop.f32.mrf.mxu0 }
 0x1ed   : > { %v636_v11 = vpop.f32.mrf.mxu1 }
 0x1ee   : > { %v642_v10 = vsub.f32 0.0, %v636_v11 }
 0x1ef   : > { %v1020_v0 = vpop.f32.mrf.mxu1 }
 0x1f0   : > { %v643_v36 = vmul.f32 1.442695, %v642_v10  ;;  %v1592_v10 = vmax.f32 %v1287_v31, 0.0  ;;  %v1597_v31 = vmax.f32 %v1324_v51, 0.0  ;;  %v1601_v51 = vmax.f32 %v1358_v52, 0.0  ;;  %v706_v52 = vld [vmem:[%s1388_s30 + $0xb0] sm:$0xff] }
 0x1f1   : > { %v639_v42 = vpop.f32.mrf.mxu1 }
 0x1f2   : > { %1040 = vpow2.f32 %v643_v36 }
 0x1f3   : > { %v1021_v22 = vpop.f32.mrf.mxu1 }
 0x1f4   : > { %v695_v22 = vld [vmem:[%s1388_s30 + $0x58] sm:$0xff] }
 0x1ff   : > { %v1041_v3 = vpop.eup %1040 }
 0x200   : > { %v645_v4 = vadd.f32 1.0, %v1041_v3  ;;  %v696_v3 = vld [vmem:[%s1388_s30 + $0x60] sm:$0xff] }
 0x202   : > { %1042 = vrcp.f32 %v645_v4  ;;  %v697_v4 = vld [vmem:[%s1388_s30 + $0x68] sm:$0xff] }
 0x20f   : > { %v1043_v16 = vpop.eup %1042 }
 0x210   : > { %v651_v5 = vrot.slane %v1043_v16, %v650_v13 }
 0x212   : > { %v652_v53 = vmul.f32 %v651_v5, %v415_v34  ;;  %v653_v19 = vmul.f32 %v651_v5, %v416_v35  ;;  %v654_v18 = vmul.f32 %v651_v5, %v417_v40  ;;  %v655_v16 = vmul.f32 %v651_v5, %v418_v44  ;;  %v684_v40 = vld [vmem:[%s1388_s30] sm:$0xff]  ;;  %v686_v44 = vld [vmem:[%s1388_s30 + $0x10] sm:$0xff] }
 0x213   : > { %v656_v11 = vmul.f32 %v651_v5, %v419_v50  ;;  %v657_v25 = vmul.f32 %v651_v5, %v420_v55  ;;  %v658_v34 = vmul.f32 %v651_v5, %v421_v61  ;;  %v659_v26 = vmul.f32 %v651_v5, %v422_v2  ;;  %v689_v2 = vld [vmem:[%s1388_s30 + $0x28] sm:$0xff] }
 0x214   : > { %v660_v29 = vmul.f32 %v651_v5, %v423_v8  ;;  %v661_v33 = vmul.f32 %v651_v5, %v424_v14  ;;  %v662_v35 = vmul.f32 %v651_v5, %v425_v21  ;;  %v663_v39 = vmul.f32 %v651_v5, %v426_v28  ;;  %v691_v8 = vld [vmem:[%s1388_s30 + $0x38] sm:$0xff] }
 0x215   : > { %v664_v50 = vmul.f32 %v651_v5, %v427_v38  ;;  %v665_v54 = vmul.f32 %v651_v5, %v428_v47  ;;  %v666_v55 = vmul.f32 %v651_v5, %v429_v57  ;;  %v667_v61 = vmul.f32 %v651_v5, %v1587_v60  ;;  %v693_v47 = vld [vmem:[%s1388_s30 + $0x48] sm:$0xff]  ;;  %v694_v57 = vld [vmem:[%s1388_s30 + $0x50] sm:$0xff] }
 0x216   : > { %v668_v14 = vmul.f32 %v651_v5, %v1588_v12  ;;  %v669_v21 = vmul.f32 %v651_v5, %v1589_v20  ;;  %v670_v28 = vmul.f32 %v651_v5, %v1590_v27  ;;  %v671_v38 = vmul.f32 %v651_v5, %v1591_v37  ;;  %v698_v12 = vld [vmem:[%s1388_s30 + $0x70] sm:$0xff]  ;;  %v699_v20 = vld [vmem:[%s1388_s30 + $0x78] sm:$0xff]  ;;  %v700_v27 = vld [vmem:[%s1388_s30 + $0x80] sm:$0xff] }
 0x217   : > { %v672_v0 = vmul.f32 %v651_v5, %v1592_v10  ;;  %v673_v36 = vmul.f32 %v651_v5, %v1593_v56  ;;  %v674_v42 = vmul.f32 %v651_v5, %v1594_v63  ;;  %v675_v17 = vmul.f32 %v651_v5, %v1595_v9  ;;  %v701_v63 = vld [vmem:[%s1388_s30 + $0x88] sm:$0xff]  ;;  %v702_v9 = vld [vmem:[%s1388_s30 + $0x90] sm:$0xff] }
 0x218   : > { %v676_v62 = vmul.f32 %v651_v5, %v1596_v48  ;;  %v677_v13 = vmul.f32 %v651_v5, %v1597_v31  ;;  %v678_v60 = vmul.f32 %v651_v5, %v1598_v45  ;;  %v679_v6 = vmul.f32 %v651_v5, %v1599_v59  ;;  %v703_v48 = vld [vmem:[%s1388_s30 + $0x98] sm:$0xff] }
 0x219   : > { %v680_v37 = vmul.f32 %v651_v5, %v443_v58  ;;  %v681_v10 = vmul.f32 %v651_v5, %v1600_v30  ;;  %v682_v56 = vmul.f32 %v651_v5, %v1601_v51  ;;  %v683_v15 = vmul.f32 %v651_v5, %v1602_v32  ;;  %v705_v58 = vld [vmem:[%s1388_s30 + $0xa8] sm:$0xff]  ;;  %v707_v32 = vld [vmem:[%s1388_s30 + $0xb8] sm:$0xff] }
 0x21a   : > { %v716_v31 = vadd.f32 %v684_v40, %v652_v53  ;;  %v717_v45 = vadd.f32 %v685_v43, %v653_v19  ;;  %v718_v59 = vadd.f32 %v686_v44, %v654_v18  ;;  %v719_v23 = vadd.f32 %v687_v49, %v655_v16  ;;  %v708_v40 = vld [vmem:[%s1388_s30 + $0xc0] sm:$0xff]  ;;  %v709_v53 = vld [vmem:[%s1388_s30 + $0xc8] sm:$0xff]  ;;  %v710_v16 = vld [vmem:[%s1388_s30 + $0xd0] sm:$0xff] }
 0x21b   : > { %v720_v30 = vadd.f32 %v688_v1, %v656_v11  ;;  %v721_v51 = vadd.f32 %v689_v2, %v657_v25  ;;  %v722_v24 = vadd.f32 %v690_v7, %v658_v34  ;;  %v723_v5 = vadd.f32 %v691_v8, %v659_v26  ;;  %v711_v49 = vld [vmem:[%s1388_s30 + $0xd8] sm:$0xff]  ;;  %v712_v1 = vld [vmem:[%s1388_s30 + $0xe0] sm:$0xff]  ;;  %v713_v34 = vld [vmem:[%s1388_s30 + $0xe8] sm:$0xff] }
 0x21c   : > { %v724_v19 = vadd.f32 %v692_v46, %v660_v29  ;;  %v725_v43 = vadd.f32 %v693_v47, %v661_v33  ;;  %v726_v18 = vadd.f32 %v694_v57, %v662_v35  ;;  %v727_v44 = vadd.f32 %v695_v22, %v663_v39  ;;  %v714_v8 = vld [vmem:[%s1388_s30 + $0xf0] sm:$0xff]  ;;  %v715_v26 = vld [vmem:[%s1388_s30 + $0xf8] sm:$0xff] }
 0x21d   : > { %v728_v11 = vadd.f32 %v696_v3, %v664_v50  ;;  %v729_v2 = vadd.f32 %v697_v4, %v665_v54  ;;  %v730_v25 = vadd.f32 %v698_v12, %v666_v55  ;;  %v731_v7 = vadd.f32 %v699_v20, %v667_v61 }
 0x21e   : > { %v732_v29 = vadd.f32 %v700_v27, %v668_v14  ;;  %v733_v46 = vadd.f32 %v701_v63, %v669_v21  ;;  %v734_v33 = vadd.f32 %v702_v9, %v670_v28  ;;  %v735_v47 = vadd.f32 %v703_v48, %v671_v38 }
 0x21f   : > { %v1486_v35 = vadd.f32 %v704_v41, %v672_v0  ;;  %v1488_v57 = vadd.f32 %v705_v58, %v673_v36  ;;  %v1490_v39 = vadd.f32 %v706_v52, %v674_v42  ;;  %v1492_v22 = vadd.f32 %v707_v32, %v675_v17 }
 0x220   : > { %v1494_v50 = vadd.f32 %v708_v40, %v676_v62  ;;  %v1496_v54 = vadd.f32 %v709_v53, %v677_v13  ;;  %v1498_v55 = vadd.f32 %v710_v16, %v678_v60  ;;  %v1500_v61 = vadd.f32 %v711_v49, %v679_v6 }
 0x221   : > { %v1509_v14 = vadd.f32 %v712_v1, %v680_v37  ;;  %v1511_v21 = vadd.f32 %v713_v34, %v681_v10  ;;  %v1513_v28 = vadd.f32 %v714_v8, %v682_v56  ;;  %v1515_v38 = vadd.f32 %v715_v26, %v683_v15 }
 0x222   : > { %v748_v0 = vmax.f32 %v716_v31, 0.0  ;;  %v749_v36 = vmax.f32 %v717_v45, 0.0  ;;  %v750_v42 = vmax.f32 %v718_v59, 0.0  ;;  %v751_v17 = vmax.f32 %v719_v23, 0.0 }
 0x223   : > { %v752_v3 = vmax.f32 %v720_v30, 0.0  ;;  %v753_v4 = vmax.f32 %v721_v51, 0.0  ;;  %v754_v62 = vmax.f32 %v722_v24, 0.0  ;;  %v755_v13 = vmax.f32 %v723_v5, 0.0 }
 0x224   : > { %v756_v60 = vmax.f32 %v724_v19, 0.0  ;;  %v757_v6 = vmax.f32 %v725_v43, 0.0  ;;  %v758_v12 = vmax.f32 %v726_v18, 0.0  ;;  %v759_v20 = vmax.f32 %v727_v44, 0.0  ;;  %780 = vst [vmem:[%s1507_s9] sm:$0xff] %v748_v0  ;;  %781 = vst [vmem:[%s1507_s9 + $0x8] sm:$0xff] %v749_v36 }
 0x225   : > { %782 = vst [vmem:[%s1507_s9 + $0x10] sm:$0xff] %v750_v42  ;;  %783 = vst [vmem:[%s1507_s9 + $0x18] sm:$0xff] %v751_v17  ;;  %v760_v27 = vmax.f32 %v728_v11, 0.0  ;;  %v761_v37 = vmax.f32 %v729_v2, 0.0  ;;  %v762_v10 = vmax.f32 %v730_v25, 0.0  ;;  %v763_v56 = vmax.f32 %v731_v7, 0.0 }
 0x226   : > { %784 = vst [vmem:[%s1507_s9 + $0x20] sm:$0xff] %v752_v3  ;;  %785 = vst [vmem:[%s1507_s9 + $0x28] sm:$0xff] %v753_v4  ;;  %v764_v15 = vmax.f32 %v732_v29, 0.0  ;;  %v765_v63 = vmax.f32 %v733_v46, 0.0  ;;  %v766_v9 = vmax.f32 %v734_v33, 0.0  ;;  %v767_v48 = vmax.f32 %v735_v47, 0.0 }
 0x227   : > { %786 = vst [vmem:[%s1507_s9 + $0x30] sm:$0xff] %v754_v62  ;;  %787 = vst [vmem:[%s1507_s9 + $0x38] sm:$0xff] %v755_v13  ;;  %v768_v31 = vmax.f32 %v1486_v35, 0.0  ;;  %v769_v45 = vmax.f32 %v1488_v57, 0.0  ;;  %v770_v59 = vmax.f32 %v1490_v39, 0.0  ;;  %v771_v23 = vmax.f32 %v1492_v22, 0.0 }
 0x228   : > { %788 = vst [vmem:[%s1507_s9 + $0x40] sm:$0xff] %v756_v60  ;;  %789 = vst [vmem:[%s1507_s9 + $0x48] sm:$0xff] %v757_v6  ;;  %v772_v41 = vmax.f32 %v1494_v50, 0.0  ;;  %v773_v58 = vmax.f32 %v1496_v54, 0.0  ;;  %v774_v52 = vmax.f32 %v1498_v55, 0.0  ;;  %v775_v30 = vmax.f32 %v1500_v61, 0.0 }
 0x229   : > { %790 = vst [vmem:[%s1507_s9 + $0x50] sm:$0xff] %v758_v12  ;;  %791 = vst [vmem:[%s1507_s9 + $0x58] sm:$0xff] %v759_v20  ;;  %v776_v51 = vmax.f32 %v1509_v14, 0.0  ;;  %v777_v24 = vmax.f32 %v1511_v21, 0.0  ;;  %v778_v5 = vmax.f32 %v1513_v28, 0.0  ;;  %v779_v32 = vmax.f32 %v1515_v38, 0.0 }
 0x22a   : > { %792 = vst [vmem:[%s1507_s9 + $0x60] sm:$0xff] %v760_v27  ;;  %793 = vst [vmem:[%s1507_s9 + $0x68] sm:$0xff] %v761_v37 }
 0x22b   : > { %794 = vst [vmem:[%s1507_s9 + $0x70] sm:$0xff] %v762_v10  ;;  %795 = vst [vmem:[%s1507_s9 + $0x78] sm:$0xff] %v763_v56 }
 0x22c   : > { %796 = vst [vmem:[%s1507_s9 + $0x80] sm:$0xff] %v764_v15  ;;  %797 = vst [vmem:[%s1507_s9 + $0x88] sm:$0xff] %v765_v63 }
 0x22d   : > { %798 = vst [vmem:[%s1507_s9 + $0x90] sm:$0xff] %v766_v9  ;;  %799 = vst [vmem:[%s1507_s9 + $0x98] sm:$0xff] %v767_v48 }
 0x22e   : > { %800 = vst [vmem:[%s1507_s9 + $0xa0] sm:$0xff] %v768_v31  ;;  %801 = vst [vmem:[%s1507_s9 + $0xa8] sm:$0xff] %v769_v45 }
 0x22f   : > { %802 = vst [vmem:[%s1507_s9 + $0xb0] sm:$0xff] %v770_v59  ;;  %803 = vst [vmem:[%s1507_s9 + $0xb8] sm:$0xff] %v771_v23 }
 0x230   : > { %804 = vst [vmem:[%s1507_s9 + $0xc0] sm:$0xff] %v772_v41  ;;  %805 = vst [vmem:[%s1507_s9 + $0xc8] sm:$0xff] %v773_v58 }
 0x231   : > { %806 = vst [vmem:[%s1507_s9 + $0xd0] sm:$0xff] %v774_v52  ;;  %807 = vst [vmem:[%s1507_s9 + $0xd8] sm:$0xff] %v775_v30 }
 0x232   : > { %808 = vst [vmem:[%s1507_s9 + $0xe0] sm:$0xff] %v776_v51  ;;  %809 = vst [vmem:[%s1507_s9 + $0xe8] sm:$0xff] %v777_v24 }
 0x233   : > { %810 = vst [vmem:[%s1507_s9 + $0xf0] sm:$0xff] %v778_v5  ;;  %811 = vst [vmem:[%s1507_s9 + $0xf8] sm:$0xff] %v779_v32 }
 0x234 PF: > { %s16_s21 = sadd.s32 1, %s1050_s21  }
 0x235   : > { %p13_p4 = scmp.ge.s32.totalorder %s16_s21, 4  }
 0x237   :  { %15 = sbr.rel (!%p13_p4) target bundleno = 1 (0x1), region = 77 }

// kernel: block_forward.5
= control target key start
LH: loop header
LB: loop body
LE: loop exit
PB: predicated region body
PF: predicated region fallthrough
CT: control target
= control target key end

     0   :  { %s7238_s18 = smov 0   ;;  %s9581_s0 = inlined_call_operand.vmem [shape: bf16[2,16,16,128], index: 0, kind: input, shape index: {}]   ;;  %s9582_s1 = inlined_call_operand.vmem [shape: f32[1,128], index: 1, kind: input, shape index: {}]   ;;  %s9583_s2 = inlined_call_operand.vmem [shape: f32[1,128], index: 2, kind: input, shape index: {}]   ;;  %s9584_s3 = inlined_call_operand.vmem [shape: bf16[1152,128], index: 3, kind: input, shape index: {}]   ;;  %s9585_s4 = inlined_call_operand.vmem [shape: bf16[2,256,128], index: 4, kind: output, shape index: {0}]   ;;  %s9586_s5 = inlined_call_operand.vmem [shape: f32[2,2,128], index: 5, kind: output, shape index: {1}]  }
   0x1 LB: > { %s5799_s19 = sadd.s32 4294967295, %s7205_s18   ;;  %p5803_p0 = scmp.ge.s32.totalorder %s7205_s18, 1  ;;  %s7205_s18 = sphi %s7238_s18, %s16_s18  }
   0x2   : > { %p190_p1 = scmp.lt.s32.totalorder %s7205_s18, 3 }
   0x4   : > { %p191_p2 = pnand %p5803_p0, %p190_p1 }
   0x6   : > { %194 = sbr.rel (%p191_p2) target bundleno = 754 (0x2f2), region = 36 }
   0xb   : > { %v6910_v0 = vld [vmem:[%s9584_s3 + $0x78] sm:$0xff]   ;;  %v7207_v2 = vmov 0   ;;  %v6912_v3 = vld [vmem:[%s9584_s3 + $0x70] sm:$0xff]   ;;  %v6914_v5 = vld [vmem:[%s9584_s3 + $0x68] sm:$0xff]   ;;  %p222_p3 = scmp.lt.s32.totalorder %s5799_s19, 1  ;;  %vm1417_vm0 = vcmask 1042432  }
   0xc   : > { %v6911_v1 = vld [vmem:[%s9584_s3 + $0x38] sm:$0xff]   ;;  %831 = vst [vmem:[#allocation2] sm:$0xf] %v7207_v2  ;;  %832 = vst [vmem:[#allocation2 + $0x4] sm:$0xf] %v7207_v2  ;;  %6365 = vmatprep.subr.bf16.mxu0 %v6910_v0  ;;  %6885 = vmatprep.subr.bf16.mxu1 %v6910_v0  ;;  %v6913_v4 = vld [vmem:[%s9584_s3 + $0x30] sm:$0xff]  }
   0xd   : > { %833 = vst [vmem:[#allocation2 + $0x8] sm:$0x1] %v7207_v2  ;;  %835 = vst [vmem:[#allocation2 + $0xcc] sm:$0xf] %v7207_v2  ;;  %6366 = vmatpush3.bf16.msra.mxu0 %v6911_v1  ;;  %6893 = vmatpush3.bf16.msra.mxu1 %v6911_v1  ;;  %v6915_v6 = vld [vmem:[%s9584_s3 + $0x28] sm:$0xff]   ;;  %v6916_v7 = vld [vmem:[%s9584_s3 + $0x60] sm:$0xff]  }
   0xe   : > { %836 = vst [vmem:[#allocation2 + $0xd0] sm:$0xf] %v7207_v2  ;;  %837 = vst [vmem:[#allocation2 + $0xd4] sm:$0x1] %v7207_v2  ;;  %6367 = vmatprep.subr.bf16.mxu0 %v6912_v3  ;;  %6886 = vmatprep.subr.bf16.mxu1 %v6912_v3  ;;  %s9721_s19 = smov (!%p222_p3, %s5799_s19), 1  ;;  %v6917_v8 = vld [vmem:[%s9584_s3 + $0x20] sm:$0xff]  }
   0xf   : > { %v6918_v9 = vld [vmem:[%s9584_s3 + $0x58] sm:$0xff]   ;;  %s6157_s15 = sshll.u32 %s9721_s19, 7  ;;  %v6920_v11 = vld [vmem:[%s9584_s3 + $0x50] sm:$0xff]   ;;  %vm1418_vm1 = vcmask 1046532   ;;  %vm918_vm2 = vsmask.f32 3328 }
  0x10   : > { %v6919_v10 = vld [vmem:[%s9584_s3 + $0x18] sm:$0xff]   ;;  %vm919_vm3 = vsmask.f32 7440  ;;  %s7291_s22 = scalar_lea.vmem %s9581_s0, %s6157_s15  ;;  %vm7295_vm4 = vmor %vm1417_vm0, %vm1418_vm1  ;;  %v6921_v22 = vld [vmem:[%s9584_s3 + $0x10] sm:$0xff]   ;;  %vm571_vm6 = vcmask 1040384   ;;  %s9257_s9 = scalar_lea.vmem %s9585_s4, %s6157_s15 }
  0x11   : > { %6368 = vmatpush3.bf16.msra.mxu0 %v6913_v4  ;;  %6894 = vmatpush3.bf16.msra.mxu1 %v6913_v4  ;;  %v7305_v26 = vld [vmem:[%s9582_s1] ss:$0 sm:$0xff]  ;;  %v6922_v27 = vld [vmem:[%s9584_s3 + $0x48] sm:$0xff]   ;;  %v6345_v37 = vld [vmem:[%s7291_s22 + $0x58] sm:$0xff]   ;;  %vm572_vm7 = vsmask.f32 256 }
  0x12   : > { %6369 = vmatprep.subr.bf16.mxu0 %v6914_v5  ;;  %6887 = vmatprep.subr.bf16.mxu1 %v6914_v5  ;;  %v6192_v32 = vld [vmem:[%s7291_s22] sm:$0xff]   ;;  %vm7321_vm5 = vmor %vm918_vm2, %vm919_vm3  ;;  %v6237_v41 = vunpack.c.l.bf16 %v6345_v37  ;;  %v6238_v42 = vunpack.c.h.bf16 %v6345_v37  ;;  %v6923_v44 = vld [vmem:[%s9584_s3 + $0x8] sm:$0xff]   ;;  %s5808_s15 = sshll.u32 %s9721_s19, 1 }
  0x13   : > { %v838_v12 = vld [vmem:[#allocation2] sm:$0xf]  ;;  %v839_v13 = vld [vmem:[#allocation2 + $0x4] sm:$0xf]  ;;  %v6193_v35 = vunpack.c.l.bf16 %v6192_v32  ;;  %v6194_v36 = vunpack.c.h.bf16 %v6192_v32  ;;  %v6934_v62 = vld [vmem:[%s9584_s3 + $0xf8] sm:$0xff]   ;;  %s235_s12 = scalar_lea.vmem %s9586_s5, %s5808_s15 }
  0x14   : > { %v840_v14 = vld [vmem:[#allocation2 + $0x8] sm:$0x1]  ;;  %886 = vst [vmem:[#allocation3] sm:$0xf] %v838_v12  ;;  %887 = vst [vmem:[#allocation3 + $0x24] sm:$0xf] %v839_v13  ;;  %v331_v50 = vmul.f32 %v6237_v41, %v7305_v26  ;;  %v332_v51 = vmul.f32 %v6238_v42, %v7305_v26 }
  0x15   : > { %6370 = vmatpush3.bf16.msra.mxu0 %v6915_v6  ;;  %6895 = vmatpush3.bf16.msra.mxu1 %v6915_v6  ;;  %v922_v15 = vshrl.u32 %v838_v12, 16  ;;  %v925_v16 = vshll.u32 %v838_v12, 16  ;;  %v931_v17 = vshll.u32 %v839_v13, 16  ;;  %v935_v18 = vshrl.u32 %v839_v13, 16  ;;  %v7314_v34 = vld [vmem:[%s9583_s2] ss:$0 sm:$0xff]  ;;  %vm7362_vm8 = vmand %vm571_vm6, %vm572_vm7 }
  0x16   : > { %6371 = vmatprep.subr.bf16.mxu0 %v6916_v7  ;;  %6888 = vmatprep.subr.bf16.mxu1 %v6916_v7  ;;  %v941_v19 = vshll.u32 %v840_v14, 16  ;;  %v5859_v20 = vrot.slane %v838_v12, 9  ;;  %v1422_v25 = vrot.slane %v839_v13, 5  ;;  %v1425_v31 = vrot.slane %v840_v14, 5  ;;  %v6924_v48 = vld [vmem:[%s9584_s3 + $0x40] sm:$0xff]   ;;  %v6335_v63 = vld [vmem:[%s7291_s22 + $0x8] sm:$0xff]  }
  0x17   : > { %v924_v23 = vrot.slane %v922_v15, 4  ;;  %v927_v24 = vrot.slane %v925_v16, 5  ;;  %v933_v28 = vrot.slane %v931_v17, 5  ;;  %v937_v29 = vrot.slane %v935_v18, 4  ;;  %v6925_v53 = vld [vmem:[%s9584_s3] sm:$0xff]   ;;  %v6935_v2 = vld [vmem:[%s9584_s3 + $0x178] sm:$0xff]  }
  0x18   : > { %v943_v30 = vrot.slane %v941_v19, 5  ;;  %v1423_v38 = vsel %vm7295_vm4, %v5859_v20, %v1422_v25  ;;  %v1424_v43 = vrot.slane %v1422_v25, 4  ;;  %v309_v46 = vmul.f32 %v6193_v35, %v7305_v26  ;;  %v6346_v5 = vld [vmem:[%s7291_s22 + $0x60] sm:$0xff]   ;;  %v6950_v35 = vld [vmem:[%s9584_s3 + $0x170] sm:$0xff]   ;;  %v6347_v42 = vld [vmem:[%s7291_s22 + $0x68] sm:$0xff]  }
  0x19   : > { %6372 = vmatpush3.bf16.msra.mxu0 %v6917_v8  ;;  %6896 = vmatpush3.bf16.msra.mxu1 %v6917_v8  ;;  %v928_v33 = vor.u32 %v927_v24, %v924_v23  ;;  %v938_v40 = vor.u32 %v937_v29, %v933_v28  ;;  %1564 = vst [vmem:[#allocation3 + $0x8] sm:$0xf] %v1423_v38  ;;  %v6197_v3 = vunpack.c.l.bf16 %v6335_v63  ;;  %v6198_v4 = vunpack.c.h.bf16 %v6335_v63  ;;  %v6938_v23 = vld [vmem:[%s9584_s3 + $0x138] sm:$0xff]   ;;  %v6336_v41 = vld [vmem:[%s7291_s22 + $0x10] sm:$0xff]  }
  0x1a   : > { %6373 = vmatprep.subr.bf16.mxu0 %v6918_v9  ;;  %6889 = vmatprep.subr.bf16.mxu1 %v6918_v9  ;;  %v310_v47 = vmul.f32 %v6194_v36, %v7305_v26  ;;  %v1426_v52 = vsel %vm7295_vm4, %v1424_v43, %v1425_v31  ;;  %v347_v55 = vadd.f32 %v7314_v34, %v309_v46  ;;  %v6241_v7 = vunpack.c.l.bf16 %v6346_v5 }
  0x1b   : > { %v929_v45 = vrot.slane %v928_v33, 4  ;;  %v939_v49 = vrot.slane %v938_v40, 4  ;;  %1565 = vst [vmem:[#allocation3 + $0x2c] sm:$0xf] %v1426_v52  ;;  %v369_v58 = vadd.f32 %v7314_v34, %v331_v50  ;;  %v370_v59 = vadd.f32 %v7314_v34, %v332_v51  ;;  %v6952_v50 = vld [vmem:[%s9584_s3 + $0x130] sm:$0xff]  }
  0x1c   : > { %v348_v56 = vadd.f32 %v7314_v34, %v310_v47  ;;  %v379_v60 = vmax.f32 %v347_v55, 0.0  ;;  %v6242_v8 = vunpack.c.h.bf16 %v6346_v5  ;;  %v333_v14 = vmul.f32 %v6241_v7, %v7305_v26 }
  0x1d   : > { %6374 = vmatpush3.bf16.msra.mxu0 %v6919_v10  ;;  %6897 = vmatpush3.bf16.msra.mxu1 %v6919_v10  ;;  %v934_v54 = vsel %vm7321_vm5, %v929_v45, %v933_v28  ;;  %v944_v57 = vsel %vm7321_vm5, %v939_v49, %v943_v30  ;;  %v401_v0 = vmax.f32 %v369_v58, 0.0  ;;  %v402_v1 = vmax.f32 %v370_v59, 0.0 }
  0x1e   : > { %6375 = vmatprep.subr.bf16.mxu0 %v6920_v11  ;;  %6890 = vmatprep.subr.bf16.mxu1 %v6920_v11  ;;  %1337 = vst [vmem:[#allocation3 + $0x4] sm:$0xf] %v934_v54  ;;  %1338 = vst [vmem:[#allocation3 + $0x28] sm:$0xf] %v944_v57  ;;  %v380_v61 = vmax.f32 %v348_v56, 0.0  ;;  %v311_v10 = vmul.f32 %v6197_v3, %v7305_v26  ;;  %v312_v11 = vmul.f32 %v6198_v4, %v7305_v26 }
  0x1f   : > { %v422_v9 = vpack.c.bf16 %v402_v1, %v401_v0  ;;  %v334_v15 = vmul.f32 %v6242_v8, %v7305_v26  ;;  %v371_v24 = vadd.f32 %v7314_v34, %v333_v14  ;;  %v6201_v51 = vunpack.c.l.bf16 %v6336_v41 }
  0x20   : > { %v411_v6 = vpack.c.bf16 %v380_v61, %v379_v60  ;;  %v349_v19 = vadd.f32 %v7314_v34, %v311_v10  ;;  %v350_v20 = vadd.f32 %v7314_v34, %v312_v11  ;;  %v6202_v57 = vunpack.c.h.bf16 %v6336_v41  ;;  %v6968_v10 = vld [vmem:[%s9584_s3 + $0x168] sm:$0xff]  }
  0x21   : > { %6376 = vmatpush3.bf16.msra.mxu0 %v6921_v22  ;;  %6898 = vmatpush3.bf16.msra.mxu1 %v6921_v22  ;;  %v505_v17 = vshrl.u32 %v422_v9, 16  ;;  %v508_v18 = vshll.u32 %v422_v9, 16  ;;  %v372_v25 = vadd.f32 %v7314_v34, %v334_v15  ;;  %v403_v40 = vmax.f32 %v371_v24, 0.0 }
  0x22   : > { %6377 = vmatprep.subr.bf16.mxu0 %v6922_v27  ;;  %6891 = vmatprep.subr.bf16.mxu1 %v6922_v27  ;;  %v428_v12 = vshrl.u32 %v411_v6, 16  ;;  %v431_v13 = vshll.u32 %v411_v6, 16  ;;  %v6926_v27 = vld [vmem:[#allocation3] ss:$36 sps:$4 sm:$0xff]   ;;  %v381_v32 = vmax.f32 %v349_v19, 0.0  ;;  %v382_v33 = vmax.f32 %v350_v20, 0.0 }
  0x23   : > { %v507_v29 = vrot.slane %v505_v17, 7  ;;  %v404_v46 = vmax.f32 %v372_v25, 0.0  ;;  %v313_v58 = vmul.f32 %v6201_v51, %v7305_v26  ;;  %v6245_v59 = vunpack.c.l.bf16 %v6347_v42  ;;  %v6972_v17 = vld [vmem:[%s9584_s3 + $0x128] sm:$0xff]  }
  0x24   : > { %v430_v22 = vrot.slane %v428_v12, 7  ;;  %v412_v45 = vpack.c.bf16 %v382_v33, %v381_v32  ;;  %v6246_v61 = vunpack.c.h.bf16 %v6347_v42  ;;  %v314_v1 = vmul.f32 %v6202_v57, %v7305_v26 }
  0x25   : > { %6378 = vmatpush3.bf16.msra.mxu0 %v6923_v44  ;;  %6899 = vmatpush3.bf16.msra.mxu1 %v6923_v44  ;;  %v6928_v28 = vld [vmem:[#allocation3 + $0x4] ss:$36 sps:$4 sm:$0xff]   ;;  %v510_v37 = vor.u32 %v508_v18, %v507_v29  ;;  %v601_v38 = vsel %vm7362_vm8, %v507_v29, 0  ;;  %v423_v56 = vpack.c.bf16 %v404_v46, %v403_v40  ;;  %v335_v5 = vmul.f32 %v6245_v59, %v7305_v26 }
  0x26   : > { %6379 = vmatprep.subr.bf16.mxu0 %v6924_v48  ;;  %6892 = vmatprep.subr.bf16.mxu1 %v6924_v48  ;;  %v433_v30 = vor.u32 %v431_v13, %v430_v22  ;;  %v590_v31 = vsel %vm7362_vm8, %v430_v22, 0  ;;  %v5846_v44 = vcombine.low %v601_v38, %v601_v38  ;;  %v435_v54 = vshrl.u32 %v412_v45, 16 }
  0x27   : > { %4605 = vmatprep.mubr.bf16.mxu0 %v6928_v28  ;;  %v5813_v36 = vcombine.low %v590_v31, %v590_v31  ;;  %v585_v49 = vsel %vm7362_vm8, 0, %v510_v37  ;;  %v438_v55 = vshll.u32 %v412_v45, 16  ;;  %v512_v63 = vshrl.u32 %v423_v56, 16 }
  0x28   : > { %v574_v43 = vsel %vm7362_vm8, 0, %v433_v30  ;;  %v5844_v52 = vcombine.low %v585_v49, %v585_v49  ;;  %818 = vst [vmem:[#allocation2 + $0x98] sm:$0x1] %v5846_v44  ;;  %v437_v60 = vrot.slane %v435_v54, 7  ;;  %v515_v0 = vshll.u32 %v423_v56, 16 }
  0x29   : > { %6380 = vmatpush3.bf16.msra.mxu0 %v6925_v53  ;;  %6900 = vmatpush3.bf16.msra.mxu1 %v6925_v53  ;;  %v5811_v47 = vcombine.low %v574_v43, %v574_v43  ;;  %v5812_v48 = vcombine.high %v574_v43, %v574_v43  ;;  %785 = vst [vmem:[#allocation2 + $0x14] sm:$0x1] %v5813_v36  ;;  %v514_v8 = vrot.slane %v512_v63, 7 }
  0x2a   : > { %6477 = vmatprep.subr.bf16.mxu1 %v6934_v62  ;;  %6589 = vmatprep.subr.bf16.mxu0 %v6935_v2  ;;  %v5845_v53 = vcombine.high %v585_v49, %v585_v49  ;;  %816 = vst [vmem:[#allocation2 + $0x90] sm:$0xf] %v5844_v52  ;;  %v7391_v62 = vld [vmem:[%s7291_s22 + $0x18] sm:$0xff]   ;;  %v7395_v2 = vadd.f32 %v7314_v34, %v313_v58  ;;  %v591_v4 = vsel %vm7362_vm8, %v437_v60, 0 }
  0x2b   : > { %783 = vst [vmem:[#allocation2 + $0xc] sm:$0xf] %v5811_v47  ;;  %784 = vst [vmem:[#allocation2 + $0x10] sm:$0xf] %v5812_v48  ;;  %v440_v3 = vor.u32 %v438_v55, %v437_v60  ;;  %v336_v6 = vmul.f32 %v6246_v61, %v7305_v26  ;;  %v5816_v7 = vcombine.low %v591_v4, %v591_v4  ;;  %v6205_v15 = vunpack.c.l.bf16 %v7391_v62 }
  0x2c   : > { %4606 = vmatmul.mubr.bf16.vlgmr.msra.gmra.mxu0 %v6926_v27  ;;  %817 = vst [vmem:[#allocation2 + $0x94] sm:$0xf] %v5845_v53  ;;  %v383_v9 = vmax.f32 %v7395_v2, 0.0  ;;  %v7410_v13 = vadd.f32 %v7314_v34, %v314_v1  ;;  %v7413_v14 = vadd.f32 %v7314_v34, %v335_v5  ;;  %v517_v28 = vor.u32 %v515_v0, %v514_v8 }
  0x2d   : > { %6590 = vmatpush3.bf16.msra.mxu0 %v6938_v23  ;;  %v575_v12 = vsel %vm7362_vm8, 0, %v440_v3  ;;  %788 = vst [vmem:[#allocation2 + $0x20] sm:$0x1] %v5816_v7  ;;  %v7421_v23 = vadd.f32 %v7314_v34, %v336_v6  ;;  %v6206_v29 = vunpack.c.h.bf16 %v7391_v62  ;;  %v7429_v30 = vmul.f32 %v6205_v15, %v7305_v26  ;;  %v6984_v62 = vld [vmem:[%s9584_s3 + $0x120] sm:$0xff]  }
  0x2e   : > { %6591 = vmatprep.subr.bf16.mxu0 %v6950_v35  ;;  %v5814_v20 = vcombine.low %v575_v12, %v575_v12  ;;  %v5815_v22 = vcombine.high %v575_v12, %v575_v12  ;;  %v586_v59 = vsel %vm7362_vm8, 0, %v517_v28  ;;  %v602_v0 = vsel %vm7362_vm8, %v514_v8, 0 }
  0x2f   : > { %v876_v19 = vld [vmem:[#allocation2 + $0x98] sm:$0x1]  ;;  %v5847_v6 = vcombine.low %v586_v59, %v586_v59  ;;  %v5848_v7 = vcombine.high %v586_v59, %v586_v59 }
  0x30   : > { %v7405_v11 = vld [vmem:[#allocation2 + $0x14] sm:$0x1]  ;;  %v1229_v27 = vshll.u32 %v876_v19, 16  ;;  %786 = vst [vmem:[#allocation2 + $0x18] sm:$0xf] %v5814_v20 }
  0x31   : > { %6592 = vmatpush3.bf16.msra.mxu0 %v6952_v50  ;;  %v965_v18 = vshll.u32 %v7405_v11, 16  ;;  %v7437_v36 = vld [vmem:[#allocation2 + $0x90] sm:$0xf]  ;;  %787 = vst [vmem:[#allocation2 + $0x1c] sm:$0xf] %v5815_v22 }
  0x32   : > { %6593 = vmatprep.subr.bf16.mxu0 %v6968_v10  ;;  %v7423_v24 = vld [vmem:[#allocation2 + $0xc] sm:$0xf]  ;;  %v7425_v25 = vld [vmem:[#allocation2 + $0x10] sm:$0xf]  ;;  %910 = vst [vmem:[#allocation3 + $0x360] sm:$0xf] %v7437_v36 }
  0x33   : > { %888 = vst [vmem:[#allocation3 + $0x48] sm:$0xf] %v7423_v24  ;;  %889 = vst [vmem:[#allocation3 + $0x6c] sm:$0xf] %v7425_v25  ;;  %v946_v31 = vshrl.u32 %v7423_v24, 16  ;;  %v949_v32 = vshll.u32 %v7423_v24, 16 }
  0x34   : > { %v955_v33 = vshll.u32 %v7425_v25, 16  ;;  %v959_v35 = vshrl.u32 %v7425_v25, 16  ;;  %v967_v37 = vrot.slane %v965_v18, 5  ;;  %v7439_v38 = vld [vmem:[#allocation2 + $0x94] sm:$0xf]  ;;  %v1210_v40 = vshrl.u32 %v7437_v36, 16 }
  0x35   : > { %6594 = vmatpush3.bf16.msra.mxu0 %v6972_v17  ;;  %v1213_v41 = vshll.u32 %v7437_v36, 16  ;;  %v1231_v42 = vrot.slane %v1229_v27, 5  ;;  %v948_v43 = vrot.slane %v946_v31, 4  ;;  %v951_v44 = vrot.slane %v949_v32, 5  ;;  %911 = vst [vmem:[#allocation3 + $0x384] sm:$0xf] %v7439_v38 }
  0x36   : > { %v957_v45 = vrot.slane %v955_v33, 5  ;;  %v961_v46 = vrot.slane %v959_v35, 4  ;;  %v1212_v47 = vrot.slane %v1210_v40, 4  ;;  %v1219_v49 = vshll.u32 %v7439_v38, 16  ;;  %v7449_v58 = vld [vmem:[#allocation2 + $0x20] sm:$0x1] }
  0x37   : > { %v1215_v48 = vrot.slane %v1213_v41, 5  ;;  %v1223_v50 = vshrl.u32 %v7439_v38, 16  ;;  %v952_v51 = vor.u32 %v951_v44, %v948_v43  ;;  %v989_v63 = vshll.u32 %v7449_v58, 16  ;;  %v7456_v4 = vld [vmem:[#allocation2 + $0x18] sm:$0xf]  ;;  %v6348_v35 = vld [vmem:[%s7291_s22 + $0x70] sm:$0xff]  }
  0x38   : > { %v962_v52 = vor.u32 %v961_v46, %v957_v45  ;;  %v1221_v56 = vrot.slane %v1219_v49, 5  ;;  %v7458_v5 = vld [vmem:[#allocation2 + $0x1c] sm:$0xf]  ;;  %890 = vst [vmem:[#allocation3 + $0x90] sm:$0xf] %v7456_v4  ;;  %v970_v8 = vshrl.u32 %v7456_v4, 16  ;;  %v5849_v33 = vcombine.low %v602_v0, %v602_v0 }
  0x39   : > { %v1216_v55 = vor.u32 %v1215_v48, %v1212_v47  ;;  %v1225_v57 = vrot.slane %v1223_v50, 4  ;;  %v953_v60 = vrot.slane %v952_v51, 4  ;;  %891 = vst [vmem:[#allocation3 + $0xb4] sm:$0xf] %v7458_v5  ;;  %v973_v15 = vshll.u32 %v7456_v4, 16  ;;  %v6983_v44 = vld [vmem:[%s9584_s3 + $0x160] sm:$0xff]  }
  0x3a   : > { %v963_v61 = vrot.slane %v962_v52, 4  ;;  %v7468_v17 = vld [vmem:[#allocation2 + $0xc] sm:$0xf]  ;;  %v7470_v18 = vld [vmem:[#allocation2 + $0x10] sm:$0xf]  ;;  %v979_v22 = vshll.u32 %v7458_v5, 16  ;;  %v7494_v49 = vadd.f32 %v7314_v34, %v7429_v30  ;;  %v6249_v50 = vunpack.c.l.bf16 %v6348_v35  ;;  %6595 = vmatprep.subr.bf16.mxu0 %v6983_v44 }
  0x3b   : > { %v1217_v1 = vrot.slane %v1216_v55, 4  ;;  %v1226_v3 = vor.u32 %v1225_v57, %v1221_v56  ;;  %v958_v10 = vsel %vm7321_vm5, %v953_v60, %v957_v45  ;;  %v983_v27 = vshrl.u32 %v7458_v5, 16  ;;  %819 = vst [vmem:[#allocation2 + $0x9c] sm:$0xf] %v5847_v6  ;;  %820 = vst [vmem:[#allocation2 + $0xa0] sm:$0xf] %v5848_v7  ;;  %6596 = vmatpush3.bf16.msra.mxu0 %v6984_v62 }
  0x3c   : > { %v968_v12 = vsel %vm7321_vm5, %v963_v61, %v967_v37  ;;  %1339 = vst [vmem:[#allocation3 + $0x4c] sm:$0xf] %v958_v10  ;;  %1644 = vst [vmem:[#allocation3 + $0xc] sm:$0xf] %v7468_v17  ;;  %v972_v28 = vrot.slane %v970_v8, 4  ;;  %v975_v31 = vrot.slane %v973_v15, 5  ;;  %v337_v0 = vmul.f32 %v6249_v50, %v7305_v26 }
  0x3d   : > { %1340 = vst [vmem:[#allocation3 + $0x70] sm:$0xf] %v968_v12  ;;  %v1222_v19 = vsel %vm7321_vm5, %v1217_v1, %v1221_v56  ;;  %v1227_v20 = vrot.slane %v1226_v3, 4  ;;  %1645 = vst [vmem:[#allocation3 + $0x30] sm:$0xf] %v7470_v18  ;;  %v991_v32 = vrot.slane %v989_v63, 5 }
  0x3e   : > { %1361 = vst [vmem:[#allocation3 + $0x364] sm:$0xf] %v1222_v19  ;;  %v981_v40 = vrot.slane %v979_v22, 5  ;;  %v985_v41 = vrot.slane %v983_v27, 4  ;;  %v384_v43 = vmax.f32 %v7410_v13, 0.0  ;;  %v976_v45 = vor.u32 %v975_v31, %v972_v28  ;;  %v7502_v55 = vld [vmem:[%s7291_s22 + $0x20] sm:$0xff]  }
  0x3f   : > { %v1232_v37 = vsel %vm7321_vm5, %v1227_v20, %v1231_v42  ;;  %821 = vst [vmem:[#allocation2 + $0xa4] sm:$0x1] %v5849_v33  ;;  %v405_v46 = vmax.f32 %v7413_v14, 0.0  ;;  %v406_v47 = vmax.f32 %v7421_v23, 0.0  ;;  %v316_v42 = vmul.f32 %v6206_v29, %v7305_v26  ;;  %v7507_v2 = vld [vmem:[#allocation2 + $0x18] sm:$0xf] }
  0x40   : > { %1362 = vst [vmem:[#allocation3 + $0x388] sm:$0xf] %v1232_v37  ;;  %v986_v48 = vor.u32 %v985_v41, %v981_v40  ;;  %v413_v13 = vpack.c.bf16 %v384_v43, %v383_v9  ;;  %v977_v51 = vrot.slane %v976_v45, 4  ;;  %v6250_v23 = vunpack.c.h.bf16 %v6348_v35  ;;  %v7510_v57 = vld [vmem:[#allocation2 + $0x1c] sm:$0xf]  ;;  %v6939_v15 = vld [vmem:[%s9584_s3 + $0xf0] sm:$0xff]  }
  0x41   : > { %v7496_v52 = vpack.c.bf16 %v406_v47, %v405_v46  ;;  %v7499_v14 = vadd.f32 %v7314_v34, %v316_v42  ;;  %v385_v56 = vmax.f32 %v7494_v49, 0.0  ;;  %1646 = vst [vmem:[#allocation3 + $0x54] sm:$0xf] %v7507_v2  ;;  %1647 = vst [vmem:[#allocation3 + $0x78] sm:$0xf] %v7510_v57  ;;  %v6937_v3 = vld [vmem:[%s9584_s3 + $0xb8] sm:$0xff]   ;;  %v6209_v8 = vunpack.c.l.bf16 %v7502_v55 }
  0x42   : > { %v987_v9 = vrot.slane %v986_v48, 4  ;;  %v442_v29 = vshrl.u32 %v413_v13, 16  ;;  %v445_v30 = vshll.u32 %v413_v13, 16  ;;  %v982_v60 = vsel %vm7321_vm5, %v977_v51, %v981_v40  ;;  %v6936_v1 = vld [vmem:[#allocation3 + $0x48] ss:$36 sps:$4 sm:$0xff]   ;;  %v6940_v49 = vld [vmem:[%s9584_s3 + $0xb0] sm:$0xff]  }
  0x43   : > { %v519_v61 = vshrl.u32 %v7496_v52, 16  ;;  %v522_v63 = vshll.u32 %v7496_v52, 16  ;;  %1341 = vst [vmem:[#allocation3 + $0x94] sm:$0xf] %v982_v60  ;;  %v7524_v7 = vld [vmem:[#allocation2 + $0x9c] sm:$0xf]  ;;  %v338_v12 = vmul.f32 %v6250_v23, %v7305_v26  ;;  %v7540_v37 = vadd.f32 %v7314_v34, %v337_v0 }
  0x44   : > { %v6929_v59 = vld [vmem:[#allocation3 + $0x4c] ss:$36 sps:$4 sm:$0xff]   ;;  %v992_v6 = vsel %vm7321_vm5, %v987_v9, %v991_v32  ;;  %v444_v10 = vrot.slane %v442_v29, 7  ;;  %v7531_v19 = vld [vmem:[#allocation2 + $0xa0] sm:$0xf]  ;;  %v1234_v20 = vshrl.u32 %v7524_v7, 16 }
  0x45   : > { %4613 = vmatprep.mubr.bf16.mxu0 %v6929_v59  ;;  %1342 = vst [vmem:[#allocation3 + $0xb8] sm:$0xf] %v992_v6  ;;  %912 = vst [vmem:[#allocation3 + $0x3a8] sm:$0xf] %v7524_v7  ;;  %v1237_v22 = vshll.u32 %v7524_v7, 16  ;;  %v521_v27 = vrot.slane %v519_v61, 7  ;;  %v7543_v40 = vadd.f32 %v7314_v34, %v338_v12  ;;  %v6210_v12 = vunpack.c.h.bf16 %v7502_v55 }
  0x46   : > { %v386_v28 = vmax.f32 %v7499_v14, 0.0  ;;  %v6931_v31 = vld [vmem:[#allocation3 + $0x360] ss:$36 sps:$4 sm:$0xff]   ;;  %4614 = vmatmul.mubr.bf16.gmra.mxu0 %v6936_v1  ;;  %913 = vst [vmem:[#allocation3 + $0x3cc] sm:$0xf] %v7531_v19  ;;  %v1243_v33 = vshll.u32 %v7531_v19, 16  ;;  %v447_v35 = vor.u32 %v445_v30, %v444_v10 }
  0x47   : > { %v6933_v32 = vld [vmem:[#allocation3 + $0x364] ss:$36 sps:$4 sm:$0xff]   ;;  %v879_v41 = vld [vmem:[#allocation2 + $0xa4] sm:$0x1]  ;;  %v1236_v43 = vrot.slane %v1234_v20, 4  ;;  %v1239_v44 = vrot.slane %v1237_v22, 5  ;;  %v524_v29 = vor.u32 %v522_v63, %v521_v27 }
  0x48   : > { %v1247_v45 = vshrl.u32 %v7531_v19, 16  ;;  %v592_v46 = vsel %vm7362_vm8, %v444_v10, 0  ;;  %4701 = vmatprep.mubr.bf16.mxu1 %v6933_v32  ;;  %v1245_v47 = vrot.slane %v1243_v33, 5  ;;  %v1253_v42 = vshll.u32 %v879_v41, 16  ;;  %v6339_v23 = vld [vmem:[%s7291_s22 + $0x28] sm:$0xff]   ;;  %v6995_v62 = vld [vmem:[%s9584_s3 + $0x158] sm:$0xff]  }
  0x49   : > { %v576_v48 = vsel %vm7362_vm8, 0, %v447_v35  ;;  %v5819_v13 = vcombine.low %v592_v46, %v592_v46  ;;  %4702 = vmatmul.mubr.bf16.vlgmr.msra.gmra.mxu1 %v6931_v31  ;;  %v1240_v50 = vor.u32 %v1239_v44, %v1236_v43  ;;  %v603_v30 = vsel %vm7362_vm8, %v521_v27, 0  ;;  %v6945_v0 = vld [vmem:[%s9584_s3 + $0xe8] sm:$0xff]   ;;  %6597 = vmatprep.subr.bf16.mxu0 %v6995_v62  ;;  %v6999_v32 = vld [vmem:[%s9584_s3 + $0x118] sm:$0xff]   ;;  %v6949_v55 = vld [vmem:[%s9584_s3 + $0xe0] sm:$0xff]  }
  0x4a   : > { %v1249_v51 = vrot.slane %v1247_v45, 4  ;;  %v5817_v52 = vcombine.low %v576_v48, %v576_v48  ;;  %v5818_v14 = vcombine.high %v576_v48, %v576_v48  ;;  %6478 = vmatpush3.bf16.msra.mxu1 %v6937_v3  ;;  %v1255_v9 = vrot.slane %v1253_v42, 5  ;;  %v6946_v10 = vld [vmem:[#allocation3 + $0x90] ss:$36 sps:$4 sm:$0xff]   ;;  %v7587_v46 = vld [vmem:[%s7291_s22 + $0x30] sm:$0xff]   ;;  %6598 = vmatpush3.bf16.msra.mxu0 %v6999_v32  ;;  %v6960_v32 = vld [vmem:[%s9584_s3 + $0x98] sm:$0xff]  }
  0x4b   : > { %791 = vst [vmem:[#allocation2 + $0x2c] sm:$0x1] %v5819_v13  ;;  %v414_v59 = vpack.c.bf16 %v386_v28, %v385_v56  ;;  %6479 = vmatprep.subr.bf16.mxu1 %v6939_v15  ;;  %v1241_v60 = vrot.slane %v1240_v50, 4  ;;  %v5852_v1 = vcombine.low %v603_v30, %v603_v30  ;;  %v407_v6 = vmax.f32 %v7540_v37, 0.0  ;;  %v6948_v63 = vld [vmem:[%s9584_s3 + $0xa8] sm:$0xff]   ;;  %v6957_v50 = vld [vmem:[%s9584_s3 + $0xd8] sm:$0xff]  }
  0x4c   : > { %v1250_v61 = vor.u32 %v1249_v51, %v1245_v47  ;;  %789 = vst [vmem:[#allocation2 + $0x24] sm:$0xf] %v5817_v52  ;;  %790 = vst [vmem:[#allocation2 + $0x28] sm:$0xf] %v5818_v14  ;;  %v6941_v3 = vld [vmem:[#allocation3 + $0x94] ss:$36 sps:$4 sm:$0xff]   ;;  %v317_v15 = vmul.f32 %v6209_v8, %v7305_v26  ;;  %v6213_v20 = vunpack.c.l.bf16 %v6339_v23  ;;  %v318_v37 = vmul.f32 %v6210_v12, %v7305_v26 }
  0x4d   : > { %v587_v56 = vsel %vm7362_vm8, 0, %v524_v29  ;;  %v1246_v22 = vsel %vm7321_vm5, %v1241_v60, %v1245_v47  ;;  %824 = vst [vmem:[#allocation2 + $0xb0] sm:$0x1] %v5852_v1  ;;  %4621 = vmatprep.mubr.bf16.mxu0 %v6941_v3  ;;  %v449_v8 = vshrl.u32 %v414_v59, 16  ;;  %v452_v33 = vshll.u32 %v414_v59, 16  ;;  %v7007_v62 = vld [vmem:[%s9584_s3 + $0x150] sm:$0xff]  }
  0x4e   : > { %v1251_v27 = vrot.slane %v1250_v61, 4  ;;  %v5850_v28 = vcombine.low %v587_v56, %v587_v56  ;;  %v5851_v31 = vcombine.high %v587_v56, %v587_v56  ;;  %6480 = vmatpush3.bf16.msra.mxu1 %v6940_v49  ;;  %1363 = vst [vmem:[#allocation3 + $0x3ac] sm:$0xf] %v1246_v22  ;;  %v408_v35 = vmax.f32 %v7543_v40, 0.0  ;;  %4622 = vmatmul.mubr.bf16.gmra.mxu0 %v6946_v10  ;;  %v6951_v40 = vld [vmem:[%s9584_s3 + $0xa0] sm:$0xff]  }
  0x4f   : > { %6481 = vmatprep.subr.bf16.mxu1 %v6945_v0  ;;  %v7583_v43 = vadd.f32 %v7314_v34, %v317_v15  ;;  %v6214_v44 = vunpack.c.h.bf16 %v6339_v23  ;;  %v319_v45 = vmul.f32 %v6213_v20, %v7305_v26  ;;  %v451_v47 = vrot.slane %v449_v8, 7  ;;  %6599 = vmatprep.subr.bf16.mxu0 %v7007_v62 }
  0x50   : > { %v1256_v41 = vsel %vm7321_vm5, %v1251_v27, %v1255_v9  ;;  %822 = vst [vmem:[#allocation2 + $0xa8] sm:$0xf] %v5850_v28  ;;  %823 = vst [vmem:[#allocation2 + $0xac] sm:$0xf] %v5851_v31  ;;  %v7592_v42 = vpack.c.bf16 %v408_v35, %v407_v6  ;;  %v7595_v48 = vadd.f32 %v7314_v34, %v318_v37  ;;  %v5860_v13 = vrot.slane %v7423_v24, 9  ;;  %v7008_v9 = vld [vmem:[%s9584_s3 + $0x110] sm:$0xff]  }
  0x51   : > { %1364 = vst [vmem:[#allocation3 + $0x3d0] sm:$0xf] %v1256_v41  ;;  %v387_v51 = vmax.f32 %v7583_v43, 0.0  ;;  %v320_v52 = vmul.f32 %v6214_v44, %v7305_v26  ;;  %v7606_v14 = vadd.f32 %v7314_v34, %v319_v45  ;;  %v1429_v23 = vrot.slane %v7425_v25, 5  ;;  %6600 = vmatpush3.bf16.msra.mxu0 %v7008_v9  ;;  %v6961_v35 = vld [vmem:[%s9584_s3 + $0xd0] sm:$0xff]   ;;  %v7024_v24 = vld [vmem:[%s9584_s3 + $0x108] sm:$0xff]  }
  0x52   : > { %v7598_v49 = vld [vmem:[#allocation2 + $0x2c] sm:$0x1]  ;;  %6482 = vmatpush3.bf16.msra.mxu1 %v6948_v63  ;;  %v454_v59 = vor.u32 %v452_v33, %v451_v47  ;;  %v593_v60 = vsel %vm7362_vm8, %v451_v47, 0  ;;  %v6217_v61 = vunpack.c.l.bf16 %v7587_v46  ;;  %v526_v20 = vshrl.u32 %v7592_v42, 16  ;;  %v6947_v47 = vld [vmem:[#allocation3 + $0x3a8] ss:$36 sps:$4 sm:$0xff]  }
  0x53   : > { %v7615_v29 = vld [vmem:[#allocation2 + $0x24] sm:$0xf]  ;;  %v7617_v30 = vld [vmem:[#allocation2 + $0x28] sm:$0xf]  ;;  %v1013_v26 = vshll.u32 %v7598_v49, 16  ;;  %6483 = vmatprep.subr.bf16.mxu1 %v6949_v55  ;;  %v5822_v15 = vcombine.low %v593_v60, %v593_v60 }
  0x54   : > { %892 = vst [vmem:[#allocation3 + $0xd8] sm:$0xf] %v7615_v29  ;;  %893 = vst [vmem:[#allocation3 + $0xfc] sm:$0xf] %v7617_v30  ;;  %v994_v0 = vshrl.u32 %v7615_v29, 16  ;;  %v997_v1 = vshll.u32 %v7615_v29, 16 }
  0x55   : > { %v1003_v6 = vshll.u32 %v7617_v30, 16  ;;  %v1007_v3 = vshrl.u32 %v7617_v30, 16  ;;  %v7629_v10 = vld [vmem:[#allocation2 + $0x24] sm:$0xf]  ;;  %v1015_v63 = vrot.slane %v1013_v26, 5  ;;  %v577_v12 = vsel %vm7362_vm8, 0, %v454_v59 }
  0x56   : > { %v882_v56 = vld [vmem:[#allocation2 + $0xb0] sm:$0x1]  ;;  %1648 = vst [vmem:[#allocation3 + $0x9c] sm:$0xf] %v7629_v10  ;;  %v996_v22 = vrot.slane %v994_v0, 4  ;;  %v999_v27 = vrot.slane %v997_v1, 5  ;;  %6484 = vmatpush3.bf16.msra.mxu1 %v6951_v40  ;;  %v5820_v37 = vcombine.low %v577_v12, %v577_v12  ;;  %v5821_v41 = vcombine.high %v577_v12, %v577_v12 }
  0x57   : > { %v1005_v28 = vrot.slane %v1003_v6, 5  ;;  %v1009_v31 = vrot.slane %v1007_v3, 4  ;;  %v7638_v55 = vld [vmem:[#allocation2 + $0xa8] sm:$0xf]  ;;  %v7640_v8 = vld [vmem:[#allocation2 + $0xac] sm:$0xf]  ;;  %6485 = vmatprep.subr.bf16.mxu1 %v6957_v50  ;;  %v358_v26 = vadd.f32 %v7314_v34, %v320_v52 }
  0x58   : > { %9634 = vst [vmem:[#allocation4_spill] sm:$0xff] %v7640_v8  ;;  %v1277_v33 = vshll.u32 %v882_v56, 16  ;;  %794 = vst [vmem:[#allocation2 + $0x38] sm:$0x1] %v5822_v15  ;;  %v528_v44 = vrot.slane %v526_v20, 7  ;;  %v1000_v62 = vor.u32 %v999_v27, %v996_v22  ;;  %v1258_v40 = vshrl.u32 %v7638_v55, 16 }
  0x59   : > { %v6943_v45 = vld [vmem:[#allocation3 + $0x3ac] ss:$36 sps:$4 sm:$0xff]   ;;  %v1010_v9 = vor.u32 %v1009_v31, %v1005_v28  ;;  %914 = vst [vmem:[#allocation3 + $0x3f0] sm:$0xf] %v7638_v55  ;;  %915 = vst [vmem:[#allocation3 + $0x414] sm:$0xf] %v7640_v8 }
  0x5a   : > { %v1261_v59 = vshll.u32 %v7638_v55, 16  ;;  %v1267_v60 = vshll.u32 %v7640_v8, 16  ;;  %v1271_v0 = vshrl.u32 %v7640_v8, 16  ;;  %v7652_v1 = vrot.slane %v1277_v33, 5  ;;  %792 = vst [vmem:[#allocation2 + $0x30] sm:$0xf] %v5820_v37  ;;  %4709 = vmatprep.mubr.bf16.mxu1 %v6943_v45  ;;  %6486 = vmatpush3.bf16.msra.mxu1 %v6960_v32 }
  0x5b   : > { %793 = vst [vmem:[#allocation2 + $0x34] sm:$0xf] %v5821_v41  ;;  %v7654_v6 = vld [vmem:[#allocation2 + $0x28] sm:$0xf]  ;;  %v1001_v3 = vrot.slane %v1000_v62, 4  ;;  %v1011_v56 = vrot.slane %v1010_v9, 4  ;;  %4710 = vmatmul.mubr.bf16.gmra.mxu1 %v6947_v47  ;;  %6487 = vmatprep.subr.bf16.mxu1 %v6961_v35 }
  0x5c   : > { %v1260_v12 = vrot.slane %v1258_v40, 4  ;;  %v6962_v34 = vld [vmem:[%s9584_s3 + $0x90] sm:$0xff]   ;;  %v529_v50 = vshll.u32 %v7592_v42, 16  ;;  %1649 = vst [vmem:[#allocation3 + $0xc0] sm:$0xf] %v7654_v6  ;;  %v1263_v52 = vrot.slane %v1261_v59, 5 }
  0x5d   : > { %v1269_v15 = vrot.slane %v1267_v60, 5  ;;  %v1273_v20 = vrot.slane %v1271_v0, 4  ;;  %v604_v22 = vsel %vm7362_vm8, %v528_v44, 0  ;;  %v1006_v27 = vsel %vm7321_vm5, %v1001_v3, %v1005_v28  ;;  %v6967_v45 = vld [vmem:[%s9584_s3 + $0xc8] sm:$0xff]  }
  0x5e   : > { %v1016_v31 = vsel %vm7321_vm5, %v1011_v56, %v1015_v63  ;;  %v531_v33 = vor.u32 %v529_v50, %v528_v44  ;;  %v5855_v37 = vcombine.low %v604_v22, %v604_v22  ;;  %1343 = vst [vmem:[#allocation3 + $0xdc] sm:$0xf] %v1006_v27  ;;  %v1264_v42 = vor.u32 %v1263_v52, %v1260_v12  ;;  %v6971_v32 = vld [vmem:[%s9584_s3 + $0x88] sm:$0xff]  }
  0x5f   : > { %1344 = vst [vmem:[#allocation3 + $0x100] sm:$0xf] %v1016_v31  ;;  %v1274_v41 = vor.u32 %v1273_v20, %v1269_v15  ;;  %v388_v47 = vmax.f32 %v7595_v48, 0.0  ;;  %v389_v62 = vmax.f32 %v7606_v14, 0.0  ;;  %v7672_v28 = vld [vmem:[#allocation2 + $0x38] sm:$0x1]  ;;  %v1430_v48 = vsel %vm7295_vm4, %v5860_v13, %v1429_v23  ;;  %6488 = vmatpush3.bf16.msra.mxu1 %v6962_v34 }
  0x60   : > { %v588_v63 = vsel %vm7362_vm8, 0, %v531_v33  ;;  %827 = vst [vmem:[#allocation2 + $0xbc] sm:$0x1] %v5855_v37  ;;  %v390_v44 = vmax.f32 %v358_v26, 0.0  ;;  %v1431_v14 = vrot.slane %v1429_v23, 4  ;;  %v7021_v35 = vld [vmem:[%s9584_s3 + $0x148] sm:$0xff]   ;;  %6489 = vmatprep.subr.bf16.mxu1 %v6967_v45 }
  0x61   : > { %v1265_v9 = vrot.slane %v1264_v42, 4  ;;  %v1275_v40 = vrot.slane %v1274_v41, 4  ;;  %v1037_v59 = vshll.u32 %v7672_v28, 16  ;;  %v5853_v60 = vcombine.low %v588_v63, %v588_v63  ;;  %1566 = vst [vmem:[#allocation3 + $0x50] sm:$0xf] %v1430_v48  ;;  %v6973_v23 = vld [vmem:[%s9584_s3 + $0xc0] sm:$0xff]   ;;  %6601 = vmatprep.subr.bf16.mxu0 %v7021_v35 }
  0x62   : > { %v7694_v26 = vld [vmem:[#allocation2 + $0x30] sm:$0xf]  ;;  %v7696_v13 = vld [vmem:[#allocation2 + $0x34] sm:$0xf]  ;;  %v5854_v25 = vcombine.high %v588_v63, %v588_v63  ;;  %v415_v0 = vpack.c.bf16 %v388_v47, %v387_v51  ;;  %v416_v3 = vpack.c.bf16 %v390_v44, %v389_v62  ;;  %v1432_v56 = vrot.slane %v7405_v11, 5  ;;  %6602 = vmatpush3.bf16.msra.mxu0 %v7024_v24  ;;  %v6974_v20 = vld [vmem:[%s9584_s3 + $0x80] sm:$0xff]  }
  0x63   : > { %v1270_v12 = vsel %vm7321_vm5, %v1265_v9, %v1269_v15  ;;  %v1280_v34 = vsel %vm7321_vm5, %v1275_v40, %v7652_v1  ;;  %894 = vst [vmem:[#allocation3 + $0x120] sm:$0xf] %v7694_v26  ;;  %895 = vst [vmem:[#allocation3 + $0x144] sm:$0xf] %v7696_v13  ;;  %v1018_v50 = vshrl.u32 %v7694_v26, 16  ;;  %v1021_v43 = vshll.u32 %v7694_v26, 16  ;;  %6490 = vmatpush3.bf16.msra.mxu1 %v6971_v32 }
  0x64   : > { %825 = vst [vmem:[#allocation2 + $0xb4] sm:$0xf] %v5853_v60  ;;  %v7713_v51 = vld [vmem:[#allocation2 + $0x30] sm:$0xf]  ;;  %v7715_v11 = vld [vmem:[#allocation2 + $0x34] sm:$0xf]  ;;  %v1433_v62 = vsel %vm7295_vm4, %v1431_v14, %v1432_v56  ;;  %v6218_v63 = vunpack.c.h.bf16 %v7587_v46  ;;  %6491 = vmatprep.subr.bf16.mxu1 %v6973_v23 }
  0x65   : > { %1365 = vst [vmem:[#allocation3 + $0x3f4] sm:$0xf] %v1270_v12  ;;  %1366 = vst [vmem:[#allocation3 + $0x418] sm:$0xf] %v1280_v34  ;;  %v1027_v52 = vshll.u32 %v7696_v13, 16  ;;  %v1031_v1 = vshrl.u32 %v7696_v13, 16 }
  0x66   : > { %v1039_v15 = vrot.slane %v1037_v59, 5  ;;  %826 = vst [vmem:[#allocation2 + $0xb8] sm:$0xf] %v5854_v25  ;;  %v456_v22 = vshrl.u32 %v415_v0, 16  ;;  %1650 = vst [vmem:[#allocation3 + $0xe4] sm:$0xf] %v7713_v51 }
  0x67   : > { %1651 = vst [vmem:[#allocation3 + $0x108] sm:$0xf] %v7715_v11  ;;  %v1020_v27 = vrot.slane %v1018_v50, 4  ;;  %v1023_v31 = vrot.slane %v1021_v43, 5  ;;  %v459_v33 = vshll.u32 %v415_v0, 16  ;;  %v6980_v37 = vld [vmem:[%s9584_s3 + $0x1f8] sm:$0xff]   ;;  %6492 = vmatpush3.bf16.msra.mxu1 %v6974_v20 }
  0x68   : > { %v463_v42 = vshrl.u32 %v416_v3, 16  ;;  %v6953_v41 = vld [vmem:[#allocation3 + $0xdc] ss:$36 sps:$4 sm:$0xff]   ;;  %v1029_v45 = vrot.slane %v1027_v52, 5  ;;  %v1033_v47 = vrot.slane %v1031_v1, 4  ;;  %v458_v9 = vrot.slane %v456_v22, 7  ;;  %6701 = vmatprep.subr.bf16.mxu1 %v6980_v37 }
  0x69   : > { %v6958_v44 = vld [vmem:[#allocation3 + $0xd8] ss:$36 sps:$4 sm:$0xff]   ;;  %v1024_v48 = vor.u32 %v1023_v31, %v1020_v27  ;;  %v885_v35 = vld [vmem:[#allocation2 + $0xbc] sm:$0x1]  ;;  %1567 = vst [vmem:[#allocation3 + $0x74] sm:$0xf] %v1433_v62  ;;  %4629 = vmatprep.mubr.bf16.mxu0 %v6953_v41 }
  0x6a   : > { %v465_v40 = vrot.slane %v463_v42, 7  ;;  %v7733_v59 = vld [vmem:[%s9582_s1] ss:$0 sm:$0xff]  ;;  %v1034_v14 = vor.u32 %v1033_v47, %v1029_v45  ;;  %v1301_v60 = vshll.u32 %v885_v35, 16  ;;  %v466_v24 = vshll.u32 %v416_v3, 16  ;;  %4630 = vmatmul.mubr.bf16.gmra.mxu0 %v6958_v44 }
  0x6b   : > { %v321_v32 = vmul.f32 %v7733_v59, %v6217_v61  ;;  %v322_v25 = vmul.f32 %v7733_v59, %v6218_v63  ;;  %v1025_v23 = vrot.slane %v1024_v48, 4  ;;  %v461_v0 = vor.u32 %v459_v33, %v458_v9  ;;  %v7743_v50 = vld [vmem:[#allocation2 + $0xb4] sm:$0xf]  ;;  %v6959_v31 = vld [vmem:[#allocation3 + $0x3f0] ss:$36 sps:$4 sm:$0xff]  }
  0x6c   : > { %v594_v56 = vsel %vm7362_vm8, %v458_v9, 0  ;;  %v595_v12 = vsel %vm7362_vm8, %v465_v40, 0  ;;  %v1035_v34 = vrot.slane %v1034_v14, 4  ;;  %9635 = vst [vmem:[#allocation5_spill] sm:$0xff] %v7743_v50  ;;  %v7745_v46 = vrot.slane %v1301_v60, 5 }
  0x6d   : > { %v5825_v61 = vcombine.low %v594_v56, %v594_v56  ;;  %v468_v43 = vor.u32 %v466_v24, %v465_v40  ;;  %v6955_v3 = vld [vmem:[#allocation3 + $0x3f4] ss:$36 sps:$4 sm:$0xff]   ;;  %v1030_v52 = vsel %vm7321_vm5, %v1025_v23, %v1029_v45  ;;  %916 = vst [vmem:[#allocation3 + $0x438] sm:$0xf] %v7743_v50  ;;  %v1282_v1 = vshrl.u32 %v7743_v50, 16  ;;  %v6341_v40 = vld [vmem:[%s7291_s22 + $0x38] sm:$0xff]  }
  0x6e   : > { %v1285_v22 = vshll.u32 %v7743_v50, 16  ;;  %v5828_v27 = vcombine.low %v595_v12, %v595_v12  ;;  %v1040_v33 = vsel %vm7321_vm5, %v1035_v34, %v1039_v15  ;;  %1345 = vst [vmem:[#allocation3 + $0x124] sm:$0xf] %v1030_v52  ;;  %v7754_v20 = vld [vmem:[#allocation2 + $0xb8] sm:$0xf]  ;;  %v578_v42 = vsel %vm7362_vm8, 0, %v461_v0  ;;  %4717 = vmatprep.mubr.bf16.mxu1 %v6955_v3 }
  0x6f   : > { %9636 = vst [vmem:[#allocation6_spill] sm:$0xff] %v7754_v20  ;;  %797 = vst [vmem:[#allocation2 + $0x44] sm:$0x1] %v5825_v61  ;;  %v579_v41 = vsel %vm7362_vm8, 0, %v468_v43  ;;  %v7763_v37 = vld [vmem:[%s9583_s2] ss:$0 sm:$0xff]  ;;  %4718 = vmatmul.mubr.bf16.gmra.mxu1 %v6959_v31  ;;  %v5823_v44 = vcombine.low %v578_v42, %v578_v42  ;;  %v5824_v48 = vcombine.high %v578_v42, %v578_v42  ;;  %v6221_v52 = vunpack.c.l.bf16 %v6341_v40 }
  0x70   : > { %v359_v45 = vadd.f32 %v7763_v37, %v321_v32  ;;  %1346 = vst [vmem:[#allocation3 + $0x148] sm:$0xf] %v1040_v33  ;;  %917 = vst [vmem:[#allocation3 + $0x45c] sm:$0xf] %v7754_v20  ;;  %v1284_v15 = vrot.slane %v1282_v1, 4  ;;  %v1287_v47 = vrot.slane %v1285_v22, 5  ;;  %v5826_v35 = vcombine.low %v579_v41, %v579_v41 }
  0x71   : > { %v1291_v62 = vshll.u32 %v7754_v20, 16  ;;  %v1295_v63 = vshrl.u32 %v7754_v20, 16  ;;  %800 = vst [vmem:[#allocation2 + $0x50] sm:$0x1] %v5828_v27  ;;  %v5827_v9 = vcombine.high %v579_v41, %v579_v41  ;;  %v360_v24 = vadd.f32 %v7763_v37, %v322_v25  ;;  %v7772_v23 = vld [vmem:[%s7291_s22 + $0x40] sm:$0xff]  }
  0x72   : > { %v1288_v14 = vor.u32 %v1287_v47, %v1284_v15  ;;  %795 = vst [vmem:[#allocation2 + $0x3c] sm:$0xf] %v5823_v44  ;;  %796 = vst [vmem:[#allocation2 + $0x40] sm:$0xf] %v5824_v48  ;;  %v391_v0 = vmax.f32 %v359_v45, 0.0  ;;  %v5861_v56 = vrot.slane %v7456_v4, 9  ;;  %v323_v41 = vmul.f32 %v7733_v59, %v6221_v52 }
  0x73   : > { %v1293_v32 = vrot.slane %v1291_v62, 5  ;;  %v1297_v60 = vrot.slane %v1295_v63, 4  ;;  %798 = vst [vmem:[#allocation2 + $0x48] sm:$0xf] %v5826_v35  ;;  %799 = vst [vmem:[#allocation2 + $0x4c] sm:$0xf] %v5827_v9  ;;  %v6225_v48 = vunpack.c.l.bf16 %v7772_v23 }
  0x74   : > { %v1436_v12 = vrot.slane %v7458_v5, 5  ;;  %v1439_v34 = vrot.slane %v7449_v58, 5  ;;  %v1289_v61 = vrot.slane %v1288_v14, 4  ;;  %v392_v3 = vmax.f32 %v360_v24, 0.0  ;;  %v7033_v25 = vld [vmem:[%s9584_s3 + $0x140] sm:$0xff]   ;;  %v7794_v45 = vld [vmem:[%s7291_s22 + $0x48] sm:$0xff]  }
  0x75   : > { %v1298_v43 = vor.u32 %v1297_v60, %v1293_v32  ;;  %v7034_v1 = vld [vmem:[%s9584_s3 + $0x100] sm:$0xff]   ;;  %v6222_v5 = vunpack.c.h.bf16 %v6341_v40  ;;  %6603 = vmatprep.subr.bf16.mxu0 %v7033_v25  ;;  %v6969_v47 = vld [vmem:[#allocation3 + $0x120] ss:$36 sps:$4 sm:$0xff]   ;;  %v9637_v8 = vrot.slane %v7615_v29, 9 }
  0x76   : > { %v1437_v4 = vsel %vm7295_vm4, %v5861_v56, %v1436_v12  ;;  %v1438_v22 = vrot.slane %v1436_v12, 4  ;;  %v1294_v27 = vsel %vm7321_vm5, %v1289_v61, %v1293_v32  ;;  %v7788_v33 = vld [vmem:[#allocation2 + $0x44] sm:$0x1]  ;;  %v7790_v42 = vpack.c.bf16 %v392_v3, %v391_v0  ;;  %6604 = vmatpush3.bf16.msra.mxu0 %v7034_v1 }
  0x77   : > { %v1299_v31 = vrot.slane %v1298_v43, 4  ;;  %1568 = vst [vmem:[#allocation3 + $0x98] sm:$0xf] %v1437_v4  ;;  %v6963_v15 = vld [vmem:[#allocation3 + $0x124] ss:$36 sps:$4 sm:$0xff]   ;;  %v1061_v62 = vshll.u32 %v7788_v33, 16  ;;  %v324_v44 = vmul.f32 %v7733_v59, %v6222_v5  ;;  %v7809_v32 = vadd.f32 %v7763_v37, %v323_v41 }
  0x78   : > { %1367 = vst [vmem:[#allocation3 + $0x43c] sm:$0xf] %v1294_v27  ;;  %v1440_v63 = vsel %vm7295_vm4, %v1438_v22, %v1439_v34  ;;  %v7804_v9 = vld [vmem:[#allocation2 + $0x50] sm:$0x1]  ;;  %v470_v40 = vshrl.u32 %v7790_v42, 16  ;;  %v473_v14 = vshll.u32 %v7790_v42, 16  ;;  %4637 = vmatprep.mubr.bf16.mxu0 %v6963_v15  ;;  %v7826_v43 = vmul.f32 %v7733_v59, %v6225_v48 }
  0x79   : > { %v1304_v35 = vsel %vm7321_vm5, %v1299_v31, %v7745_v46  ;;  %1569 = vst [vmem:[#allocation3 + $0xbc] sm:$0xf] %v1440_v63  ;;  %v7811_v60 = vrot.slane %v1061_v62, 5  ;;  %v1085_v24 = vshll.u32 %v7804_v9, 16  ;;  %v7815_v0 = vadd.f32 %v7763_v37, %v324_v44  ;;  %4638 = vmatmul.mubr.bf16.gmra.mxu0 %v6969_v47  ;;  %v7818_v56 = vld [vmem:[#allocation2 + $0x3c] sm:$0xf] }
  0x7a   : > { %1368 = vst [vmem:[#allocation3 + $0x460] sm:$0xf] %v1304_v35  ;;  %v1443_v46 = vrot.slane %v7617_v30, 5  ;;  %v7820_v12 = vld [vmem:[#allocation2 + $0x40] sm:$0xf]  ;;  %v1042_v30 = vshrl.u32 %v7818_v56, 16 }
  0x7b   : > { %v7822_v34 = vld [vmem:[#allocation2 + $0x48] sm:$0xf]  ;;  %896 = vst [vmem:[#allocation3 + $0x168] sm:$0xf] %v7818_v56  ;;  %897 = vst [vmem:[#allocation3 + $0x18c] sm:$0xf] %v7820_v12 }
  0x7c   : > { %v1045_v25 = vshll.u32 %v7818_v56, 16  ;;  %v1051_v1 = vshll.u32 %v7820_v12, 16  ;;  %v1055_v4 = vshrl.u32 %v7820_v12, 16  ;;  %v7836_v22 = vld [vmem:[#allocation2 + $0x4c] sm:$0xf]  ;;  %v1066_v5 = vshrl.u32 %v7822_v34, 16 }
  0x7d   : > { %898 = vst [vmem:[#allocation3 + $0x1b0] sm:$0xf] %v7822_v34  ;;  %899 = vst [vmem:[#allocation3 + $0x1d4] sm:$0xf] %v7836_v22  ;;  %v1069_v27 = vshll.u32 %v7822_v34, 16  ;;  %v1075_v31 = vshll.u32 %v7836_v22, 16 }
  0x7e   : > { %v1079_v42 = vshrl.u32 %v7836_v22, 16  ;;  %v7844_v41 = vld [vmem:[#allocation2 + $0x3c] sm:$0xf]  ;;  %v1044_v15 = vrot.slane %v1042_v30, 4  ;;  %v1047_v47 = vrot.slane %v1045_v25, 5  ;;  %v1053_v62 = vrot.slane %v1051_v1, 5 }
  0x7f   : > { %v1057_v63 = vrot.slane %v1055_v4, 4  ;;  %1652 = vst [vmem:[#allocation3 + $0x12c] sm:$0xf] %v7844_v41  ;;  %v7046_v44 = vld [vmem:[%s9584_s3 + $0x238] sm:$0xff]   ;;  %v1068_v48 = vrot.slane %v1066_v5, 4  ;;  %v1071_v35 = vrot.slane %v1069_v27, 5  ;;  %v1444_v5 = vsel %vm7295_vm4, %v9637_v8, %v1443_v46 }
  0x80   : > { %v1077_v53 = vrot.slane %v1075_v31, 5  ;;  %v1081_v54 = vrot.slane %v1079_v42, 4  ;;  %v1048_v52 = vor.u32 %v1047_v47, %v1044_v15  ;;  %v6979_v61 = vld [vmem:[#allocation3 + $0xc] ss:$36 sps:$4 sm:$0xff]   ;;  %v1087_v58 = vrot.slane %v1085_v24, 5  ;;  %6837 = vmatprep.subr.bf16.mxu0 %v7046_v44 }
  0x81   : > { %v1058_v3 = vor.u32 %v1057_v63, %v1053_v62  ;;  %v472_v20 = vrot.slane %v470_v40, 7  ;;  %v6965_v30 = vld [vmem:[#allocation3 + $0x43c] ss:$36 sps:$4 sm:$0xff]   ;;  %v1072_v1 = vor.u32 %v1071_v35, %v1068_v48  ;;  %v393_v50 = vmax.f32 %v7809_v32, 0.0  ;;  %1570 = vst [vmem:[#allocation3 + $0xe0] sm:$0xf] %v1444_v5 }
  0x82   : > { %v6970_v25 = vld [vmem:[#allocation3 + $0x438] ss:$36 sps:$4 sm:$0xff]   ;;  %v1082_v4 = vor.u32 %v1081_v54, %v1077_v53  ;;  %v1049_v27 = vrot.slane %v1048_v52, 4  ;;  %4725 = vmatprep.mubr.bf16.mxu1 %v6965_v30  ;;  %v394_v54 = vmax.f32 %v7815_v0, 0.0  ;;  %v7858_v63 = vld [vmem:[#allocation2 + $0x40] sm:$0xf] }
  0x83   : > { %v1059_v31 = vrot.slane %v1058_v3, 4  ;;  %v475_v42 = vor.u32 %v473_v14, %v472_v20  ;;  %v596_v15 = vsel %vm7362_vm8, %v472_v20, 0  ;;  %v1073_v40 = vrot.slane %v1072_v1, 4  ;;  %4726 = vmatmul.mubr.bf16.gmra.mxu1 %v6970_v25  ;;  %1653 = vst [vmem:[#allocation3 + $0x150] sm:$0xf] %v7858_v63  ;;  %v6982_v35 = vld [vmem:[%s9584_s3 + $0x1b8] sm:$0xff]  }
  0x84   : > { %v1083_v24 = vrot.slane %v1082_v4, 4  ;;  %v5831_v47 = vcombine.low %v596_v15, %v596_v15  ;;  %v1054_v29 = vsel %vm7321_vm5, %v1049_v27, %v1053_v62  ;;  %v1445_v14 = vrot.slane %v1443_v46, 4  ;;  %v7868_v32 = vld [vmem:[#allocation2 + $0x48] sm:$0xf]  ;;  %v7870_v3 = vld [vmem:[#allocation2 + $0x4c] sm:$0xf]  ;;  %4766 = vmatprep.mubr.bf16.mxu1 %v6979_v61 }
  0x85   : > { %v1064_v8 = vsel %vm7321_vm5, %v1059_v31, %v7811_v60  ;;  %v580_v20 = vsel %vm7362_vm8, 0, %v475_v42  ;;  %1347 = vst [vmem:[#allocation3 + $0x16c] sm:$0xf] %v1054_v29  ;;  %v1078_v0 = vsel %vm7321_vm5, %v1073_v40, %v1077_v53  ;;  %1654 = vst [vmem:[#allocation3 + $0x174] sm:$0xf] %v7868_v32  ;;  %v418_v44 = vpack.c.bf16 %v394_v54, %v393_v50  ;;  %v7907_v29 = vld [vmem:[%s7291_s22 + $0x50] sm:$0xff]  }
  0x86   : > { %1348 = vst [vmem:[#allocation3 + $0x190] sm:$0xf] %v1064_v8  ;;  %v1088_v52 = vsel %vm7321_vm5, %v1083_v24, %v1087_v58  ;;  %v5829_v60 = vcombine.low %v580_v20, %v580_v20  ;;  %v5830_v62 = vcombine.high %v580_v20, %v580_v20  ;;  %803 = vst [vmem:[#allocation2 + $0x5c] sm:$0x1] %v5831_v47  ;;  %v6977_v46 = vld [vmem:[#allocation3 + $0x8] ss:$36 sps:$4 sm:$0xff]   ;;  %v9638_v61 = vunpack.c.h.bf16 %v7772_v23 }
  0x87   : > { %1655 = vst [vmem:[#allocation3 + $0x198] sm:$0xf] %v7870_v3  ;;  %1349 = vst [vmem:[#allocation3 + $0x1b4] sm:$0xf] %v1078_v0  ;;  %v1446_v48 = vrot.slane %v7598_v49, 5  ;;  %v363_v58 = vadd.f32 %v7763_v37, %v7826_v43  ;;  %v5863_v25 = vrot.slane %v7694_v26, 9  ;;  %v9639_v23 = vunpack.c.l.bf16 %v7794_v45 }
  0x88   : > { %1350 = vst [vmem:[#allocation3 + $0x1d8] sm:$0xf] %v1088_v52  ;;  %v326_v53 = vmul.f32 %v7733_v59, %v9638_v61  ;;  %v6987_v30 = vld [vmem:[#allocation3 + $0x54] ss:$36 sps:$4 sm:$0xff]   ;;  %801 = vst [vmem:[#allocation2 + $0x54] sm:$0xf] %v5829_v60  ;;  %v9640_v42 = vunpack.c.h.bf16 %v7794_v45 }
  0x89   : > { %802 = vst [vmem:[#allocation2 + $0x58] sm:$0xf] %v5830_v62  ;;  %v1450_v50 = vrot.slane %v7696_v13, 5  ;;  %v1453_v49 = vrot.slane %v7672_v28, 5  ;;  %v327_v1 = vmul.f32 %v7733_v59, %v9639_v23  ;;  %v477_v4 = vshrl.u32 %v418_v44, 16  ;;  %v6996_v26 = vld [vmem:[%s9584_s3 + $0x1f0] sm:$0xff]  }
  0x8a   : > { %v480_v43 = vshll.u32 %v418_v44, 16  ;;  %v1447_v5 = vsel %vm7295_vm4, %v1445_v14, %v1446_v48  ;;  %v364_v27 = vadd.f32 %v7763_v37, %v326_v53  ;;  %v395_v13 = vmax.f32 %v363_v58, 0.0  ;;  %v7000_v8 = vld [vmem:[%s9584_s3 + $0x1b0] sm:$0xff]   ;;  %v7013_v62 = vld [vmem:[%s9584_s3 + $0x1e8] sm:$0xff]   ;;  %v6981_v48 = vld [vmem:[#allocation3 + $0x168] ss:$36 sps:$4 sm:$0xff]  }
  0x8b   : > { %1571 = vst [vmem:[#allocation3 + $0x104] sm:$0xf] %v1447_v5  ;;  %v1451_v28 = vsel %vm7295_vm4, %v5863_v25, %v1450_v50  ;;  %v1452_v31 = vrot.slane %v1450_v50, 4  ;;  %v328_v15 = vmul.f32 %v7733_v59, %v9640_v42  ;;  %v479_v40 = vrot.slane %v477_v4, 7  ;;  %4767 = vmatmul.mubr.bf16.vlgmr.msra.gmra.mxu1 %v6977_v46  ;;  %v6990_v58 = vld [vmem:[#allocation3 + $0x50] ss:$36 sps:$4 sm:$0xff]  }
  0x8c   : > { %v396_v24 = vmax.f32 %v364_v27, 0.0  ;;  %1572 = vst [vmem:[#allocation3 + $0x128] sm:$0xf] %v1451_v28  ;;  %v365_v47 = vadd.f32 %v7763_v37, %v327_v1  ;;  %v5864_v54 = vrot.slane %v7818_v56, 9  ;;  %v1457_v14 = vrot.slane %v7820_v12, 5  ;;  %6702 = vmatpush3.bf16.msra.mxu1 %v6982_v35  ;;  %4774 = vmatprep.mubr.bf16.mxu1 %v6987_v30 }
  0x8d   : > { %v1454_v20 = vsel %vm7295_vm4, %v1452_v31, %v1453_v49  ;;  %v366_v45 = vadd.f32 %v7763_v37, %v328_v15  ;;  %v1460_v0 = vrot.slane %v7788_v33, 5  ;;  %v6975_v52 = vld [vmem:[#allocation3 + $0x16c] ss:$36 sps:$4 sm:$0xff]   ;;  %v482_v60 = vor.u32 %v480_v43, %v479_v40  ;;  %6703 = vmatprep.subr.bf16.mxu1 %v6996_v26  ;;  %v7936_v43 = vld [vmem:[#allocation2 + $0x5c] sm:$0x1] }
  0x8e   : > { %v597_v56 = vsel %vm7362_vm8, %v479_v40, 0  ;;  %1573 = vst [vmem:[#allocation3 + $0x14c] sm:$0xf] %v1454_v20  ;;  %v397_v44 = vmax.f32 %v365_v47, 0.0  ;;  %v1458_v33 = vsel %vm7295_vm4, %v5864_v54, %v1457_v14  ;;  %v1459_v12 = vrot.slane %v1457_v14, 4  ;;  %4645 = vmatprep.mubr.bf16.mxu0 %v6975_v52  ;;  %v7029_v52 = vld [vmem:[%s9584_s3 + $0x1e0] sm:$0xff]  }
  0x8f   : > { %v5834_v61 = vcombine.low %v597_v56, %v597_v56  ;;  %v398_v53 = vmax.f32 %v366_v45, 0.0  ;;  %v6985_v46 = vld [vmem:[#allocation3 + $0x1b4] ss:$36 sps:$4 sm:$0xff]   ;;  %v7924_v25 = vld [vmem:[#allocation2 + $0x54] sm:$0xf]  ;;  %v419_v50 = vpack.c.bf16 %v396_v24, %v395_v13  ;;  %v6233_v49 = vunpack.c.l.bf16 %v7907_v29  ;;  %4646 = vmatmul.mubr.bf16.gmra.mxu0 %v6981_v48 }
  0x90   : > { %1574 = vst [vmem:[#allocation3 + $0x170] sm:$0xf] %v1458_v33  ;;  %v6234_v23 = vunpack.c.h.bf16 %v7907_v29  ;;  %v9641_v35 = vrot.slane %v7439_v38, 5  ;;  %v9642_v30 = vrot.slane %v7437_v36, 9  ;;  %v7934_v4 = vld [vmem:[#allocation2 + $0x58] sm:$0xf]  ;;  %v1461_v36 = vsel %vm7295_vm4, %v1459_v12, %v1460_v0  ;;  %4653 = vmatprep.mubr.bf16.mxu0 %v6985_v46  ;;  %6704 = vmatpush3.bf16.msra.mxu1 %v7000_v8 }
  0x91   : > { %900 = vst [vmem:[#allocation3 + $0x1f8] sm:$0xf] %v7924_v25  ;;  %v1090_v5 = vshrl.u32 %v7924_v25, 16  ;;  %v1093_v27 = vshll.u32 %v7924_v25, 16  ;;  %806 = vst [vmem:[#allocation2 + $0x68] sm:$0x1] %v5834_v61  ;;  %v7941_v26 = vpack.c.bf16 %v398_v53, %v397_v44  ;;  %6705 = vmatprep.subr.bf16.mxu1 %v7013_v62  ;;  %v329_v44 = vmul.f32 %v7733_v59, %v6233_v49 }
  0x92   : > { %v1507_v1 = vsel %vm7295_vm4, %v9642_v30, %v9641_v35  ;;  %901 = vst [vmem:[#allocation3 + $0x21c] sm:$0xf] %v7934_v4  ;;  %v1099_v13 = vshll.u32 %v7934_v4, 16  ;;  %v1103_v28 = vshrl.u32 %v7934_v4, 16  ;;  %v1109_v31 = vshll.u32 %v7936_v43, 16  ;;  %v7016_v29 = vld [vmem:[%s9584_s3 + $0x1a8] sm:$0xff]  }
  0x93   : > { %1588 = vst [vmem:[#allocation3 + $0x368] sm:$0xf] %v1507_v1  ;;  %v581_v42 = vsel %vm7362_vm8, 0, %v482_v60  ;;  %1575 = vst [vmem:[#allocation3 + $0x194] sm:$0xf] %v1461_v36  ;;  %v1092_v15 = vrot.slane %v1090_v5, 4  ;;  %v330_v48 = vmul.f32 %v7733_v59, %v6234_v23  ;;  %4775 = vmatmul.mubr.bf16.gmra.mxu1 %v6990_v58  ;;  %v7964_v35 = vadd.f32 %v7763_v37, %v329_v44 }
  0x94   : > { %v1095_v40 = vrot.slane %v1093_v27, 5  ;;  %v6993_v24 = vld [vmem:[#allocation3 + $0x9c] ss:$36 sps:$4 sm:$0xff]   ;;  %v5832_v47 = vcombine.low %v581_v42, %v581_v42  ;;  %v5833_v54 = vcombine.high %v581_v42, %v581_v42  ;;  %v1101_v20 = vrot.slane %v1099_v13, 5  ;;  %v6989_v60 = vld [vmem:[#allocation3 + $0x1b0] ss:$36 sps:$4 sm:$0xff]   ;;  %6706 = vmatpush3.bf16.msra.mxu1 %v7016_v29 }
  0x95   : > { %v1105_v45 = vrot.slane %v1103_v28, 4  ;;  %v1111_v14 = vrot.slane %v1109_v31, 5  ;;  %v484_v0 = vshrl.u32 %v419_v50, 16  ;;  %v487_v8 = vshll.u32 %v419_v50, 16  ;;  %v7961_v12 = vld [vmem:[#allocation2 + $0x54] sm:$0xf]  ;;  %4782 = vmatprep.mubr.bf16.mxu1 %v6993_v24  ;;  %6707 = vmatprep.subr.bf16.mxu1 %v7029_v52 }
  0x96   : > { %v1096_v56 = vor.u32 %v1095_v40, %v1092_v15  ;;  %804 = vst [vmem:[#allocation2 + $0x60] sm:$0xf] %v5832_v47  ;;  %805 = vst [vmem:[#allocation2 + $0x64] sm:$0xf] %v5833_v54  ;;  %v491_v33 = vshrl.u32 %v7941_v26, 16  ;;  %v494_v62 = vshll.u32 %v7941_v26, 16  ;;  %v7967_v50 = vadd.f32 %v7763_v37, %v330_v48 }
  0x97   : > { %v1106_v61 = vor.u32 %v1105_v45, %v1101_v20  ;;  %v486_v53 = vrot.slane %v484_v0, 7  ;;  %v7969_v49 = vld [vmem:[#allocation2 + $0x58] sm:$0xf]  ;;  %1656 = vst [vmem:[#allocation3 + $0x1bc] sm:$0xf] %v7961_v12  ;;  %v7032_v59 = vld [vmem:[%s9584_s3 + $0x1a0] sm:$0xff]   ;;  %4654 = vmatmul.mubr.bf16.gmra.mxu0 %v6989_v60 }
  0x98   : > { %v1097_v46 = vrot.slane %v1096_v56, 4  ;;  %v7975_v23 = vld [vmem:[#allocation2 + $0x68] sm:$0x1]  ;;  %v493_v5 = vrot.slane %v491_v33, 7  ;;  %1657 = vst [vmem:[#allocation3 + $0x1e0] sm:$0xf] %v7969_v49  ;;  %6708 = vmatpush3.bf16.msra.mxu1 %v7032_v59 }
  0x99   : > { %v1107_v58 = vrot.slane %v1106_v61, 4  ;;  %v489_v30 = vor.u32 %v487_v8, %v486_v53  ;;  %v598_v1 = vsel %vm7362_vm8, %v486_v53, 0  ;;  %v7045_v37 = vld [vmem:[%s9584_s3 + $0x1d8] sm:$0xff]   ;;  %v6998_v26 = vld [vmem:[#allocation3 + $0x98] ss:$36 sps:$4 sm:$0xff]   ;;  %v1133_v36 = vshll.u32 %v7975_v23, 16 }
  0x9a   : > { %v1102_v27 = vsel %vm7321_vm5, %v1097_v46, %v1101_v20  ;;  %v5837_v13 = vcombine.low %v598_v1, %v598_v1  ;;  %v5865_v28 = vrot.slane %v7822_v34, 9  ;;  %v7049_v31 = vld [vmem:[%s9584_s3 + $0x198] sm:$0xff]   ;;  %v496_v40 = vor.u32 %v494_v62, %v493_v5  ;;  %v7996_v47 = vld [vmem:[#allocation2 + $0x90] sm:$0xf]  ;;  %v7998_v54 = vld [vmem:[#allocation2 + $0x94] sm:$0xf]  ;;  %6709 = vmatprep.subr.bf16.mxu1 %v7045_v37 }
  0x9b   : > { %v1112_v42 = vsel %vm7321_vm5, %v1107_v58, %v1111_v14  ;;  %1351 = vst [vmem:[#allocation3 + $0x1fc] sm:$0xf] %v1102_v27  ;;  %v582_v15 = vsel %vm7362_vm8, 0, %v489_v30  ;;  %v599_v24 = vsel %vm7362_vm8, %v493_v5, 0  ;;  %9643 = vst [vmem:[#allocation7_spill] sm:$0xff] %v7996_v47  ;;  %v8000_v34 = vrot.slane %v1133_v36, 5  ;;  %4783 = vmatmul.mubr.bf16.gmra.mxu1 %v6998_v26 }
  0x9c   : > { %9644 = vst [vmem:[#allocation8_spill] sm:$0xff] %v7998_v54  ;;  %1352 = vst [vmem:[#allocation3 + $0x220] sm:$0xf] %v1112_v42  ;;  %v7003_v29 = vld [vmem:[#allocation3 + $0xe4] ss:$36 sps:$4 sm:$0xff]   ;;  %v5835_v20 = vcombine.low %v582_v15, %v582_v15  ;;  %v5836_v45 = vcombine.high %v582_v15, %v582_v15  ;;  %v5840_v14 = vcombine.low %v599_v24, %v599_v24  ;;  %v7060_v0 = vld [vmem:[%s9584_s3 + $0x1d0] sm:$0xff]   ;;  %6710 = vmatpush3.bf16.msra.mxu1 %v7049_v31 }
  0x9d   : > { %809 = vst [vmem:[#allocation2 + $0x74] sm:$0x1] %v5837_v13  ;;  %1666 = vst [vmem:[#allocation3 + $0x324] sm:$0xf] %v7996_v47  ;;  %v8007_v52 = vld [vmem:[#allocation2 + $0x9c] sm:$0xf]  ;;  %4790 = vmatprep.mubr.bf16.mxu1 %v7003_v29  ;;  %6711 = vmatprep.subr.bf16.mxu1 %v7060_v0 }
  0x9e   : > { %1667 = vst [vmem:[#allocation3 + $0x348] sm:$0xf] %v7998_v54  ;;  %9645 = vst [vmem:[#allocation9_spill] sm:$0xff] %v8007_v52  ;;  %v8009_v60 = vld [vmem:[#allocation2 + $0x60] sm:$0xf]  ;;  %v583_v8 = vsel %vm7362_vm8, 0, %v496_v40 }
  0x9f   : > { %v8011_v56 = vld [vmem:[#allocation2 + $0x64] sm:$0xf]  ;;  %v399_v44 = vmax.f32 %v7964_v35, 0.0  ;;  %1668 = vst [vmem:[#allocation3 + $0x36c] sm:$0xf] %v8007_v52  ;;  %v1114_v48 = vshrl.u32 %v8009_v60, 16  ;;  %v5838_v46 = vcombine.low %v583_v8, %v583_v8  ;;  %v5839_v35 = vcombine.high %v583_v8, %v583_v8 }
  0xa0   : > { %902 = vst [vmem:[#allocation3 + $0x240] sm:$0xf] %v8009_v60  ;;  %903 = vst [vmem:[#allocation3 + $0x264] sm:$0xf] %v8011_v56  ;;  %v1117_v61 = vshll.u32 %v8009_v60, 16  ;;  %v1123_v53 = vshll.u32 %v8011_v56, 16 }
  0xa1   : > { %v1127_v33 = vshrl.u32 %v8011_v56, 16  ;;  %807 = vst [vmem:[#allocation2 + $0x6c] sm:$0xf] %v5835_v20  ;;  %808 = vst [vmem:[#allocation2 + $0x70] sm:$0xf] %v5836_v45  ;;  %v400_v59 = vmax.f32 %v7967_v50, 0.0 }
  0xa2   : > { %812 = vst [vmem:[#allocation2 + $0x80] sm:$0x1] %v5840_v14  ;;  %v8023_v62 = vld [vmem:[#allocation2 + $0x60] sm:$0xf]  ;;  %v1464_v58 = vrot.slane %v7836_v22, 5  ;;  %v1116_v5 = vrot.slane %v1114_v48, 4 }
  0xa3   : > { %v8027_v30 = vld [vmem:[#allocation2 + $0x64] sm:$0xf]  ;;  %1658 = vst [vmem:[#allocation3 + $0x204] sm:$0xf] %v8023_v62  ;;  %v8030_v1 = vld [vmem:[#allocation2 + $0xa0] sm:$0xf]  ;;  %v421_v13 = vpack.c.bf16 %v400_v59, %v399_v44 }
  0xa4   : > { %9646 = vst [vmem:[#allocation10_spill] sm:$0xff] %v8030_v1  ;;  %v1119_v37 = vrot.slane %v1117_v61, 5  ;;  %v1125_v27 = vrot.slane %v1123_v53, 5  ;;  %v1129_v36 = vrot.slane %v1127_v33, 4  ;;  %1659 = vst [vmem:[#allocation3 + $0x228] sm:$0xf] %v8027_v30  ;;  %v1465_v42 = vsel %vm7295_vm4, %v5865_v28, %v1464_v58 }
  0xa5   : > { %v7064_v50 = vld [vmem:[%s9584_s3 + $0x190] sm:$0xff]   ;;  %1669 = vst [vmem:[#allocation3 + $0x390] sm:$0xf] %v8030_v1  ;;  %v7075_v22 = vld [vmem:[%s9584_s3 + $0x1c8] sm:$0xff]   ;;  %v7006_v26 = vld [vmem:[#allocation3 + $0xe0] ss:$36 sps:$4 sm:$0xff]  }
  0xa6   : > { %810 = vst [vmem:[#allocation2 + $0x78] sm:$0xf] %v5838_v46  ;;  %811 = vst [vmem:[#allocation2 + $0x7c] sm:$0xf] %v5839_v35  ;;  %v1466_v15 = vrot.slane %v1464_v58, 4  ;;  %v1467_v31 = vrot.slane %v7804_v9, 5  ;;  %v1120_v40 = vor.u32 %v1119_v37, %v1116_v5  ;;  %v1130_v24 = vor.u32 %v1129_v36, %v1125_v27  ;;  %6712 = vmatpush3.bf16.msra.mxu1 %v7064_v50 }
  0xa7   : > { %v7011_v29 = vld [vmem:[#allocation3 + $0x12c] ss:$36 sps:$4 sm:$0xff]   ;;  %1576 = vst [vmem:[#allocation3 + $0x1b8] sm:$0xf] %v1465_v42  ;;  %v5866_v20 = vrot.slane %v7924_v25, 9  ;;  %v9590_v45 = vrot.slane %v7934_v4, 5  ;;  %6713 = vmatprep.subr.bf16.mxu1 %v7075_v22  ;;  %4791 = vmatmul.mubr.bf16.gmra.mxu1 %v7006_v26 }
  0xa8   : > { %v7079_v14 = vld [vmem:[%s9584_s3 + $0x188] sm:$0xff]   ;;  %v6991_v8 = vld [vmem:[#allocation3 + $0x1fc] ss:$36 sps:$4 sm:$0xff]   ;;  %v498_v48 = vshrl.u32 %v421_v13, 16  ;;  %v1468_v28 = vsel %vm7295_vm4, %v1466_v15, %v1467_v31  ;;  %v7090_v9 = vld [vmem:[%s9584_s3 + $0x1c0] sm:$0xff]   ;;  %v1121_v0 = vrot.slane %v1120_v40, 4  ;;  %4798 = vmatprep.mubr.bf16.mxu1 %v7011_v29 }
  0xa9   : > { %v6997_v44 = vld [vmem:[#allocation3 + $0x1f8] ss:$36 sps:$4 sm:$0xff]   ;;  %v1131_v61 = vrot.slane %v1130_v24, 4  ;;  %v501_v25 = vshll.u32 %v421_v13, 16  ;;  %1577 = vst [vmem:[#allocation3 + $0x1dc] sm:$0xf] %v1468_v28  ;;  %v1472_v33 = vsel %vm7295_vm4, %v5866_v20, %v9590_v45  ;;  %4661 = vmatprep.mubr.bf16.mxu0 %v6991_v8 }
  0xaa   : > { %v8053_v53 = vld [vmem:[#allocation2 + $0x74] sm:$0x1]  ;;  %v8059_v46 = vld [vmem:[#allocation2 + $0x6c] sm:$0xf]  ;;  %v8061_v35 = vld [vmem:[#allocation2 + $0x70] sm:$0xf]  ;;  %4662 = vmatmul.mubr.bf16.gmra.mxu0 %v6997_v44  ;;  %v1126_v5 = vsel %vm7321_vm5, %v1121_v0, %v1125_v27  ;;  %6714 = vmatpush3.bf16.msra.mxu1 %v7079_v14 }
  0xab   : > { %v1157_v59 = vshll.u32 %v8053_v53, 16  ;;  %v500_v58 = vrot.slane %v498_v48, 7  ;;  %1578 = vst [vmem:[#allocation3 + $0x200] sm:$0xf] %v1472_v33  ;;  %v1136_v37 = vsel %vm7321_vm5, %v1131_v61, %v8000_v34  ;;  %904 = vst [vmem:[#allocation3 + $0x288] sm:$0xf] %v8059_v46  ;;  %6715 = vmatprep.subr.bf16.mxu1 %v7090_v9 }
  0xac   : > { %905 = vst [vmem:[#allocation3 + $0x2ac] sm:$0xf] %v8061_v35  ;;  %v1138_v36 = vshrl.u32 %v8059_v46, 16  ;;  %v1141_v50 = vshll.u32 %v8059_v46, 16  ;;  %v8073_v13 = vld [vmem:[#allocation2 + $0x80] sm:$0x1] }
  0xad   : > { %v8075_v42 = vld [vmem:[#allocation2 + $0x6c] sm:$0xf]  ;;  %v7094_v27 = vld [vmem:[%s9584_s3 + $0x180] sm:$0xff]   ;;  %1353 = vst [vmem:[#allocation3 + $0x244] sm:$0xf] %v1126_v5  ;;  %v1147_v34 = vshll.u32 %v8061_v35, 16  ;;  %v503_v48 = vor.u32 %v501_v25, %v500_v58 }
  0xae   : > { %1354 = vst [vmem:[#allocation3 + $0x268] sm:$0xf] %v1136_v37  ;;  %v1151_v22 = vshrl.u32 %v8061_v35, 16  ;;  %v1159_v15 = vrot.slane %v1157_v59, 5  ;;  %v1181_v31 = vshll.u32 %v8073_v13, 16  ;;  %v1140_v24 = vrot.slane %v1138_v36, 4  ;;  %6716 = vmatpush3.bf16.msra.mxu1 %v7094_v27 }
  0xaf   : > { %v8083_v40 = vld [vmem:[#allocation2 + $0x70] sm:$0xf]  ;;  %1660 = vst [vmem:[#allocation3 + $0x24c] sm:$0xf] %v8075_v42  ;;  %v1143_v20 = vrot.slane %v1141_v50, 5  ;;  %v1149_v26 = vrot.slane %v1147_v34, 5 }
  0xb0   : > { %v8086_v8 = vld [vmem:[#allocation2 + $0x78] sm:$0xf]  ;;  %v8088_v44 = vld [vmem:[#allocation2 + $0x7c] sm:$0xf]  ;;  %1661 = vst [vmem:[#allocation3 + $0x270] sm:$0xf] %v8083_v40 }
  0xb1   : > { %v1153_v28 = vrot.slane %v1151_v22, 4  ;;  %906 = vst [vmem:[#allocation3 + $0x2d0] sm:$0xf] %v8086_v8  ;;  %907 = vst [vmem:[#allocation3 + $0x2f4] sm:$0xf] %v8088_v44  ;;  %v1162_v0 = vshrl.u32 %v8086_v8, 16  ;;  %v1144_v29 = vor.u32 %v1143_v20, %v1140_v24 }
  0xb2   : > { %v1165_v61 = vshll.u32 %v8086_v8, 16  ;;  %v1171_v33 = vshll.u32 %v8088_v44, 16  ;;  %v1175_v59 = vshrl.u32 %v8088_v44, 16  ;;  %v1183_v25 = vrot.slane %v1181_v31, 5  ;;  %v8097_v5 = vld [vmem:[#allocation2 + $0x78] sm:$0xf] }
  0xb3   : > { %v1154_v14 = vor.u32 %v1153_v28, %v1149_v26  ;;  %v7015_v37 = vld [vmem:[#allocation3 + $0x128] ss:$36 sps:$4 sm:$0xff]   ;;  %v1164_v36 = vrot.slane %v1162_v0, 4  ;;  %v584_v34 = vsel %vm7362_vm8, 0, %v503_v48  ;;  %1662 = vst [vmem:[#allocation3 + $0x294] sm:$0xf] %v8097_v5 }
  0xb4   : > { %v1167_v50 = vrot.slane %v1165_v61, 5  ;;  %v1145_v22 = vrot.slane %v1144_v29, 4  ;;  %v1173_v45 = vrot.slane %v1171_v33, 5  ;;  %v1177_v9 = vrot.slane %v1175_v59, 4  ;;  %v7019_v24 = vld [vmem:[#allocation3 + $0x174] ss:$36 sps:$4 sm:$0xff]   ;;  %4799 = vmatmul.mubr.bf16.gmra.mxu1 %v7015_v37 }
  0xb5   : > { %v600_v20 = vsel %vm7362_vm8, %v500_v58, 0  ;;  %v1155_v31 = vrot.slane %v1154_v14, 4  ;;  %v5841_v52 = vcombine.low %v584_v34, %v584_v34  ;;  %v5842_v28 = vcombine.high %v584_v34, %v584_v34  ;;  %v8104_v54 = vld [vmem:[#allocation2 + $0x7c] sm:$0xf]  ;;  %4806 = vmatprep.mubr.bf16.mxu1 %v7019_v24  ;;  %v8122_v37 = vld [vmem:[#allocation2 + $0xa8] sm:$0xf] }
  0xb6   : > { %v1168_v1 = vor.u32 %v1167_v50, %v1164_v36  ;;  %v7001_v0 = vld [vmem:[#allocation3 + $0x244] ss:$36 sps:$4 sm:$0xff]   ;;  %v1150_v48 = vsel %vm7321_vm5, %v1145_v22, %v1149_v26  ;;  %v1178_v61 = vor.u32 %v1177_v9, %v1173_v45  ;;  %v5843_v47 = vcombine.low %v600_v20, %v600_v20  ;;  %1663 = vst [vmem:[#allocation3 + $0x2b8] sm:$0xf] %v8104_v54  ;;  %v7023_v22 = vld [vmem:[#allocation3 + $0x170] ss:$36 sps:$4 sm:$0xff]  }
  0xb7   : > { %v9647_v29 = vrot.slane %v7934_v4, 5  ;;  %v7005_v59 = vld [vmem:[#allocation3 + $0x240] ss:$36 sps:$4 sm:$0xff]   ;;  %v1160_v58 = vsel %vm7321_vm5, %v1155_v31, %v1159_v15  ;;  %1355 = vst [vmem:[#allocation3 + $0x28c] sm:$0xf] %v1150_v48  ;;  %v1474_v14 = vrot.slane %v7936_v43, 5  ;;  %4669 = vmatprep.mubr.bf16.mxu0 %v7001_v0 }
  0xb8   : > { %v1169_v27 = vrot.slane %v1168_v1, 4  ;;  %813 = vst [vmem:[#allocation2 + $0x84] sm:$0xf] %v5841_v52  ;;  %814 = vst [vmem:[#allocation2 + $0x88] sm:$0xf] %v5842_v28  ;;  %v1677_v26 = vshrl.u32 %v7468_v17, 16  ;;  %4670 = vmatmul.mubr.bf16.gmra.mxu0 %v7005_v59 }
  0xb9   : > { %v1473_v33 = vrot.slane %v9647_v29, 4  ;;  %1356 = vst [vmem:[#allocation3 + $0x2b0] sm:$0xf] %v1160_v58  ;;  %v1179_v36 = vrot.slane %v1178_v61, 4  ;;  %815 = vst [vmem:[#allocation2 + $0x8c] sm:$0x1] %v5843_v47 }
  0xba   : > { %v1598_v4 = vld [vmem:[#allocation2 + $0x14] sm:$0x1]  ;;  %v1680_v50 = vshll.u32 %v7468_v17, 16  ;;  %v1686_v34 = vshll.u32 %v7470_v18, 16  ;;  %v1690_v15 = vshrl.u32 %v7470_v18, 16  ;;  %v1174_v52 = vsel %vm7321_vm5, %v1169_v27, %v1173_v45 }
  0xbb   : > { %v1475_v43 = vsel %vm7295_vm4, %v1473_v33, %v1474_v14  ;;  %v1679_v1 = vrot.slane %v1677_v26, 4  ;;  %v1184_v47 = vsel %vm7321_vm5, %v1179_v36, %v1183_v25  ;;  %1357 = vst [vmem:[#allocation3 + $0x2d4] sm:$0xf] %v1174_v52  ;;  %v8126_v20 = vld [vmem:[#allocation2 + $0xac] sm:$0xf]  ;;  %v5875_v28 = vrot.slane %v7468_v17, 9 }
  0xbc   : > { %1579 = vst [vmem:[#allocation3 + $0x224] sm:$0xf] %v1475_v43  ;;  %v1682_v9 = vrot.slane %v1680_v50, 5  ;;  %v1688_v24 = vrot.slane %v1686_v34, 5  ;;  %1670 = vst [vmem:[#allocation3 + $0x3b4] sm:$0xf] %v8122_v37  ;;  %4807 = vmatmul.mubr.bf16.gmra.mxu1 %v7023_v22 }
  0xbd   : > { %1358 = vst [vmem:[#allocation3 + $0x2f8] sm:$0xf] %v1184_v47  ;;  %v7027_v45 = vld [vmem:[#allocation3 + $0x1bc] ss:$36 sps:$4 sm:$0xff]   ;;  %v1692_v31 = vrot.slane %v1690_v15, 4  ;;  %v2174_v0 = vrot.slane %v7470_v18, 5 }
  0xbe   : > { %v2177_v48 = vrot.slane %v1598_v4, 5  ;;  %1671 = vst [vmem:[#allocation3 + $0x3d8] sm:$0xf] %v8126_v20  ;;  %v1683_v25 = vor.u32 %v1682_v9, %v1679_v1  ;;  %v5867_v61 = vrot.slane %v8009_v60, 9  ;;  %v1478_v29 = vrot.slane %v8011_v56, 5  ;;  %4814 = vmatprep.mubr.bf16.mxu1 %v7027_v45 }
  0xbf   : > { %v8134_v33 = vld [vmem:[#allocation2 + $0xb4] sm:$0xf]  ;;  %v8136_v59 = vld [vmem:[#allocation2 + $0xb8] sm:$0xf]  ;;  %v1696_v58 = vshll.u32 %v1598_v4, 16  ;;  %v2175_v27 = vsel %vm7295_vm4, %v5875_v28, %v2174_v0  ;;  %v2176_v14 = vrot.slane %v2174_v0, 4  ;;  %v1693_v34 = vor.u32 %v1692_v31, %v1688_v24 }
  0xc0   : > { %9648 = vst [vmem:[#allocation11_spill] sm:$0xff] %v8134_v33  ;;  %9649 = vst [vmem:[#allocation12_spill] sm:$0xff] %v8136_v59  ;;  %v1701_v17 = vshrl.u32 %v7507_v2, 16  ;;  %v8143_v18 = vld [vmem:[#allocation2 + $0x84] sm:$0xf]  ;;  %v1684_v56 = vrot.slane %v1683_v25, 4  ;;  %v1479_v26 = vsel %vm7295_vm4, %v5867_v61, %v1478_v29 }
  0xc1   : > { %1672 = vst [vmem:[#allocation3 + $0x3fc] sm:$0xf] %v8134_v33  ;;  %1673 = vst [vmem:[#allocation3 + $0x420] sm:$0xf] %v8136_v59  ;;  %v8145_v60 = vld [vmem:[#allocation2 + $0x88] sm:$0xf]  ;;  %v2178_v15 = vsel %vm7295_vm4, %v2176_v14, %v2177_v48 }
  0xc2   : > { %2316 = vst [vmem:[#allocation3 + $0x14] sm:$0xf] %v2175_v27  ;;  %v7009_v36 = vld [vmem:[#allocation3 + $0x28c] ss:$36 sps:$4 sm:$0xff]   ;;  %908 = vst [vmem:[#allocation3 + $0x318] sm:$0xf] %v8143_v18  ;;  %v1689_v22 = vsel %vm7321_vm5, %v1684_v56, %v1688_v24 }
  0xc3   : > { %v7014_v4 = vld [vmem:[#allocation3 + $0x288] ss:$36 sps:$4 sm:$0xff]   ;;  %909 = vst [vmem:[#allocation3 + $0x33c] sm:$0xf] %v8145_v60  ;;  %v1186_v50 = vshrl.u32 %v8143_v18, 16  ;;  %v1189_v43 = vshll.u32 %v8143_v18, 16  ;;  %4677 = vmatprep.mubr.bf16.mxu0 %v7009_v36 }
  0xc4   : > { %1580 = vst [vmem:[#allocation3 + $0x248] sm:$0xf] %v1479_v26  ;;  %v8154_v52 = vld [vmem:[#allocation2 + $0x8c] sm:$0x1]  ;;  %v1195_v1 = vshll.u32 %v8145_v60, 16  ;;  %v1199_v47 = vshrl.u32 %v8145_v60, 16  ;;  %4678 = vmatmul.mubr.bf16.gmra.mxu0 %v7014_v4 }
  0xc5   : > { %2317 = vst [vmem:[#allocation3 + $0x38] sm:$0xf] %v2178_v15  ;;  %v1188_v9 = vrot.slane %v1186_v50, 4  ;;  %v1205_v31 = vshll.u32 %v8154_v52, 16  ;;  %v7031_v28 = vld [vmem:[#allocation3 + $0x1b8] ss:$36 sps:$4 sm:$0xff]  }
  0xc6   : > { %v1698_v0 = vrot.slane %v1696_v58, 5  ;;  %2092 = vst [vmem:[#allocation3 + $0x10] sm:$0xf] %v1689_v22  ;;  %v1601_v48 = vld [vmem:[#allocation2 + $0x20] sm:$0x1]  ;;  %v1191_v61 = vrot.slane %v1189_v43, 5  ;;  %4815 = vmatmul.mubr.bf16.gmra.mxu1 %v7031_v28 }
  0xc7   : > { %v7017_v25 = vld [vmem:[#allocation3 + $0x2d4] ss:$36 sps:$4 sm:$0xff]   ;;  %v1481_v27 = vrot.slane %v7975_v23, 5  ;;  %v1197_v14 = vrot.slane %v1195_v1, 5  ;;  %v1201_v26 = vrot.slane %v1199_v47, 4  ;;  %v1207_v45 = vrot.slane %v1205_v31, 5 }
  0xc8   : > { %v7035_v59 = vld [vmem:[#allocation3 + $0x204] ss:$36 sps:$4 sm:$0xff]   ;;  %v1694_v33 = vrot.slane %v1693_v34, 4  ;;  %4685 = vmatprep.mubr.bf16.mxu0 %v7017_v25  ;;  %v7022_v24 = vld [vmem:[#allocation3 + $0x2d0] ss:$36 sps:$4 sm:$0xff]   ;;  %v1192_v56 = vor.u32 %v1191_v61, %v1188_v9  ;;  %v1480_v36 = vrot.slane %v1478_v29, 4 }
  0xc9   : > { %v1703_v50 = vrot.slane %v1701_v17, 4  ;;  %v1704_v15 = vshll.u32 %v7507_v2, 16  ;;  %v8164_v58 = vld [vmem:[#allocation2 + $0x84] sm:$0xf]  ;;  %v1202_v22 = vor.u32 %v1201_v26, %v1197_v14  ;;  %v1710_v23 = vshll.u32 %v7510_v57, 16  ;;  %4822 = vmatprep.mubr.bf16.mxu1 %v7035_v59 }
  0xca   : > { %v1699_v4 = vsel %vm7321_vm5, %v1694_v33, %v1698_v0  ;;  %v1714_v43 = vshrl.u32 %v7510_v57, 16  ;;  %v8170_v1 = vld [vmem:[#allocation2 + $0x88] sm:$0xf]  ;;  %1664 = vst [vmem:[#allocation3 + $0x2dc] sm:$0xf] %v8164_v58  ;;  %v1193_v34 = vrot.slane %v1192_v56, 4  ;;  %v1482_v29 = vsel %vm7295_vm4, %v1480_v36, %v1481_v27 }
  0xcb   : > { %2093 = vst [vmem:[#allocation3 + $0x34] sm:$0xf] %v1699_v4  ;;  %v1706_v17 = vrot.slane %v1704_v15, 5  ;;  %v1720_v47 = vshll.u32 %v1601_v48, 16  ;;  %1665 = vst [vmem:[#allocation3 + $0x300] sm:$0xf] %v8170_v1 }
  0xcc   : > { %v1203_v9 = vrot.slane %v1202_v22, 4  ;;  %1581 = vst [vmem:[#allocation3 + $0x26c] sm:$0xf] %v1482_v29  ;;  %v1712_v33 = vrot.slane %v1710_v23, 5  ;;  %v1716_v31 = vrot.slane %v1714_v43, 4  ;;  %v5876_v0 = vrot.slane %v7507_v2, 9  ;;  %4686 = vmatmul.mubr.bf16.gmra.mxu0 %v7022_v24 }
  0xcd   : > { %v1198_v25 = vsel %vm7321_vm5, %v1193_v34, %v1197_v14  ;;  %v1707_v61 = vor.u32 %v1706_v17, %v1703_v50  ;;  %v1722_v26 = vrot.slane %v1720_v47, 5  ;;  %v2181_v56 = vrot.slane %v7510_v57, 5  ;;  %v1604_v50 = vld [vmem:[#allocation2 + $0x2c] sm:$0x1]  ;;  %v7040_v4 = vld [vmem:[#allocation3 + $0x200] ss:$36 sps:$4 sm:$0xff]  }
  0xce   : > { %v1208_v27 = vsel %vm7321_vm5, %v1203_v9, %v1207_v45  ;;  %1359 = vst [vmem:[#allocation3 + $0x31c] sm:$0xf] %v1198_v25  ;;  %v1717_v36 = vor.u32 %v1716_v31, %v1712_v33  ;;  %v2184_v15 = vrot.slane %v1601_v48, 5  ;;  %v5868_v28 = vrot.slane %v8059_v46, 9  ;;  %v8195_v34 = vld [vmem:[#allocation2 + $0x18] sm:$0xf]  ;;  %4823 = vmatmul.mubr.bf16.gmra.mxu1 %v7040_v4 }
  0xcf   : > { %1360 = vst [vmem:[#allocation3 + $0x340] sm:$0xf] %v1208_v27  ;;  %v1708_v22 = vrot.slane %v1707_v61, 4  ;;  %v2182_v2 = vsel %vm7295_vm4, %v5876_v0, %v2181_v56  ;;  %v2183_v14 = vrot.slane %v2181_v56, 4  ;;  %v1485_v59 = vrot.slane %v8061_v35, 5 }
  0xd0   : > { %v1718_v57 = vrot.slane %v1717_v36, 4  ;;  %2318 = vst [vmem:[#allocation3 + $0x5c] sm:$0xf] %v2182_v2  ;;  %v1488_v45 = vrot.slane %v8053_v53, 5  ;;  %v1725_v23 = vshrl.u32 %v7629_v10, 16  ;;  %v1728_v48 = vshll.u32 %v7629_v10, 16 }
  0xd1   : > { %v1713_v46 = vsel %vm7321_vm5, %v1708_v22, %v1712_v33  ;;  %v2185_v24 = vsel %vm7295_vm4, %v2183_v14, %v2184_v15  ;;  %v1486_v43 = vsel %vm7295_vm4, %v5868_v28, %v1485_v59  ;;  %v1487_v35 = vrot.slane %v1485_v59, 4  ;;  %v8197_v29 = vld [vmem:[#allocation2 + $0x1c] sm:$0xf]  ;;  %2397 = vst [vmem:[#allocation3 + $0x18] sm:$0xf] %v8195_v34 }
  0xd2   : > { %v1723_v53 = vsel %vm7321_vm5, %v1718_v57, %v1722_v26  ;;  %2094 = vst [vmem:[#allocation3 + $0x58] sm:$0xf] %v1713_v46  ;;  %2319 = vst [vmem:[#allocation3 + $0x80] sm:$0xf] %v2185_v24  ;;  %v1727_v17 = vrot.slane %v1725_v23, 4  ;;  %v1730_v33 = vrot.slane %v1728_v48, 5 }
  0xd3   : > { %1582 = vst [vmem:[#allocation3 + $0x290] sm:$0xf] %v1486_v43  ;;  %2398 = vst [vmem:[#allocation3 + $0x3c] sm:$0xf] %v8197_v29  ;;  %v7041_v47 = vld [vmem:[#allocation3 + $0x24c] ss:$36 sps:$4 sm:$0xff]   ;;  %v1489_v9 = vsel %vm7295_vm4, %v1487_v35, %v1488_v45 }
  0xd4   : > { %2095 = vst [vmem:[#allocation3 + $0x7c] sm:$0xf] %v1723_v53  ;;  %v7039_v31 = vld [vmem:[#allocation3 + $0x14] ss:$36 sps:$4 sm:$0xff]   ;;  %1583 = vst [vmem:[#allocation3 + $0x2b4] sm:$0xf] %v1489_v9  ;;  %4830 = vmatprep.mubr.bf16.mxu1 %v7041_v47  ;;  %v1731_v56 = vor.u32 %v1730_v33, %v1727_v17 }
  0xd5   : > { %v1734_v0 = vshll.u32 %v7654_v6, 16  ;;  %v1738_v25 = vshrl.u32 %v7654_v6, 16  ;;  %v1744_v61 = vshll.u32 %v1604_v50, 16  ;;  %v5877_v26 = vrot.slane %v7629_v10, 9  ;;  %v7030_v22 = vld [vmem:[#allocation3 + $0x318] ss:$36 sps:$4 sm:$0xff]  }
  0xd6   : > { %v2188_v27 = vrot.slane %v7654_v6, 5  ;;  %v2191_v36 = vrot.slane %v1604_v50, 5  ;;  %v5869_v15 = vrot.slane %v8086_v8, 9  ;;  %v7025_v28 = vld [vmem:[#allocation3 + $0x31c] ss:$36 sps:$4 sm:$0xff]   ;;  %v1732_v14 = vrot.slane %v1731_v56, 4 }
  0xd7   : > { %v1736_v2 = vrot.slane %v1734_v0, 5  ;;  %v1740_v59 = vrot.slane %v1738_v25, 4  ;;  %v1746_v4 = vrot.slane %v1744_v61, 5  ;;  %4693 = vmatprep.mubr.bf16.mxu0 %v7025_v28  ;;  %v7047_v45 = vld [vmem:[#allocation3 + $0x248] ss:$36 sps:$4 sm:$0xff]   ;;  %v1492_v10 = vrot.slane %v8088_v44, 5 }
  0xd8   : > { %v2189_v57 = vsel %vm7295_vm4, %v5877_v26, %v2188_v27  ;;  %v2190_v23 = vrot.slane %v2188_v27, 4  ;;  %v1495_v6 = vrot.slane %v8073_v13, 5  ;;  %v1749_v50 = vshrl.u32 %v7713_v51, 16  ;;  %4694 = vmatmul.mubr.bf16.gmra.mxu0 %v7030_v22  ;;  %v8219_v43 = vld [vmem:[#allocation2 + $0x24] sm:$0xf]  ;;  %4831 = vmatmul.mubr.bf16.gmra.mxu1 %v7047_v45 }
  0xd9   : > { %2320 = vst [vmem:[#allocation3 + $0xa4] sm:$0xf] %v2189_v57  ;;  %v1737_v8 = vsel %vm7321_vm5, %v1732_v14, %v1736_v2  ;;  %v1741_v48 = vor.u32 %v1740_v59, %v1736_v2  ;;  %v1752_v46 = vshll.u32 %v7713_v51, 16  ;;  %v1758_v24 = vshll.u32 %v7715_v11, 16  ;;  %4927 = vmatprep.mubr.bf16.mxu0 %v7039_v31  ;;  %v1607_v53 = vld [vmem:[#allocation2 + $0x38] sm:$0x1] }
  0xda   : > { %2096 = vst [vmem:[#allocation3 + $0xa0] sm:$0xf] %v1737_v8  ;;  %v2192_v44 = vsel %vm7295_vm4, %v2190_v23, %v2191_v36  ;;  %v1493_v13 = vsel %vm7295_vm4, %v5869_v15, %v1492_v10  ;;  %v1494_v35 = vrot.slane %v1492_v10, 4  ;;  %2399 = vst [vmem:[#allocation3 + $0x60] sm:$0xf] %v8219_v43  ;;  %v1751_v31 = vrot.slane %v1749_v50, 4 }
  0xdb   : > { %v7037_v17 = vld [vmem:[#allocation3 + $0x10] ss:$36 sps:$4 sm:$0xff]   ;;  %v1742_v9 = vrot.slane %v1741_v48, 4  ;;  %2321 = vst [vmem:[#allocation3 + $0xc8] sm:$0xf] %v2192_v44  ;;  %v1754_v0 = vrot.slane %v1752_v46, 5 }
  0xdc   : > { %v7050_v47 = vld [vmem:[#allocation3 + $0x294] ss:$36 sps:$4 sm:$0xff]   ;;  %1584 = vst [vmem:[#allocation3 + $0x2d8] sm:$0xf] %v1493_v13  ;;  %v1496_v33 = vsel %vm7295_vm4, %v1494_v35, %v1495_v6  ;;  %v1760_v25 = vrot.slane %v1758_v24, 5  ;;  %v1762_v27 = vshrl.u32 %v7715_v11, 16 }
  0xdd   : > { %v8228_v61 = vld [vmem:[#allocation2 + $0x28] sm:$0xf]  ;;  %v7043_v26 = vld [vmem:[#allocation3 + $0x5c] ss:$36 sps:$4 sm:$0xff]   ;;  %4838 = vmatprep.mubr.bf16.mxu1 %v7050_v47  ;;  %v1747_v56 = vsel %vm7321_vm5, %v1742_v9, %v1746_v4  ;;  %1585 = vst [vmem:[#allocation3 + $0x2fc] sm:$0xf] %v1496_v33  ;;  %v1755_v22 = vor.u32 %v1754_v0, %v1751_v31 }
  0xde   : > { %v1768_v36 = vshll.u32 %v1607_v53, 16  ;;  %v5878_v15 = vrot.slane %v7713_v51, 9  ;;  %2400 = vst [vmem:[#allocation3 + $0x84] sm:$0xf] %v8228_v61  ;;  %2097 = vst [vmem:[#allocation3 + $0xc4] sm:$0xf] %v1747_v56 }
  0xdf   : > { %v7054_v28 = vld [vmem:[#allocation3 + $0x290] ss:$36 sps:$4 sm:$0xff]   ;;  %v2195_v2 = vrot.slane %v7715_v11, 5  ;;  %v2198_v14 = vrot.slane %v1607_v53, 5  ;;  %v7061_v59 = vld [vmem:[%s9584_s3 + $0x230] sm:$0xff]   ;;  %v5870_v4 = vrot.slane %v8143_v18, 9 }
  0xe0   : > { %v1764_v57 = vrot.slane %v1762_v27, 4  ;;  %v1770_v45 = vrot.slane %v1768_v36, 5  ;;  %v1499_v23 = vrot.slane %v8145_v60, 5  ;;  %v1502_v51 = vrot.slane %v8154_v52, 5  ;;  %v8242_v10 = vld [vmem:[#allocation2 + $0x30] sm:$0xf]  ;;  %4928 = vmatmul.mubr.bf16.vlgmr.msra.gmra.mxu0 %v7037_v17  ;;  %4839 = vmatmul.mubr.bf16.gmra.mxu1 %v7054_v28 }
  0xe1   : > { %v1756_v6 = vrot.slane %v1755_v22, 4  ;;  %v2196_v11 = vsel %vm7295_vm4, %v5878_v15, %v2195_v2  ;;  %v2197_v50 = vrot.slane %v2195_v2, 4  ;;  %v1773_v8 = vshrl.u32 %v7844_v41, 16  ;;  %v8247_v48 = vld [vmem:[#allocation2 + $0x34] sm:$0xf]  ;;  %v8256_v44 = vld [vmem:[%s7291_s22 + $0x78] sm:$0xff]   ;;  %4935 = vmatprep.mubr.bf16.mxu0 %v7043_v26 }
  0xe2   : > { %2401 = vst [vmem:[#allocation3 + $0xa8] sm:$0xf] %v8242_v10  ;;  %v1765_v18 = vor.u32 %v1764_v57, %v1760_v25  ;;  %2322 = vst [vmem:[#allocation3 + $0xec] sm:$0xf] %v2196_v11  ;;  %v1500_v60 = vsel %vm7295_vm4, %v5870_v4, %v1499_v23  ;;  %v1501_v52 = vrot.slane %v1499_v23, 4  ;;  %v1776_v24 = vshll.u32 %v7844_v41, 16 }
  0xe3   : > { %v8252_v46 = vld [vmem:[#allocation2 + $0x44] sm:$0x1]  ;;  %2402 = vst [vmem:[#allocation3 + $0xcc] sm:$0xf] %v8247_v48  ;;  %v7192_v13 = vld [vmem:[%s9584_s3 + $0x238] sm:$0xff]   ;;  %v1761_v35 = vsel %vm7321_vm5, %v1756_v6, %v1760_v25  ;;  %v2199_v53 = vsel %vm7295_vm4, %v2197_v50, %v2198_v14  ;;  %v1775_v17 = vrot.slane %v1773_v8, 4  ;;  %v6253_v15 = vunpack.c.l.bf16 %v8256_v44 }
  0xe4   : > { %6838 = vmatpush3.bf16.msra.mxu0 %v7192_v13  ;;  %1586 = vst [vmem:[#allocation3 + $0x320] sm:$0xf] %v1500_v60  ;;  %v1782_v47 = vshll.u32 %v7858_v63, 16  ;;  %v1766_v9 = vrot.slane %v1765_v18, 4  ;;  %2098 = vst [vmem:[#allocation3 + $0xe8] sm:$0xf] %v1761_v35  ;;  %v1503_v33 = vsel %vm7295_vm4, %v1501_v52, %v1502_v51  ;;  %v6254_v57 = vunpack.c.h.bf16 %v8256_v44 }
  0xe5   : > { %2323 = vst [vmem:[#allocation3 + $0x110] sm:$0xf] %v2199_v53  ;;  %6839 = vmatprep.subr.bf16.mxu0 %v7061_v59  ;;  %v1778_v31 = vrot.slane %v1776_v24, 5  ;;  %v1786_v0 = vshrl.u32 %v7858_v63, 16  ;;  %v7076_v25 = vld [vmem:[%s9584_s3 + $0x228] sm:$0xff]   ;;  %v1792_v28 = vshll.u32 %v8252_v46, 16 }
  0xe6   : > { %v7193_v26 = vld [vmem:[#allocation2 + $0x98] sm:$0x1]  ;;  %1587 = vst [vmem:[#allocation3 + $0x344] sm:$0xf] %v1503_v33  ;;  %v1784_v36 = vrot.slane %v1782_v47, 5  ;;  %v1771_v2 = vsel %vm7321_vm5, %v1766_v9, %v1770_v45  ;;  %v5879_v6 = vrot.slane %v7844_v41, 9 }
  0xe7   : > { %v1509_v56 = vrot.slane %v7193_v26, 5  ;;  %v7056_v27 = vld [vmem:[#allocation3 + $0x2dc] ss:$36 sps:$4 sm:$0xff]   ;;  %v1779_v14 = vor.u32 %v1778_v31, %v1775_v17  ;;  %v1788_v4 = vrot.slane %v1786_v0, 4  ;;  %v7052_v23 = vld [vmem:[#allocation3 + $0xa4] ss:$36 sps:$4 sm:$0xff]  }
  0xe8   : > { %v7048_v22 = vld [vmem:[#allocation3 + $0x58] ss:$36 sps:$4 sm:$0xff]   ;;  %4846 = vmatprep.mubr.bf16.mxu1 %v7056_v27  ;;  %2099 = vst [vmem:[#allocation3 + $0x10c] sm:$0xf] %v1771_v2  ;;  %6840 = vmatpush3.bf16.msra.mxu0 %v7061_v59  ;;  %v2202_v11 = vrot.slane %v7858_v63, 5  ;;  %v2205_v50 = vrot.slane %v8252_v46, 5 }
  0xe9   : > { %v7062_v51 = vld [vmem:[#allocation3 + $0x2d8] ss:$36 sps:$4 sm:$0xff]   ;;  %v1780_v45 = vrot.slane %v1779_v14, 4  ;;  %v1789_v18 = vor.u32 %v1788_v4, %v1784_v36  ;;  %v9650_v60 = vrot.slane %v7439_v38, 5  ;;  %v1797_v24 = vshrl.u32 %v7868_v32, 16  ;;  %6841 = vmatprep.subr.bf16.mxu0 %v7076_v25  ;;  %v7091_v59 = vld [vmem:[%s9584_s3 + $0x220] sm:$0xff]   ;;  %4936 = vmatmul.mubr.bf16.gmra.mxu0 %v7048_v22 }
  0xea   : > { %v8281_v8 = vld [vmem:[#allocation2 + $0x50] sm:$0x1]  ;;  %v8289_v44 = vld [vmem:[#allocation2 + $0x3c] sm:$0xf]  ;;  %v1794_v41 = vrot.slane %v1792_v28, 5  ;;  %v2203_v63 = vsel %vm7295_vm4, %v5879_v6, %v2202_v11  ;;  %v2204_v46 = vrot.slane %v2202_v11, 4  ;;  %4943 = vmatprep.mubr.bf16.mxu0 %v7052_v23  ;;  %4847 = vmatmul.mubr.bf16.gmra.mxu1 %v7062_v51 }
  0xeb   : > { %v1508_v52 = vrot.slane %v9650_v60, 4  ;;  %v1800_v13 = vshll.u32 %v7868_v32, 16  ;;  %v8294_v35 = vld [vmem:[#allocation2 + $0x40] sm:$0xf]  ;;  %2403 = vst [vmem:[#allocation3 + $0xf0] sm:$0xf] %v8289_v44  ;;  %v1785_v38 = vsel %vm7321_vm5, %v1780_v45, %v1784_v36 }
  0xec   : > { %v1790_v53 = vrot.slane %v1789_v18, 4  ;;  %2324 = vst [vmem:[#allocation3 + $0x134] sm:$0xf] %v2203_v63  ;;  %v1799_v47 = vrot.slane %v1797_v24, 4  ;;  %2404 = vst [vmem:[#allocation3 + $0x114] sm:$0xf] %v8294_v35  ;;  %v2206_v9 = vsel %vm7295_vm4, %v2204_v46, %v2205_v50  ;;  %6842 = vmatpush3.bf16.msra.mxu0 %v7076_v25 }
  0xed   : > { %v1510_v17 = vsel %vm7295_vm4, %v1508_v52, %v1509_v56  ;;  %2100 = vst [vmem:[#allocation3 + $0x130] sm:$0xf] %v1785_v38  ;;  %v1802_v33 = vrot.slane %v1800_v13, 5  ;;  %v1806_v31 = vshll.u32 %v7870_v3, 16  ;;  %v1810_v0 = vshrl.u32 %v7870_v3, 16  ;;  %6843 = vmatprep.subr.bf16.mxu0 %v7091_v59  ;;  %v7106_v36 = vld [vmem:[%s9584_s3 + $0x218] sm:$0xff]  }
  0xee   : > { %1589 = vst [vmem:[#allocation3 + $0x38c] sm:$0xf] %v1510_v17  ;;  %v7065_v26 = vld [vmem:[#allocation3 + $0x324] ss:$36 sps:$4 sm:$0xff]   ;;  %v1795_v27 = vsel %vm7321_vm5, %v1790_v53, %v1794_v41  ;;  %2325 = vst [vmem:[#allocation3 + $0x158] sm:$0xf] %v2206_v9 }
  0xef   : > { %v1816_v56 = vshll.u32 %v8281_v8, 16  ;;  %2101 = vst [vmem:[#allocation3 + $0x154] sm:$0xf] %v1795_v27  ;;  %v1803_v22 = vor.u32 %v1802_v33, %v1799_v47  ;;  %v1808_v2 = vrot.slane %v1806_v31, 5  ;;  %v1812_v14 = vrot.slane %v1810_v0, 4  ;;  %4854 = vmatprep.mubr.bf16.mxu1 %v7065_v26  ;;  %v7118_v52 = vld [vmem:[%s9584_s3 + $0x210] sm:$0xff]  }
  0xf0   : > { %v5880_v4 = vrot.slane %v7868_v32, 9  ;;  %v8313_v25 = vld [vmem:[#allocation2 + $0x48] sm:$0xf]  ;;  %v7055_v23 = vld [vmem:[#allocation3 + $0xa0] ss:$36 sps:$4 sm:$0xff]   ;;  %v2209_v60 = vrot.slane %v7870_v3, 5  ;;  %6844 = vmatpush3.bf16.msra.mxu0 %v7091_v59 }
  0xf1   : > { %v7058_v28 = vld [vmem:[#allocation3 + $0xec] ss:$36 sps:$4 sm:$0xff]   ;;  %v1818_v6 = vrot.slane %v1816_v56, 5  ;;  %v7194_v11 = vld [vmem:[%s9582_s1] ss:$0 sm:$0xff]  ;;  %v1804_v51 = vrot.slane %v1803_v22, 4  ;;  %v1813_v18 = vor.u32 %v1812_v14, %v1808_v2  ;;  %6845 = vmatprep.subr.bf16.mxu0 %v7106_v36  ;;  %4944 = vmatmul.mubr.bf16.gmra.mxu0 %v7055_v23 }
  0xf2   : > { %v339_v50 = vmul.f32 %v7194_v11, %v6253_v15  ;;  %v340_v45 = vmul.f32 %v7194_v11, %v6254_v57  ;;  %2405 = vst [vmem:[#allocation3 + $0x138] sm:$0xf] %v8313_v25  ;;  %v2212_v32 = vrot.slane %v8281_v8, 5  ;;  %v8324_v24 = vld [vmem:[#allocation2 + $0x4c] sm:$0xf]  ;;  %v5872_v63 = vrot.slane %v7524_v7, 9  ;;  %4951 = vmatprep.mubr.bf16.mxu0 %v7058_v28 }
  0xf3   : > { %v7069_v41 = vld [vmem:[#allocation3 + $0x320] ss:$36 sps:$4 sm:$0xff]   ;;  %v1513_v15 = vrot.slane %v7531_v19, 5  ;;  %v7195_v57 = vld [vmem:[#allocation2 + $0xa4] sm:$0x1]  ;;  %v1821_v3 = vshrl.u32 %v7961_v12, 16  ;;  %v1809_v8 = vsel %vm7321_vm5, %v1804_v51, %v1808_v2  ;;  %v2210_v38 = vsel %vm7295_vm4, %v5880_v4, %v2209_v60 }
  0xf4   : > { %v1516_v46 = vrot.slane %v7195_v57, 5  ;;  %v8328_v13 = vld [vmem:[#allocation2 + $0x5c] sm:$0x1]  ;;  %2406 = vst [vmem:[#allocation3 + $0x15c] sm:$0xf] %v8324_v24  ;;  %v1814_v59 = vrot.slane %v1813_v18, 4  ;;  %6846 = vmatpush3.bf16.msra.mxu0 %v7106_v36  ;;  %4855 = vmatmul.mubr.bf16.gmra.mxu1 %v7069_v41 }
  0xf5   : > { %v2211_v53 = vrot.slane %v2209_v60, 4  ;;  %v7071_v7 = vld [vmem:[#allocation3 + $0x36c] ss:$36 sps:$4 sm:$0xff]   ;;  %2102 = vst [vmem:[#allocation3 + $0x178] sm:$0xf] %v1809_v8  ;;  %v1514_v19 = vsel %vm7295_vm4, %v5872_v63, %v1513_v15  ;;  %v1515_v17 = vrot.slane %v1513_v15, 4  ;;  %6847 = vmatprep.subr.bf16.mxu0 %v7118_v52 }
  0xf6   : > { %2326 = vst [vmem:[#allocation3 + $0x17c] sm:$0xf] %v2210_v38  ;;  %v1823_v47 = vrot.slane %v1821_v3, 4  ;;  %v1819_v9 = vsel %vm7321_vm5, %v1814_v59, %v1818_v6  ;;  %1590 = vst [vmem:[#allocation3 + $0x3b0] sm:$0xf] %v1514_v19  ;;  %v1824_v31 = vshll.u32 %v7961_v12, 16  ;;  %4862 = vmatprep.mubr.bf16.mxu1 %v7071_v7 }
  0xf7   : > { %v2213_v33 = vsel %vm7295_vm4, %v2211_v53, %v2212_v32  ;;  %v1830_v0 = vshll.u32 %v7969_v49, 16  ;;  %v7063_v26 = vld [vmem:[#allocation3 + $0xe8] ss:$36 sps:$4 sm:$0xff]   ;;  %2103 = vst [vmem:[#allocation3 + $0x19c] sm:$0xf] %v1819_v9  ;;  %v1517_v27 = vsel %vm7295_vm4, %v1515_v17, %v1516_v46  ;;  %v1834_v56 = vshrl.u32 %v7969_v49, 16 }
  0xf8   : > { %2327 = vst [vmem:[#allocation3 + $0x1a0] sm:$0xf] %v2213_v33  ;;  %v7196_v22 = vld [vmem:[%s9583_s2] ss:$0 sm:$0xff]  ;;  %v7131_v36 = vld [vmem:[%s9584_s3 + $0x208] sm:$0xff]   ;;  %v1826_v4 = vrot.slane %v1824_v31, 5  ;;  %6848 = vmatpush3.bf16.msra.mxu0 %v7118_v52 }
  0xf9   : > { %v8350_v2 = vadd.f32 %v7196_v22, %v339_v50  ;;  %v8352_v14 = vadd.f32 %v7196_v22, %v340_v45  ;;  %1591 = vst [vmem:[#allocation3 + $0x3d4] sm:$0xf] %v1517_v27  ;;  %v1832_v23 = vrot.slane %v1830_v0, 5  ;;  %v1840_v28 = vshll.u32 %v8328_v13, 16  ;;  %v8359_v11 = vld [vmem:[#allocation2 + $0x54] sm:$0xf]  ;;  %6849 = vmatprep.subr.bf16.mxu0 %v7131_v36  ;;  %4952 = vmatmul.mubr.bf16.gmra.mxu0 %v7063_v26 }
  0xfa   : > { %v5881_v6 = vrot.slane %v7961_v12, 9  ;;  %v1836_v50 = vrot.slane %v1834_v56, 4  ;;  %v2216_v45 = vrot.slane %v7969_v49, 5  ;;  %v2219_v51 = vrot.slane %v8328_v13, 5  ;;  %v8364_v60 = vld [vmem:[#allocation2 + $0x58] sm:$0xf] }
  0xfb   : > { %v5873_v18 = vrot.slane %v7638_v55, 9  ;;  %2407 = vst [vmem:[#allocation3 + $0x180] sm:$0xf] %v8359_v11  ;;  %v7067_v32 = vld [vmem:[#allocation3 + $0x134] ss:$36 sps:$4 sm:$0xff]   ;;  %v1827_v41 = vor.u32 %v1826_v4, %v1823_v47  ;;  %v1842_v63 = vrot.slane %v1840_v28, 5 }
  0xfc   : > { %v9651_v15 = vld [vmem:[#allocation4_spill] sm:$0xff]  ;;  %v7197_v12 = vld [vmem:[#allocation2 + $0xb0] sm:$0x1]  ;;  %2408 = vst [vmem:[#allocation3 + $0x1a4] sm:$0xf] %v8364_v60  ;;  %v7144_v49 = vld [vmem:[%s9584_s3 + $0x200] sm:$0xff]   ;;  %v1837_v13 = vor.u32 %v1836_v50, %v1832_v23  ;;  %v2217_v55 = vsel %vm7295_vm4, %v5881_v6, %v2216_v45  ;;  %4959 = vmatprep.mubr.bf16.mxu0 %v7067_v32  ;;  %6850 = vmatpush3.bf16.msra.mxu0 %v7131_v36 }
  0xfd   : > { %v1520_v57 = vrot.slane %v9651_v15, 5  ;;  %v1523_v46 = vrot.slane %v7197_v12, 5  ;;  %v2218_v3 = vrot.slane %v2216_v45, 4  ;;  %v8374_v8 = vld [vmem:[#allocation2 + $0x68] sm:$0x1]  ;;  %v1845_v59 = vshrl.u32 %v8023_v62, 16  ;;  %6851 = vmatprep.subr.bf16.mxu0 %v7144_v49 }
  0xfe   : > { %v8377_v38 = vld [vmem:[#allocation2 + $0x60] sm:$0xf]  ;;  %v8379_v53 = vld [vmem:[#allocation2 + $0x64] sm:$0xf]  ;;  %v1828_v7 = vrot.slane %v1827_v41, 4  ;;  %v1848_v47 = vshll.u32 %v8023_v62, 16 }
  0xff   : > { %v7077_v52 = vld [vmem:[#allocation3 + $0x368] ss:$36 sps:$4 sm:$0xff]   ;;  %2328 = vst [vmem:[#allocation3 + $0x1c4] sm:$0xf] %v2217_v55  ;;  %v1521_v19 = vsel %vm7295_vm4, %v5873_v18, %v1520_v57  ;;  %v1522_v17 = vrot.slane %v1520_v57, 4  ;;  %v1838_v9 = vrot.slane %v1837_v13, 4  ;;  %v2220_v33 = vsel %vm7295_vm4, %v2218_v3, %v2219_v51 }
 0x100   : > { %2409 = vst [vmem:[#allocation3 + $0x1c8] sm:$0xf] %v8377_v38  ;;  %2410 = vst [vmem:[#allocation3 + $0x1ec] sm:$0xf] %v8379_v53  ;;  %v1847_v31 = vrot.slane %v1845_v59, 4  ;;  %v1854_v0 = vshll.u32 %v8027_v30, 16  ;;  %v1833_v27 = vsel %vm7321_vm5, %v1828_v7, %v1832_v23  ;;  %4863 = vmatmul.mubr.bf16.gmra.mxu1 %v7077_v52  ;;  %6852 = vmatpush3.bf16.msra.mxu0 %v7144_v49  ;;  %v6381_v52 = vpop.f32.mrf.mxu0 }
 0x101   : > { %1592 = vst [vmem:[#allocation3 + $0x3f8] sm:$0xf] %v1521_v19  ;;  %2329 = vst [vmem:[#allocation3 + $0x1e8] sm:$0xf] %v2220_v33  ;;  %v1524_v56 = vsel %vm7295_vm4, %v1522_v17, %v1523_v46  ;;  %v1850_v22 = vrot.slane %v1848_v47, 5  ;;  %v1843_v28 = vsel %vm7321_vm5, %v1838_v9, %v1842_v63  ;;  %v1858_v23 = vshrl.u32 %v8027_v30, 16 }
 0x102   : > { %v7070_v4 = vld [vmem:[#allocation3 + $0x130] ss:$36 sps:$4 sm:$0xff]   ;;  %2104 = vst [vmem:[#allocation3 + $0x1c0] sm:$0xf] %v1833_v27  ;;  %1593 = vst [vmem:[#allocation3 + $0x41c] sm:$0xf] %v1524_v56 }
 0x103   : > { %v7080_v26 = vld [vmem:[#allocation3 + $0x3b4] ss:$36 sps:$4 sm:$0xff]   ;;  %v1856_v6 = vrot.slane %v1854_v0, 5  ;;  %v7073_v50 = vld [vmem:[#allocation3 + $0x17c] ss:$36 sps:$4 sm:$0xff]   ;;  %v1851_v45 = vor.u32 %v1850_v22, %v1847_v31  ;;  %v1864_v51 = vshll.u32 %v8374_v8, 16  ;;  %4960 = vmatmul.mubr.bf16.gmra.mxu0 %v7070_v4 }
 0x104   : > { %2105 = vst [vmem:[#allocation3 + $0x1e4] sm:$0xf] %v1843_v28  ;;  %v5882_v18 = vrot.slane %v8023_v62, 9  ;;  %4870 = vmatprep.mubr.bf16.mxu1 %v7080_v26  ;;  %v2223_v36 = vrot.slane %v8027_v30, 5  ;;  %v2226_v32 = vrot.slane %v8374_v8, 5  ;;  %v409_v41 = vmax.f32 %v8350_v2, 0.0  ;;  %v6382_v26 = vpop.f32.mrf.mxu0  ;;  %4967 = vmatprep.mubr.bf16.mxu0 %v7073_v50 }
 0x105   : > { %v410_v63 = vmax.f32 %v8352_v14, 0.0  ;;  %v8402_v15 = vld [vmem:[#allocation2 + $0x6c] sm:$0xf]  ;;  %v1852_v57 = vrot.slane %v1851_v45, 4  ;;  %v1860_v12 = vrot.slane %v1858_v23, 4  ;;  %v1866_v46 = vrot.slane %v1864_v51, 5 }
 0x106   : > { %v9652_v13 = vld [vmem:[#allocation5_spill] sm:$0xff]  ;;  %v8405_v3 = vld [vmem:[#allocation2 + $0x70] sm:$0xf]  ;;  %2411 = vst [vmem:[#allocation3 + $0x210] sm:$0xf] %v8402_v15  ;;  %v2224_v30 = vsel %vm7295_vm4, %v5882_v18, %v2223_v36  ;;  %v2225_v8 = vrot.slane %v2223_v36, 4  ;;  %v8429_v23 = vadd.f32 %v6382_v26, %v6381_v52 }
 0x107   : > { %v5874_v55 = vrot.slane %v9652_v13, 9  ;;  %v7084_v62 = vld [vmem:[#allocation3 + $0x3b0] ss:$36 sps:$4 sm:$0xff]   ;;  %v426_v2 = vpack.c.bf16 %v410_v63, %v409_v41  ;;  %2412 = vst [vmem:[#allocation3 + $0x234] sm:$0xf] %v8405_v3  ;;  %v1857_v49 = vsel %vm7321_vm5, %v1852_v57, %v1856_v6  ;;  %v1861_v19 = vor.u32 %v1860_v12, %v1856_v6 }
 0x108   : > { %v9653_v59 = vld [vmem:[#allocation6_spill] sm:$0xff]  ;;  %v8412_v7 = vld [vmem:[#allocation2 + $0x78] sm:$0xf]  ;;  %2330 = vst [vmem:[#allocation3 + $0x20c] sm:$0xf] %v2224_v30  ;;  %v1869_v9 = vshrl.u32 %v8075_v42, 16  ;;  %v2227_v31 = vsel %vm7295_vm4, %v2225_v8, %v2226_v32  ;;  %4871 = vmatmul.mubr.bf16.gmra.mxu1 %v7084_v62 }
 0x109   : > { %v1527_v14 = vrot.slane %v9653_v59, 5  ;;  %v7198_v17 = vld [vmem:[#allocation2 + $0xbc] sm:$0x1]  ;;  %2413 = vst [vmem:[#allocation3 + $0x258] sm:$0xf] %v8412_v7  ;;  %v533_v0 = vshrl.u32 %v426_v2, 16 }
 0x10a   : > { %v1530_v47 = vrot.slane %v7198_v17, 5  ;;  %v8417_v33 = vld [vmem:[#allocation2 + $0x7c] sm:$0xf]  ;;  %2106 = vst [vmem:[#allocation3 + $0x208] sm:$0xf] %v1857_v49  ;;  %v536_v27 = vshll.u32 %v426_v2, 16 }
 0x10b   : > { %v1528_v56 = vsel %vm7295_vm4, %v5874_v55, %v1527_v14  ;;  %v8424_v22 = vld [vmem:[#allocation2 + $0x74] sm:$0x1]  ;;  %2414 = vst [vmem:[#allocation3 + $0x27c] sm:$0xf] %v8417_v33  ;;  %v8427_v28 = vld [vmem:[#allocation2 + $0x84] sm:$0xf] }
 0x10c   : > { %v7086_v6 = vld [vmem:[#allocation3 + $0x3fc] ss:$36 sps:$4 sm:$0xff]   ;;  %v1862_v45 = vrot.slane %v1861_v19, 4  ;;  %2331 = vst [vmem:[#allocation3 + $0x230] sm:$0xf] %v2227_v31  ;;  %v1529_v4 = vrot.slane %v1527_v14, 4 }
 0x10d   : > { %1594 = vst [vmem:[#allocation3 + $0x440] sm:$0xf] %v1528_v56  ;;  %2415 = vst [vmem:[#allocation3 + $0x2a0] sm:$0xf] %v8427_v28  ;;  %v8432_v51 = vrot.slane %v533_v0, 7  ;;  %v1871_v50 = vrot.slane %v1869_v9, 4  ;;  %4878 = vmatprep.mubr.bf16.mxu1 %v7086_v6 }
 0x10e   : > { %v7078_v18 = vld [vmem:[#allocation3 + $0x178] ss:$36 sps:$4 sm:$0xff]   ;;  %v1867_v36 = vsel %vm7321_vm5, %v1862_v45, %v1866_v46  ;;  %v1531_v32 = vsel %vm7295_vm4, %v1529_v4, %v1530_v47  ;;  %v1872_v41 = vshll.u32 %v8075_v42, 16  ;;  %v8439_v63 = vld [vmem:[#allocation2 + $0x88] sm:$0xf]  ;;  %v1878_v13 = vshll.u32 %v8083_v40, 16 }
 0x10f   : > { %v7082_v57 = vld [vmem:[#allocation3 + $0x1c4] ss:$36 sps:$4 sm:$0xff]   ;;  %2107 = vst [vmem:[#allocation3 + $0x22c] sm:$0xf] %v1867_v36  ;;  %v538_v12 = vor.u32 %v536_v27, %v8432_v51  ;;  %1595 = vst [vmem:[#allocation3 + $0x464] sm:$0xf] %v1531_v32  ;;  %4968 = vmatmul.mubr.bf16.gmra.mxu0 %v7078_v18 }
 0x110   : > { %v1882_v55 = vshrl.u32 %v8083_v40, 16  ;;  %v1888_v46 = vshll.u32 %v8424_v22, 16  ;;  %v8445_v62 = vld [vmem:[#allocation2 + $0x80] sm:$0x1]  ;;  %2416 = vst [vmem:[#allocation3 + $0x2c4] sm:$0xf] %v8439_v63  ;;  %4975 = vmatprep.mubr.bf16.mxu0 %v7082_v57 }
 0x111   : > { %v1874_v30 = vrot.slane %v1872_v41, 5  ;;  %v5883_v8 = vrot.slane %v8075_v42, 9  ;;  %v2230_v2 = vrot.slane %v8083_v40, 5  ;;  %v2233_v59 = vrot.slane %v8424_v22, 5  ;;  %v8451_v14 = vld [vmem:[#allocation2 + $0x90] sm:$0xf] }
 0x112   : > { %9654 = vst [vmem:[#allocation4_spill] sm:$0xff] %v8451_v14  ;;  %v589_v52 = vsel %vm7362_vm8, 0, %v538_v12  ;;  %v1880_v49 = vrot.slane %v1878_v13, 5  ;;  %v1884_v19 = vrot.slane %v1882_v55, 4  ;;  %v1890_v17 = vrot.slane %v1888_v46, 5 }
 0x113   : > { %v8455_v47 = vld [vmem:[#allocation2 + $0x94] sm:$0xf]  ;;  %2417 = vst [vmem:[#allocation3 + $0x2e8] sm:$0xf] %v8451_v14  ;;  %v5856_v31 = vcombine.low %v589_v52, %v589_v52  ;;  %v5857_v0 = vcombine.high %v589_v52, %v589_v52  ;;  %v1875_v42 = vor.u32 %v1874_v30, %v1871_v50  ;;  %v2231_v40 = vsel %vm7295_vm4, %v5883_v8, %v2230_v2  ;;  %v8461_v27 = vld [vmem:[#allocation2 + $0x9c] sm:$0xf] }
 0x114   : > { %9655 = vst [vmem:[#allocation5_spill] sm:$0xff] %v8455_v47  ;;  %v7092_v9 = vld [vmem:[#allocation3 + $0x3f8] ss:$36 sps:$4 sm:$0xff]   ;;  %2418 = vst [vmem:[#allocation3 + $0x30c] sm:$0xf] %v8455_v47  ;;  %v1885_v56 = vor.u32 %v1884_v19, %v1880_v49  ;;  %v2232_v22 = vrot.slane %v2230_v2, 4 }
 0x115   : > { %9656 = vst [vmem:[#allocation6_spill] sm:$0xff] %v8461_v27  ;;  %2332 = vst [vmem:[#allocation3 + $0x254] sm:$0xf] %v2231_v40  ;;  %v1893_v26 = vshrl.u32 %v8097_v5, 16  ;;  %v1896_v6 = vshll.u32 %v8097_v5, 16  ;;  %v1876_v4 = vrot.slane %v1875_v42, 4  ;;  %4879 = vmatmul.mubr.bf16.gmra.mxu1 %v7092_v9 }
 0x116   : > { %v8465_v45 = vld [vmem:[#allocation2 + $0xa0] sm:$0xf]  ;;  %2419 = vst [vmem:[#allocation3 + $0x330] sm:$0xf] %v8461_v27  ;;  %828 = vst [vmem:[#allocation2 + $0xc0] sm:$0xf] %v5856_v31  ;;  %v2234_v41 = vsel %vm7295_vm4, %v2232_v22, %v2233_v59 }
 0x117   : > { %9657 = vst [vmem:[#allocation13_spill] sm:$0xff] %v8465_v45  ;;  %829 = vst [vmem:[#allocation2 + $0xc4] sm:$0xf] %v5857_v0  ;;  %v1902_v36 = vshll.u32 %v8104_v54, 16  ;;  %v1906_v32 = vshrl.u32 %v8104_v54, 16  ;;  %v1912_v18 = vshll.u32 %v8445_v62, 16  ;;  %v1881_v46 = vsel %vm7321_vm5, %v1876_v4, %v1880_v49 }
 0x118   : > { %2420 = vst [vmem:[#allocation3 + $0x354] sm:$0xf] %v8465_v45  ;;  %v1886_v50 = vrot.slane %v1885_v56, 4  ;;  %v1895_v12 = vrot.slane %v1893_v26, 4  ;;  %v1898_v13 = vrot.slane %v1896_v6, 5  ;;  %v5884_v9 = vrot.slane %v8097_v5, 9 }
 0x119   : > { %v8474_v55 = vld [vmem:[#allocation2 + $0xa8] sm:$0xf]  ;;  %v7085_v57 = vld [vmem:[#allocation3 + $0x1c0] ss:$36 sps:$4 sm:$0xff]   ;;  %2333 = vst [vmem:[#allocation3 + $0x278] sm:$0xf] %v2234_v41 }
 0x11a   : > { %9658 = vst [vmem:[#allocation14_spill] sm:$0xff] %v8474_v55  ;;  %v1904_v30 = vrot.slane %v1902_v36, 5  ;;  %2421 = vst [vmem:[#allocation3 + $0x378] sm:$0xf] %v8474_v55  ;;  %v7088_v8 = vld [vmem:[#allocation3 + $0x20c] ss:$36 sps:$4 sm:$0xff]   ;;  %v1891_v2 = vsel %vm7321_vm5, %v1886_v50, %v1890_v17  ;;  %v1899_v52 = vor.u32 %v1898_v13, %v1895_v12  ;;  %4976 = vmatmul.mubr.bf16.gmra.mxu0 %v7085_v57 }
 0x11b   : > { %2108 = vst [vmem:[#allocation3 + $0x250] sm:$0xf] %v1881_v46  ;;  %v1908_v59 = vrot.slane %v1906_v32, 4  ;;  %v1914_v19 = vrot.slane %v1912_v18, 5  ;;  %v8481_v31 = vld [vmem:[#allocation2 + $0x20] sm:$0x1]  ;;  %4983 = vmatprep.mubr.bf16.mxu0 %v7088_v8 }
 0x11c   : > { %v8483_v0 = vld [vmem:[#allocation2 + $0xac] sm:$0xf]  ;;  %2109 = vst [vmem:[#allocation3 + $0x274] sm:$0xf] %v1891_v2  ;;  %v2237_v49 = vrot.slane %v8104_v54, 5  ;;  %v2240_v42 = vrot.slane %v8445_v62, 5 }
 0x11d   : > { %9659 = vst [vmem:[#allocation15_spill] sm:$0xff] %v8483_v0  ;;  %v2430_v40 = vshrl.u32 %v8195_v34, 16  ;;  %2422 = vst [vmem:[#allocation3 + $0x39c] sm:$0xf] %v8483_v0  ;;  %v8490_v17 = vld [vmem:[#allocation2 + $0xb4] sm:$0xf]  ;;  %v1909_v22 = vor.u32 %v1908_v59, %v1904_v30 }
 0x11e   : > { %9660 = vst [vmem:[#allocation16_spill] sm:$0xff] %v8490_v17  ;;  %v1900_v56 = vrot.slane %v1899_v52, 4  ;;  %v2433_v26 = vshll.u32 %v8195_v34, 16  ;;  %v2439_v6 = vshll.u32 %v8197_v29, 16  ;;  %v8494_v4 = vld [vmem:[#allocation2 + $0xb8] sm:$0xf]  ;;  %v2238_v54 = vsel %vm7295_vm4, %v5884_v9, %v2237_v49 }
 0x11f   : > { %9661 = vst [vmem:[#allocation17_spill] sm:$0xff] %v8494_v4  ;;  %2423 = vst [vmem:[#allocation3 + $0x3c0] sm:$0xf] %v8490_v17  ;;  %v2239_v5 = vrot.slane %v2237_v49, 4  ;;  %v2432_v62 = vrot.slane %v2430_v40, 4  ;;  %v2443_v36 = vshrl.u32 %v8197_v29, 16 }
 0x120   : > { %2424 = vst [vmem:[#allocation3 + $0x3e4] sm:$0xf] %v8494_v4  ;;  %v8501_v32 = vld [vmem:[#allocation2 + $0xc0] sm:$0xf]  ;;  %v8503_v18 = vld [vmem:[#allocation2 + $0xc4] sm:$0xf]  ;;  %v1905_v50 = vsel %vm7321_vm5, %v1900_v56, %v1904_v30 }
 0x121   : > { %v1910_v41 = vrot.slane %v1909_v22, 4  ;;  %2334 = vst [vmem:[#allocation3 + $0x29c] sm:$0xf] %v2238_v54  ;;  %v2435_v12 = vrot.slane %v2433_v26, 5  ;;  %1674 = vst [vmem:[#allocation3 + $0x444] sm:$0xf] %v8501_v32  ;;  %v2241_v13 = vsel %vm7295_vm4, %v2239_v5, %v2240_v42  ;;  %v8524_v54 = vpop.f32.mrf.mxu0 }
 0x122   : > { %1675 = vst [vmem:[#allocation3 + $0x468] sm:$0xf] %v8503_v18  ;;  %2110 = vst [vmem:[#allocation3 + $0x298] sm:$0xf] %v1905_v50  ;;  %v2441_v57 = vrot.slane %v2439_v6, 5  ;;  %v2445_v46 = vrot.slane %v2443_v36, 4 }
 0x123   : > { %v2449_v2 = vshll.u32 %v8481_v31, 16  ;;  %v8512_v52 = vld [vmem:[#allocation2 + $0xc0] sm:$0xf]  ;;  %v1915_v30 = vsel %vm7321_vm5, %v1910_v41, %v1914_v19  ;;  %2335 = vst [vmem:[#allocation3 + $0x2c0] sm:$0xf] %v2241_v13  ;;  %v2436_v59 = vor.u32 %v2435_v12, %v2432_v62  ;;  %v1917_v8 = vshrl.u32 %v8164_v58, 16 }
 0x124   : > { %9662 = vst [vmem:[#allocation18_spill] sm:$0xff] %v8512_v52  ;;  %v1920_v9 = vshll.u32 %v8164_v58, 16  ;;  %v8518_v49 = vld [vmem:[#allocation2 + $0xc4] sm:$0xf]  ;;  %2425 = vst [vmem:[#allocation3 + $0x408] sm:$0xf] %v8512_v52  ;;  %v2446_v42 = vor.u32 %v2445_v46, %v2441_v57 }
 0x125   : > { %9663 = vst [vmem:[#allocation19_spill] sm:$0xff] %v8518_v49  ;;  %2111 = vst [vmem:[#allocation3 + $0x2bc] sm:$0xf] %v1915_v30  ;;  %v2451_v40 = vrot.slane %v2449_v2, 5  ;;  %v1628_v56 = vld [vmem:[#allocation2 + $0x8c] sm:$0x1] }
 0x126   : > { %v1926_v22 = vshll.u32 %v8170_v1, 16  ;;  %v1930_v26 = vshrl.u32 %v8170_v1, 16  ;;  %2426 = vst [vmem:[#allocation3 + $0x42c] sm:$0xf] %v8518_v49  ;;  %v7093_v19 = vld [vmem:[#allocation3 + $0x208] ss:$36 sps:$4 sm:$0xff]  }
 0x127   : > { %v2437_v6 = vrot.slane %v2436_v59, 4  ;;  %v7097_v5 = vld [vmem:[#allocation3 + $0x254] ss:$36 sps:$4 sm:$0xff]   ;;  %v2447_v62 = vrot.slane %v2446_v42, 4  ;;  %v1919_v36 = vrot.slane %v1917_v8, 4  ;;  %v1922_v50 = vrot.slane %v1920_v9, 5  ;;  %4984 = vmatmul.mubr.bf16.gmra.mxu0 %v7093_v19 }
 0x128   : > { %v1928_v41 = vrot.slane %v1926_v22, 5  ;;  %v1932_v13 = vrot.slane %v1930_v26, 4  ;;  %v1936_v46 = vshll.u32 %v1628_v56, 16  ;;  %v5885_v2 = vrot.slane %v8164_v58, 9  ;;  %v8532_v4 = vld [vmem:[#allocation2 + $0x2c] sm:$0x1]  ;;  %v8535_v22 = vpop.f32.mrf.mxu0  ;;  %4991 = vmatprep.mubr.bf16.mxu0 %v7097_v5 }
 0x129   : > { %v2442_v12 = vsel %vm7321_vm5, %v2437_v6, %v2441_v57  ;;  %v2452_v30 = vsel %vm7321_vm5, %v2447_v62, %v2451_v40  ;;  %v1923_v49 = vor.u32 %v1922_v50, %v1919_v36  ;;  %v2244_v59 = vrot.slane %v8170_v1, 5  ;;  %v7095_v8 = vld [vmem:[#allocation3 + $0x444] ss:$36 sps:$4 sm:$0xff]   ;;  %v8544_v50 = vld [vmem:[#allocation2 + $0xcc] sm:$0xf] }
 0x12a   : > { %2845 = vst [vmem:[#allocation3 + $0x1c] sm:$0xf] %v2442_v12  ;;  %v2247_v52 = vrot.slane %v1628_v56, 5  ;;  %2846 = vst [vmem:[#allocation3 + $0x40] sm:$0xf] %v2452_v30  ;;  %v1933_v9 = vor.u32 %v1932_v13, %v1928_v41  ;;  %v1938_v42 = vrot.slane %v1936_v46, 5  ;;  %4886 = vmatprep.mubr.bf16.mxu1 %v7095_v8 }
 0x12b   : > { %v2454_v57 = vshrl.u32 %v8219_v43, 16  ;;  %v7099_v58 = vld [vmem:[#allocation3 + $0x440] ss:$36 sps:$4 sm:$0xff]   ;;  %v1924_v26 = vrot.slane %v1923_v49, 4  ;;  %v2245_v40 = vsel %vm7295_vm4, %v5885_v2, %v2244_v59  ;;  %v2246_v6 = vrot.slane %v2244_v59, 4  ;;  %9664 = vst [vmem:[#allocation20_spill] sm:$0xff] %v8544_v50 }
 0x12c   : > { %v2457_v1 = vshll.u32 %v8219_v43, 16  ;;  %v1934_v56 = vrot.slane %v1933_v9, 4  ;;  %2336 = vst [vmem:[#allocation3 + $0x2e4] sm:$0xf] %v2245_v40  ;;  %4887 = vmatmul.mubr.bf16.gmra.mxu1 %v7099_v58  ;;  %v8546_v49 = vld [vmem:[#allocation2 + $0xd0] sm:$0xf] }
 0x12d   : > { %v1929_v19 = vsel %vm7321_vm5, %v1924_v26, %v1928_v41  ;;  %v2248_v62 = vsel %vm7295_vm4, %v2246_v6, %v2247_v52  ;;  %v2456_v36 = vrot.slane %v2454_v57, 4  ;;  %9665 = vst [vmem:[#allocation21_spill] sm:$0xff] %v8546_v49  ;;  %v7100_v12 = vld [vmem:[#allocation3 + $0x250] ss:$36 sps:$4 sm:$0xff]   ;;  %v2463_v46 = vshll.u32 %v8228_v61, 16  ;;  %v6387_v52 = vpop.f32.mrf.mxu0  ;;  %v9666_v6 = vld [vmem:[#allocation7_spill] sm:$0xff] }
 0x12e   : > { %v2459_v5 = vrot.slane %v2457_v1, 5  ;;  %v1939_v13 = vsel %vm7321_vm5, %v1934_v56, %v1938_v42  ;;  %2112 = vst [vmem:[#allocation3 + $0x2e0] sm:$0xf] %v1929_v19  ;;  %2337 = vst [vmem:[#allocation3 + $0x308] sm:$0xf] %v2248_v62  ;;  %v2467_v2 = vshrl.u32 %v8228_v61, 16 }
 0x12f   : > { %v2473_v41 = vshll.u32 %v8532_v4, 16  ;;  %v8553_v30 = vld [vmem:[#allocation2 + $0x98] sm:$0x1]  ;;  %2427 = vst [vmem:[#allocation3 + $0x450] sm:$0xf] %v8544_v50  ;;  %v5892_v9 = vrot.slane %v8219_v43, 9  ;;  %v6388_v56 = vpop.f32.mrf.mxu0  ;;  %4992 = vmatmul.mubr.bf16.gmra.mxu0 %v7100_v12 }
 0x130   : > { %2428 = vst [vmem:[#allocation3 + $0x474] sm:$0xf] %v8546_v49  ;;  %v7101_v59 = vld [vmem:[#allocation3 + $0x29c] ss:$36 sps:$4 sm:$0xff]   ;;  %2113 = vst [vmem:[#allocation3 + $0x304] sm:$0xf] %v1939_v13  ;;  %v2460_v8 = vor.u32 %v2459_v5, %v2456_v36  ;;  %v6453_v13 = vpop.f32.mrf.mxu1  ;;  %v8563_v36 = vadd.f32 %v6388_v56, %v6387_v52 }
 0x131   : > { %v2934_v42 = vrot.slane %v8228_v61, 5  ;;  %v2937_v57 = vrot.slane %v8532_v4, 5  ;;  %v2465_v58 = vrot.slane %v2463_v46, 5  ;;  %v2469_v26 = vrot.slane %v2467_v2, 4  ;;  %v7103_v19 = vld [vmem:[#allocation3 + $0x18] ss:$36 sps:$4 sm:$0xff]   ;;  %v8566_v46 = vpop.f32.mrf.mxu0  ;;  %4999 = vmatprep.mubr.bf16.mxu0 %v7101_v59 }
 0x132   : > { %v2475_v40 = vrot.slane %v2473_v41, 5  ;;  %v1941_v1 = vshrl.u32 %v9666_v6, 16  ;;  %v7105_v62 = vld [vmem:[#allocation3 + $0x1c] ss:$36 sps:$4 sm:$0xff]   ;;  %v2461_v50 = vrot.slane %v2460_v8, 4  ;;  %v1944_v5 = vshll.u32 %v9666_v6, 16  ;;  %v6454_v12 = vpop.f32.mrf.mxu1 }
 0x133   : > { %v2935_v49 = vsel %vm7295_vm4, %v5892_v9, %v2934_v42  ;;  %v2470_v43 = vor.u32 %v2469_v26, %v2465_v58  ;;  %v2936_v61 = vrot.slane %v2934_v42, 4  ;;  %5088 = vmatprep.mubr.bf16.mxu1 %v7105_v62  ;;  %v9667_v41 = vld [vmem:[#allocation8_spill] sm:$0xff]  ;;  %v1960_v52 = vshll.u32 %v8553_v30, 16  ;;  %v8577_v62 = vpop.f32.mrf.mxu0  ;;  %v7107_v17 = vld [vmem:[#allocation3 + $0x298] ss:$36 sps:$4 sm:$0xff]  }
 0x134   : > { %3071 = vst [vmem:[#allocation3 + $0x68] sm:$0xf] %v2935_v49  ;;  %v1943_v4 = vrot.slane %v1941_v1, 4  ;;  %v2466_v2 = vsel %vm7321_vm5, %v2461_v50, %v2465_v58  ;;  %v1950_v8 = vshll.u32 %v9667_v41, 16  ;;  %v1954_v9 = vshrl.u32 %v9667_v41, 16  ;;  %5089 = vmatmul.mubr.bf16.vlgmr.msra.gmra.mxu1 %v7103_v19 }
 0x135   : > { %v2471_v26 = vrot.slane %v2470_v43, 4  ;;  %2847 = vst [vmem:[#allocation3 + $0x64] sm:$0xf] %v2466_v2  ;;  %v2938_v49 = vsel %vm7295_vm4, %v2936_v61, %v2937_v57  ;;  %v1946_v42 = vrot.slane %v1944_v5, 5  ;;  %v5886_v1 = vrot.slane %v9666_v6, 9 }
 0x136   : > { %3072 = vst [vmem:[#allocation3 + $0x8c] sm:$0xf] %v2938_v49  ;;  %v1952_v59 = vrot.slane %v1950_v8, 5  ;;  %v1956_v56 = vrot.slane %v1954_v9, 4  ;;  %v1962_v50 = vrot.slane %v1960_v52, 5  ;;  %v2251_v58 = vrot.slane %v9667_v41, 5  ;;  %v6393_v49 = vpop.f32.mrf.mxu0 }
 0x137   : > { %v2476_v43 = vsel %vm7321_vm5, %v2471_v26, %v2475_v40  ;;  %v1947_v2 = vor.u32 %v1946_v42, %v1943_v4  ;;  %v2254_v0 = vrot.slane %v8553_v30, 5  ;;  %v8582_v57 = vld [vmem:[#allocation2 + $0x38] sm:$0x1]  ;;  %v8584_v61 = vadd.f32 %v6454_v12, %v6453_v13  ;;  %v7108_v6 = vld [vmem:[#allocation3 + $0x2e4] ss:$36 sps:$4 sm:$0xff]   ;;  %5000 = vmatmul.mubr.bf16.gmra.mxu0 %v7107_v17 }
 0x138   : > { %2848 = vst [vmem:[#allocation3 + $0x88] sm:$0xf] %v2476_v43  ;;  %v1957_v19 = vor.u32 %v1956_v56, %v1952_v59  ;;  %v2252_v5 = vsel %vm7295_vm4, %v5886_v1, %v2251_v58  ;;  %v2253_v41 = vrot.slane %v2251_v58, 4  ;;  %v2478_v8 = vshrl.u32 %v8242_v10, 16  ;;  %v1634_v43 = vld [vmem:[#allocation2 + $0xa4] sm:$0x1]  ;;  %5007 = vmatprep.mubr.bf16.mxu0 %v7108_v6 }
 0x139   : > { %9668 = vst [vmem:[#allocation7_spill] sm:$0xff] %v8584_v61  ;;  %v1948_v9 = vrot.slane %v1947_v2, 4  ;;  %2338 = vst [vmem:[#allocation3 + $0x32c] sm:$0xf] %v2252_v5  ;;  %v2481_v40 = vshll.u32 %v8242_v10, 16  ;;  %v2487_v4 = vshll.u32 %v8247_v48, 16  ;;  %v8597_v2 = vpop.f32.mrf.mxu1 }
 0x13a   : > { %v2491_v30 = vshrl.u32 %v8247_v48, 16  ;;  %v1958_v52 = vrot.slane %v1957_v19, 4  ;;  %v2255_v13 = vsel %vm7295_vm4, %v2253_v41, %v2254_v0  ;;  %v2480_v12 = vrot.slane %v2478_v8, 4  ;;  %9669 = vst [vmem:[#allocation8_spill] sm:$0xff] %v8597_v2  ;;  %v9670_v5 = vld [vmem:[#allocation9_spill] sm:$0xff] }
 0x13b   : > { %v2497_v26 = vshll.u32 %v8582_v57, 16  ;;  %v1953_v42 = vsel %vm7321_vm5, %v1948_v9, %v1952_v59  ;;  %2339 = vst [vmem:[#allocation3 + $0x350] sm:$0xf] %v2255_v13  ;;  %v2483_v1 = vrot.slane %v2481_v40, 5  ;;  %v2489_v56 = vrot.slane %v2487_v4, 5  ;;  %v9671_v9 = vld [vmem:[#allocation10_spill] sm:$0xff]  ;;  %v8606_v55 = vpop.f32.mrf.mxu1 }
 0x13c   : > { %v2493_v58 = vrot.slane %v2491_v30, 4  ;;  %v1963_v19 = vsel %vm7321_vm5, %v1958_v52, %v1962_v50  ;;  %2114 = vst [vmem:[#allocation3 + $0x328] sm:$0xf] %v1953_v42  ;;  %v1965_v41 = vshrl.u32 %v9670_v5, 16  ;;  %v1968_v17 = vshll.u32 %v9670_v5, 16  ;;  %v6394_v50 = vpop.f32.mrf.mxu0  ;;  %9672 = vst [vmem:[#allocation9_spill] sm:$0xff] %v8606_v55 }
 0x13d   : > { %v2499_v0 = vrot.slane %v2497_v26, 5  ;;  %2115 = vst [vmem:[#allocation3 + $0x34c] sm:$0xf] %v1963_v19  ;;  %v2484_v8 = vor.u32 %v2483_v1, %v2480_v12  ;;  %v1974_v40 = vshll.u32 %v9671_v9, 16  ;;  %v1978_v4 = vshrl.u32 %v9671_v9, 16 }
 0x13e   : > { %v2494_v59 = vor.u32 %v2493_v58, %v2489_v56  ;;  %v7112_v30 = vld [vmem:[#allocation3 + $0x2e0] ss:$36 sps:$4 sm:$0xff]   ;;  %v1967_v13 = vrot.slane %v1965_v41, 4  ;;  %v1970_v2 = vrot.slane %v1968_v17, 5  ;;  %v1984_v6 = vshll.u32 %v1634_v43, 16 }
 0x13f   : > { %v5887_v61 = vrot.slane %v9670_v5, 9  ;;  %v7110_v52 = vld [vmem:[#allocation3 + $0x64] ss:$36 sps:$4 sm:$0xff]   ;;  %v2485_v42 = vrot.slane %v2484_v8, 4  ;;  %v8608_v45 = vadd.f32 %v6394_v50, %v6393_v49  ;;  %v1976_v58 = vrot.slane %v1974_v40, 5  ;;  %5008 = vmatmul.mubr.bf16.gmra.mxu0 %v7112_v30 }
 0x140   : > { %v7113_v26 = vld [vmem:[#allocation3 + $0x60] ss:$36 sps:$4 sm:$0xff]   ;;  %v2495_v12 = vrot.slane %v2494_v59, 4  ;;  %v1971_v1 = vor.u32 %v1970_v2, %v1967_v13  ;;  %v1980_v19 = vrot.slane %v1978_v4, 4  ;;  %5096 = vmatprep.mubr.bf16.mxu1 %v7110_v52  ;;  %v1986_v17 = vrot.slane %v1984_v6, 5  ;;  %v6459_v4 = vpop.f32.mrf.mxu1 }
 0x141   : > { %9673 = vst [vmem:[#allocation10_spill] sm:$0xff] %v8608_v45  ;;  %v2490_v41 = vsel %vm7321_vm5, %v2485_v42, %v2489_v56  ;;  %v2258_v27 = vrot.slane %v9671_v9, 5  ;;  %v2261_v5 = vrot.slane %v1634_v43, 5  ;;  %5097 = vmatmul.mubr.bf16.gmra.mxu1 %v7113_v26  ;;  %v2502_v59 = vshrl.u32 %v8289_v44, 16  ;;  %v8618_v56 = vld [vmem:[#allocation2 + $0x44] sm:$0x1] }
 0x142   : > { %v2500_v8 = vsel %vm7321_vm5, %v2495_v12, %v2499_v0  ;;  %2849 = vst [vmem:[#allocation3 + $0xac] sm:$0xf] %v2490_v41  ;;  %v1972_v55 = vrot.slane %v1971_v1, 4  ;;  %v1981_v49 = vor.u32 %v1980_v19, %v1976_v58  ;;  %v2505_v9 = vshll.u32 %v8289_v44, 16  ;;  %v7114_v13 = vld [vmem:[#allocation3 + $0x32c] ss:$36 sps:$4 sm:$0xff]  }
 0x143   : > { %2850 = vst [vmem:[#allocation3 + $0xd0] sm:$0xf] %v2500_v8  ;;  %v2259_v2 = vsel %vm7295_vm4, %v5887_v61, %v2258_v27  ;;  %v2260_v40 = vrot.slane %v2258_v27, 4  ;;  %v2511_v43 = vshll.u32 %v8294_v35, 16  ;;  %v2504_v50 = vrot.slane %v2502_v59, 4  ;;  %5015 = vmatprep.mubr.bf16.mxu0 %v7114_v13  ;;  %v8635_v8 = vpop.f32.mrf.mxu0 }
 0x144   : > { %v1977_v0 = vsel %vm7321_vm5, %v1972_v55, %v1976_v58  ;;  %v1982_v6 = vrot.slane %v1981_v49, 4  ;;  %2340 = vst [vmem:[#allocation3 + $0x374] sm:$0xf] %v2259_v2  ;;  %v2507_v61 = vrot.slane %v2505_v9, 5  ;;  %v2515_v26 = vshrl.u32 %v8294_v35, 16 }
 0x145   : > { %2116 = vst [vmem:[#allocation3 + $0x370] sm:$0xf] %v1977_v0  ;;  %v2262_v30 = vsel %vm7295_vm4, %v2260_v40, %v2261_v5  ;;  %v2513_v52 = vrot.slane %v2511_v43, 5  ;;  %v2521_v42 = vshll.u32 %v8618_v56, 16  ;;  %v8630_v12 = vld [vmem:[#allocation2 + $0xb0] sm:$0x1]  ;;  %v6460_v5 = vpop.f32.mrf.mxu1  ;;  %v8645_v19 = vpop.f32.mrf.mxu0 }
 0x146   : > { %v1987_v27 = vsel %vm7321_vm5, %v1982_v6, %v1986_v17  ;;  %2341 = vst [vmem:[#allocation3 + $0x398] sm:$0xf] %v2262_v30  ;;  %v7119_v55 = vld [vmem:[#allocation3 + $0x328] ss:$36 sps:$4 sm:$0xff]   ;;  %v2508_v1 = vor.u32 %v2507_v61, %v2504_v50  ;;  %v5894_v58 = vrot.slane %v8289_v44, 9  ;;  %v1989_v41 = vshrl.u32 %v8122_v37, 16 }
 0x147   : > { %2117 = vst [vmem:[#allocation3 + $0x394] sm:$0xf] %v1987_v27  ;;  %v2517_v17 = vrot.slane %v2515_v26, 4  ;;  %v2523_v49 = vrot.slane %v2521_v42, 5  ;;  %v1992_v59 = vshll.u32 %v8122_v37, 16  ;;  %v1998_v2 = vshll.u32 %v8126_v20, 16  ;;  %5016 = vmatmul.mubr.bf16.gmra.mxu0 %v7119_v55 }
 0x148   : > { %v2509_v40 = vrot.slane %v2508_v1, 4  ;;  %v1991_v9 = vrot.slane %v1989_v41, 4  ;;  %v2002_v43 = vshrl.u32 %v8126_v20, 16  ;;  %v2008_v13 = vshll.u32 %v8630_v12, 16  ;;  %v7120_v0 = vld [vmem:[#allocation3 + $0xa8] ss:$36 sps:$4 sm:$0xff]  }
 0x149   : > { %v2518_v6 = vor.u32 %v2517_v17, %v2513_v52  ;;  %v1994_v30 = vrot.slane %v1992_v59, 5  ;;  %v8641_v50 = vadd.f32 %v6460_v5, %v6459_v4  ;;  %v2000_v27 = vrot.slane %v1998_v2, 5  ;;  %v8649_v59 = vpop.f32.mrf.mxu1 }
 0x14a   : > { %v7116_v44 = vld [vmem:[#allocation3 + $0xac] ss:$36 sps:$4 sm:$0xff]   ;;  %v2514_v61 = vsel %vm7321_vm5, %v2509_v40, %v2513_v52  ;;  %v2004_v26 = vrot.slane %v2002_v43, 4  ;;  %v2010_v42 = vrot.slane %v2008_v13, 5  ;;  %v5888_v45 = vrot.slane %v8122_v37, 9  ;;  %9675 = vst [vmem:[#allocation23_spill] sm:$0xff] %v8649_v59 }
 0x14b   : > { %9674 = vst [vmem:[#allocation22_spill] sm:$0xff] %v8641_v50  ;;  %5104 = vmatprep.mubr.bf16.mxu1 %v7116_v44  ;;  %v2519_v1 = vrot.slane %v2518_v6, 4  ;;  %2851 = vst [vmem:[#allocation3 + $0xf4] sm:$0xf] %v2514_v61  ;;  %v1995_v41 = vor.u32 %v1994_v30, %v1991_v9  ;;  %v2265_v17 = vrot.slane %v8126_v20, 5  ;;  %v2268_v55 = vrot.slane %v8630_v12, 5  ;;  %v6399_v61 = vpop.f32.mrf.mxu0 }
 0x14c   : > { %5105 = vmatmul.mubr.bf16.gmra.mxu1 %v7120_v0  ;;  %v2005_v4 = vor.u32 %v2004_v26, %v2000_v27  ;;  %v8652_v52 = vld [vmem:[#allocation2 + $0x50] sm:$0x1]  ;;  %v2526_v5 = vshrl.u32 %v8313_v25, 16  ;;  %v2529_v2 = vshll.u32 %v8313_v25, 16  ;;  %v9676_v20 = vrot.slane %v8294_v35, 5 }
 0x14d   : > { %v7121_v40 = vld [vmem:[#allocation3 + $0x374] ss:$36 sps:$4 sm:$0xff]   ;;  %v2524_v9 = vsel %vm7321_vm5, %v2519_v1, %v2523_v49  ;;  %v1996_v43 = vrot.slane %v1995_v41, 4  ;;  %v2266_v37 = vsel %vm7295_vm4, %v5888_v45, %v2265_v17  ;;  %v2267_v0 = vrot.slane %v2265_v17, 4 }
 0x14e   : > { %v2949_v13 = vsel %vm7295_vm4, %v5894_v58, %v9676_v20  ;;  %2852 = vst [vmem:[#allocation3 + $0x118] sm:$0xf] %v2524_v9  ;;  %v7125_v12 = vld [vmem:[#allocation3 + $0x370] ss:$36 sps:$4 sm:$0xff]   ;;  %v2006_v44 = vrot.slane %v2005_v4, 4  ;;  %v2528_v6 = vrot.slane %v2526_v5, 4  ;;  %5023 = vmatprep.mubr.bf16.mxu0 %v7121_v40  ;;  %v8669_v58 = vpop.f32.mrf.mxu1 }
 0x14f   : > { %2342 = vst [vmem:[#allocation3 + $0x3bc] sm:$0xf] %v2266_v37  ;;  %v2531_v30 = vrot.slane %v2529_v2, 5  ;;  %3075 = vst [vmem:[#allocation3 + $0xf8] sm:$0xf] %v2949_v13  ;;  %v2001_v49 = vsel %vm7321_vm5, %v1996_v43, %v2000_v27  ;;  %v2535_v45 = vshll.u32 %v8324_v24, 16  ;;  %v2269_v17 = vsel %vm7295_vm4, %v2267_v0, %v2268_v55  ;;  %v6400_v27 = vpop.f32.mrf.mxu0  ;;  %5024 = vmatmul.mubr.bf16.gmra.mxu0 %v7125_v12 }
 0x150   : > { %v2539_v26 = vshrl.u32 %v8324_v24, 16  ;;  %v2545_v1 = vshll.u32 %v8652_v52, 16  ;;  %9677 = vst [vmem:[#allocation24_spill] sm:$0xff] %v8669_v58  ;;  %v2011_v41 = vsel %vm7321_vm5, %v2006_v44, %v2010_v42  ;;  %2118 = vst [vmem:[#allocation3 + $0x3b8] sm:$0xf] %v2001_v49  ;;  %v9678_v2 = vld [vmem:[#allocation11_spill] sm:$0xff]  ;;  %v6465_v59 = vpop.f32.mrf.mxu1 }
 0x151   : > { %v2532_v4 = vor.u32 %v2531_v30, %v2528_v6  ;;  %v1640_v5 = vld [vmem:[#allocation2 + $0xbc] sm:$0x1]  ;;  %v2013_v40 = vshrl.u32 %v9678_v2, 16  ;;  %2119 = vst [vmem:[#allocation3 + $0x3dc] sm:$0xf] %v2011_v41  ;;  %v2537_v9 = vrot.slane %v2535_v45, 5  ;;  %v8683_v12 = vpop.f32.mrf.mxu0 }
 0x152   : > { %2343 = vst [vmem:[#allocation3 + $0x3e0] sm:$0xf] %v2269_v17  ;;  %v2541_v43 = vrot.slane %v2539_v26, 4  ;;  %v2547_v37 = vrot.slane %v2545_v1, 5  ;;  %v2016_v20 = vshll.u32 %v9678_v2, 16  ;;  %v9679_v42 = vld [vmem:[#allocation12_spill] sm:$0xff] }
 0x153   : > { %v2533_v13 = vrot.slane %v2532_v4, 4  ;;  %v2015_v58 = vrot.slane %v2013_v40, 4  ;;  %v2022_v44 = vshll.u32 %v9679_v42, 16  ;;  %v2026_v49 = vshrl.u32 %v9679_v42, 16  ;;  %v7126_v4 = vld [vmem:[#allocation3 + $0xf0] ss:$36 sps:$4 sm:$0xff]  }
 0x154   : > { %v2542_v55 = vor.u32 %v2541_v43, %v2537_v9  ;;  %v2018_v0 = vrot.slane %v2016_v20, 5  ;;  %v2032_v6 = vshll.u32 %v1640_v5, 16  ;;  %v5889_v30 = vrot.slane %v9678_v2, 9  ;;  %v6466_v20 = vpop.f32.mrf.mxu1 }
 0x155   : > { %v2538_v45 = vsel %vm7321_vm5, %v2533_v13, %v2537_v9  ;;  %v2024_v26 = vrot.slane %v2022_v44, 5  ;;  %v2028_v1 = vrot.slane %v2026_v49, 4  ;;  %v2272_v41 = vrot.slane %v9679_v42, 5  ;;  %v7123_v17 = vld [vmem:[#allocation3 + $0xf4] ss:$36 sps:$4 sm:$0xff]  }
 0x156   : > { %v2543_v40 = vrot.slane %v2542_v55, 4  ;;  %2853 = vst [vmem:[#allocation3 + $0x13c] sm:$0xf] %v2538_v45  ;;  %v2019_v50 = vor.u32 %v2018_v0, %v2015_v58  ;;  %v8685_v43 = vadd.f32 %v6400_v27, %v6399_v61  ;;  %v2034_v2 = vrot.slane %v2032_v6, 5  ;;  %5112 = vmatprep.mubr.bf16.mxu1 %v7123_v17  ;;  %v8691_v49 = vld [vmem:[#allocation2 + $0x5c] sm:$0x1]  ;;  %v6468_v6 = vpop.f32.mrf.mxu1 }
 0x157   : > { %v2029_v47 = vor.u32 %v2028_v1, %v2024_v26  ;;  %v2273_v14 = vsel %vm7295_vm4, %v5889_v30, %v2272_v41  ;;  %v2274_v9 = vrot.slane %v2272_v41, 4  ;;  %v2275_v44 = vrot.slane %v1640_v5, 5  ;;  %5113 = vmatmul.mubr.bf16.gmra.mxu1 %v7126_v4  ;;  %v8696_v30 = vpop.f32.mrf.mxu0 }
 0x158   : > { %v2548_v13 = vsel %vm7321_vm5, %v2543_v40, %v2547_v37  ;;  %v2020_v42 = vrot.slane %v2019_v50, 4  ;;  %2344 = vst [vmem:[#allocation3 + $0x404] sm:$0xf] %v2273_v14  ;;  %v2550_v58 = vshrl.u32 %v8359_v11, 16  ;;  %v7132_v27 = vld [vmem:[#allocation3 + $0x3b8] ss:$36 sps:$4 sm:$0xff]   ;;  %v8694_v0 = vadd.f32 %v6466_v20, %v6465_v59 }
 0x159   : > { %v7127_v61 = vld [vmem:[#allocation3 + $0x3bc] ss:$36 sps:$4 sm:$0xff]   ;;  %2854 = vst [vmem:[#allocation3 + $0x160] sm:$0xf] %v2548_v13  ;;  %v2030_v55 = vrot.slane %v2029_v47, 4  ;;  %v2276_v14 = vsel %vm7295_vm4, %v2274_v9, %v2275_v44  ;;  %v2553_v5 = vshll.u32 %v8359_v11, 16  ;;  %v6469_v9 = vpop.f32.mrf.mxu1  ;;  %v6405_v13 = vpop.f32.mrf.mxu0 }
 0x15a   : > { %9680 = vst [vmem:[#allocation11_spill] sm:$0xff] %v8694_v0  ;;  %v2025_v37 = vsel %vm7321_vm5, %v2020_v42, %v2024_v26  ;;  %v2552_v50 = vrot.slane %v2550_v58, 4  ;;  %5031 = vmatprep.mubr.bf16.mxu0 %v7127_v61  ;;  %2345 = vst [vmem:[#allocation3 + $0x428] sm:$0xf] %v2276_v14  ;;  %v2559_v47 = vshll.u32 %v8364_v60, 16  ;;  %v2563_v59 = vshrl.u32 %v8364_v60, 16 }
 0x15b   : > { %v2035_v45 = vsel %vm7321_vm5, %v2030_v55, %v2034_v2  ;;  %2120 = vst [vmem:[#allocation3 + $0x400] sm:$0xf] %v2025_v37  ;;  %v2569_v1 = vshll.u32 %v8691_v49, 16  ;;  %5032 = vmatmul.mubr.bf16.gmra.mxu0 %v7132_v27  ;;  %v2555_v26 = vrot.slane %v2553_v5, 5  ;;  %v5896_v41 = vrot.slane %v8359_v11, 9  ;;  %v6406_v14 = vpop.f32.mrf.mxu0 }
 0x15c   : > { %2121 = vst [vmem:[#allocation3 + $0x424] sm:$0xf] %v2035_v45  ;;  %v9627_v17 = vrot.slane %v8364_v60, 5  ;;  %v2561_v4 = vrot.slane %v2559_v47, 5  ;;  %v2565_v40 = vrot.slane %v2563_v59, 4  ;;  %v605_v2 = vsel %vm7362_vm8, %v8432_v51, 0 }
 0x15d   : > { %v2571_v20 = vrot.slane %v2569_v1, 5  ;;  %v2556_v42 = vor.u32 %v2555_v26, %v2552_v50  ;;  %v5858_v44 = vcombine.low %v605_v2, %v605_v2  ;;  %v2037_v58 = vshrl.u32 %v8501_v32, 16  ;;  %v7133_v45 = vld [vmem:[#allocation3 + $0x138] ss:$36 sps:$4 sm:$0xff]  }
 0x15e   : > { %v2040_v61 = vshll.u32 %v8501_v32, 16  ;;  %v2566_v27 = vor.u32 %v2565_v40, %v2561_v4  ;;  %v2046_v11 = vshll.u32 %v8503_v18, 16  ;;  %v2050_v55 = vshrl.u32 %v8503_v18, 16 }
 0x15f   : > { %v5890_v37 = vrot.slane %v8501_v32, 9  ;;  %v2557_v16 = vrot.slane %v2556_v42, 4  ;;  %830 = vst [vmem:[#allocation2 + $0xc8] sm:$0x1] %v5858_v44  ;;  %v8718_v51 = vadd.f32 %v6469_v9, %v6468_v6  ;;  %v8720_v50 = vadd.f32 %v6406_v14, %v6405_v13  ;;  %v8729_v9 = vld [vmem:[#allocation2 + $0x68] sm:$0x1] }
 0x160   : > { %v7129_v5 = vld [vmem:[#allocation3 + $0x13c] ss:$36 sps:$4 sm:$0xff]   ;;  %v2963_v47 = vsel %vm7295_vm4, %v5896_v41, %v9627_v17  ;;  %v2567_v59 = vrot.slane %v2566_v27, 4  ;;  %v2039_v1 = vrot.slane %v2037_v58, 4  ;;  %v2042_v26 = vrot.slane %v2040_v61, 5 }
 0x161   : > { %9681 = vst [vmem:[#allocation12_spill] sm:$0xff] %v8718_v51  ;;  %v2048_v40 = vrot.slane %v2046_v11, 5  ;;  %3079 = vst [vmem:[#allocation3 + $0x188] sm:$0xf] %v2963_v47  ;;  %5120 = vmatprep.mubr.bf16.mxu1 %v7129_v5  ;;  %v2562_v32 = vsel %vm7321_vm5, %v2557_v16, %v2561_v4  ;;  %v2052_v2 = vrot.slane %v2050_v55, 4  ;;  %v2279_v6 = vrot.slane %v8503_v18, 5  ;;  %v6408_v51 = vpop.f32.mrf.mxu0 }
 0x162   : > { %v2574_v13 = vshrl.u32 %v8377_v38, 16  ;;  %v8734_v42 = vadd.f32 %v8535_v22, %v8524_v54  ;;  %5121 = vmatmul.mubr.bf16.gmra.mxu1 %v7133_v45  ;;  %v7134_v41 = vld [vmem:[#allocation3 + $0x404] ss:$36 sps:$4 sm:$0xff]   ;;  %v2572_v44 = vsel %vm7321_vm5, %v2567_v59, %v2571_v20  ;;  %2855 = vst [vmem:[#allocation3 + $0x184] sm:$0xf] %v2562_v32  ;;  %v2043_v61 = vor.u32 %v2042_v26, %v2039_v1  ;;  %v6471_v59 = vpop.f32.mrf.mxu1 }
 0x163   : > { %v7138_v58 = vld [vmem:[#allocation3 + $0x400] ss:$36 sps:$4 sm:$0xff]   ;;  %v2577_v4 = vshll.u32 %v8377_v38, 16  ;;  %2856 = vst [vmem:[#allocation3 + $0x1a8] sm:$0xf] %v2572_v44  ;;  %v2053_v18 = vor.u32 %v2052_v2, %v2048_v40  ;;  %v2280_v27 = vsel %vm7295_vm4, %v5890_v37, %v2279_v6  ;;  %v2281_v11 = vrot.slane %v2279_v6, 4  ;;  %5039 = vmatprep.mubr.bf16.mxu0 %v7134_v41 }
 0x164   : > { %v2576_v55 = vrot.slane %v2574_v13, 4  ;;  %v2044_v54 = vrot.slane %v2043_v61, 4  ;;  %2346 = vst [vmem:[#allocation3 + $0x44c] sm:$0xf] %v2280_v27  ;;  %v2583_v14 = vshll.u32 %v8379_v53, 16  ;;  %v2587_v20 = vshrl.u32 %v8379_v53, 16  ;;  %5040 = vmatmul.mubr.bf16.gmra.mxu0 %v7138_v58  ;;  %v6472_v61 = vpop.f32.mrf.mxu1 }
 0x165   : > { %v2579_v22 = vrot.slane %v2577_v4, 5  ;;  %v2054_v5 = vrot.slane %v2053_v18, 4  ;;  %v2593_v45 = vshll.u32 %v8729_v9, 16  ;;  %v2598_v16 = vshrl.u32 %v8402_v15, 16  ;;  %v8748_v6 = vld [vmem:[#allocation2 + $0x74] sm:$0x1] }
 0x166   : > { %v2601_v47 = vshll.u32 %v8402_v15, 16  ;;  %v1643_v37 = vld [vmem:[#allocation2 + $0xc8] sm:$0x1]  ;;  %v2049_v1 = vsel %vm7321_vm5, %v2044_v54, %v2048_v40  ;;  %v2585_v32 = vrot.slane %v2583_v14, 5  ;;  %v2589_v2 = vrot.slane %v2587_v20, 4 }
 0x167   : > { %v2580_v26 = vor.u32 %v2579_v22, %v2576_v55  ;;  %v2056_v13 = vshll.u32 %v1643_v37, 16  ;;  %2122 = vst [vmem:[#allocation3 + $0x448] sm:$0xf] %v2049_v1  ;;  %v2282_v41 = vrot.slane %v1643_v37, 5  ;;  %v2595_v44 = vrot.slane %v2593_v45, 5  ;;  %v6474_v22 = vpop.f32.mrf.mxu1 }
 0x168   : > { %v2600_v58 = vrot.slane %v2598_v16, 4  ;;  %v2590_v18 = vor.u32 %v2589_v2, %v2585_v32  ;;  %v2603_v27 = vrot.slane %v2601_v47, 5  ;;  %v2607_v17 = vshll.u32 %v8405_v3, 16  ;;  %v7139_v20 = vld [vmem:[#allocation3 + $0x180] ss:$36 sps:$4 sm:$0xff]  }
 0x169   : > { %v2581_v4 = vrot.slane %v2580_v26, 4  ;;  %v2058_v0 = vrot.slane %v2056_v13, 5  ;;  %v2283_v40 = vsel %vm7295_vm4, %v2281_v11, %v2282_v41  ;;  %v2611_v55 = vshrl.u32 %v8405_v3, 16  ;;  %v6475_v13 = vpop.f32.mrf.mxu1 }
 0x16a   : > { %v2617_v54 = vshll.u32 %v8748_v6, 16  ;;  %v7136_v14 = vld [vmem:[#allocation3 + $0x184] ss:$36 sps:$4 sm:$0xff]   ;;  %2347 = vst [vmem:[#allocation3 + $0x470] sm:$0xf] %v2283_v40  ;;  %v2591_v16 = vrot.slane %v2590_v18, 4  ;;  %v2604_v47 = vor.u32 %v2603_v27, %v2600_v58  ;;  %v8757_v37 = vadd.f32 %v6472_v61, %v6471_v59  ;;  %v6409_v59 = vpop.f32.mrf.mxu0 }
 0x16b   : > { %v2586_v45 = vsel %vm7321_vm5, %v2581_v4, %v2585_v32  ;;  %v2059_v11 = vsel %vm7321_vm5, %v2054_v5, %v2058_v0  ;;  %v2609_v26 = vrot.slane %v2607_v17, 5  ;;  %v2613_v2 = vrot.slane %v2611_v55, 4  ;;  %5128 = vmatprep.mubr.bf16.mxu1 %v7136_v14  ;;  %v8768_v5 = vld [vmem:[#allocation2 + $0x80] sm:$0x1]  ;;  %v6493_v18 = vpop.f32.mrf.mxu1 }
 0x16c   : > { %2857 = vst [vmem:[#allocation3 + $0x1cc] sm:$0xf] %v2586_v45  ;;  %2123 = vst [vmem:[#allocation3 + $0x46c] sm:$0xf] %v2059_v11  ;;  %v2596_v41 = vsel %vm7321_vm5, %v2591_v16, %v2595_v44  ;;  %v2605_v40 = vrot.slane %v2604_v47, 4  ;;  %v2619_v32 = vrot.slane %v2617_v54, 5  ;;  %5129 = vmatmul.mubr.bf16.gmra.mxu1 %v7139_v20  ;;  %v8773_v55 = vadd.f32 %v6409_v59, %v6408_v51 }
 0x16d   : > { %v5898_v58 = vrot.slane %v8402_v15, 9  ;;  %2858 = vst [vmem:[#allocation3 + $0x1f0] sm:$0xf] %v2596_v41  ;;  %v2614_v61 = vor.u32 %v2613_v2, %v2609_v26  ;;  %v2976_v4 = vrot.slane %v8405_v3, 5  ;;  %v5891_v0 = vrot.slane %v8195_v34, 9  ;;  %v6494_v20 = vpop.f32.mrf.mxu1 }
 0x16e   : > { %v2927_v17 = vrot.slane %v8197_v29, 5  ;;  %v2610_v44 = vsel %vm7321_vm5, %v2605_v40, %v2609_v26  ;;  %v2930_v27 = vrot.slane %v8481_v31, 5  ;;  %v8775_v15 = vadd.f32 %v6475_v13, %v6474_v22  ;;  %v6411_v22 = vpop.f32.mrf.mxu0 }
 0x16f   : > { %v2615_v54 = vrot.slane %v2614_v61, 4  ;;  %2859 = vst [vmem:[#allocation3 + $0x214] sm:$0xf] %v2610_v44  ;;  %v2622_v29 = vshrl.u32 %v8412_v7, 16  ;;  %v2625_v45 = vshll.u32 %v8412_v7, 16  ;;  %v2631_v16 = vshll.u32 %v8417_v33, 16  ;;  %v6496_v13 = vpop.f32.mrf.mxu1 }
 0x170   : > { %v2928_v14 = vsel %vm7295_vm4, %v5891_v0, %v2927_v17  ;;  %v2929_v34 = vrot.slane %v2927_v17, 4  ;;  %v2635_v31 = vshrl.u32 %v8417_v33, 16  ;;  %v2641_v51 = vshll.u32 %v8768_v5, 16  ;;  %v6412_v0 = vpop.f32.mrf.mxu0 }
 0x171   : > { %3069 = vst [vmem:[#allocation3 + $0x20] sm:$0xf] %v2928_v14  ;;  %v2620_v47 = vsel %vm7321_vm5, %v2615_v54, %v2619_v32  ;;  %v2624_v26 = vrot.slane %v2622_v29, 4  ;;  %v5893_v2 = vrot.slane %v8242_v10, 9  ;;  %v2627_v41 = vrot.slane %v2625_v45, 5  ;;  %v6497_v54 = vpop.f32.mrf.mxu1 }
 0x172   : > { %v2931_v11 = vsel %vm7295_vm4, %v2929_v34, %v2930_v27  ;;  %2860 = vst [vmem:[#allocation3 + $0x238] sm:$0xf] %v2620_v47  ;;  %v2633_v40 = vrot.slane %v2631_v16, 5  ;;  %v2637_v59 = vrot.slane %v2635_v31, 4  ;;  %v2643_v61 = vrot.slane %v2641_v51, 5  ;;  %v6414_v31 = vpop.f32.mrf.mxu0 }
 0x173   : > { %3070 = vst [vmem:[#allocation3 + $0x44] sm:$0xf] %v2931_v11  ;;  %v7140_v17 = vld [vmem:[#allocation3 + $0x44c] ss:$36 sps:$4 sm:$0xff]   ;;  %v2941_v14 = vrot.slane %v8247_v48, 5  ;;  %v8790_v1 = vadd.f32 %v6412_v0, %v6411_v22  ;;  %v6495_v32 = vadd.f32 %v6494_v20, %v6493_v18  ;;  %v2977_v10 = vsel %vm7295_vm4, %v5898_v58, %v2976_v4  ;;  %v6499_v58 = vpop.f32.mrf.mxu1 }
 0x174   : > { %v7145_v44 = vld [vmem:[#allocation3 + $0x448] ss:$36 sps:$4 sm:$0xff]   ;;  %v2628_v29 = vor.u32 %v2627_v41, %v2624_v26  ;;  %v2638_v45 = vor.u32 %v2637_v59, %v2633_v40  ;;  %v2944_v16 = vrot.slane %v8582_v57, 5  ;;  %v6498_v51 = vadd.f32 %v6497_v54, %v6496_v13  ;;  %3083 = vst [vmem:[#allocation3 + $0x218] sm:$0xf] %v2977_v10  ;;  %5047 = vmatprep.mubr.bf16.mxu0 %v7140_v17  ;;  %v6415_v57 = vpop.f32.mrf.mxu0 }
 0x175   : > { %v7142_v27 = vld [vmem:[#allocation3 + $0x1cc] ss:$36 sps:$4 sm:$0xff]   ;;  %v2942_v48 = vsel %vm7295_vm4, %v5893_v2, %v2941_v14  ;;  %v2943_v18 = vrot.slane %v2941_v14, 4  ;;  %v9682_v20 = vrot.slane %v8294_v35, 5  ;;  %v8802_v47 = vadd.f32 %v6495_v32, %v8429_v23  ;;  %5048 = vmatmul.mubr.bf16.gmra.mxu0 %v7145_v44  ;;  %v6500_v17 = vpop.f32.mrf.mxu1  ;;  %v8821_v32 = vld [vmem:[#allocation2 + $0x8c] sm:$0x1] }
 0x176   : > { %v7146_v34 = vld [vmem:[#allocation3 + $0x1c8] ss:$36 sps:$4 sm:$0xff]   ;;  %5136 = vmatprep.mubr.bf16.mxu1 %v7142_v27  ;;  %v2629_v11 = vrot.slane %v2628_v29, 4  ;;  %v2639_v26 = vrot.slane %v2638_v45, 4  ;;  %3073 = vst [vmem:[#allocation3 + $0xb0] sm:$0xf] %v2942_v48  ;;  %v8805_v13 = vadd.f32 %v6498_v51, %v8734_v42  ;;  %v8814_v59 = vadd.f32 %v6415_v57, %v6414_v31  ;;  %v6417_v10 = vpop.f32.mrf.mxu0 }
 0x177   : > { %v2950_v22 = vrot.slane %v9682_v20, 4  ;;  %v2646_v41 = vshrl.u32 %v8427_v28, 16  ;;  %5137 = vmatmul.mubr.bf16.gmra.mxu1 %v7146_v34  ;;  %v2945_v35 = vsel %vm7295_vm4, %v2943_v18, %v2944_v16  ;;  %v9683_v2 = vrot.slane %v8618_v56, 5  ;;  %v7151_v44 = vld [vmem:[#allocation3 + $0x68] ss:$36 sps:$4 sm:$0xff]   ;;  %v6502_v45 = vpop.f32.mrf.mxu1 }
 0x178   : > { %v2649_v0 = vshll.u32 %v8427_v28, 16  ;;  %v2634_v42 = vsel %vm7321_vm5, %v2629_v11, %v2633_v40  ;;  %v2644_v14 = vsel %vm7321_vm5, %v2639_v26, %v2643_v61  ;;  %3074 = vst [vmem:[#allocation3 + $0xd4] sm:$0xf] %v2945_v35  ;;  %v2655_v54 = vshll.u32 %v8439_v63, 16  ;;  %v6418_v18 = vpop.f32.mrf.mxu0 }
 0x179   : > { %v2952_v23 = vsel %vm7295_vm4, %v2950_v22, %v9683_v2  ;;  %v2648_v56 = vrot.slane %v2646_v41, 4  ;;  %v8826_v27 = vadd.f32 %v8577_v62, %v8566_v46  ;;  %v7147_v34 = vld [vmem:[#allocation3 + $0x214] ss:$36 sps:$4 sm:$0xff]   ;;  %2861 = vst [vmem:[#allocation3 + $0x25c] sm:$0xf] %v2634_v42  ;;  %v6501_v40 = vadd.f32 %v6500_v17, %v6499_v58  ;;  %v6503_v11 = vpop.f32.mrf.mxu1 }
 0x17a   : > { %3076 = vst [vmem:[#allocation3 + $0x11c] sm:$0xf] %v2952_v23  ;;  %2862 = vst [vmem:[#allocation3 + $0x280] sm:$0xf] %v2644_v14  ;;  %v2651_v29 = vrot.slane %v2649_v0, 5  ;;  %v2965_v61 = vrot.slane %v8691_v49, 5  ;;  %v8833_v20 = vadd.f32 %v8645_v19, %v8635_v8  ;;  %5144 = vmatprep.mubr.bf16.mxu1 %v7147_v34  ;;  %v6420_v35 = vpop.f32.mrf.mxu0 }
 0x17b   : > { %v2979_v16 = vrot.slane %v8748_v6, 5  ;;  %v7149_v31 = vld [vmem:[#allocation3 + $0x20] ss:$36 sps:$4 sm:$0xff]   ;;  %v2657_v51 = vrot.slane %v2655_v54, 5  ;;  %v2659_v48 = vshrl.u32 %v8439_v63, 16  ;;  %v2665_v22 = vshll.u32 %v8821_v32, 16  ;;  %v6505_v17 = vpop.f32.mrf.mxu1 }
 0x17c   : > { %v7150_v46 = vld [vmem:[#allocation3 + $0x210] ss:$36 sps:$4 sm:$0xff]   ;;  %v2652_v62 = vor.u32 %v2651_v29, %v2648_v56  ;;  %v5900_v58 = vrot.slane %v8427_v28, 9  ;;  %6853 = vmatprep.mubr.bf16.mxu0 %v7149_v31  ;;  %v2990_v26 = vrot.slane %v8439_v63, 5  ;;  %v5895_v57 = vrot.slane %v8313_v25, 9  ;;  %v6421_v25 = vpop.f32.mrf.mxu0 }
 0x17d   : > { %v2661_v49 = vrot.slane %v2659_v48, 4  ;;  %v2955_v41 = vrot.slane %v8324_v24, 5  ;;  %v2667_v19 = vrot.slane %v2665_v22, 5  ;;  %v2958_v8 = vrot.slane %v8652_v52, 5  ;;  %6854 = vmatmul.mubr.bf16.vlgmr.msra.gmra.mxu0 %v7151_v44  ;;  %v6506_v34 = vpop.f32.mrf.mxu1  ;;  %v8858_v48 = vld [vmem:[#allocation2 + $0x98] sm:$0x1] }
 0x17e   : > { %v2653_v2 = vrot.slane %v2652_v62, 4  ;;  %v9684_v23 = vrot.slane %v8364_v60, 5  ;;  %v8845_v56 = vadd.f32 %v6418_v18, %v6417_v10  ;;  %v8852_v52 = vadd.f32 %v6501_v40, %v8563_v36  ;;  %v9686_v40 = vld [vmem:[#allocation5_spill] sm:$0xff] }
 0x17f   : > { %v2662_v28 = vor.u32 %v2661_v49, %v2657_v51  ;;  %v2956_v42 = vsel %vm7295_vm4, %v5895_v57, %v2955_v41  ;;  %v2957_v14 = vrot.slane %v2955_v41, 4  ;;  %5145 = vmatmul.mubr.bf16.gmra.mxu1 %v7150_v46  ;;  %v7155_v24 = vld [vmem:[#allocation3 + $0xb0] ss:$36 sps:$4 sm:$0xff]   ;;  %v8854_v44 = vadd.f32 %v6421_v25, %v6420_v35  ;;  %v6508_v22 = vpop.f32.mrf.mxu1 }
 0x180   : > { %v2964_v0 = vrot.slane %v9684_v23, 4  ;;  %v2658_v54 = vsel %vm7321_vm5, %v2653_v2, %v2657_v51  ;;  %3077 = vst [vmem:[#allocation3 + $0x140] sm:$0xf] %v2956_v42  ;;  %v6504_v31 = vadd.f32 %v6503_v11, %v6502_v45  ;;  %v9685_v51 = vld [vmem:[#allocation4_spill] sm:$0xff]  ;;  %6857 = vmatprep.mubr.bf16.mxu0 %v7155_v24  ;;  %v6507_v62 = vadd.f32 %v6506_v34, %v6505_v17  ;;  %v7152_v2 = vld [vmem:[#allocation3 + $0x258] ss:$36 sps:$4 sm:$0xff]   ;;  %v6423_v42 = vpop.f32.mrf.mxu0 }
 0x181   : > { %v2663_v29 = vrot.slane %v2662_v28, 4  ;;  %2863 = vst [vmem:[#allocation3 + $0x2a4] sm:$0xf] %v2658_v54  ;;  %v2959_v10 = vsel %vm7295_vm4, %v2957_v14, %v2958_v8  ;;  %v2670_v18 = vshrl.u32 %v9685_v51, 16  ;;  %v7154_v46 = vld [vmem:[#allocation3 + $0x25c] ss:$36 sps:$4 sm:$0xff]   ;;  %v2991_v49 = vsel %vm7295_vm4, %v5900_v58, %v2990_v26  ;;  %v6509_v17 = vpop.f32.mrf.mxu1 }
 0x182   : > { %v2966_v60 = vsel %vm7295_vm4, %v2964_v0, %v2965_v61  ;;  %3078 = vst [vmem:[#allocation3 + $0x164] sm:$0xf] %v2959_v10  ;;  %v2673_v36 = vshll.u32 %v9685_v51, 16  ;;  %v2679_v61 = vshll.u32 %v9686_v40, 16  ;;  %v7156_v57 = vld [vmem:[#allocation3 + $0xf8] ss:$36 sps:$4 sm:$0xff]   ;;  %v8870_v11 = vadd.f32 %v6504_v31, %v8826_v27  ;;  %5152 = vmatprep.mubr.bf16.mxu1 %v7154_v46  ;;  %v6424_v3 = vpop.f32.mrf.mxu0 }
 0x183   : > { %3080 = vst [vmem:[#allocation3 + $0x1ac] sm:$0xf] %v2966_v60  ;;  %v2668_v45 = vsel %vm7321_vm5, %v2663_v29, %v2667_v19  ;;  %v2672_v41 = vrot.slane %v2670_v18, 4  ;;  %v2683_v35 = vshrl.u32 %v9686_v40, 16  ;;  %3087 = vst [vmem:[#allocation3 + $0x2a8] sm:$0xf] %v2991_v49  ;;  %v6510_v34 = vadd.f32 %v6509_v17, %v6508_v22  ;;  %v6511_v29 = vpop.f32.mrf.mxu1 }
 0x184   : > { %2864 = vst [vmem:[#allocation3 + $0x2c8] sm:$0xf] %v2668_v45  ;;  %v2675_v8 = vrot.slane %v2673_v36, 5  ;;  %v2681_v23 = vrot.slane %v2679_v61, 5  ;;  %v2689_v0 = vshll.u32 %v8858_v48, 16  ;;  %v5897_v58 = vrot.slane %v8377_v38, 9  ;;  %v6426_v22 = vpop.f32.mrf.mxu0 }
 0x185   : > { %v2685_v28 = vrot.slane %v2683_v35, 4  ;;  %v2969_v19 = vrot.slane %v8379_v53, 5  ;;  %v2972_v27 = vrot.slane %v8729_v9, 5  ;;  %v2978_v14 = vrot.slane %v2976_v4, 4  ;;  %v9687_v54 = vld [vmem:[#allocation10_spill] sm:$0xff]  ;;  %6858 = vmatmul.mubr.bf16.gmra.mxu0 %v7156_v57  ;;  %v6512_v36 = vpop.f32.mrf.mxu1 }
 0x186   : > { %v2676_v25 = vor.u32 %v2675_v8, %v2672_v41  ;;  %v2691_v24 = vrot.slane %v2689_v0, 5  ;;  %v8880_v60 = vadd.f32 %v6507_v62, %v9687_v54  ;;  %v8888_v4 = vadd.f32 %v6424_v3, %v6423_v42  ;;  %v8893_v46 = vld [vmem:[#allocation2 + $0xa4] sm:$0x1] }
 0x187   : > { %v2686_v10 = vor.u32 %v2685_v28, %v2681_v23  ;;  %v2970_v38 = vsel %vm7295_vm4, %v5897_v58, %v2969_v19  ;;  %v2971_v31 = vrot.slane %v2969_v19, 4  ;;  %v2980_v53 = vsel %vm7295_vm4, %v2978_v14, %v2979_v16  ;;  %5153 = vmatmul.mubr.bf16.gmra.mxu1 %v7152_v2  ;;  %v9688_v16 = vld [vmem:[#allocation6_spill] sm:$0xff]  ;;  %v6514_v8 = vpop.f32.mrf.mxu1  ;;  %v6427_v28 = vpop.f32.mrf.mxu0 }
 0x188   : > { %v2677_v9 = vrot.slane %v2676_v25, 4  ;;  %3081 = vst [vmem:[#allocation3 + $0x1d0] sm:$0xf] %v2970_v38  ;;  %3084 = vst [vmem:[#allocation3 + $0x23c] sm:$0xf] %v2980_v53  ;;  %v8891_v18 = vadd.f32 %v6510_v34, %v8833_v20  ;;  %v2694_v49 = vshrl.u32 %v9688_v16, 16  ;;  %v6513_v57 = vadd.f32 %v6512_v36, %v6511_v29 }
 0x189   : > { %v7160_v61 = vld [vmem:[#allocation3 + $0x140] ss:$36 sps:$4 sm:$0xff]   ;;  %v2687_v62 = vrot.slane %v2686_v10, 4  ;;  %v2973_v6 = vsel %vm7295_vm4, %v2971_v31, %v2972_v27  ;;  %v2697_v41 = vshll.u32 %v9688_v16, 16  ;;  %v9689_v20 = vld [vmem:[#allocation13_spill] sm:$0xff]  ;;  %v8908_v42 = vadd.f32 %v6427_v28, %v6426_v22  ;;  %v6515_v34 = vpop.f32.mrf.mxu1 }
 0x18a   : > { %v2682_v45 = vsel %vm7321_vm5, %v2677_v9, %v2681_v23  ;;  %3082 = vst [vmem:[#allocation3 + $0x1f4] sm:$0xf] %v2973_v6  ;;  %v2703_v35 = vshll.u32 %v9689_v20, 16  ;;  %v2707_v2 = vshrl.u32 %v9689_v20, 16  ;;  %6861 = vmatprep.mubr.bf16.mxu0 %v7160_v61  ;;  %v7161_v58 = vld [vmem:[#allocation3 + $0x188] ss:$36 sps:$4 sm:$0xff]   ;;  %v8906_v27 = vadd.f32 %v6513_v57, %v8685_v43 }
 0x18b   : > { %v7159_v0 = vld [vmem:[#allocation3 + $0x2a4] ss:$36 sps:$4 sm:$0xff]   ;;  %v2692_v17 = vsel %vm7321_vm5, %v2687_v62, %v2691_v24  ;;  %2865 = vst [vmem:[#allocation3 + $0x2ec] sm:$0xf] %v2682_v45  ;;  %v2696_v19 = vrot.slane %v2694_v49, 4  ;;  %v2699_v14 = vrot.slane %v2697_v41, 5  ;;  %v6404_v29 = vadd.f32 %v8696_v30, %v8683_v12  ;;  %v6517_v9 = vpop.f32.mrf.mxu1 }
 0x18c   : > { %v7157_v23 = vld [vmem:[#allocation3 + $0x2a0] ss:$36 sps:$4 sm:$0xff]   ;;  %2866 = vst [vmem:[#allocation3 + $0x310] sm:$0xf] %v2692_v17  ;;  %v2705_v25 = vrot.slane %v2703_v35, 5  ;;  %v2709_v54 = vrot.slane %v2707_v2, 4  ;;  %5160 = vmatprep.mubr.bf16.mxu1 %v7159_v0  ;;  %v6516_v12 = vadd.f32 %v6515_v34, %v6514_v8 }
 0x18d   : > { %v2713_v24 = vshll.u32 %v8893_v46, 16  ;;  %v5902_v10 = vrot.slane %v9688_v16, 9  ;;  %v3004_v38 = vrot.slane %v9689_v20, 5  ;;  %v2700_v43 = vor.u32 %v2699_v14, %v2696_v19  ;;  %6862 = vmatmul.mubr.bf16.gmra.mxu0 %v7161_v58  ;;  %v8932_v0 = vld [vmem:[#allocation2 + $0xb0] sm:$0x1]  ;;  %v9690_v58 = vld [vmem:[#allocation14_spill] sm:$0xff] }
 0x18e   : > { %v2710_v31 = vor.u32 %v2709_v54, %v2705_v25  ;;  %v5899_v53 = vrot.slane %v8412_v7, 9  ;;  %v2983_v3 = vrot.slane %v8417_v33, 5  ;;  %v2993_v36 = vrot.slane %v8821_v32, 5  ;;  %v6429_v7 = vpop.f32.mrf.mxu0  ;;  %v6518_v33 = vpop.f32.mrf.mxu1 }
 0x18f   : > { %v3007_v61 = vrot.slane %v8893_v46, 5  ;;  %v3005_v30 = vsel %vm7295_vm4, %v5902_v10, %v3004_v38  ;;  %5161 = vmatmul.mubr.bf16.gmra.mxu1 %v7157_v23  ;;  %v2701_v62 = vrot.slane %v2700_v43, 4  ;;  %v2715_v22 = vrot.slane %v2713_v24, 5  ;;  %v7166_v19 = vld [vmem:[#allocation3 + $0x218] ss:$36 sps:$4 sm:$0xff]  }
 0x190   : > { %v2711_v6 = vrot.slane %v2710_v31, 4  ;;  %v2984_v16 = vsel %vm7295_vm4, %v5899_v53, %v2983_v3  ;;  %3091 = vst [vmem:[#allocation3 + $0x338] sm:$0xf] %v3005_v30  ;;  %v2985_v57 = vrot.slane %v2983_v3, 4  ;;  %v2986_v32 = vrot.slane %v8768_v5, 5  ;;  %v6430_v8 = vpop.f32.mrf.mxu0  ;;  %v6520_v28 = vpop.f32.mrf.mxu1  ;;  %v9691_v24 = vld [vmem:[#allocation15_spill] sm:$0xff] }
 0x191   : > { %v7165_v49 = vld [vmem:[#allocation3 + $0x1d0] ss:$36 sps:$4 sm:$0xff]   ;;  %3085 = vst [vmem:[#allocation3 + $0x260] sm:$0xf] %v2984_v16  ;;  %v8924_v45 = vadd.f32 %v6516_v12, %v6404_v29  ;;  %v6519_v41 = vadd.f32 %v6518_v33, %v6517_v9  ;;  %v2706_v20 = vsel %vm7321_vm5, %v2701_v62, %v2705_v25  ;;  %v2992_v2 = vrot.slane %v2990_v26, 4 }
 0x192   : > { %v2716_v35 = vsel %vm7321_vm5, %v2711_v6, %v2715_v22  ;;  %v2718_v17 = vshrl.u32 %v9690_v58, 16  ;;  %6865 = vmatprep.mubr.bf16.mxu0 %v7165_v49  ;;  %2867 = vst [vmem:[#allocation3 + $0x334] sm:$0xf] %v2706_v20  ;;  %v2987_v23 = vsel %vm7295_vm4, %v2985_v57, %v2986_v32  ;;  %v8937_v14 = vadd.f32 %v6430_v8, %v6429_v7  ;;  %v7162_v26 = vld [vmem:[#allocation3 + $0x2e8] ss:$36 sps:$4 sm:$0xff]   ;;  %v6432_v34 = vpop.f32.mrf.mxu0  ;;  %v6521_v31 = vpop.f32.mrf.mxu1 }
 0x193   : > { %v7164_v5 = vld [vmem:[#allocation3 + $0x2ec] ss:$36 sps:$4 sm:$0xff]   ;;  %2868 = vst [vmem:[#allocation3 + $0x358] sm:$0xf] %v2716_v35  ;;  %v2721_v25 = vshll.u32 %v9690_v58, 16  ;;  %v8941_v63 = vadd.f32 %v6519_v41, %v8720_v50  ;;  %v2994_v54 = vsel %vm7295_vm4, %v2992_v2, %v2993_v36  ;;  %v2727_v10 = vshll.u32 %v9691_v24, 16 }
 0x194   : > { %3086 = vst [vmem:[#allocation3 + $0x284] sm:$0xf] %v2987_v23  ;;  %v2720_v29 = vrot.slane %v2718_v17, 4  ;;  %v2731_v43 = vshrl.u32 %v9691_v24, 16  ;;  %5168 = vmatprep.mubr.bf16.mxu1 %v7164_v5  ;;  %3088 = vst [vmem:[#allocation3 + $0x2cc] sm:$0xf] %v2994_v54  ;;  %v6433_v12 = vpop.f32.mrf.mxu0  ;;  %v6523_v22 = vpop.f32.mrf.mxu1 }
 0x195   : > { %v2723_v53 = vrot.slane %v2721_v25, 5  ;;  %v2737_v3 = vshll.u32 %v8932_v0, 16  ;;  %v5901_v50 = vrot.slane %v9685_v51, 9  ;;  %v2997_v9 = vrot.slane %v9686_v40, 5  ;;  %6866 = vmatmul.mubr.bf16.gmra.mxu0 %v7166_v19  ;;  %v2390_v20 = vld [vmem:[#allocation2 + $0xbc] sm:$0x1] }
 0x196   : > { %v2729_v30 = vrot.slane %v2727_v10, 5  ;;  %v2733_v62 = vrot.slane %v2731_v43, 4  ;;  %v3000_v36 = vrot.slane %v8858_v48, 5  ;;  %v3006_v6 = vrot.slane %v3004_v38, 4  ;;  %v6524_v38 = vpop.f32.mrf.mxu1  ;;  %v6435_v41 = vpop.f32.mrf.mxu0  ;;  %v9692_v35 = vld [vmem:[#allocation16_spill] sm:$0xff]  ;;  %v9693_v17 = vld [vmem:[#allocation17_spill] sm:$0xff] }
 0x197   : > { %v8951_v16 = vadd.f32 %v6433_v12, %v6432_v34  ;;  %v2724_v7 = vor.u32 %v2723_v53, %v2720_v29  ;;  %v2739_v33 = vrot.slane %v2737_v3, 5  ;;  %v2998_v49 = vsel %vm7295_vm4, %v5901_v50, %v2997_v9  ;;  %5169 = vmatmul.mubr.bf16.gmra.mxu1 %v7162_v26  ;;  %v7167_v19 = vld [vmem:[#allocation3 + $0x330] ss:$36 sps:$4 sm:$0xff]  }
 0x198   : > { %v2734_v57 = vor.u32 %v2733_v62, %v2729_v30  ;;  %v2999_v51 = vrot.slane %v2997_v9, 4  ;;  %3089 = vst [vmem:[#allocation3 + $0x2f0] sm:$0xf] %v2998_v49  ;;  %v3008_v40 = vsel %vm7295_vm4, %v3006_v6, %v3007_v61  ;;  %v6522_v48 = vadd.f32 %v6521_v31, %v6520_v28  ;;  %v6526_v28 = vpop.f32.mrf.mxu1  ;;  %v6436_v29 = vpop.f32.mrf.mxu0 }
 0x199   : > { %v2725_v32 = vrot.slane %v2724_v7, 4  ;;  %3092 = vst [vmem:[#allocation3 + $0x35c] sm:$0xf] %v3008_v40  ;;  %v2742_v2 = vshrl.u32 %v9692_v35, 16  ;;  %v2745_v8 = vshll.u32 %v9692_v35, 16  ;;  %v2751_v5 = vshll.u32 %v9693_v17, 16 }
 0x19a   : > { %v2735_v23 = vrot.slane %v2734_v57, 4  ;;  %v3001_v46 = vsel %vm7295_vm4, %v2999_v51, %v3000_v36  ;;  %v8965_v25 = vadd.f32 %v6522_v48, %v8773_v55  ;;  %v2755_v61 = vshrl.u32 %v9693_v17, 16  ;;  %v7169_v26 = vld [vmem:[#allocation3 + $0x334] ss:$36 sps:$4 sm:$0xff]   ;;  %v6527_v50 = vpop.f32.mrf.mxu1  ;;  %v6438_v9 = vpop.f32.mrf.mxu0 }
 0x19b   : > { %v7170_v54 = vld [vmem:[#allocation3 + $0x260] ss:$36 sps:$4 sm:$0xff]   ;;  %v2730_v34 = vsel %vm7321_vm5, %v2725_v32, %v2729_v30  ;;  %3090 = vst [vmem:[#allocation3 + $0x314] sm:$0xf] %v3001_v46  ;;  %v6525_v10 = vadd.f32 %v6524_v38, %v6523_v22  ;;  %v7171_v43 = vld [vmem:[#allocation3 + $0x2a8] ss:$36 sps:$4 sm:$0xff]   ;;  %v8972_v53 = vadd.f32 %v6436_v29, %v6435_v41  ;;  %5176 = vmatprep.mubr.bf16.mxu1 %v7169_v26 }
 0x19c   : > { %v2740_v31 = vsel %vm7321_vm5, %v2735_v23, %v2739_v33  ;;  %2869 = vst [vmem:[#allocation3 + $0x37c] sm:$0xf] %v2730_v34  ;;  %v2744_v55 = vrot.slane %v2742_v2, 4  ;;  %v2747_v3 = vrot.slane %v2745_v8, 5  ;;  %6869 = vmatprep.mubr.bf16.mxu0 %v7170_v54  ;;  %v2753_v12 = vrot.slane %v2751_v5, 5  ;;  %v6529_v49 = vpop.f32.mrf.mxu1  ;;  %v6439_v57 = vpop.f32.mrf.mxu0  ;;  %v9694_v26 = vld [vmem:[#allocation18_spill] sm:$0xff] }
 0x19d   : > { %2870 = vst [vmem:[#allocation3 + $0x3a0] sm:$0xf] %v2740_v31  ;;  %v2757_v62 = vrot.slane %v2755_v61, 4  ;;  %v2761_v30 = vshll.u32 %v2390_v20, 16  ;;  %v5904_v36 = vrot.slane %v9692_v35, 9  ;;  %v3018_v22 = vrot.slane %v9693_v17, 5  ;;  %6870 = vmatmul.mubr.bf16.gmra.mxu0 %v7171_v43 }
 0x19e   : > { %v2748_v6 = vor.u32 %v2747_v3, %v2744_v55  ;;  %v3021_v7 = vrot.slane %v2390_v20, 5  ;;  %v5903_v33 = vrot.slane %v9690_v58, 9  ;;  %v3011_v48 = vrot.slane %v9691_v24, 5  ;;  %v6530_v20 = vpop.f32.mrf.mxu1  ;;  %v6441_v5 = vpop.f32.mrf.mxu0  ;;  %v9695_v55 = vld [vmem:[#allocation19_spill] sm:$0xff] }
 0x19f   : > { %v2758_v51 = vor.u32 %v2757_v62, %v2753_v12  ;;  %v2763_v40 = vrot.slane %v2761_v30, 5  ;;  %v3014_v38 = vrot.slane %v8932_v0, 5  ;;  %5177 = vmatmul.mubr.bf16.gmra.mxu1 %v7167_v19  ;;  %v8979_v32 = vadd.f32 %v6439_v57, %v6438_v9  ;;  %v2393_v0 = vld [vmem:[#allocation2 + $0xc8] sm:$0x1]  ;;  %v7172_v9 = vld [vmem:[#allocation3 + $0x378] ss:$36 sps:$4 sm:$0xff]  }
 0x1a0   : > { %v2749_v41 = vrot.slane %v2748_v6, 4  ;;  %v3019_v35 = vsel %vm7295_vm4, %v5904_v36, %v3018_v22  ;;  %v3020_v2 = vrot.slane %v3018_v22, 4  ;;  %v3012_v58 = vsel %vm7295_vm4, %v5903_v33, %v3011_v48  ;;  %v6532_v34 = vpop.f32.mrf.mxu1  ;;  %v7176_v29 = vld [vmem:[#allocation3 + $0x338] ss:$36 sps:$4 sm:$0xff]  }
 0x1a1   : > { %v2759_v8 = vrot.slane %v2758_v51, 4  ;;  %v3013_v17 = vrot.slane %v3011_v48, 4  ;;  %3095 = vst [vmem:[#allocation3 + $0x3c8] sm:$0xf] %v3019_v35  ;;  %v8986_v24 = vadd.f32 %v6525_v10, %v8790_v1  ;;  %3093 = vst [vmem:[#allocation3 + $0x380] sm:$0xf] %v3012_v58  ;;  %v6528_v61 = vadd.f32 %v6527_v50, %v6526_v28  ;;  %v6442_v10 = vpop.f32.mrf.mxu0 }
 0x1a2   : > { %v7175_v19 = vld [vmem:[#allocation3 + $0x2f0] ss:$36 sps:$4 sm:$0xff]   ;;  %v2754_v23 = vsel %vm7321_vm5, %v2749_v41, %v2753_v12  ;;  %v3022_v46 = vsel %vm7295_vm4, %v3020_v2, %v3021_v7  ;;  %v2766_v54 = vshrl.u32 %v9694_v26, 16  ;;  %v2769_v31 = vshll.u32 %v9694_v26, 16  ;;  %v6533_v36 = vpop.f32.mrf.mxu1 }
 0x1a3   : > { %v2764_v43 = vsel %vm7321_vm5, %v2759_v8, %v2763_v40  ;;  %2871 = vst [vmem:[#allocation3 + $0x3c4] sm:$0xf] %v2754_v23  ;;  %v3015_v1 = vsel %vm7295_vm4, %v3013_v17, %v3014_v38  ;;  %3096 = vst [vmem:[#allocation3 + $0x3ec] sm:$0xf] %v3022_v46  ;;  %v2775_v3 = vshll.u32 %v9695_v55, 16  ;;  %6873 = vmatprep.mubr.bf16.mxu0 %v7175_v19  ;;  %v6444_v6 = vpop.f32.mrf.mxu0  ;;  %v2779_v33 = vshrl.u32 %v9695_v55, 16 }
 0x1a4   : > { %v7174_v12 = vld [vmem:[#allocation3 + $0x37c] ss:$36 sps:$4 sm:$0xff]   ;;  %2872 = vst [vmem:[#allocation3 + $0x3e8] sm:$0xf] %v2764_v43  ;;  %3094 = vst [vmem:[#allocation3 + $0x3a4] sm:$0xf] %v3015_v1  ;;  %v8999_v28 = vadd.f32 %v6442_v10, %v6441_v5  ;;  %v9002_v50 = vadd.f32 %v6528_v61, %v8814_v59  ;;  %v6531_v30 = vadd.f32 %v6530_v20, %v6529_v49  ;;  %v6535_v41 = vpop.f32.mrf.mxu1 }
 0x1a5   : > { %v2768_v62 = vrot.slane %v2766_v54, 4  ;;  %v2771_v22 = vrot.slane %v2769_v31, 5  ;;  %v2777_v7 = vrot.slane %v2775_v3, 5  ;;  %v2785_v57 = vshll.u32 %v2393_v0, 16  ;;  %5184 = vmatprep.mubr.bf16.mxu1 %v7174_v12  ;;  %v9010_v59 = vld [vmem:[#allocation2 + $0xd4] sm:$0x1]  ;;  %6874 = vmatmul.mubr.bf16.gmra.mxu0 %v7176_v29  ;;  %v6445_v49 = vpop.f32.mrf.mxu0 }
 0x1a6   : > { %v5905_v51 = vrot.slane %v9694_v26, 9  ;;  %v3025_v40 = vrot.slane %v9695_v55, 5  ;;  %v3028_v48 = vrot.slane %v2393_v0, 5  ;;  %v9008_v38 = vadd.f32 %v6531_v30, %v8845_v56  ;;  %v9696_v8 = vld [vmem:[#allocation20_spill] sm:$0xff]  ;;  %v9697_v19 = vld [vmem:[#allocation21_spill] sm:$0xff]  ;;  %v6536_v23 = vpop.f32.mrf.mxu1 }
 0x1a7   : > { %v2772_v35 = vor.u32 %v2771_v22, %v2768_v62  ;;  %v2781_v2 = vrot.slane %v2779_v33, 4  ;;  %v2787_v20 = vrot.slane %v2785_v57, 5  ;;  %v5906_v58 = vrot.slane %v9696_v8, 9  ;;  %5185 = vmatmul.mubr.bf16.gmra.mxu1 %v7172_v9  ;;  %v7177_v3 = vld [vmem:[#allocation3 + $0x3c0] ss:$36 sps:$4 sm:$0xff]   ;;  %v6447_v30 = vpop.f32.mrf.mxu0 }
 0x1a8   : > { %v9013_v17 = vadd.f32 %v6445_v49, %v6444_v6  ;;  %v3026_v5 = vsel %vm7295_vm4, %v5905_v51, %v3025_v40  ;;  %v3027_v0 = vrot.slane %v3025_v40, 4  ;;  %v3032_v56 = vrot.slane %v9697_v19, 5  ;;  %v6538_v55 = vpop.f32.mrf.mxu1 }
 0x1a9   : > { %v2773_v46 = vrot.slane %v2772_v35, 4  ;;  %v2782_v61 = vor.u32 %v2781_v2, %v2777_v7  ;;  %3097 = vst [vmem:[#allocation3 + $0x410] sm:$0xf] %v3026_v5  ;;  %v3035_v26 = vrot.slane %v9010_v59, 5  ;;  %v6534_v54 = vadd.f32 %v6533_v36, %v6532_v34  ;;  %v6448_v40 = vpop.f32.mrf.mxu0 }
 0x1aa   : > { %v7181_v29 = vld [vmem:[#allocation3 + $0x3c8] ss:$36 sps:$4 sm:$0xff]   ;;  %v3029_v43 = vsel %vm7295_vm4, %v3027_v0, %v3028_v48  ;;  %v3033_v1 = vsel %vm7295_vm4, %v5906_v58, %v3032_v56  ;;  %v3034_v10 = vrot.slane %v3032_v56, 4  ;;  %v6537_v31 = vadd.f32 %v6536_v23, %v6535_v41 }
 0x1ab   : > { %v7179_v9 = vld [vmem:[#allocation3 + $0x3c4] ss:$36 sps:$4 sm:$0xff]   ;;  %v2778_v12 = vsel %vm7321_vm5, %v2773_v46, %v2777_v7  ;;  %v2783_v62 = vrot.slane %v2782_v61, 4  ;;  %3098 = vst [vmem:[#allocation3 + $0x434] sm:$0xf] %v3029_v43  ;;  %v9026_v34 = vadd.f32 %v6534_v54, %v8854_v44  ;;  %v2790_v22 = vshrl.u32 %v9696_v8, 16  ;;  %v6539_v7 = vpop.f32.mrf.mxu1 }
 0x1ac   : > { %3099 = vst [vmem:[#allocation3 + $0x458] sm:$0xf] %v3033_v1  ;;  %v7180_v36 = vld [vmem:[#allocation3 + $0x380] ss:$36 sps:$4 sm:$0xff]   ;;  %2873 = vst [vmem:[#allocation3 + $0x40c] sm:$0xf] %v2778_v12  ;;  %v3036_v6 = vsel %vm7295_vm4, %v3034_v10, %v3035_v26  ;;  %v9033_v57 = vadd.f32 %v6537_v31, %v8888_v4  ;;  %5192 = vmatprep.mubr.bf16.mxu1 %v7179_v9  ;;  %v9040_v41 = vadd.f32 %v6448_v40, %v6447_v30 }
 0x1ad   : > { %v2793_v33 = vshll.u32 %v9696_v8, 16  ;;  %v2788_v51 = vsel %vm7321_vm5, %v2783_v62, %v2787_v20  ;;  %3100 = vst [vmem:[#allocation3 + $0x47c] sm:$0xf] %v3036_v6  ;;  %v2799_v44 = vshll.u32 %v9697_v19, 16  ;;  %v2803_v48 = vshrl.u32 %v9697_v19, 16  ;;  %6877 = vmatprep.mubr.bf16.mxu0 %v7180_v36  ;;  %v6541_v2 = vpop.f32.mrf.mxu1  ;;  %v6450_v8 = vpop.f32.mrf.mxu0 }
 0x1ae   : > { %v2809_v21 = vshll.u32 %v9010_v59, 16  ;;  %2874 = vst [vmem:[#allocation3 + $0x430] sm:$0xf] %v2788_v51  ;;  %v2792_v49 = vrot.slane %v2790_v22, 4  ;;  %v6540_v35 = vadd.f32 %v6539_v7, %v6538_v55  ;;  %6878 = vmatmul.mubr.bf16.gmra.mxu0 %v7181_v29 }
 0x1af   : > { %v2795_v4 = vrot.slane %v2793_v33, 5  ;;  %v2801_v58 = vrot.slane %v2799_v44, 5  ;;  %v2805_v20 = vrot.slane %v2803_v48, 4  ;;  %5193 = vmatmul.mubr.bf16.gmra.mxu1 %v7177_v3  ;;  %v6542_v19 = vpop.f32.mrf.mxu1  ;;  %v6451_v56 = vpop.f32.mrf.mxu0 }
 0x1b0   : > { %v9043_v0 = vadd.f32 %v6540_v35, %v8908_v42  ;;  %v2811_v23 = vrot.slane %v2809_v21, 5  ;;  %v6543_v46 = vadd.f32 %v6542_v19, %v6541_v2  ;;  %v9045_v26 = vadd.f32 %v6451_v56, %v6450_v8  ;;  %v7182_v42 = vld [vmem:[#allocation3 + $0x408] ss:$36 sps:$4 sm:$0xff]   ;;  %v7187_v35 = vld [vmem:[#allocation3 + $0x450] ss:$36 sps:$4 sm:$0xff]  }
 0x1b1   : > { %v2796_v5 = vor.u32 %v2795_v4, %v2792_v49  ;;  %v2806_v59 = vor.u32 %v2805_v20, %v2801_v58  ;;  %v6544_v54 = vpop.f32.mrf.mxu1  ;;  %v6605_v29 = vpop.f32.mrf.mxu0 }
 0x1b2   : > { %v7185_v61 = vld [vmem:[#allocation3 + $0x410] ss:$36 sps:$4 sm:$0xff]   ;;  %v9048_v10 = vadd.f32 %v6543_v46, %v8937_v14 }
 0x1b3   : > { %v2797_v43 = vrot.slane %v2796_v5, 4  ;;  %v2807_v1 = vrot.slane %v2806_v59, 4  ;;  %6881 = vmatprep.mubr.bf16.mxu0 %v7185_v61  ;;  %v6545_v55 = vpop.f32.mrf.mxu1  ;;  %v6606_v62 = vpop.f32.mrf.mxu0 }
 0x1b4   : > { %v7186_v31 = vld [vmem:[#allocation3 + $0x458] ss:$36 sps:$4 sm:$0xff]   ;;  %v6546_v30 = vadd.f32 %v6545_v55, %v6544_v54  ;;  %v6607_v36 = vadd.f32 %v6606_v62, %v6605_v29 }
 0x1b5   : > { %v7184_v3 = vld [vmem:[#allocation3 + $0x40c] ss:$36 sps:$4 sm:$0xff]   ;;  %v2802_v9 = vsel %vm7321_vm5, %v2797_v43, %v2801_v58  ;;  %v2812_v12 = vsel %vm7321_vm5, %v2807_v1, %v2811_v23  ;;  %v6547_v6 = vpop.f32.mrf.mxu1  ;;  %v6608_v14 = vpop.f32.mrf.mxu0 }
 0x1b6   : > { %2875 = vst [vmem:[#allocation3 + $0x454] sm:$0xf] %v2802_v9  ;;  %2876 = vst [vmem:[#allocation3 + $0x478] sm:$0xf] %v2812_v12  ;;  %5200 = vmatprep.mubr.bf16.mxu1 %v7184_v3  ;;  %6882 = vmatmul.mubr.bf16.gmra.mxu0 %v7186_v31  ;;  %v9055_v22 = vadd.f32 %v6546_v30, %v8951_v16  ;;  %v9058_v33 = vadd.f32 %v6607_v36, %v8802_v47 }
 0x1b7   : > { %5201 = vmatmul.mubr.bf16.gmra.mxu1 %v7182_v42  ;;  %v6548_v7 = vpop.f32.mrf.mxu1  ;;  %v6609_v51 = vpop.f32.mrf.mxu0 }
 0x1b8   : > { %v6549_v39 = vadd.f32 %v6548_v7, %v6547_v6  ;;  %v6610_v40 = vadd.f32 %v6609_v51, %v6608_v14 }
 0x1b9   : > { %v6550_v44 = vpop.f32.mrf.mxu1  ;;  %v6611_v48 = vpop.f32.mrf.mxu0 }
 0x1ba   : > { %v9061_v21 = vadd.f32 %v6549_v39, %v8972_v53  ;;  %v9064_v49 = vadd.f32 %v6610_v40, %v8805_v13 }
 0x1bb   : > { %v6551_v4 = vpop.f32.mrf.mxu1  ;;  %v6612_v16 = vpop.f32.mrf.mxu0 }
 0x1bc   : > { %v6552_v2 = vadd.f32 %v6551_v4, %v6550_v44  ;;  %v6613_v58 = vadd.f32 %v6612_v16, %v6611_v48 }
 0x1bd   : > { %v7189_v8 = vld [vmem:[#allocation3 + $0x454] ss:$36 sps:$4 sm:$0xff]   ;;  %v6553_v47 = vpop.f32.mrf.mxu1  ;;  %v6614_v20 = vpop.f32.mrf.mxu0 }
 0x1be   : > { %v9067_v5 = vadd.f32 %v6552_v2, %v8979_v32  ;;  %5208 = vmatprep.mubr.bf16.mxu1 %v7189_v8  ;;  %v9070_v19 = vadd.f32 %v6613_v58, %v8852_v52 }
 0x1bf   : > { %v6554_v53 = vpop.f32.mrf.mxu1  ;;  %5209 = vmatmul.mubr.bf16.gmra.mxu1 %v7187_v35  ;;  %v6615_v56 = vpop.f32.mrf.mxu0 }
 0x1c0   : > { %v6555_v13 = vadd.f32 %v6554_v53, %v6553_v47  ;;  %v6616_v59 = vadd.f32 %v6615_v56, %v6614_v20  ;;  %v9699_v47 = vld [vmem:[#allocation8_spill] sm:$0xff]  ;;  %v9700_v20 = vld [vmem:[#allocation9_spill] sm:$0xff] }
 0x1c1   : > { %v6556_v23 = vpop.f32.mrf.mxu1  ;;  %v6617_v46 = vpop.f32.mrf.mxu0 }
 0x1c2   : > { %v9073_v61 = vadd.f32 %v6555_v13, %v8999_v28  ;;  %v9076_v54 = vadd.f32 %v6616_v59, %v8870_v11 }
 0x1c3   : > { %v6557_v43 = vpop.f32.mrf.mxu1  ;;  %v6618_v32 = vpop.f32.mrf.mxu0 }
 0x1c4   : > { %v6558_v1 = vadd.f32 %v6557_v43, %v6556_v23  ;;  %v6619_v29 = vadd.f32 %v6618_v32, %v6617_v46 }
 0x1c5   : > { %v6559_v31 = vpop.f32.mrf.mxu1  ;;  %v6620_v52 = vpop.f32.mrf.mxu0 }
 0x1c6   : > { %v9079_v55 = vadd.f32 %v6558_v1, %v9013_v17  ;;  %v9082_v42 = vadd.f32 %v6619_v29, %v8880_v60 }
 0x1c7   : > { %v6560_v3 = vpop.f32.mrf.mxu1  ;;  %v6621_v9 = vpop.f32.mrf.mxu0 }
 0x1c8   : > { %v6561_v12 = vadd.f32 %v6560_v3, %v6559_v31  ;;  %v6622_v28 = vadd.f32 %v6621_v9, %v6620_v52  ;;  %v9701_v52 = vld [vmem:[#allocation22_spill] sm:$0xff] }
 0x1c9   : > { %v6562_v62 = vpop.f32.mrf.mxu1  ;;  %v6623_v30 = vpop.f32.mrf.mxu0 }
 0x1ca   : > { %v9085_v11 = vadd.f32 %v6561_v12, %v9040_v41  ;;  %v9088_v36 = vadd.f32 %v6622_v28, %v8891_v18  ;;  %v9698_v18 = vld [vmem:[#allocation7_spill] sm:$0xff] }
 0x1cb   : > { %v6563_v6 = vpop.f32.mrf.mxu1  ;;  %v6624_v14 = vpop.f32.mrf.mxu0  ;;  %v9702_v28 = vld [vmem:[#allocation23_spill] sm:$0xff] }
 0x1cc   : > { %v6564_v7 = vadd.f32 %v6563_v6, %v6562_v62  ;;  %v6625_v17 = vadd.f32 %v6624_v14, %v6623_v30  ;;  %v9703_v62 = vld [vmem:[#allocation24_spill] sm:$0xff] }
 0x1cd   : > { %v6565_v51 = vpop.f32.mrf.mxu1  ;;  %v6626_v39 = vpop.f32.mrf.mxu0  ;;  %v6464_v30 = vadd.f32 %v9703_v62, %v9702_v28 }
 0x1ce   : > { %v9091_v60 = vadd.f32 %v6564_v7, %v9045_v26  ;;  %v9094_v40 = vadd.f32 %v6625_v17, %v8906_v27  ;;  %v6458_v26 = vadd.f32 %v9700_v20, %v9699_v47 }
 0x1cf   : > { %v6566_v44 = vpop.f32.mrf.mxu1  ;;  %v6627_v48 = vpop.f32.mrf.mxu0 }
 0x1d0   : > { %v6567_v4 = vadd.f32 %v6566_v44, %v6565_v51  ;;  %v6628_v41 = vadd.f32 %v6627_v48, %v6626_v39 }
 0x1d1   : > { %v6568_v35 = vpop.f32.mrf.mxu1  ;;  %v6629_v16 = vpop.f32.mrf.mxu0 }
 0x1d2   : > { %v9097_v2 = vadd.f32 %v6567_v4, %v9698_v18  ;;  %v9100_v8 = vadd.f32 %v6628_v41, %v8924_v45 }
 0x1d3   : > { %v6569_v58 = vpop.f32.mrf.mxu1  ;;  %v6630_v53 = vpop.f32.mrf.mxu0 }
 0x1d4   : > { %v6570_v56 = vadd.f32 %v6569_v58, %v6568_v35  ;;  %v6631_v27 = vadd.f32 %v6630_v53, %v6629_v16  ;;  %v9704_v16 = vld [vmem:[#allocation11_spill] sm:$0xff] }
 0x1d5   : > { %v6571_v13 = vpop.f32.mrf.mxu1  ;;  %v6632_v59 = vpop.f32.mrf.mxu0 }
 0x1d6   : > { %v9104_v23 = vadd.f32 %v6570_v56, %v6458_v26  ;;  %v9107_v46 = vadd.f32 %v6631_v27, %v8941_v63  ;;  %v9705_v27 = vld [vmem:[#allocation12_spill] sm:$0xff] }
 0x1d7   : > { %v6572_v43 = vpop.f32.mrf.mxu1  ;;  %v6633_v32 = vpop.f32.mrf.mxu0 }
 0x1d8   : > { %v6573_v1 = vadd.f32 %v6572_v43, %v6571_v13  ;;  %v6634_v29 = vadd.f32 %v6633_v32, %v6632_v59 }
 0x1d9   : > { %v6574_v45 = vpop.f32.mrf.mxu1  ;;  %v6635_v31 = vpop.f32.mrf.mxu0 }
 0x1da   : > { %v9110_v3 = vadd.f32 %v6573_v1, %v9701_v52  ;;  %v9113_v9 = vadd.f32 %v6634_v29, %v8965_v25 }
 0x1db   : > { %v6575_v12 = vpop.f32.mrf.mxu1  ;;  %v6636_v6 = vpop.f32.mrf.mxu0 }
 0x1dc   : > { %v6576_v14 = vadd.f32 %v6575_v12, %v6574_v45  ;;  %v6637_v63 = vadd.f32 %v6636_v6, %v6635_v31 }
 0x1dd   : > { %v6577_v7 = vpop.f32.mrf.mxu1  ;;  %v6638_v17 = vpop.f32.mrf.mxu0 }
 0x1de   : > { %v9117_v51 = vadd.f32 %v6576_v14, %v6464_v30  ;;  %v9120_v39 = vadd.f32 %v6637_v63, %v8986_v24 }
 0x1df   : > { %v6578_v44 = vpop.f32.mrf.mxu1  ;;  %v6639_v48 = vpop.f32.mrf.mxu0 }
 0x1e0   : > { %v6579_v4 = vadd.f32 %v6578_v44, %v6577_v7  ;;  %v6640_v41 = vadd.f32 %v6639_v48, %v6638_v17 }
 0x1e1   : > { %v6580_v25 = vpop.f32.mrf.mxu1  ;;  %v6641_v35 = vpop.f32.mrf.mxu0 }
 0x1e2   : > { %v9123_v18 = vadd.f32 %v6579_v4, %v9704_v16  ;;  %v9126_v58 = vadd.f32 %v6640_v41, %v9002_v50 }
 0x1e3   : > { %v6581_v47 = vpop.f32.mrf.mxu1  ;;  %v6642_v20 = vpop.f32.mrf.mxu0 }
 0x1e4   : > { %v6582_v26 = vadd.f32 %v6581_v47, %v6580_v25  ;;  %v6643_v53 = vadd.f32 %v6642_v20, %v6641_v35 }
 0x1e5   : > { %v6644_v56 = vpop.f32.mrf.mxu0 }
 0x1e6   : > { %v9129_v24 = vadd.f32 %v6582_v26, %v9705_v27  ;;  %v9132_v13 = vadd.f32 %v6643_v53, %v9008_v38 }
 0x1e7   : > { %v6645_v59 = vpop.f32.mrf.mxu0 }
 0x1e8   : > { %v6646_v43 = vadd.f32 %v6645_v59, %v6644_v56 }
 0x1e9   : > { %v6647_v32 = vpop.f32.mrf.mxu0 }
 0x1ea   : > { %v9135_v1 = vadd.f32 %v6646_v43, %v9026_v34 }
 0x1eb   : > { %v6648_v29 = vpop.f32.mrf.mxu0 }
 0x1ec   : > { %v6649_v50 = vadd.f32 %v6648_v29, %v6647_v32  ;;  %v6583_v45 = vpop.f32.mrf.mxu1 }
 0x1ed   : > { %v6650_v31 = vpop.f32.mrf.mxu0 }
 0x1ee   : > { %v9138_v52 = vadd.f32 %v6649_v50, %v9033_v57  ;;  %v6584_v12 = vpop.f32.mrf.mxu1 }
 0x1ef   : > { %v6651_v28 = vpop.f32.mrf.mxu0  ;;  %v6585_v62 = vadd.f32 %v6584_v12, %v6583_v45 }
 0x1f0   : > { %v6652_v30 = vadd.f32 %v6651_v28, %v6650_v31  ;;  %v6586_v6 = vpop.f32.mrf.mxu1 }
 0x1f1   : > { %v6653_v38 = vpop.f32.mrf.mxu0  ;;  %v9141_v14 = vadd.f32 %v6585_v62, %v8757_v37 }
 0x1f2   : > { %v9144_v63 = vadd.f32 %v6652_v30, %v9043_v0  ;;  %v6587_v34 = vpop.f32.mrf.mxu1 }
 0x1f3   : > { %v6654_v7 = vpop.f32.mrf.mxu0  ;;  %v6588_v17 = vadd.f32 %v6587_v34, %v6586_v6 }
 0x1f4   : > { %v6655_v44 = vadd.f32 %v6654_v7, %v6653_v38  ;;  %v9146_v48 = vpop.f32.mrf.mxu1 }
 0x1f5   : > { %v6656_v57 = vpop.f32.mrf.mxu0  ;;  %v9149_v4 = vadd.f32 %v6588_v17, %v8775_v15 }
 0x1f6   : > { %v9152_v41 = vadd.f32 %v6655_v44, %v9048_v10  ;;  %v9154_v25 = vpop.f32.mrf.mxu1 }
 0x1f7   : > { %v6657_v37 = vpop.f32.mrf.mxu0 }
 0x1f8   : > { %v6658_v35 = vadd.f32 %v6657_v37, %v6656_v57  ;;  %v9156_v16 = vpop.f32.mrf.mxu1 }
 0x1f9   : > { %v6659_v0 = vpop.f32.mrf.mxu0 }
 0x1fa   : > { %v9159_v47 = vadd.f32 %v6658_v35, %v9055_v22  ;;  %v9161_v53 = vpop.f32.mrf.mxu1 }
 0x1fb   : > { %v6660_v20 = vpop.f32.mrf.mxu0 }
 0x1fc   : > { %v6661_v26 = vadd.f32 %v6660_v20, %v6659_v0 }
 0x1fd   : > { %v6662_v56 = vpop.f32.mrf.mxu0 }
 0x1fe   : > { %v9164_v15 = vadd.f32 %v6661_v26, %v9061_v21 }
 0x1ff   : > { %v6663_v10 = vpop.f32.mrf.mxu0 }
 0x200   : > { %v6664_v27 = vadd.f32 %v6663_v10, %v6662_v56 }
 0x201   : > { %v9166_v59 = vpop.f32.mrf.mxu1  ;;  %v6665_v43 = vpop.f32.mrf.mxu0 }
 0x202   : > { %v9169_v32 = vadd.f32 %v6664_v27, %v9067_v5 }
 0x203   : > { %v9171_v29 = vpop.f32.mrf.mxu1  ;;  %v6666_v22 = vpop.f32.mrf.mxu0 }
 0x204   : > { %v6667_v50 = vadd.f32 %v6666_v22, %v6665_v43 }
 0x205   : > { %v9173_v45 = vpop.f32.mrf.mxu1  ;;  %v6668_v31 = vpop.f32.mrf.mxu0 }
 0x206   : > { %v9176_v12 = vadd.f32 %v6667_v50, %v9073_v61 }
 0x207   : > { %v6669_v21 = vpop.f32.mrf.mxu0  ;;  %v6727_v28 = vpop.f32.mrf.mxu1 }
 0x208   : > { %v6670_v62 = vadd.f32 %v6669_v21, %v6668_v31 }
 0x209   : > { %v6671_v30 = vpop.f32.mrf.mxu0 }
 0x20a   : > { %v9179_v6 = vadd.f32 %v6670_v62, %v9079_v55 }
 0x20b   : > { %v6672_v5 = vpop.f32.mrf.mxu0 }
 0x20c   : > { %v9181_v38 = vpop.f32.mrf.mxu1  ;;  %v6673_v34 = vadd.f32 %v6672_v5, %v6671_v30 }
 0x20d   : > { %v6674_v17 = vpop.f32.mrf.mxu0 }
 0x20e   : > { %v9183_v7 = vpop.f32.mrf.mxu1  ;;  %v9186_v44 = vadd.f32 %v6673_v34, %v9085_v11 }
 0x20f   : > { %v6675_v61 = vpop.f32.mrf.mxu0 }
 0x210   : > { %v9188_v57 = vpop.f32.mrf.mxu1  ;;  %v6676_v37 = vadd.f32 %v6675_v61, %v6674_v17 }
 0x211   : > { %v6677_v35 = vpop.f32.mrf.mxu0 }
 0x212   : > { %v9191_v0 = vadd.f32 %v6676_v37, %v9091_v60  ;;  %v9193_v55 = vpop.f32.mrf.mxu1 }
 0x213   : > { %v6678_v20 = vpop.f32.mrf.mxu0 }
 0x214   : > { %v6679_v26 = vadd.f32 %v6678_v20, %v6677_v35 }
 0x215   : > { %v6680_v56 = vpop.f32.mrf.mxu0 }
 0x216   : > { %v9196_v10 = vadd.f32 %v6679_v26, %v9097_v2 }
 0x217   : > { %v6735_v27 = vpop.f32.mrf.mxu1  ;;  %v6681_v43 = vpop.f32.mrf.mxu0 }
 0x218   : > { %9706 = vst [vmem:[#allocation4_spill] sm:$0xff] %v9196_v10  ;;  %v6682_v11 = vadd.f32 %v6681_v43, %v6680_v56 }
 0x219   : > { %v6736_v22 = vpop.f32.mrf.mxu1 }
 0x21a   : > { %v9199_v50 = vadd.f32 %v6682_v11, %v9104_v23 }
 0x21b   : > { %v6683_v31 = vpop.f32.mrf.mxu0  ;;  %v6738_v21 = vpop.f32.mrf.mxu1 }
 0x21c   : > { %9707 = vst [vmem:[#allocation5_spill] sm:$0xff] %v9199_v50 }
 0x21d   : > { %v6684_v62 = vpop.f32.mrf.mxu0  ;;  %v6739_v60 = vpop.f32.mrf.mxu1 }
 0x21e   : > { %v6685_v30 = vadd.f32 %v6684_v62, %v6683_v31 }
 0x21f   : > { %v6686_v5 = vpop.f32.mrf.mxu0 }
 0x220   : > { %v9202_v34 = vadd.f32 %v6685_v30, %v9110_v3 }
 0x221   : > { %v6687_v17 = vpop.f32.mrf.mxu0 }
 0x222   : > { %9708 = vst [vmem:[#allocation10_spill] sm:$0xff] %v9202_v34  ;;  %v9204_v61 = vpop.f32.mrf.mxu1  ;;  %v6688_v2 = vadd.f32 %v6687_v17, %v6686_v5 }
 0x224   : > { %v9206_v37 = vpop.f32.mrf.mxu1  ;;  %v9209_v35 = vadd.f32 %v6688_v2, %v9117_v51  ;;  %v6689_v23 = vpop.f32.mrf.mxu0 }
 0x226   : > { %9709 = vst [vmem:[#allocation6_spill] sm:$0xff] %v9209_v35  ;;  %v9211_v20 = vpop.f32.mrf.mxu1  ;;  %v6690_v26 = vpop.f32.mrf.mxu0 }
 0x227   : > { %v6691_v56 = vadd.f32 %v6690_v26, %v6689_v23 }
 0x228   : > { %v9213_v43 = vpop.f32.mrf.mxu1  ;;  %v6692_v11 = vpop.f32.mrf.mxu0 }
 0x229   : > { %v9216_v3 = vadd.f32 %v6691_v56, %v9123_v18 }
 0x22a   : > { %v6693_v31 = vpop.f32.mrf.mxu0 }
 0x22b   : > { %9710 = vst [vmem:[#allocation13_spill] sm:$0xff] %v9216_v3  ;;  %v6694_v62 = vadd.f32 %v6693_v31, %v6692_v11  ;;  %v6728_v31 = vadd.f32 %v6727_v28, %v9173_v45 }
 0x22c   : > { %v6747_v30 = vpop.f32.mrf.mxu1 }
 0x22d   : > { %v9219_v5 = vadd.f32 %v6694_v62, %v9129_v24  ;;  %v6725_v24 = vadd.f32 %v9171_v29, %v9166_v59  ;;  %v5102_v45 = vadd.f32 %v6728_v31, %v9076_v54  ;;  %v6740_v54 = vadd.f32 %v6739_v60, %v6738_v21 }
 0x22e   : > { %v6748_v17 = vpop.f32.mrf.mxu1  ;;  %v6731_v31 = vadd.f32 %v9183_v7, %v9181_v38 }
 0x22f   : > { %9711 = vst [vmem:[#allocation14_spill] sm:$0xff] %v9219_v5  ;;  %v5099_v59 = vadd.f32 %v6725_v24, %v9070_v19  ;;  %v5118_v7 = vadd.f32 %v6740_v54, %v9100_v8  ;;  %v6743_v54 = vadd.f32 %v9206_v37, %v9204_v61 }
 0x230   : > { %v6750_v51 = vpop.f32.mrf.mxu1 }
 0x232   : > { %v6751_v2 = vpop.f32.mrf.mxu1 }
 0x235   : > { %v6695_v35 = vpop.f32.mrf.mxu0 }
 0x237   : > { %v9221_v34 = vpop.f32.mrf.mxu1  ;;  %v6696_v50 = vpop.f32.mrf.mxu0 }
 0x238   : > { %v6697_v23 = vadd.f32 %v6696_v50, %v6695_v35  ;;  %v6719_v50 = vadd.f32 %v9154_v25, %v9146_v48 }
 0x239   : > { %v9223_v26 = vpop.f32.mrf.mxu1  ;;  %v6698_v10 = vpop.f32.mrf.mxu0 }
 0x23a   : > { %v9226_v18 = vadd.f32 %v6697_v23, %v9141_v14  ;;  %v6722_v14 = vadd.f32 %v9161_v53, %v9156_v16 }
 0x23b   : > { %v9228_v56 = vpop.f32.mrf.mxu1  ;;  %v6699_v11 = vpop.f32.mrf.mxu0 }
 0x23c   : > { %9712 = vst [vmem:[#allocation15_spill] sm:$0xff] %v9226_v18  ;;  %v6700_v62 = vadd.f32 %v6699_v11, %v6698_v10  ;;  %v5091_v11 = vadd.f32 %v6719_v50, %v9058_v33  ;;  %v5094_v16 = vadd.f32 %v6722_v14, %v9064_v49  ;;  %v6734_v49 = vadd.f32 %v9193_v55, %v9188_v57 }
 0x23d   : > { %v9233_v5 = vpop.f32.mrf.mxu1  ;;  %v6855_v3 = vpop.f32.mrf.mxu0  ;;  %v5107_v57 = vadd.f32 %v6731_v31, %v9082_v42 }
 0x23e   : > { %v9240_v35 = vadd.f32 %v6700_v62, %v9149_v4  ;;  %v5260_v10 = vadd.f32 %v6855_v3, %v5099_v59  ;;  %v6737_v4 = vadd.f32 %v6736_v22, %v6735_v27  ;;  %v5110_v14 = vadd.f32 %v6734_v49, %v9088_v36 }
 0x23f   : > { %v9242_v23 = vpop.f32.mrf.mxu1  ;;  %v5251_v18 = vpop.f32.mrf.mxu0 }
 0x240   : > { %v5252_v53 = vadd.f32 %v5251_v18, %v5091_v11  ;;  %v5115_v18 = vadd.f32 %v6737_v4, %v9094_v40  ;;  %v6749_v11 = vadd.f32 %v6748_v17, %v6747_v30 }
 0x241   : > { %v9245_v29 = vpop.f32.mrf.mxu1  ;;  %v6856_v28 = vpop.f32.mrf.mxu0 }
 0x242   : > { %v5263_v25 = vadd.f32 %v6856_v28, %v5102_v45  ;;  %v5131_v61 = vadd.f32 %v6749_v11, %v9120_v39  ;;  %v6761_v39 = vadd.f32 %v9245_v29, %v9242_v23  ;;  %v6758_v23 = vadd.f32 %v9233_v5, %v9228_v56 }
 0x243   : > { %v9249_v48 = vpop.f32.mrf.mxu1  ;;  %v5254_v19 = vpop.f32.mrf.mxu0 }
 0x244   : > { %v9259_v3 = vpack.c.bf16 %v5263_v25, %v5260_v10  ;;  %v5255_v24 = vadd.f32 %v5254_v19, %v5094_v16  ;;  %v6752_v25 = vadd.f32 %v6751_v2, %v6750_v51  ;;  %v5147_v5 = vadd.f32 %v6761_v39, %v9138_v52 }
 0x245   : > { %v6763_v33 = vpop.f32.mrf.mxu1  ;;  %v6859_v27 = vpop.f32.mrf.mxu0 }
 0x246   : > { %6350 = vst [vmem:[%s9257_s9 + $0x8] sm:$0xff] %v9259_v3   ;;  %v9267_v22 = vpack.c.bf16 %v5255_v24, %v5252_v53  ;;  %v5396_v59 = vunpack.c.l.bf16 %v9259_v3  ;;  %v5276_v28 = vadd.f32 %v6859_v27, %v5115_v18  ;;  %v6746_v53 = vadd.f32 %v9213_v43, %v9211_v20 }
 0x247   : > { %v9269_v62 = vpop.f32.mrf.mxu1  ;;  %v5267_v50 = vpop.f32.mrf.mxu0  ;;  %v5397_v30 = vunpack.c.h.bf16 %v9259_v3  ;;  %v5134_v20 = vadd.f32 %v6752_v25, %v9126_v58  ;;  %v5123_v43 = vadd.f32 %v6743_v54, %v9107_v46 }
 0x248   : > { %v5394_v21 = vunpack.c.l.bf16 %v9267_v22  ;;  %v5395_v60 = vunpack.c.h.bf16 %v9267_v22  ;;  %6259 = vst [vmem:[%s9257_s9] sm:$0xff] %v9267_v22   ;;  %v5268_v36 = vadd.f32 %v5267_v50, %v5107_v57  ;;  %v5126_v50 = vadd.f32 %v6746_v53, %v9113_v9 }
 0x249   : > { %v9276_v38 = vpop.f32.mrf.mxu1  ;;  %v6860_v55 = vpop.f32.mrf.mxu0 }
 0x24a   : > { %v5426_v45 = vadd.f32 %v5395_v60, %v5394_v21  ;;  %v5279_v40 = vadd.f32 %v6860_v55, %v5118_v7 }
 0x24b   : > { %v9286_v10 = vpop.f32.mrf.mxu1  ;;  %v5270_v8 = vpop.f32.mrf.mxu0 }
 0x24c   : > { %v5427_v42 = vadd.f32 %v5426_v45, %v5396_v59  ;;  %v9290_v16 = vpack.c.bf16 %v5279_v40, %v5276_v28  ;;  %v5271_v19 = vadd.f32 %v5270_v8, %v5110_v14  ;;  %v6764_v45 = vadd.f32 %v6763_v33, %v9249_v48 }
 0x24d   : > { %v9292_v4 = vpop.f32.mrf.mxu1  ;;  %v6863_v24 = vpop.f32.mrf.mxu0  ;;  %v6755_v8 = vadd.f32 %v9223_v26, %v9221_v34 }
 0x24e   : > { %6352 = vst [vmem:[%s9257_s9 + $0x18] sm:$0xff] %v9290_v16   ;;  %v9301_v17 = vpack.c.bf16 %v5271_v19, %v5268_v36  ;;  %v5428_v49 = vadd.f32 %v5427_v42, %v5397_v30  ;;  %v5292_v57 = vadd.f32 %v6863_v24, %v5131_v61  ;;  %v5400_v58 = vunpack.c.l.bf16 %v9290_v16 }
 0x24f   : > { %v6771_v51 = vpop.f32.mrf.mxu1  ;;  %v5283_v2 = vpop.f32.mrf.mxu0  ;;  %v5401_v48 = vunpack.c.h.bf16 %v9290_v16  ;;  %v5150_v56 = vadd.f32 %v6764_v45, %v9144_v63  ;;  %v5139_v53 = vadd.f32 %v6755_v8, %v9132_v13  ;;  %v6767_v45 = vadd.f32 %v9276_v38, %v9269_v62 }
 0x250   : > { %v5398_v31 = vunpack.c.l.bf16 %v9301_v17  ;;  %6351 = vst [vmem:[%s9257_s9 + $0x10] sm:$0xff] %v9301_v17   ;;  %v5399_v18 = vunpack.c.h.bf16 %v9301_v17  ;;  %v5284_v28 = vadd.f32 %v5283_v2, %v5123_v43  ;;  %v5142_v2 = vadd.f32 %v6758_v23, %v9135_v1 }
 0x251   : > { %v6772_v37 = vpop.f32.mrf.mxu1  ;;  %v6864_v27 = vpop.f32.mrf.mxu0  ;;  %v5155_v8 = vadd.f32 %v6767_v45, %v9152_v41 }
 0x252   : > { %v5429_v7 = vadd.f32 %v5428_v49, %v5398_v31  ;;  %v5295_v14 = vadd.f32 %v6864_v27, %v5134_v20 }
 0x253   : > { %v6774_v55 = vpop.f32.mrf.mxu1  ;;  %v5286_v46 = vpop.f32.mrf.mxu0 }
 0x254   : > { %v5430_v9 = vadd.f32 %v5429_v7, %v5399_v18  ;;  %v9321_v40 = vpack.c.bf16 %v5295_v14, %v5292_v57  ;;  %v5287_v25 = vadd.f32 %v5286_v46, %v5126_v50  ;;  %v6773_v50 = vadd.f32 %v6772_v37, %v6771_v51 }
 0x255   : > { %v6775_v11 = vpop.f32.mrf.mxu1  ;;  %v6867_v29 = vpop.f32.mrf.mxu0  ;;  %v6770_v46 = vadd.f32 %v9292_v4, %v9286_v10 }
 0x256   : > { %v5431_v33 = vadd.f32 %v5430_v9, %v5400_v58  ;;  %6354 = vst [vmem:[%s9257_s9 + $0x28] sm:$0xff] %v9321_v40   ;;  %v9332_v42 = vpack.c.bf16 %v5287_v25, %v5284_v28  ;;  %v5308_v20 = vadd.f32 %v6867_v29, %v5147_v5  ;;  %v5404_v52 = vunpack.c.l.bf16 %v9321_v40 }
 0x257   : > { %v6777_v36 = vpop.f32.mrf.mxu1  ;;  %v5299_v19 = vpop.f32.mrf.mxu0  ;;  %v6776_v7 = vadd.f32 %v6775_v11, %v6774_v55  ;;  %v5405_v37 = vunpack.c.h.bf16 %v9321_v40  ;;  %v5163_v38 = vadd.f32 %v6773_v50, %v9164_v15  ;;  %v5158_v29 = vadd.f32 %v6770_v46, %v9159_v47 }
 0x258   : > { %v5402_v54 = vunpack.c.l.bf16 %v9332_v42  ;;  %v5432_v34 = vadd.f32 %v5431_v33, %v5401_v48  ;;  %6353 = vst [vmem:[%s9257_s9 + $0x20] sm:$0xff] %v9332_v42   ;;  %v5403_v49 = vunpack.c.h.bf16 %v9332_v42  ;;  %v5300_v63 = vadd.f32 %v5299_v19, %v5139_v53 }
 0x259   : > { %v6778_v26 = vpop.f32.mrf.mxu1  ;;  %v6868_v24 = vpop.f32.mrf.mxu0  ;;  %v5166_v4 = vadd.f32 %v6776_v7, %v9169_v32 }
 0x25a   : > { %v5433_v61 = vadd.f32 %v5432_v34, %v5402_v54  ;;  %v5311_v27 = vadd.f32 %v6868_v24, %v5150_v56 }
 0x25b   : > { %v6780_v43 = vpop.f32.mrf.mxu1  ;;  %v5302_v57 = vpop.f32.mrf.mxu0 }
 0x25c   : > { %v5434_v13 = vadd.f32 %v5433_v61, %v5403_v49  ;;  %v9349_v1 = vpack.c.bf16 %v5311_v27, %v5308_v20  ;;  %v5303_v39 = vadd.f32 %v5302_v57, %v5142_v2  ;;  %v6779_v20 = vadd.f32 %v6778_v26, %v6777_v36 }
 0x25d   : > { %v6781_v14 = vpop.f32.mrf.mxu1  ;;  %v6871_v51 = vpop.f32.mrf.mxu0 }
 0x25e   : > { %v5435_v55 = vadd.f32 %v5434_v13, %v5404_v52  ;;  %6356 = vst [vmem:[%s9257_s9 + $0x38] sm:$0xff] %v9349_v1   ;;  %v9360_v9 = vpack.c.bf16 %v5303_v39, %v5300_v63  ;;  %v5324_v34 = vadd.f32 %v6871_v51, %v5163_v38  ;;  %v5408_v53 = vunpack.c.l.bf16 %v9349_v1 }
 0x25f   : > { %v6783_v28 = vpop.f32.mrf.mxu1  ;;  %v5315_v11 = vpop.f32.mrf.mxu0  ;;  %v6782_v27 = vadd.f32 %v6781_v14, %v6780_v43  ;;  %v5409_v57 = vunpack.c.h.bf16 %v9349_v1  ;;  %v5171_v14 = vadd.f32 %v6779_v20, %v9176_v12 }
 0x260   : > { %v5406_v25 = vunpack.c.l.bf16 %v9360_v9  ;;  %v5436_v62 = vadd.f32 %v5435_v55, %v5405_v37  ;;  %6355 = vst [vmem:[%s9257_s9 + $0x30] sm:$0xff] %v9360_v9   ;;  %v5407_v33 = vunpack.c.h.bf16 %v9360_v9  ;;  %v5316_v15 = vadd.f32 %v5315_v11, %v5155_v8 }
 0x261   : > { %v6784_v10 = vpop.f32.mrf.mxu1  ;;  %v6872_v23 = vpop.f32.mrf.mxu0 }
 0x262   : > { %v5437_v19 = vadd.f32 %v5436_v62, %v5406_v25  ;;  %v5327_v56 = vadd.f32 %v6872_v23, %v5166_v4  ;;  %v6785_v41 = vadd.f32 %v6784_v10, %v6783_v28  ;;  %v5174_v28 = vadd.f32 %v6782_v27, %v9179_v6 }
 0x263   : > { %v6786_v5 = vpop.f32.mrf.mxu1  ;;  %v5318_v24 = vpop.f32.mrf.mxu0 }
 0x264   : > { %v5438_v32 = vadd.f32 %v5437_v19, %v5407_v33  ;;  %v9377_v2 = vpack.c.bf16 %v5327_v56, %v5324_v34  ;;  %v5319_v61 = vadd.f32 %v5318_v24, %v5158_v29  ;;  %v5179_v36 = vadd.f32 %v6785_v41, %v9186_v44 }
 0x265   : > { %v6787_v47 = vpop.f32.mrf.mxu1  ;;  %v6875_v7 = vpop.f32.mrf.mxu0 }
 0x266   : > { %v6788_v50 = vadd.f32 %v6787_v47, %v6786_v5  ;;  %v5439_v13 = vadd.f32 %v5438_v32, %v5408_v53  ;;  %6358 = vst [vmem:[%s9257_s9 + $0x48] sm:$0xff] %v9377_v2   ;;  %v9384_v63 = vpack.c.bf16 %v5319_v61, %v5316_v15  ;;  %v5340_v38 = vadd.f32 %v6875_v7, %v5179_v36  ;;  %v9714_v36 = vld [vmem:[#allocation5_spill] sm:$0xff] }
 0x267   : > { %v6789_v39 = vpop.f32.mrf.mxu1  ;;  %v5331_v45 = vpop.f32.mrf.mxu0  ;;  %v5412_v8 = vunpack.c.l.bf16 %v9377_v2  ;;  %v5413_v19 = vunpack.c.h.bf16 %v9377_v2 }
 0x268   : > { %v5410_v46 = vunpack.c.l.bf16 %v9384_v63  ;;  %v5440_v51 = vadd.f32 %v5439_v13, %v5409_v57  ;;  %6357 = vst [vmem:[%s9257_s9 + $0x40] sm:$0xff] %v9384_v63   ;;  %v5182_v43 = vadd.f32 %v6788_v50, %v9191_v0  ;;  %v5411_v11 = vunpack.c.h.bf16 %v9384_v63 }
 0x269   : > { %v6790_v26 = vpop.f32.mrf.mxu1  ;;  %v6876_v55 = vpop.f32.mrf.mxu0  ;;  %v5332_v12 = vadd.f32 %v5331_v45, %v5171_v14 }
 0x26a   : > { %v5441_v62 = vadd.f32 %v5440_v51, %v5410_v46  ;;  %v5343_v4 = vadd.f32 %v6876_v55, %v5182_v43  ;;  %v6791_v56 = vadd.f32 %v6790_v26, %v6789_v39  ;;  %v9713_v39 = vld [vmem:[#allocation4_spill] sm:$0xff] }
 0x26b   : > { %v6792_v10 = vpop.f32.mrf.mxu1  ;;  %v5334_v44 = vpop.f32.mrf.mxu0 }
 0x26c   : > { %v5442_v0 = vadd.f32 %v5441_v62, %v5411_v11  ;;  %v9401_v23 = vpack.c.bf16 %v5343_v4, %v5340_v38  ;;  %v5335_v29 = vadd.f32 %v5334_v44, %v5174_v28  ;;  %v5187_v45 = vadd.f32 %v6791_v56, %v9713_v39  ;;  %v9716_v56 = vld [vmem:[#allocation6_spill] sm:$0xff] }
 0x26d   : > { %v6793_v6 = vpop.f32.mrf.mxu1 }
 0x26e   : > { %v6879_v34 = vpop.f32.mrf.mxu0  ;;  %v5443_v5 = vadd.f32 %v5442_v0, %v5412_v8  ;;  %6360 = vst [vmem:[%s9257_s9 + $0x58] sm:$0xff] %v9401_v23   ;;  %v6794_v15 = vadd.f32 %v6793_v6, %v6792_v10  ;;  %v9408_v24 = vpack.c.bf16 %v5335_v29, %v5332_v12  ;;  %v5416_v14 = vunpack.c.l.bf16 %v9401_v23  ;;  %v9715_v10 = vld [vmem:[#allocation10_spill] sm:$0xff] }
 0x26f   : > { %v6795_v32 = vpop.f32.mrf.mxu1  ;;  %v5417_v12 = vunpack.c.h.bf16 %v9401_v23 }
 0x270   : > { %v5347_v41 = vpop.f32.mrf.mxu0  ;;  %v5414_v47 = vunpack.c.l.bf16 %v9408_v24  ;;  %v5444_v61 = vadd.f32 %v5443_v5, %v5413_v19  ;;  %6359 = vst [vmem:[%s9257_s9 + $0x50] sm:$0xff] %v9408_v24   ;;  %v5415_v7 = vunpack.c.h.bf16 %v9408_v24  ;;  %v5190_v26 = vadd.f32 %v6794_v15, %v9714_v36 }
 0x271   : > { %v6796_v20 = vpop.f32.mrf.mxu1  ;;  %v5348_v28 = vadd.f32 %v5347_v41, %v5187_v45 }
 0x272   : > { %v6797_v27 = vadd.f32 %v6796_v20, %v6795_v32  ;;  %v6880_v50 = vpop.f32.mrf.mxu0  ;;  %v5445_v13 = vadd.f32 %v5444_v61, %v5414_v47 }
 0x273   : > { %v6798_v51 = vpop.f32.mrf.mxu1 }
 0x274   : > { %v5350_v43 = vpop.f32.mrf.mxu0  ;;  %v5446_v55 = vadd.f32 %v5445_v13, %v5415_v7  ;;  %v5195_v4 = vadd.f32 %v6797_v27, %v9715_v10 }
 0x275   : > { %v6799_v62 = vpop.f32.mrf.mxu1  ;;  %v5351_v38 = vadd.f32 %v5350_v43, %v5190_v26 }
 0x276   : > { %v6800_v44 = vadd.f32 %v6799_v62, %v6798_v51  ;;  %v6883_v0 = vpop.f32.mrf.mxu0  ;;  %v5447_v6 = vadd.f32 %v5446_v55, %v5416_v14  ;;  %v5356_v27 = vadd.f32 %v6879_v34, %v5195_v4  ;;  %v9717_v34 = vld [vmem:[#allocation13_spill] sm:$0xff] }
 0x277   : > { %v9427_v29 = vpack.c.bf16 %v5351_v38, %v5348_v28  ;;  %v6801_v5 = vpop.f32.mrf.mxu1 }
 0x278   : > { %v5198_v15 = vadd.f32 %v6800_v44, %v9716_v56  ;;  %v5448_v41 = vadd.f32 %v5447_v6, %v5417_v12  ;;  %v5363_v20 = vpop.f32.mrf.mxu0  ;;  %v9718_v6 = vld [vmem:[#allocation14_spill] sm:$0xff] }
 0x279   : > { %v5418_v32 = vunpack.c.l.bf16 %v9427_v29  ;;  %6361 = vst [vmem:[%s9257_s9 + $0x60] sm:$0xff] %v9427_v29   ;;  %v6802_v61 = vpop.f32.mrf.mxu1  ;;  %v5419_v45 = vunpack.c.h.bf16 %v9427_v29 }
 0x27a   : > { %v5359_v13 = vadd.f32 %v6880_v50, %v5198_v15  ;;  %v6803_v39 = vadd.f32 %v6802_v61, %v6801_v5  ;;  %v6884_v28 = vpop.f32.mrf.mxu0 }
 0x27b   : > { %v5449_v51 = vadd.f32 %v5448_v41, %v5418_v32  ;;  %v6804_v36 = vpop.f32.mrf.mxu1 }
 0x27c   : > { %v9438_v26 = vpack.c.bf16 %v5359_v13, %v5356_v27  ;;  %v5203_v50 = vadd.f32 %v6803_v39, %v9717_v34  ;;  %v5366_v56 = vpop.f32.mrf.mxu0 }
 0x27d   : > { %v5450_v43 = vadd.f32 %v5449_v51, %v5419_v45  ;;  %v6805_v55 = vpop.f32.mrf.mxu1 }
 0x27e   : > { %v5420_v62 = vunpack.c.l.bf16 %v9438_v26  ;;  %6362 = vst [vmem:[%s9257_s9 + $0x68] sm:$0xff] %v9438_v26   ;;  %v6806_v38 = vadd.f32 %v6805_v55, %v6804_v36  ;;  %v5421_v10 = vunpack.c.h.bf16 %v9438_v26  ;;  %v5364_v15 = vadd.f32 %v5363_v20, %v5203_v50  ;;  %v9719_v55 = vld [vmem:[#allocation15_spill] sm:$0xff] }
 0x27f   : > { %v6807_v44 = vpop.f32.mrf.mxu1 }
 0x280   : > { %v5451_v4 = vadd.f32 %v5450_v43, %v5420_v62  ;;  %v5206_v5 = vadd.f32 %v6806_v38, %v9718_v6 }
 0x281   : > { %v6808_v27 = vpop.f32.mrf.mxu1 }
 0x282   : > { %v5367_v41 = vadd.f32 %v5366_v56, %v5206_v5  ;;  %v5452_v61 = vadd.f32 %v5451_v4, %v5421_v10  ;;  %v6809_v13 = vadd.f32 %v6808_v27, %v6807_v44 }
 0x283   : > { %v6810_v39 = vpop.f32.mrf.mxu1 }
 0x284   : > { %v9452_v51 = vpack.c.bf16 %v5367_v41, %v5364_v15  ;;  %v5211_v34 = vadd.f32 %v6809_v13, %v9719_v55 }
 0x285   : > { %v6811_v43 = vpop.f32.mrf.mxu1 }
 0x286   : > { %v5422_v36 = vunpack.c.l.bf16 %v9452_v51  ;;  %6363 = vst [vmem:[%s9257_s9 + $0x70] sm:$0xff] %v9452_v51   ;;  %v6812_v38 = vadd.f32 %v6811_v43, %v6810_v39  ;;  %v5423_v20 = vunpack.c.h.bf16 %v9452_v51  ;;  %v5372_v6 = vadd.f32 %v6883_v0, %v5211_v34 }
 0x288   : > { %v5453_v50 = vadd.f32 %v5452_v61, %v5422_v36  ;;  %v5214_v4 = vadd.f32 %v6812_v38, %v9240_v35 }
 0x28a   : > { %v5454_v44 = vadd.f32 %v5453_v50, %v5423_v20  ;;  %v5375_v5 = vadd.f32 %v6884_v28, %v5214_v4 }
 0x28c   : > { %v9464_v56 = vpack.c.bf16 %v5375_v5, %v5372_v6 }
 0x28e   : > { %v5424_v15 = vunpack.c.l.bf16 %v9464_v56  ;;  %6364 = vst [vmem:[%s9257_s9 + $0x78] sm:$0xff] %v9464_v56   ;;  %v5425_v41 = vunpack.c.h.bf16 %v9464_v56 }
 0x290   : > { %v5455_v27 = vadd.f32 %v5454_v44, %v5424_v15 }
 0x292   : > { %v5456_v61 = vadd.f32 %v5455_v27, %v5425_v41 }
 0x294   : > { %v5457_v35 = vrot.slane %v5456_v61, 4 }
 0x296   : > { %v5458_v13 = vadd.f32 %v5457_v35, %v5456_v61 }
 0x298   : > { %v5459_v39 = vrot.slane %v5458_v13, 2 }
 0x29a   : > { %v5460_v43 = vadd.f32 %v5459_v39, %v5458_v13 }
 0x29c   : > { %v5461_v0 = vrot.slane %v5460_v43, 1 }
 0x29e   : > { %v5462_v28 = vadd.f32 %v5461_v0, %v5460_v43 }
 0x2a0   : > { %v9474_v55 = vmul.f32 0.00390625, %v5462_v28 }
 0x2a2   : > { %v5465_v34 = vsub.f32 %v5394_v21, %v9474_v55  ;;  %v5466_v38 = vsub.f32 %v5395_v60, %v9474_v55  ;;  %v5467_v50 = vsub.f32 %v5396_v59, %v9474_v55  ;;  %v5468_v6 = vsub.f32 %v5397_v30, %v9474_v55 }
 0x2a3   : > { %v5469_v5 = vsub.f32 %v5398_v31, %v9474_v55  ;;  %v5470_v22 = vsub.f32 %v5399_v18, %v9474_v55  ;;  %v5471_v59 = vsub.f32 %v5400_v58, %v9474_v55  ;;  %v5472_v3 = vsub.f32 %v5401_v48, %v9474_v55 }
 0x2a4   : > { %v5497_v4 = vmul.f32 %v5465_v34, %v5465_v34  ;;  %v5498_v44 = vmul.f32 %v5466_v38, %v5466_v38  ;;  %v5499_v27 = vmul.f32 %v5467_v50, %v5467_v50  ;;  %v5500_v60 = vmul.f32 %v5468_v6, %v5468_v6 }
 0x2a5   : > { %v5501_v35 = vmul.f32 %v5469_v5, %v5469_v5  ;;  %v5502_v30 = vmul.f32 %v5470_v22, %v5470_v22  ;;  %v5473_v39 = vsub.f32 %v5402_v54, %v9474_v55  ;;  %v5503_v17 = vmul.f32 %v5471_v59, %v5471_v59 }
 0x2a6   : > { %v5529_v21 = vadd.f32 %v5498_v44, %v5497_v4  ;;  %v5474_v43 = vsub.f32 %v5403_v49, %v9474_v55  ;;  %v5504_v0 = vmul.f32 %v5472_v3, %v5472_v3  ;;  %v5475_v28 = vsub.f32 %v5404_v52, %v9474_v55 }
 0x2a7   : > { %v5505_v16 = vmul.f32 %v5473_v39, %v5473_v39  ;;  %v5476_v34 = vsub.f32 %v5405_v37, %v9474_v55  ;;  %v5477_v50 = vsub.f32 %v5406_v25, %v9474_v55  ;;  %v5478_v4 = vsub.f32 %v5407_v33, %v9474_v55 }
 0x2a8   : > { %v5530_v61 = vadd.f32 %v5529_v21, %v5499_v27  ;;  %v5506_v38 = vmul.f32 %v5474_v43, %v5474_v43  ;;  %v5507_v42 = vmul.f32 %v5475_v28, %v5475_v28  ;;  %v5479_v6 = vsub.f32 %v5408_v53, %v9474_v55 }
 0x2a9   : > { %v5508_v44 = vmul.f32 %v5476_v34, %v5476_v34  ;;  %v5509_v40 = vmul.f32 %v5477_v50, %v5477_v50  ;;  %v5480_v5 = vsub.f32 %v5409_v57, %v9474_v55  ;;  %v5510_v27 = vmul.f32 %v5478_v4, %v5478_v4 }
 0x2aa   : > { %v5531_v13 = vadd.f32 %v5530_v61, %v5500_v60  ;;  %v5481_v21 = vsub.f32 %v5410_v46, %v9474_v55  ;;  %v5511_v9 = vmul.f32 %v5479_v6, %v5479_v6  ;;  %v5482_v22 = vsub.f32 %v5411_v11, %v9474_v55 }
 0x2ab   : > { %v5512_v60 = vmul.f32 %v5480_v5, %v5480_v5  ;;  %v5483_v61 = vsub.f32 %v5412_v8, %v9474_v55  ;;  %v5484_v59 = vsub.f32 %v5413_v19, %v9474_v55  ;;  %v5486_v3 = vsub.f32 %v5415_v7, %v9474_v55 }
 0x2ac   : > { %v5532_v31 = vadd.f32 %v5531_v13, %v5501_v35  ;;  %v5513_v1 = vmul.f32 %v5481_v21, %v5481_v21  ;;  %v5514_v35 = vmul.f32 %v5482_v22, %v5482_v22  ;;  %v5485_v13 = vsub.f32 %v5414_v47, %v9474_v55 }
 0x2ad   : > { %v5515_v63 = vmul.f32 %v5483_v61, %v5483_v61  ;;  %v5488_v39 = vsub.f32 %v5417_v12, %v9474_v55  ;;  %v5490_v43 = vsub.f32 %v5419_v45, %v9474_v55  ;;  %v5492_v28 = vsub.f32 %v5421_v10, %v9474_v55 }
 0x2ae   : > { %v5533_v18 = vadd.f32 %v5532_v31, %v5502_v30  ;;  %v5516_v30 = vmul.f32 %v5484_v59, %v5484_v59  ;;  %v5487_v31 = vsub.f32 %v5416_v14, %v9474_v55  ;;  %v5517_v2 = vmul.f32 %v5485_v13, %v5485_v13 }
 0x2af   : > { %v5494_v34 = vsub.f32 %v5423_v20, %v9474_v55  ;;  %v5495_v26 = vsub.f32 %v5424_v15, %v9474_v55  ;;  %v5496_v50 = vsub.f32 %v5425_v41, %v9474_v55 }
 0x2b0   : > { %v5534_v58 = vadd.f32 %v5533_v18, %v5503_v17  ;;  %v5518_v17 = vmul.f32 %v5486_v3, %v5486_v3  ;;  %v5489_v18 = vsub.f32 %v5418_v32, %v9474_v55  ;;  %v5519_v24 = vmul.f32 %v5487_v31, %v5487_v31 }
 0x2b2   : > { %v5535_v48 = vadd.f32 %v5534_v58, %v5504_v0  ;;  %v5520_v0 = vmul.f32 %v5488_v39, %v5488_v39  ;;  %v5491_v58 = vsub.f32 %v5420_v62, %v9474_v55  ;;  %v5521_v23 = vmul.f32 %v5489_v18, %v5489_v18 }
 0x2b4   : > { %v5536_v54 = vadd.f32 %v5535_v48, %v5505_v16  ;;  %v5522_v16 = vmul.f32 %v5490_v43, %v5490_v43  ;;  %v5493_v48 = vsub.f32 %v5422_v36, %v9474_v55  ;;  %v5523_v29 = vmul.f32 %v5491_v58, %v5491_v58 }
 0x2b5   : > { %v5526_v36 = vmul.f32 %v5494_v34, %v5494_v34 }
 0x2b6   : > { %v5537_v49 = vadd.f32 %v5536_v54, %v5506_v38  ;;  %v5524_v38 = vmul.f32 %v5492_v28, %v5492_v28  ;;  %v5525_v10 = vmul.f32 %v5493_v48, %v5493_v48 }
 0x2b8   : > { %v5538_v52 = vadd.f32 %v5537_v49, %v5507_v42  ;;  %v5527_v49 = vmul.f32 %v5495_v26, %v5495_v26 }
 0x2ba   : > { %v5539_v37 = vadd.f32 %v5538_v52, %v5508_v44  ;;  %v5528_v44 = vmul.f32 %v5496_v50, %v5496_v50 }
 0x2bc   : > { %v5540_v25 = vadd.f32 %v5539_v37, %v5509_v40 }
 0x2be   : > { %v5541_v33 = vadd.f32 %v5540_v25, %v5510_v27 }
 0x2c0   : > { %v5542_v53 = vadd.f32 %v5541_v33, %v5511_v9 }
 0x2c2   : > { %v5543_v57 = vadd.f32 %v5542_v53, %v5512_v60 }
 0x2c4   : > { %v5544_v46 = vadd.f32 %v5543_v57, %v5513_v1 }
 0x2c6   : > { %v5545_v11 = vadd.f32 %v5544_v46, %v5514_v35 }
 0x2c8   : > { %v5546_v8 = vadd.f32 %v5545_v11, %v5515_v63 }
 0x2ca   : > { %v5547_v19 = vadd.f32 %v5546_v8, %v5516_v30 }
 0x2cc   : > { %v5548_v47 = vadd.f32 %v5547_v19, %v5517_v2 }
 0x2ce   : > { %v5549_v7 = vadd.f32 %v5548_v47, %v5518_v17 }
 0x2d0   : > { %v5550_v14 = vadd.f32 %v5549_v7, %v5519_v24 }
 0x2d2   : > { %v5551_v12 = vadd.f32 %v5550_v14, %v5520_v0 }
 0x2d4   : > { %v5552_v32 = vadd.f32 %v5551_v12, %v5521_v23 }
 0x2d6   : > { %v5553_v45 = vadd.f32 %v5552_v32, %v5522_v16 }
 0x2d8   : > { %v5554_v62 = vadd.f32 %v5553_v45, %v5523_v29 }
 0x2da   : > { %v5555_v54 = vadd.f32 %v5554_v62, %v5524_v38 }
 0x2dc   : > { %v5556_v42 = vadd.f32 %v5555_v54, %v5525_v10 }
 0x2de   : > { %v5557_v4 = vadd.f32 %v5556_v42, %v5526_v36 }
 0x2e0   : > { %v5558_v51 = vadd.f32 %v5557_v4, %v5527_v49 }
 0x2e2   : > { %v5559_v20 = vadd.f32 %v5558_v51, %v5528_v44 }
 0x2e4   : > { %v5560_v52 = vrot.slane %v5559_v20, 4 }
 0x2e6   : > { %v5561_v6 = vadd.f32 %v5560_v52, %v5559_v20 }
 0x2e8   : > { %v5562_v40 = vrot.slane %v5561_v6, 2 }
 0x2ea   : > { %v5563_v37 = vadd.f32 %v5562_v40, %v5561_v6 }
 0x2ec   : > { %v5564_v5 = vrot.slane %v5563_v37, 1 }
 0x2ee   : > { %v5565_v15 = vadd.f32 %v5564_v5, %v5563_v37 }
 0x2f0   : > { %v5567_v56 = vsel %vm571_vm6, %v9474_v55, %v5565_v15 }
 0x2f1   : > { %5712 = vst [vmem:[%s235_s12] sm:$0x3] %v5567_v56 }
 0x2f2 PF: > { %s16_s18 = sadd.s32 1, %s7205_s18  }
 0x2f3   : > { %p13_p4 = scmp.ge.s32.totalorder %s16_s18, 4  }
 0x2f5   :  { %15 = sbr.rel (!%p13_p4) target bundleno = 1 (0x1), region = 81 }

</bundles_post_ra>
